<compile_context>
chip_gen: v6e
topology: v6e:2x2x1
jax: 0.10.0
libtpu: 0.0.40
codegen_flags: <defaults>
</compile_context>

<pallas_src>
import functools
import math

import jax
import jax.numpy as jnp
from jax.experimental import pallas as pl
from jax.experimental.pallas import tpu as pltpu


# ----------------------------- in-kernel math -------------------------------

_A1, _A2, _A3, _A4, _A5 = 0.254829592, -0.284496736, 1.421413741, -1.453152027, 1.061405429
_P = 0.3275911
_INV_SQRT2 = 0.7071067811865476


def _erf_approx(x):
    sgn = jnp.where(x < 0.0, -1.0, 1.0)
    ax = jnp.abs(x)
    d = 1.0 + _P * ax
    r = pl.reciprocal(d, approx=True)      # EUP slot (otherwise mostly idle)
    t = r * (2.0 - d * r)                  # one Newton step -> ~f32 accuracy
    poly = ((((_A5 * t + _A4) * t + _A3) * t + _A2) * t + _A1) * t
    return sgn * (1.0 - poly * jnp.exp(-ax * ax))


def _gelu(x):
    # exact (erf-based) GELU, same as torch.nn.GELU() default
    return 0.5 * x * (1.0 + _erf_approx(x * _INV_SQRT2))


# ------------------------------- the kernel ---------------------------------

def cmblock_kernel(xp_ref, xr_ref, ctab_ref, w1tab_ref, o_ref,
                   *, Wp, C, hidden, KL, KS, G, L):
    # parameter-table row indices (all static)
    i_ws = KL * KL
    i_bl = i_ws + KS * KS
    i_bs, i_sl, i_ss, i_b2 = i_bl + 1, i_bl + 2, i_bl + 3, i_bl + 4
    i_w2 = i_bl + 5

    n_chunks = L // 128
    off = (KL - KS) // 2               # small kernel centred inside the large one

    for g in range(G):                 # images grouped into this grid step
        xp = xp_ref[g]                 # (C, Lin) padded, row-major flattened input

        # depthwise 7x7 and centred 3x3, accumulated per aligned 128-lane chunk
        acc_l = [jnp.zeros((C, 128), jnp.float32) for _ in range(n_chunks)]
        acc_s = [jnp.zeros((C, 128), jnp.float32) for _ in range(n_chunks)]
        for di in range(KL):
            for dj in range(KL):
                t0 = di * Wp + dj
                win = xp[:, t0:t0 + L]                 # one shifted window (shared)
                wl_t = ctab_ref[di * KL + dj]          # (C,128) pre-broadcast weight
                in_small = (off <= di < off + KS) and (off <= dj < off + KS)
                if in_small:
                    ws_t = ctab_ref[i_ws + (di - off) * KS + (dj - off)]
                for q in range(n_chunks):
                    wq = win[:, q * 128:(q + 1) * 128]  # free vreg selection
                    acc_l[q] = acc_l[q] + wq * wl_t
                    if in_small:
                        acc_s[q] = acc_s[q] + wq * ws_t

        # per-channel constants (pre-broadcast, hoisted out of the chunk loop)
        bl = ctab_ref[i_bl]
        bs = ctab_ref[i_bs]
        sl = ctab_ref[i_sl]
        ss = ctab_ref[i_ss]
        b2 = ctab_ref[i_b2]
        b1 = w1tab_ref[C]

        for q in range(n_chunks):
            base = q * 128
            # depthwise conv -> bias -> GELU -> folded-BN scale
            # (BN shifts shl+shs are folded into cv1's bias on the host)
            y = _gelu(acc_l[q] + bl) * sl + _gelu(acc_s[q] + bs) * ss   # (C,128)

            # cv1: 1x1 conv as unrolled VPU broadcast-MAC (contraction depth C=8)
            h1 = b1                                                     # (hidden,128)
            for c in range(C):
                h1 = h1 + w1tab_ref[c] * jnp.broadcast_to(y[c:c + 1, :],
                                                          (hidden, 128))
            h1 = _gelu(h1)

            # cv2 (+ folded BN): 1x1 conv as VPU broadcast-MAC (depth hidden=16)
            h2 = b2                                                     # (C,128)
            for d in range(hidden):
                h2 = h2 + ctab_ref[i_w2 + d] * jnp.broadcast_to(h1[d:d + 1, :],
                                                                (C, 128))

            # residual from the lane-aligned pre-laid identity input
            o_ref[g, :, base:base + 128] = h2 + xr_ref[g, :, base:base + 128]


# ----------------------------- host-side helpers -----------------------------

def _pick_images_per_step(n):
    # fewest grid steps (each costs ~0.35us) while keeping >= 2 parallel steps
    # so both v7x TensorCores get work (v5e / v6e have a single TC).
    best = 1
    for g in range(1, n + 1):
        if n % g == 0 and n // g >= 2:
            best = g
    return best


def _build_tables(params, C, hidden, KL, KS):
    LANE = 128
    wl = params["wl"].reshape(C, KL * KL).T                  # (KL*KL, C)
    ws = params["ws"].reshape(C, KS * KS).T                  # (KS*KS, C)
    b2eff = params["b2"] * params["s2"] + params["sh2"]      # cv2 BN folded
    w2eff = params["w2"] * params["s2"][None, :]             # (hidden, C)
    rows = jnp.concatenate([
        wl, ws,
        params["bl"][None, :], params["bs"][None, :],
        params["sl"][None, :], params["ss"][None, :],
        b2eff[None, :], w2eff], axis=0)                      # (KL^2+KS^2+5+hidden, C)
    ctab = jnp.broadcast_to(rows[:, :, None], rows.shape + (LANE,))

    # cv1: bias gets the two depthwise-path BN shifts folded in
    b1eff = params["b1"] + (params["shl"] + params["shs"]) @ params["w1"]
    w1rows = jnp.concatenate([params["w1"], b1eff[None, :]], axis=0)   # (C+1, hidden)
    w1tab = jnp.broadcast_to(w1rows[:, :, None], w1rows.shape + (LANE,))
    return ctab.astype(jnp.float32), w1tab.astype(jnp.float32)


# ------------------------------- wrapper -------------------------------------

def cmblock_forward(x_nchw, params, *, KL, KS):
    assert KL % 2 == 1 and KS % 2 == 1 and KS <= KL
    N, C, H, W = x_nchw.shape
    hidden = params["w1"].shape[1]
    pad = (KL - 1) // 2

    # row-padded width, rounded so H*Wp is a multiple of 128 (lane-dense stores)
    step = 128 // math.gcd(H, 128)
    Wp = -(-(W + 2 * pad) // step) * step
    L = H * Wp
    assert L % 128 == 0, "H*Wp must be a multiple of 128 for unmasked stores"
    n_rows = H + 2 * pad + 1            # extra zero row keeps tap slices in-bounds
    Lin = -(-(n_rows * Wp) // 128) * 128
    assert (KL - 1) * Wp + (KL - 1) + L <= Lin

    # spatially padded, row-major flattened input (no transposes anywhere)
    xpad = jnp.pad(x_nchw, ((0, 0), (0, 0),
                            (pad, n_rows - H - pad),
                            (pad, Wp - W - pad)))
    xp = xpad.reshape(N, C, n_rows * Wp)
    xp = jnp.pad(xp, ((0, 0), (0, 0), (0, Lin - n_rows * Wp)))
    # residual, pre-laid at row stride Wp -> aligned add in the kernel epilogue
    xr = jnp.pad(x_nchw, ((0, 0), (0, 0), (0, 0), (0, Wp - W))).reshape(N, C, L)

    ctab, w1tab = _build_tables(params, C, hidden, KL, KS)
    NT = ctab.shape[0]

    G = _pick_images_per_step(N)
    grid = (N // G,)

    kern = functools.partial(cmblock_kernel, Wp=Wp, C=C, hidden=hidden,
                             KL=KL, KS=KS, G=G, L=L)
    cost = pl.CostEstimate(
        flops=int(N * (2 * (KL * KL + KS * KS) * C * H * W
                       + 2 * 2 * C * hidden * H * W)),
        transcendentals=int(N * (2 * C + hidden) * H * W),
        bytes_accessed=int(4 * (xp.size + xr.size + ctab.size + w1tab.size
                                + N * C * L)),
    )

    out_flat = pl.pallas_call(
        kern,
        out_shape=jax.ShapeDtypeStruct((N, C, L), jnp.float32),
        grid=grid,
        in_specs=[
            pl.BlockSpec((G, C, Lin), lambda n: (n, 0, 0)),   # padded input
            pl.BlockSpec((G, C, L), lambda n: (n, 0, 0)),     # aligned residual
            pl.BlockSpec((NT, C, 128), lambda n: (0, 0, 0)),  # consolidated table
            pl.BlockSpec((C + 1, hidden, 128), lambda n: (0, 0, 0)),
        ],
        out_specs=pl.BlockSpec((G, C, L), lambda n: (n, 0, 0)),
        compiler_params=pltpu.CompilerParams(
            dimension_semantics=("parallel",),
            vmem_limit_bytes=32 * 1024 * 1024),
        cost_estimate=cost,
    )(xp, xr, ctab, w1tab)

    # drop the right-pad garbage columns; result is already NCHW
    return out_flat.reshape(N, C, H, Wp)[:, :, :, :W]


# --------------------------- deterministic params ----------------------------

def _bn_fold(key, C, eps=1e-5):
    k1, k2, k3, k4 = jax.random.split(key, 4)
    gamma = 1.0 + 0.1 * jax.random.normal(k1, (C,))
    beta = 0.1 * jax.random.normal(k2, (C,))
    mean = 0.1 * jax.random.normal(k3, (C,))
    var = jnp.abs(jax.random.normal(k4, (C,))) + 0.5
    scale = gamma / jnp.sqrt(var + eps)
    shift = beta - mean * scale
    return scale, shift


def init_params(key, C, hidden, KL, KS):
    ks = jax.random.split(key, 12)
    sl, shl = _bn_fold(ks[0], C)
    ss, shs = _bn_fold(ks[1], C)
    s2, sh2 = _bn_fold(ks[2], C)
    p = dict(
        wl=0.1 * jax.random.normal(ks[3], (C, KL, KL)),
        bl=0.1 * jax.random.normal(ks[4], (C,)),
        ws=0.1 * jax.random.normal(ks[5], (C, KS, KS)),
        bs=0.1 * jax.random.normal(ks[6], (C,)),
        w1=0.1 * jax.random.normal(ks[7], (C, hidden)),
        b1=0.1 * jax.random.normal(ks[8], (hidden,)),
        w2=0.1 * jax.random.normal(ks[9], (hidden, C)),
        b2=0.1 * jax.random.normal(ks[10], (C,)),
        sl=sl, shl=shl, ss=ss, shs=shs, s2=s2, sh2=sh2,
    )
    return {k: v.astype(jnp.float32) for k, v in p.items()}


# ------------------------------ pure-JAX reference ---------------------------

def reference(x, params, KL, KS):
    N, C, H, W = x.shape

    def dwconv(inp, w):
        return jax.lax.conv_general_dilated(
            inp, w[:, None, :, :], (1, 1), "SAME",
            dimension_numbers=("NCHW", "OIHW", "NCHW"),
            feature_group_count=C)

    def per_ch(v):
        return v[None, :, None, None]

    yl = jax.nn.gelu(dwconv(x, params["wl"]) + per_ch(params["bl"]), approximate=False)
    yl = yl * per_ch(params["sl"]) + per_ch(params["shl"])
    ys = jax.nn.gelu(dwconv(x, params["ws"]) + per_ch(params["bs"]), approximate=False)
    ys = ys * per_ch(params["ss"]) + per_ch(params["shs"])
    y = yl + ys
    h1 = jax.nn.gelu(jnp.einsum("nchw,cd->ndhw", y, params["w1"]) + per_ch(params["b1"]),
                     approximate=False)
    h2 = jnp.einsum("ndhw,dc->nchw", h1, params["w2"]) + per_ch(params["b2"])
    h2 = h2 * per_ch(params["s2"]) + per_ch(params["sh2"])
    return h2 + x


# ----------------------------------- main ------------------------------------

if __name__ == "__main__":
    key = jax.random.PRNGKey(0)
    N, C, H, W = 2, 8, 16, 16          # in_channels == out_channels == 8
    KL, KS = 7, 3                      # large_kernel, small_kernel
    expansion = 2
    hidden = C * expansion

    kx, kp, kx4 = jax.random.split(key, 3)
    x = jax.random.normal(kx, (N, C, H, W), jnp.float32)
    params = init_params(kp, C, hidden, KL, KS)

    out = cmblock_forward(x, params, KL=KL, KS=KS)
    out = jax.block_until_ready(out)

    ref = reference(x, params, KL, KS)
    assert out.shape == (N, C, H, W)
    err = float(jnp.max(jnp.abs(out - ref)))
    assert jnp.allclose(out, ref, atol=1e-3, rtol=1e-3), err

    # also exercise the multi-image-per-grid-step path (G=2, two parallel steps)
    x4 = jax.random.normal(kx4, (4, C, H, W), jnp.float32)
    out4 = jax.block_until_ready(cmblock_forward(x4, params, KL=KL, KS=KS))
    ref4 = reference(x4, params, KL, KS)
    err4 = float(jnp.max(jnp.abs(out4 - ref4)))
    assert jnp.allclose(out4, ref4, atol=1e-3, rtol=1e-3), err4

    print("KERNEL_OK")
</pallas_src>

<mosaic_0001>
module attributes {stable_mosaic.version = 11 : i64} {
  func.func @cmblock_kernel(%arg0: i32, %arg1: memref<1x8x640xf32, #tpu.memory_space<vmem>>, %arg2: memref<1x8x384xf32, #tpu.memory_space<vmem>>, %arg3: memref<79x8x128xf32, #tpu.memory_space<vmem>>, %arg4: memref<9x16x128xf32, #tpu.memory_space<vmem>>, %arg5: memref<1x8x384xf32, #tpu.memory_space<vmem>>) attributes {dimension_semantics = [#tpu.dimension_semantics<parallel>], iteration_bounds = array<i64: 2>, scalar_prefetch = 0 : i64, scratch_operands = 0 : i64, tpu.core_type = #tpu.core_type<tc>, window_params = [{transform_indices = @transform_0, window_bounds = array<i64: 1, 8, 640>}, {transform_indices = @transform_1, window_bounds = array<i64: 1, 8, 384>}, {pipeline_mode = #tpu.pipeline_mode<synchronous>, transform_indices = @transform_2, window_bounds = array<i64: 79, 8, 128>}, {pipeline_mode = #tpu.pipeline_mode<synchronous>, transform_indices = @transform_3, window_bounds = array<i64: 9, 16, 128>}, {transform_indices = @transform_4, window_bounds = array<i64: 1, 8, 384>}]} {
    %c0 = arith.constant 0 : index
    %c0_0 = arith.constant 0 : index
    %c0_1 = arith.constant 0 : index
    %0 = vector.load %arg1[%c0, %c0_0, %c0_1] : memref<1x8x640xf32, #tpu.memory_space<vmem>>, vector<1x8x640xf32>
    %1 = vector.shape_cast %0 : vector<1x8x640xf32> to vector<8x640xf32>
    %cst = arith.constant 0.000000e+00 : f32
    %2 = vector.broadcast %cst : f32 to vector<8x128xf32>
    %cst_2 = arith.constant 0.000000e+00 : f32
    %3 = vector.broadcast %cst_2 : f32 to vector<8x128xf32>
    %cst_3 = arith.constant 0.000000e+00 : f32
    %4 = vector.broadcast %cst_3 : f32 to vector<8x128xf32>
    %cst_4 = arith.constant 0.000000e+00 : f32
    %5 = vector.broadcast %cst_4 : f32 to vector<8x128xf32>
    %cst_5 = arith.constant 0.000000e+00 : f32
    %6 = vector.broadcast %cst_5 : f32 to vector<8x128xf32>
    %cst_6 = arith.constant 0.000000e+00 : f32
    %7 = vector.broadcast %cst_6 : f32 to vector<8x128xf32>
    %8 = vector.extract_strided_slice %1 {offsets = [0, 0], sizes = [8, 384], strides = [1, 1]} : vector<8x640xf32> to vector<8x384xf32>
    %c0_7 = arith.constant 0 : index
    %c0_8 = arith.constant 0 : index
    %c0_9 = arith.constant 0 : index
    %9 = vector.load %arg3[%c0_7, %c0_8, %c0_9] : memref<79x8x128xf32, #tpu.memory_space<vmem>>, vector<1x8x128xf32>
    %10 = vector.shape_cast %9 : vector<1x8x128xf32> to vector<8x128xf32>
    %11 = vector.extract_strided_slice %8 {offsets = [0, 0], sizes = [8, 128], strides = [1, 1]} : vector<8x384xf32> to vector<8x128xf32>
    %12 = arith.mulf %11, %10 : vector<8x128xf32>
    %13 = arith.addf %2, %12 : vector<8x128xf32>
    %14 = vector.extract_strided_slice %8 {offsets = [0, 128], sizes = [8, 128], strides = [1, 1]} : vector<8x384xf32> to vector<8x128xf32>
    %15 = arith.mulf %14, %10 : vector<8x128xf32>
    %16 = arith.addf %3, %15 : vector<8x128xf32>
    %17 = vector.extract_strided_slice %8 {offsets = [0, 256], sizes = [8, 128], strides = [1, 1]} : vector<8x384xf32> to vector<8x128xf32>
    %18 = arith.mulf %17, %10 : vector<8x128xf32>
    %19 = arith.addf %4, %18 : vector<8x128xf32>
    %20 = vector.extract_strided_slice %1 {offsets = [0, 1], sizes = [8, 384], strides = [1, 1]} : vector<8x640xf32> to vector<8x384xf32>
    %c1 = arith.constant 1 : index
    %c0_10 = arith.constant 0 : index
    %c0_11 = arith.constant 0 : index
    %21 = vector.load %arg3[%c1, %c0_10, %c0_11] : memref<79x8x128xf32, #tpu.memory_space<vmem>>, vector<1x8x128xf32>
    %22 = vector.shape_cast %21 : vector<1x8x128xf32> to vector<8x128xf32>
    %23 = vector.extract_strided_slice %20 {offsets = [0, 0], sizes = [8, 128], strides = [1, 1]} : vector<8x384xf32> to vector<8x128xf32>
    %24 = arith.mulf %23, %22 : vector<8x128xf32>
    %25 = arith.addf %13, %24 : vector<8x128xf32>
    %26 = vector.extract_strided_slice %20 {offsets = [0, 128], sizes = [8, 128], strides = [1, 1]} : vector<8x384xf32> to vector<8x128xf32>
    %27 = arith.mulf %26, %22 : vector<8x128xf32>
    %28 = arith.addf %16, %27 : vector<8x128xf32>
    %29 = vector.extract_strided_slice %20 {offsets = [0, 256], sizes = [8, 128], strides = [1, 1]} : vector<8x384xf32> to vector<8x128xf32>
    %30 = arith.mulf %29, %22 : vector<8x128xf32>
    %31 = arith.addf %19, %30 : vector<8x128xf32>
    %32 = vector.extract_strided_slice %1 {offsets = [0, 2], sizes = [8, 384], strides = [1, 1]} : vector<8x640xf32> to vector<8x384xf32>
    %c2 = arith.constant 2 : index
    %c0_12 = arith.constant 0 : index
    %c0_13 = arith.constant 0 : index
    %33 = vector.load %arg3[%c2, %c0_12, %c0_13] : memref<79x8x128xf32, #tpu.memory_space<vmem>>, vector<1x8x128xf32>
    %34 = vector.shape_cast %33 : vector<1x8x128xf32> to vector<8x128xf32>
    %35 = vector.extract_strided_slice %32 {offsets = [0, 0], sizes = [8, 128], strides = [1, 1]} : vector<8x384xf32> to vector<8x128xf32>
    %36 = arith.mulf %35, %34 : vector<8x128xf32>
    %37 = arith.addf %25, %36 : vector<8x128xf32>
    %38 = vector.extract_strided_slice %32 {offsets = [0, 128], sizes = [8, 128], strides = [1, 1]} : vector<8x384xf32> to vector<8x128xf32>
    %39 = arith.mulf %38, %34 : vector<8x128xf32>
    %40 = arith.addf %28, %39 : vector<8x128xf32>
    %41 = vector.extract_strided_slice %32 {offsets = [0, 256], sizes = [8, 128], strides = [1, 1]} : vector<8x384xf32> to vector<8x128xf32>
    %42 = arith.mulf %41, %34 : vector<8x128xf32>
    %43 = arith.addf %31, %42 : vector<8x128xf32>
    %44 = vector.extract_strided_slice %1 {offsets = [0, 3], sizes = [8, 384], strides = [1, 1]} : vector<8x640xf32> to vector<8x384xf32>
    %c3 = arith.constant 3 : index
    %c0_14 = arith.constant 0 : index
    %c0_15 = arith.constant 0 : index
    %45 = vector.load %arg3[%c3, %c0_14, %c0_15] : memref<79x8x128xf32, #tpu.memory_space<vmem>>, vector<1x8x128xf32>
    %46 = vector.shape_cast %45 : vector<1x8x128xf32> to vector<8x128xf32>
    %47 = vector.extract_strided_slice %44 {offsets = [0, 0], sizes = [8, 128], strides = [1, 1]} : vector<8x384xf32> to vector<8x128xf32>
    %48 = arith.mulf %47, %46 : vector<8x128xf32>
    %49 = arith.addf %37, %48 : vector<8x128xf32>
    %50 = vector.extract_strided_slice %44 {offsets = [0, 128], sizes = [8, 128], strides = [1, 1]} : vector<8x384xf32> to vector<8x128xf32>
    %51 = arith.mulf %50, %46 : vector<8x128xf32>
    %52 = arith.addf %40, %51 : vector<8x128xf32>
    %53 = vector.extract_strided_slice %44 {offsets = [0, 256], sizes = [8, 128], strides = [1, 1]} : vector<8x384xf32> to vector<8x128xf32>
    %54 = arith.mulf %53, %46 : vector<8x128xf32>
    %55 = arith.addf %43, %54 : vector<8x128xf32>
    %56 = vector.extract_strided_slice %1 {offsets = [0, 4], sizes = [8, 384], strides = [1, 1]} : vector<8x640xf32> to vector<8x384xf32>
    %c4 = arith.constant 4 : index
    %c0_16 = arith.constant 0 : index
    %c0_17 = arith.constant 0 : index
    %57 = vector.load %arg3[%c4, %c0_16, %c0_17] : memref<79x8x128xf32, #tpu.memory_space<vmem>>, vector<1x8x128xf32>
    %58 = vector.shape_cast %57 : vector<1x8x128xf32> to vector<8x128xf32>
    %59 = vector.extract_strided_slice %56 {offsets = [0, 0], sizes = [8, 128], strides = [1, 1]} : vector<8x384xf32> to vector<8x128xf32>
    %60 = arith.mulf %59, %58 : vector<8x128xf32>
    %61 = arith.addf %49, %60 : vector<8x128xf32>
    %62 = vector.extract_strided_slice %56 {offsets = [0, 128], sizes = [8, 128], strides = [1, 1]} : vector<8x384xf32> to vector<8x128xf32>
    %63 = arith.mulf %62, %58 : vector<8x128xf32>
    %64 = arith.addf %52, %63 : vector<8x128xf32>
    %65 = vector.extract_strided_slice %56 {offsets = [0, 256], sizes = [8, 128], strides = [1, 1]} : vector<8x384xf32> to vector<8x128xf32>
    %66 = arith.mulf %65, %58 : vector<8x128xf32>
    %67 = arith.addf %55, %66 : vector<8x128xf32>
    %68 = vector.extract_strided_slice %1 {offsets = [0, 5], sizes = [8, 384], strides = [1, 1]} : vector<8x640xf32> to vector<8x384xf32>
    %c5 = arith.constant 5 : index
    %c0_18 = arith.constant 0 : index
    %c0_19 = arith.constant 0 : index
    %69 = vector.load %arg3[%c5, %c0_18, %c0_19] : memref<79x8x128xf32, #tpu.memory_space<vmem>>, vector<1x8x128xf32>
    %70 = vector.shape_cast %69 : vector<1x8x128xf32> to vector<8x128xf32>
    %71 = vector.extract_strided_slice %68 {offsets = [0, 0], sizes = [8, 128], strides = [1, 1]} : vector<8x384xf32> to vector<8x128xf32>
    %72 = arith.mulf %71, %70 : vector<8x128xf32>
    %73 = arith.addf %61, %72 : vector<8x128xf32>
    %74 = vector.extract_strided_slice %68 {offsets = [0, 128], sizes = [8, 128], strides = [1, 1]} : vector<8x384xf32> to vector<8x128xf32>
    %75 = arith.mulf %74, %70 : vector<8x128xf32>
    %76 = arith.addf %64, %75 : vector<8x128xf32>
    %77 = vector.extract_strided_slice %68 {offsets = [0, 256], sizes = [8, 128], strides = [1, 1]} : vector<8x384xf32> to vector<8x128xf32>
    %78 = arith.mulf %77, %70 : vector<8x128xf32>
    %79 = arith.addf %67, %78 : vector<8x128xf32>
    %80 = vector.extract_strided_slice %1 {offsets = [0, 6], sizes = [8, 384], strides = [1, 1]} : vector<8x640xf32> to vector<8x384xf32>
    %c6 = arith.constant 6 : index
    %c0_20 = arith.constant 0 : index
    %c0_21 = arith.constant 0 : index
    %81 = vector.load %arg3[%c6, %c0_20, %c0_21] : memref<79x8x128xf32, #tpu.memory_space<vmem>>, vector<1x8x128xf32>
    %82 = vector.shape_cast %81 : vector<1x8x128xf32> to vector<8x128xf32>
    %83 = vector.extract_strided_slice %80 {offsets = [0, 0], sizes = [8, 128], strides = [1, 1]} : vector<8x384xf32> to vector<8x128xf32>
    %84 = arith.mulf %83, %82 : vector<8x128xf32>
    %85 = arith.addf %73, %84 : vector<8x128xf32>
    %86 = vector.extract_strided_slice %80 {offsets = [0, 128], sizes = [8, 128], strides = [1, 1]} : vector<8x384xf32> to vector<8x128xf32>
    %87 = arith.mulf %86, %82 : vector<8x128xf32>
    %88 = arith.addf %76, %87 : vector<8x128xf32>
    %89 = vector.extract_strided_slice %80 {offsets = [0, 256], sizes = [8, 128], strides = [1, 1]} : vector<8x384xf32> to vector<8x128xf32>
    %90 = arith.mulf %89, %82 : vector<8x128xf32>
    %91 = arith.addf %79, %90 : vector<8x128xf32>
    %92 = vector.extract_strided_slice %1 {offsets = [0, 24], sizes = [8, 384], strides = [1, 1]} : vector<8x640xf32> to vector<8x384xf32>
    %c7 = arith.constant 7 : index
    %c0_22 = arith.constant 0 : index
    %c0_23 = arith.constant 0 : index
    %93 = vector.load %arg3[%c7, %c0_22, %c0_23] : memref<79x8x128xf32, #tpu.memory_space<vmem>>, vector<1x8x128xf32>
    %94 = vector.shape_cast %93 : vector<1x8x128xf32> to vector<8x128xf32>
    %95 = vector.extract_strided_slice %92 {offsets = [0, 0], sizes = [8, 128], strides = [1, 1]} : vector<8x384xf32> to vector<8x128xf32>
    %96 = arith.mulf %95, %94 : vector<8x128xf32>
    %97 = arith.addf %85, %96 : vector<8x128xf32>
    %98 = vector.extract_strided_slice %92 {offsets = [0, 128], sizes = [8, 128], strides = [1, 1]} : vector<8x384xf32> to vector<8x128xf32>
    %99 = arith.mulf %98, %94 : vector<8x128xf32>
    %100 = arith.addf %88, %99 : vector<8x128xf32>
    %101 = vector.extract_strided_slice %92 {offsets = [0, 256], sizes = [8, 128], strides = [1, 1]} : vector<8x384xf32> to vector<8x128xf32>
    %102 = arith.mulf %101, %94 : vector<8x128xf32>
    %103 = arith.addf %91, %102 : vector<8x128xf32>
    %104 = vector.extract_strided_slice %1 {offsets = [0, 25], sizes = [8, 384], strides = [1, 1]} : vector<8x640xf32> to vector<8x384xf32>
    %c8 = arith.constant 8 : index
    %c0_24 = arith.constant 0 : index
    %c0_25 = arith.constant 0 : index
    %105 = vector.load %arg3[%c8, %c0_24, %c0_25] : memref<79x8x128xf32, #tpu.memory_space<vmem>>, vector<1x8x128xf32>
    %106 = vector.shape_cast %105 : vector<1x8x128xf32> to vector<8x128xf32>
    %107 = vector.extract_strided_slice %104 {offsets = [0, 0], sizes = [8, 128], strides = [1, 1]} : vector<8x384xf32> to vector<8x128xf32>
    %108 = arith.mulf %107, %106 : vector<8x128xf32>
    %109 = arith.addf %97, %108 : vector<8x128xf32>
    %110 = vector.extract_strided_slice %104 {offsets = [0, 128], sizes = [8, 128], strides = [1, 1]} : vector<8x384xf32> to vector<8x128xf32>
    %111 = arith.mulf %110, %106 : vector<8x128xf32>
    %112 = arith.addf %100, %111 : vector<8x128xf32>
    %113 = vector.extract_strided_slice %104 {offsets = [0, 256], sizes = [8, 128], strides = [1, 1]} : vector<8x384xf32> to vector<8x128xf32>
    %114 = arith.mulf %113, %106 : vector<8x128xf32>
    %115 = arith.addf %103, %114 : vector<8x128xf32>
    %116 = vector.extract_strided_slice %1 {offsets = [0, 26], sizes = [8, 384], strides = [1, 1]} : vector<8x640xf32> to vector<8x384xf32>
    %c9 = arith.constant 9 : index
    %c0_26 = arith.constant 0 : index
    %c0_27 = arith.constant 0 : index
    %117 = vector.load %arg3[%c9, %c0_26, %c0_27] : memref<79x8x128xf32, #tpu.memory_space<vmem>>, vector<1x8x128xf32>
    %118 = vector.shape_cast %117 : vector<1x8x128xf32> to vector<8x128xf32>
    %119 = vector.extract_strided_slice %116 {offsets = [0, 0], sizes = [8, 128], strides = [1, 1]} : vector<8x384xf32> to vector<8x128xf32>
    %120 = arith.mulf %119, %118 : vector<8x128xf32>
    %121 = arith.addf %109, %120 : vector<8x128xf32>
    %122 = vector.extract_strided_slice %116 {offsets = [0, 128], sizes = [8, 128], strides = [1, 1]} : vector<8x384xf32> to vector<8x128xf32>
    %123 = arith.mulf %122, %118 : vector<8x128xf32>
    %124 = arith.addf %112, %123 : vector<8x128xf32>
    %125 = vector.extract_strided_slice %116 {offsets = [0, 256], sizes = [8, 128], strides = [1, 1]} : vector<8x384xf32> to vector<8x128xf32>
    %126 = arith.mulf %125, %118 : vector<8x128xf32>
    %127 = arith.addf %115, %126 : vector<8x128xf32>
    %128 = vector.extract_strided_slice %1 {offsets = [0, 27], sizes = [8, 384], strides = [1, 1]} : vector<8x640xf32> to vector<8x384xf32>
    %c10 = arith.constant 10 : index
    %c0_28 = arith.constant 0 : index
    %c0_29 = arith.constant 0 : index
    %129 = vector.load %arg3[%c10, %c0_28, %c0_29] : memref<79x8x128xf32, #tpu.memory_space<vmem>>, vector<1x8x128xf32>
    %130 = vector.shape_cast %129 : vector<1x8x128xf32> to vector<8x128xf32>
    %131 = vector.extract_strided_slice %128 {offsets = [0, 0], sizes = [8, 128], strides = [1, 1]} : vector<8x384xf32> to vector<8x128xf32>
    %132 = arith.mulf %131, %130 : vector<8x128xf32>
    %133 = arith.addf %121, %132 : vector<8x128xf32>
    %134 = vector.extract_strided_slice %128 {offsets = [0, 128], sizes = [8, 128], strides = [1, 1]} : vector<8x384xf32> to vector<8x128xf32>
    %135 = arith.mulf %134, %130 : vector<8x128xf32>
    %136 = arith.addf %124, %135 : vector<8x128xf32>
    %137 = vector.extract_strided_slice %128 {offsets = [0, 256], sizes = [8, 128], strides = [1, 1]} : vector<8x384xf32> to vector<8x128xf32>
    %138 = arith.mulf %137, %130 : vector<8x128xf32>
    %139 = arith.addf %127, %138 : vector<8x128xf32>
    %140 = vector.extract_strided_slice %1 {offsets = [0, 28], sizes = [8, 384], strides = [1, 1]} : vector<8x640xf32> to vector<8x384xf32>
    %c11 = arith.constant 11 : index
    %c0_30 = arith.constant 0 : index
    %c0_31 = arith.constant 0 : index
    %141 = vector.load %arg3[%c11, %c0_30, %c0_31] : memref<79x8x128xf32, #tpu.memory_space<vmem>>, vector<1x8x128xf32>
    %142 = vector.shape_cast %141 : vector<1x8x128xf32> to vector<8x128xf32>
    %143 = vector.extract_strided_slice %140 {offsets = [0, 0], sizes = [8, 128], strides = [1, 1]} : vector<8x384xf32> to vector<8x128xf32>
    %144 = arith.mulf %143, %142 : vector<8x128xf32>
    %145 = arith.addf %133, %144 : vector<8x128xf32>
    %146 = vector.extract_strided_slice %140 {offsets = [0, 128], sizes = [8, 128], strides = [1, 1]} : vector<8x384xf32> to vector<8x128xf32>
    %147 = arith.mulf %146, %142 : vector<8x128xf32>
    %148 = arith.addf %136, %147 : vector<8x128xf32>
    %149 = vector.extract_strided_slice %140 {offsets = [0, 256], sizes = [8, 128], strides = [1, 1]} : vector<8x384xf32> to vector<8x128xf32>
    %150 = arith.mulf %149, %142 : vector<8x128xf32>
    %151 = arith.addf %139, %150 : vector<8x128xf32>
    %152 = vector.extract_strided_slice %1 {offsets = [0, 29], sizes = [8, 384], strides = [1, 1]} : vector<8x640xf32> to vector<8x384xf32>
    %c12 = arith.constant 12 : index
    %c0_32 = arith.constant 0 : index
    %c0_33 = arith.constant 0 : index
    %153 = vector.load %arg3[%c12, %c0_32, %c0_33] : memref<79x8x128xf32, #tpu.memory_space<vmem>>, vector<1x8x128xf32>
    %154 = vector.shape_cast %153 : vector<1x8x128xf32> to vector<8x128xf32>
    %155 = vector.extract_strided_slice %152 {offsets = [0, 0], sizes = [8, 128], strides = [1, 1]} : vector<8x384xf32> to vector<8x128xf32>
    %156 = arith.mulf %155, %154 : vector<8x128xf32>
    %157 = arith.addf %145, %156 : vector<8x128xf32>
    %158 = vector.extract_strided_slice %152 {offsets = [0, 128], sizes = [8, 128], strides = [1, 1]} : vector<8x384xf32> to vector<8x128xf32>
    %159 = arith.mulf %158, %154 : vector<8x128xf32>
    %160 = arith.addf %148, %159 : vector<8x128xf32>
    %161 = vector.extract_strided_slice %152 {offsets = [0, 256], sizes = [8, 128], strides = [1, 1]} : vector<8x384xf32> to vector<8x128xf32>
    %162 = arith.mulf %161, %154 : vector<8x128xf32>
    %163 = arith.addf %151, %162 : vector<8x128xf32>
    %164 = vector.extract_strided_slice %1 {offsets = [0, 30], sizes = [8, 384], strides = [1, 1]} : vector<8x640xf32> to vector<8x384xf32>
    %c13 = arith.constant 13 : index
    %c0_34 = arith.constant 0 : index
    %c0_35 = arith.constant 0 : index
    %165 = vector.load %arg3[%c13, %c0_34, %c0_35] : memref<79x8x128xf32, #tpu.memory_space<vmem>>, vector<1x8x128xf32>
    %166 = vector.shape_cast %165 : vector<1x8x128xf32> to vector<8x128xf32>
    %167 = vector.extract_strided_slice %164 {offsets = [0, 0], sizes = [8, 128], strides = [1, 1]} : vector<8x384xf32> to vector<8x128xf32>
    %168 = arith.mulf %167, %166 : vector<8x128xf32>
    %169 = arith.addf %157, %168 : vector<8x128xf32>
    %170 = vector.extract_strided_slice %164 {offsets = [0, 128], sizes = [8, 128], strides = [1, 1]} : vector<8x384xf32> to vector<8x128xf32>
    %171 = arith.mulf %170, %166 : vector<8x128xf32>
    %172 = arith.addf %160, %171 : vector<8x128xf32>
    %173 = vector.extract_strided_slice %164 {offsets = [0, 256], sizes = [8, 128], strides = [1, 1]} : vector<8x384xf32> to vector<8x128xf32>
    %174 = arith.mulf %173, %166 : vector<8x128xf32>
    %175 = arith.addf %163, %174 : vector<8x128xf32>
    %176 = vector.extract_strided_slice %1 {offsets = [0, 48], sizes = [8, 384], strides = [1, 1]} : vector<8x640xf32> to vector<8x384xf32>
    %c14 = arith.constant 14 : index
    %c0_36 = arith.constant 0 : index
    %c0_37 = arith.constant 0 : index
    %177 = vector.load %arg3[%c14, %c0_36, %c0_37] : memref<79x8x128xf32, #tpu.memory_space<vmem>>, vector<1x8x128xf32>
    %178 = vector.shape_cast %177 : vector<1x8x128xf32> to vector<8x128xf32>
    %179 = vector.extract_strided_slice %176 {offsets = [0, 0], sizes = [8, 128], strides = [1, 1]} : vector<8x384xf32> to vector<8x128xf32>
    %180 = arith.mulf %179, %178 : vector<8x128xf32>
    %181 = arith.addf %169, %180 : vector<8x128xf32>
    %182 = vector.extract_strided_slice %176 {offsets = [0, 128], sizes = [8, 128], strides = [1, 1]} : vector<8x384xf32> to vector<8x128xf32>
    %183 = arith.mulf %182, %178 : vector<8x128xf32>
    %184 = arith.addf %172, %183 : vector<8x128xf32>
    %185 = vector.extract_strided_slice %176 {offsets = [0, 256], sizes = [8, 128], strides = [1, 1]} : vector<8x384xf32> to vector<8x128xf32>
    %186 = arith.mulf %185, %178 : vector<8x128xf32>
    %187 = arith.addf %175, %186 : vector<8x128xf32>
    %188 = vector.extract_strided_slice %1 {offsets = [0, 49], sizes = [8, 384], strides = [1, 1]} : vector<8x640xf32> to vector<8x384xf32>
    %c15 = arith.constant 15 : index
    %c0_38 = arith.constant 0 : index
    %c0_39 = arith.constant 0 : index
    %189 = vector.load %arg3[%c15, %c0_38, %c0_39] : memref<79x8x128xf32, #tpu.memory_space<vmem>>, vector<1x8x128xf32>
    %190 = vector.shape_cast %189 : vector<1x8x128xf32> to vector<8x128xf32>
    %191 = vector.extract_strided_slice %188 {offsets = [0, 0], sizes = [8, 128], strides = [1, 1]} : vector<8x384xf32> to vector<8x128xf32>
    %192 = arith.mulf %191, %190 : vector<8x128xf32>
    %193 = arith.addf %181, %192 : vector<8x128xf32>
    %194 = vector.extract_strided_slice %188 {offsets = [0, 128], sizes = [8, 128], strides = [1, 1]} : vector<8x384xf32> to vector<8x128xf32>
    %195 = arith.mulf %194, %190 : vector<8x128xf32>
    %196 = arith.addf %184, %195 : vector<8x128xf32>
    %197 = vector.extract_strided_slice %188 {offsets = [0, 256], sizes = [8, 128], strides = [1, 1]} : vector<8x384xf32> to vector<8x128xf32>
    %198 = arith.mulf %197, %190 : vector<8x128xf32>
    %199 = arith.addf %187, %198 : vector<8x128xf32>
    %200 = vector.extract_strided_slice %1 {offsets = [0, 50], sizes = [8, 384], strides = [1, 1]} : vector<8x640xf32> to vector<8x384xf32>
    %c16 = arith.constant 16 : index
    %c0_40 = arith.constant 0 : index
    %c0_41 = arith.constant 0 : index
    %201 = vector.load %arg3[%c16, %c0_40, %c0_41] : memref<79x8x128xf32, #tpu.memory_space<vmem>>, vector<1x8x128xf32>
    %202 = vector.shape_cast %201 : vector<1x8x128xf32> to vector<8x128xf32>
    %c49 = arith.constant 49 : index
    %c0_42 = arith.constant 0 : index
    %c0_43 = arith.constant 0 : index
    %203 = vector.load %arg3[%c49, %c0_42, %c0_43] : memref<79x8x128xf32, #tpu.memory_space<vmem>>, vector<1x8x128xf32>
    %204 = vector.shape_cast %203 : vector<1x8x128xf32> to vector<8x128xf32>
    %205 = vector.extract_strided_slice %200 {offsets = [0, 0], sizes = [8, 128], strides = [1, 1]} : vector<8x384xf32> to vector<8x128xf32>
    %206 = arith.mulf %205, %202 : vector<8x128xf32>
    %207 = arith.addf %193, %206 : vector<8x128xf32>
    %208 = arith.mulf %205, %204 : vector<8x128xf32>
    %209 = arith.addf %5, %208 : vector<8x128xf32>
    %210 = vector.extract_strided_slice %200 {offsets = [0, 128], sizes = [8, 128], strides = [1, 1]} : vector<8x384xf32> to vector<8x128xf32>
    %211 = arith.mulf %210, %202 : vector<8x128xf32>
    %212 = arith.addf %196, %211 : vector<8x128xf32>
    %213 = arith.mulf %210, %204 : vector<8x128xf32>
    %214 = arith.addf %6, %213 : vector<8x128xf32>
    %215 = vector.extract_strided_slice %200 {offsets = [0, 256], sizes = [8, 128], strides = [1, 1]} : vector<8x384xf32> to vector<8x128xf32>
    %216 = arith.mulf %215, %202 : vector<8x128xf32>
    %217 = arith.addf %199, %216 : vector<8x128xf32>
    %218 = arith.mulf %215, %204 : vector<8x128xf32>
    %219 = arith.addf %7, %218 : vector<8x128xf32>
    %220 = vector.extract_strided_slice %1 {offsets = [0, 51], sizes = [8, 384], strides = [1, 1]} : vector<8x640xf32> to vector<8x384xf32>
    %c17 = arith.constant 17 : index
    %c0_44 = arith.constant 0 : index
    %c0_45 = arith.constant 0 : index
    %221 = vector.load %arg3[%c17, %c0_44, %c0_45] : memref<79x8x128xf32, #tpu.memory_space<vmem>>, vector<1x8x128xf32>
    %222 = vector.shape_cast %221 : vector<1x8x128xf32> to vector<8x128xf32>
    %c50 = arith.constant 50 : index
    %c0_46 = arith.constant 0 : index
    %c0_47 = arith.constant 0 : index
    %223 = vector.load %arg3[%c50, %c0_46, %c0_47] : memref<79x8x128xf32, #tpu.memory_space<vmem>>, vector<1x8x128xf32>
    %224 = vector.shape_cast %223 : vector<1x8x128xf32> to vector<8x128xf32>
    %225 = vector.extract_strided_slice %220 {offsets = [0, 0], sizes = [8, 128], strides = [1, 1]} : vector<8x384xf32> to vector<8x128xf32>
    %226 = arith.mulf %225, %222 : vector<8x128xf32>
    %227 = arith.addf %207, %226 : vector<8x128xf32>
    %228 = arith.mulf %225, %224 : vector<8x128xf32>
    %229 = arith.addf %209, %228 : vector<8x128xf32>
    %230 = vector.extract_strided_slice %220 {offsets = [0, 128], sizes = [8, 128], strides = [1, 1]} : vector<8x384xf32> to vector<8x128xf32>
    %231 = arith.mulf %230, %222 : vector<8x128xf32>
    %232 = arith.addf %212, %231 : vector<8x128xf32>
    %233 = arith.mulf %230, %224 : vector<8x128xf32>
    %234 = arith.addf %214, %233 : vector<8x128xf32>
    %235 = vector.extract_strided_slice %220 {offsets = [0, 256], sizes = [8, 128], strides = [1, 1]} : vector<8x384xf32> to vector<8x128xf32>
    %236 = arith.mulf %235, %222 : vector<8x128xf32>
    %237 = arith.addf %217, %236 : vector<8x128xf32>
    %238 = arith.mulf %235, %224 : vector<8x128xf32>
    %239 = arith.addf %219, %238 : vector<8x128xf32>
    %240 = vector.extract_strided_slice %1 {offsets = [0, 52], sizes = [8, 384], strides = [1, 1]} : vector<8x640xf32> to vector<8x384xf32>
    %c18 = arith.constant 18 : index
    %c0_48 = arith.constant 0 : index
    %c0_49 = arith.constant 0 : index
    %241 = vector.load %arg3[%c18, %c0_48, %c0_49] : memref<79x8x128xf32, #tpu.memory_space<vmem>>, vector<1x8x128xf32>
    %242 = vector.shape_cast %241 : vector<1x8x128xf32> to vector<8x128xf32>
    %c51 = arith.constant 51 : index
    %c0_50 = arith.constant 0 : index
    %c0_51 = arith.constant 0 : index
    %243 = vector.load %arg3[%c51, %c0_50, %c0_51] : memref<79x8x128xf32, #tpu.memory_space<vmem>>, vector<1x8x128xf32>
    %244 = vector.shape_cast %243 : vector<1x8x128xf32> to vector<8x128xf32>
    %245 = vector.extract_strided_slice %240 {offsets = [0, 0], sizes = [8, 128], strides = [1, 1]} : vector<8x384xf32> to vector<8x128xf32>
    %246 = arith.mulf %245, %242 : vector<8x128xf32>
    %247 = arith.addf %227, %246 : vector<8x128xf32>
    %248 = arith.mulf %245, %244 : vector<8x128xf32>
    %249 = arith.addf %229, %248 : vector<8x128xf32>
    %250 = vector.extract_strided_slice %240 {offsets = [0, 128], sizes = [8, 128], strides = [1, 1]} : vector<8x384xf32> to vector<8x128xf32>
    %251 = arith.mulf %250, %242 : vector<8x128xf32>
    %252 = arith.addf %232, %251 : vector<8x128xf32>
    %253 = arith.mulf %250, %244 : vector<8x128xf32>
    %254 = arith.addf %234, %253 : vector<8x128xf32>
    %255 = vector.extract_strided_slice %240 {offsets = [0, 256], sizes = [8, 128], strides = [1, 1]} : vector<8x384xf32> to vector<8x128xf32>
    %256 = arith.mulf %255, %242 : vector<8x128xf32>
    %257 = arith.addf %237, %256 : vector<8x128xf32>
    %258 = arith.mulf %255, %244 : vector<8x128xf32>
    %259 = arith.addf %239, %258 : vector<8x128xf32>
    %260 = vector.extract_strided_slice %1 {offsets = [0, 53], sizes = [8, 384], strides = [1, 1]} : vector<8x640xf32> to vector<8x384xf32>
    %c19 = arith.constant 19 : index
    %c0_52 = arith.constant 0 : index
    %c0_53 = arith.constant 0 : index
    %261 = vector.load %arg3[%c19, %c0_52, %c0_53] : memref<79x8x128xf32, #tpu.memory_space<vmem>>, vector<1x8x128xf32>
    %262 = vector.shape_cast %261 : vector<1x8x128xf32> to vector<8x128xf32>
    %263 = vector.extract_strided_slice %260 {offsets = [0, 0], sizes = [8, 128], strides = [1, 1]} : vector<8x384xf32> to vector<8x128xf32>
    %264 = arith.mulf %263, %262 : vector<8x128xf32>
    %265 = arith.addf %247, %264 : vector<8x128xf32>
    %266 = vector.extract_strided_slice %260 {offsets = [0, 128], sizes = [8, 128], strides = [1, 1]} : vector<8x384xf32> to vector<8x128xf32>
    %267 = arith.mulf %266, %262 : vector<8x128xf32>
    %268 = arith.addf %252, %267 : vector<8x128xf32>
    %269 = vector.extract_strided_slice %260 {offsets = [0, 256], sizes = [8, 128], strides = [1, 1]} : vector<8x384xf32> to vector<8x128xf32>
    %270 = arith.mulf %269, %262 : vector<8x128xf32>
    %271 = arith.addf %257, %270 : vector<8x128xf32>
    %272 = vector.extract_strided_slice %1 {offsets = [0, 54], sizes = [8, 384], strides = [1, 1]} : vector<8x640xf32> to vector<8x384xf32>
    %c20 = arith.constant 20 : index
    %c0_54 = arith.constant 0 : index
    %c0_55 = arith.constant 0 : index
    %273 = vector.load %arg3[%c20, %c0_54, %c0_55] : memref<79x8x128xf32, #tpu.memory_space<vmem>>, vector<1x8x128xf32>
    %274 = vector.shape_cast %273 : vector<1x8x128xf32> to vector<8x128xf32>
    %275 = vector.extract_strided_slice %272 {offsets = [0, 0], sizes = [8, 128], strides = [1, 1]} : vector<8x384xf32> to vector<8x128xf32>
    %276 = arith.mulf %275, %274 : vector<8x128xf32>
    %277 = arith.addf %265, %276 : vector<8x128xf32>
    %278 = vector.extract_strided_slice %272 {offsets = [0, 128], sizes = [8, 128], strides = [1, 1]} : vector<8x384xf32> to vector<8x128xf32>
    %279 = arith.mulf %278, %274 : vector<8x128xf32>
    %280 = arith.addf %268, %279 : vector<8x128xf32>
    %281 = vector.extract_strided_slice %272 {offsets = [0, 256], sizes = [8, 128], strides = [1, 1]} : vector<8x384xf32> to vector<8x128xf32>
    %282 = arith.mulf %281, %274 : vector<8x128xf32>
    %283 = arith.addf %271, %282 : vector<8x128xf32>
    %284 = vector.extract_strided_slice %1 {offsets = [0, 72], sizes = [8, 384], strides = [1, 1]} : vector<8x640xf32> to vector<8x384xf32>
    %c21 = arith.constant 21 : index
    %c0_56 = arith.constant 0 : index
    %c0_57 = arith.constant 0 : index
    %285 = vector.load %arg3[%c21, %c0_56, %c0_57] : memref<79x8x128xf32, #tpu.memory_space<vmem>>, vector<1x8x128xf32>
    %286 = vector.shape_cast %285 : vector<1x8x128xf32> to vector<8x128xf32>
    %287 = vector.extract_strided_slice %284 {offsets = [0, 0], sizes = [8, 128], strides = [1, 1]} : vector<8x384xf32> to vector<8x128xf32>
    %288 = arith.mulf %287, %286 : vector<8x128xf32>
    %289 = arith.addf %277, %288 : vector<8x128xf32>
    %290 = vector.extract_strided_slice %284 {offsets = [0, 128], sizes = [8, 128], strides = [1, 1]} : vector<8x384xf32> to vector<8x128xf32>
    %291 = arith.mulf %290, %286 : vector<8x128xf32>
    %292 = arith.addf %280, %291 : vector<8x128xf32>
    %293 = vector.extract_strided_slice %284 {offsets = [0, 256], sizes = [8, 128], strides = [1, 1]} : vector<8x384xf32> to vector<8x128xf32>
    %294 = arith.mulf %293, %286 : vector<8x128xf32>
    %295 = arith.addf %283, %294 : vector<8x128xf32>
    %296 = vector.extract_strided_slice %1 {offsets = [0, 73], sizes = [8, 384], strides = [1, 1]} : vector<8x640xf32> to vector<8x384xf32>
    %c22 = arith.constant 22 : index
    %c0_58 = arith.constant 0 : index
    %c0_59 = arith.constant 0 : index
    %297 = vector.load %arg3[%c22, %c0_58, %c0_59] : memref<79x8x128xf32, #tpu.memory_space<vmem>>, vector<1x8x128xf32>
    %298 = vector.shape_cast %297 : vector<1x8x128xf32> to vector<8x128xf32>
    %299 = vector.extract_strided_slice %296 {offsets = [0, 0], sizes = [8, 128], strides = [1, 1]} : vector<8x384xf32> to vector<8x128xf32>
    %300 = arith.mulf %299, %298 : vector<8x128xf32>
    %301 = arith.addf %289, %300 : vector<8x128xf32>
    %302 = vector.extract_strided_slice %296 {offsets = [0, 128], sizes = [8, 128], strides = [1, 1]} : vector<8x384xf32> to vector<8x128xf32>
    %303 = arith.mulf %302, %298 : vector<8x128xf32>
    %304 = arith.addf %292, %303 : vector<8x128xf32>
    %305 = vector.extract_strided_slice %296 {offsets = [0, 256], sizes = [8, 128], strides = [1, 1]} : vector<8x384xf32> to vector<8x128xf32>
    %306 = arith.mulf %305, %298 : vector<8x128xf32>
    %307 = arith.addf %295, %306 : vector<8x128xf32>
    %308 = vector.extract_strided_slice %1 {offsets = [0, 74], sizes = [8, 384], strides = [1, 1]} : vector<8x640xf32> to vector<8x384xf32>
    %c23 = arith.constant 23 : index
    %c0_60 = arith.constant 0 : index
    %c0_61 = arith.constant 0 : index
    %309 = vector.load %arg3[%c23, %c0_60, %c0_61] : memref<79x8x128xf32, #tpu.memory_space<vmem>>, vector<1x8x128xf32>
    %310 = vector.shape_cast %309 : vector<1x8x128xf32> to vector<8x128xf32>
    %c52 = arith.constant 52 : index
    %c0_62 = arith.constant 0 : index
    %c0_63 = arith.constant 0 : index
    %311 = vector.load %arg3[%c52, %c0_62, %c0_63] : memref<79x8x128xf32, #tpu.memory_space<vmem>>, vector<1x8x128xf32>
    %312 = vector.shape_cast %311 : vector<1x8x128xf32> to vector<8x128xf32>
    %313 = vector.extract_strided_slice %308 {offsets = [0, 0], sizes = [8, 128], strides = [1, 1]} : vector<8x384xf32> to vector<8x128xf32>
    %314 = arith.mulf %313, %310 : vector<8x128xf32>
    %315 = arith.addf %301, %314 : vector<8x128xf32>
    %316 = arith.mulf %313, %312 : vector<8x128xf32>
    %317 = arith.addf %249, %316 : vector<8x128xf32>
    %318 = vector.extract_strided_slice %308 {offsets = [0, 128], sizes = [8, 128], strides = [1, 1]} : vector<8x384xf32> to vector<8x128xf32>
    %319 = arith.mulf %318, %310 : vector<8x128xf32>
    %320 = arith.addf %304, %319 : vector<8x128xf32>
    %321 = arith.mulf %318, %312 : vector<8x128xf32>
    %322 = arith.addf %254, %321 : vector<8x128xf32>
    %323 = vector.extract_strided_slice %308 {offsets = [0, 256], sizes = [8, 128], strides = [1, 1]} : vector<8x384xf32> to vector<8x128xf32>
    %324 = arith.mulf %323, %310 : vector<8x128xf32>
    %325 = arith.addf %307, %324 : vector<8x128xf32>
    %326 = arith.mulf %323, %312 : vector<8x128xf32>
    %327 = arith.addf %259, %326 : vector<8x128xf32>
    %328 = vector.extract_strided_slice %1 {offsets = [0, 75], sizes = [8, 384], strides = [1, 1]} : vector<8x640xf32> to vector<8x384xf32>
    %c24 = arith.constant 24 : index
    %c0_64 = arith.constant 0 : index
    %c0_65 = arith.constant 0 : index
    %329 = vector.load %arg3[%c24, %c0_64, %c0_65] : memref<79x8x128xf32, #tpu.memory_space<vmem>>, vector<1x8x128xf32>
    %330 = vector.shape_cast %329 : vector<1x8x128xf32> to vector<8x128xf32>
    %c53 = arith.constant 53 : index
    %c0_66 = arith.constant 0 : index
    %c0_67 = arith.constant 0 : index
    %331 = vector.load %arg3[%c53, %c0_66, %c0_67] : memref<79x8x128xf32, #tpu.memory_space<vmem>>, vector<1x8x128xf32>
    %332 = vector.shape_cast %331 : vector<1x8x128xf32> to vector<8x128xf32>
    %333 = vector.extract_strided_slice %328 {offsets = [0, 0], sizes = [8, 128], strides = [1, 1]} : vector<8x384xf32> to vector<8x128xf32>
    %334 = arith.mulf %333, %330 : vector<8x128xf32>
    %335 = arith.addf %315, %334 : vector<8x128xf32>
    %336 = arith.mulf %333, %332 : vector<8x128xf32>
    %337 = arith.addf %317, %336 : vector<8x128xf32>
    %338 = vector.extract_strided_slice %328 {offsets = [0, 128], sizes = [8, 128], strides = [1, 1]} : vector<8x384xf32> to vector<8x128xf32>
    %339 = arith.mulf %338, %330 : vector<8x128xf32>
    %340 = arith.addf %320, %339 : vector<8x128xf32>
    %341 = arith.mulf %338, %332 : vector<8x128xf32>
    %342 = arith.addf %322, %341 : vector<8x128xf32>
    %343 = vector.extract_strided_slice %328 {offsets = [0, 256], sizes = [8, 128], strides = [1, 1]} : vector<8x384xf32> to vector<8x128xf32>
    %344 = arith.mulf %343, %330 : vector<8x128xf32>
    %345 = arith.addf %325, %344 : vector<8x128xf32>
    %346 = arith.mulf %343, %332 : vector<8x128xf32>
    %347 = arith.addf %327, %346 : vector<8x128xf32>
    %348 = vector.extract_strided_slice %1 {offsets = [0, 76], sizes = [8, 384], strides = [1, 1]} : vector<8x640xf32> to vector<8x384xf32>
    %c25 = arith.constant 25 : index
    %c0_68 = arith.constant 0 : index
    %c0_69 = arith.constant 0 : index
    %349 = vector.load %arg3[%c25, %c0_68, %c0_69] : memref<79x8x128xf32, #tpu.memory_space<vmem>>, vector<1x8x128xf32>
    %350 = vector.shape_cast %349 : vector<1x8x128xf32> to vector<8x128xf32>
    %c54 = arith.constant 54 : index
    %c0_70 = arith.constant 0 : index
    %c0_71 = arith.constant 0 : index
    %351 = vector.load %arg3[%c54, %c0_70, %c0_71] : memref<79x8x128xf32, #tpu.memory_space<vmem>>, vector<1x8x128xf32>
    %352 = vector.shape_cast %351 : vector<1x8x128xf32> to vector<8x128xf32>
    %353 = vector.extract_strided_slice %348 {offsets = [0, 0], sizes = [8, 128], strides = [1, 1]} : vector<8x384xf32> to vector<8x128xf32>
    %354 = arith.mulf %353, %350 : vector<8x128xf32>
    %355 = arith.addf %335, %354 : vector<8x128xf32>
    %356 = arith.mulf %353, %352 : vector<8x128xf32>
    %357 = arith.addf %337, %356 : vector<8x128xf32>
    %358 = vector.extract_strided_slice %348 {offsets = [0, 128], sizes = [8, 128], strides = [1, 1]} : vector<8x384xf32> to vector<8x128xf32>
    %359 = arith.mulf %358, %350 : vector<8x128xf32>
    %360 = arith.addf %340, %359 : vector<8x128xf32>
    %361 = arith.mulf %358, %352 : vector<8x128xf32>
    %362 = arith.addf %342, %361 : vector<8x128xf32>
    %363 = vector.extract_strided_slice %348 {offsets = [0, 256], sizes = [8, 128], strides = [1, 1]} : vector<8x384xf32> to vector<8x128xf32>
    %364 = arith.mulf %363, %350 : vector<8x128xf32>
    %365 = arith.addf %345, %364 : vector<8x128xf32>
    %366 = arith.mulf %363, %352 : vector<8x128xf32>
    %367 = arith.addf %347, %366 : vector<8x128xf32>
    %368 = vector.extract_strided_slice %1 {offsets = [0, 77], sizes = [8, 384], strides = [1, 1]} : vector<8x640xf32> to vector<8x384xf32>
    %c26 = arith.constant 26 : index
    %c0_72 = arith.constant 0 : index
    %c0_73 = arith.constant 0 : index
    %369 = vector.load %arg3[%c26, %c0_72, %c0_73] : memref<79x8x128xf32, #tpu.memory_space<vmem>>, vector<1x8x128xf32>
    %370 = vector.shape_cast %369 : vector<1x8x128xf32> to vector<8x128xf32>
    %371 = vector.extract_strided_slice %368 {offsets = [0, 0], sizes = [8, 128], strides = [1, 1]} : vector<8x384xf32> to vector<8x128xf32>
    %372 = arith.mulf %371, %370 : vector<8x128xf32>
    %373 = arith.addf %355, %372 : vector<8x128xf32>
    %374 = vector.extract_strided_slice %368 {offsets = [0, 128], sizes = [8, 128], strides = [1, 1]} : vector<8x384xf32> to vector<8x128xf32>
    %375 = arith.mulf %374, %370 : vector<8x128xf32>
    %376 = arith.addf %360, %375 : vector<8x128xf32>
    %377 = vector.extract_strided_slice %368 {offsets = [0, 256], sizes = [8, 128], strides = [1, 1]} : vector<8x384xf32> to vector<8x128xf32>
    %378 = arith.mulf %377, %370 : vector<8x128xf32>
    %379 = arith.addf %365, %378 : vector<8x128xf32>
    %380 = vector.extract_strided_slice %1 {offsets = [0, 78], sizes = [8, 384], strides = [1, 1]} : vector<8x640xf32> to vector<8x384xf32>
    %c27 = arith.constant 27 : index
    %c0_74 = arith.constant 0 : index
    %c0_75 = arith.constant 0 : index
    %381 = vector.load %arg3[%c27, %c0_74, %c0_75] : memref<79x8x128xf32, #tpu.memory_space<vmem>>, vector<1x8x128xf32>
    %382 = vector.shape_cast %381 : vector<1x8x128xf32> to vector<8x128xf32>
    %383 = vector.extract_strided_slice %380 {offsets = [0, 0], sizes = [8, 128], strides = [1, 1]} : vector<8x384xf32> to vector<8x128xf32>
    %384 = arith.mulf %383, %382 : vector<8x128xf32>
    %385 = arith.addf %373, %384 : vector<8x128xf32>
    %386 = vector.extract_strided_slice %380 {offsets = [0, 128], sizes = [8, 128], strides = [1, 1]} : vector<8x384xf32> to vector<8x128xf32>
    %387 = arith.mulf %386, %382 : vector<8x128xf32>
    %388 = arith.addf %376, %387 : vector<8x128xf32>
    %389 = vector.extract_strided_slice %380 {offsets = [0, 256], sizes = [8, 128], strides = [1, 1]} : vector<8x384xf32> to vector<8x128xf32>
    %390 = arith.mulf %389, %382 : vector<8x128xf32>
    %391 = arith.addf %379, %390 : vector<8x128xf32>
    %392 = vector.extract_strided_slice %1 {offsets = [0, 96], sizes = [8, 384], strides = [1, 1]} : vector<8x640xf32> to vector<8x384xf32>
    %c28 = arith.constant 28 : index
    %c0_76 = arith.constant 0 : index
    %c0_77 = arith.constant 0 : index
    %393 = vector.load %arg3[%c28, %c0_76, %c0_77] : memref<79x8x128xf32, #tpu.memory_space<vmem>>, vector<1x8x128xf32>
    %394 = vector.shape_cast %393 : vector<1x8x128xf32> to vector<8x128xf32>
    %395 = vector.extract_strided_slice %392 {offsets = [0, 0], sizes = [8, 128], strides = [1, 1]} : vector<8x384xf32> to vector<8x128xf32>
    %396 = arith.mulf %395, %394 : vector<8x128xf32>
    %397 = arith.addf %385, %396 : vector<8x128xf32>
    %398 = vector.extract_strided_slice %392 {offsets = [0, 128], sizes = [8, 128], strides = [1, 1]} : vector<8x384xf32> to vector<8x128xf32>
    %399 = arith.mulf %398, %394 : vector<8x128xf32>
    %400 = arith.addf %388, %399 : vector<8x128xf32>
    %401 = vector.extract_strided_slice %392 {offsets = [0, 256], sizes = [8, 128], strides = [1, 1]} : vector<8x384xf32> to vector<8x128xf32>
    %402 = arith.mulf %401, %394 : vector<8x128xf32>
    %403 = arith.addf %391, %402 : vector<8x128xf32>
    %404 = vector.extract_strided_slice %1 {offsets = [0, 97], sizes = [8, 384], strides = [1, 1]} : vector<8x640xf32> to vector<8x384xf32>
    %c29 = arith.constant 29 : index
    %c0_78 = arith.constant 0 : index
    %c0_79 = arith.constant 0 : index
    %405 = vector.load %arg3[%c29, %c0_78, %c0_79] : memref<79x8x128xf32, #tpu.memory_space<vmem>>, vector<1x8x128xf32>
    %406 = vector.shape_cast %405 : vector<1x8x128xf32> to vector<8x128xf32>
    %407 = vector.extract_strided_slice %404 {offsets = [0, 0], sizes = [8, 128], strides = [1, 1]} : vector<8x384xf32> to vector<8x128xf32>
    %408 = arith.mulf %407, %406 : vector<8x128xf32>
    %409 = arith.addf %397, %408 : vector<8x128xf32>
    %410 = vector.extract_strided_slice %404 {offsets = [0, 128], sizes = [8, 128], strides = [1, 1]} : vector<8x384xf32> to vector<8x128xf32>
    %411 = arith.mulf %410, %406 : vector<8x128xf32>
    %412 = arith.addf %400, %411 : vector<8x128xf32>
    %413 = vector.extract_strided_slice %404 {offsets = [0, 256], sizes = [8, 128], strides = [1, 1]} : vector<8x384xf32> to vector<8x128xf32>
    %414 = arith.mulf %413, %406 : vector<8x128xf32>
    %415 = arith.addf %403, %414 : vector<8x128xf32>
    %416 = vector.extract_strided_slice %1 {offsets = [0, 98], sizes = [8, 384], strides = [1, 1]} : vector<8x640xf32> to vector<8x384xf32>
    %c30 = arith.constant 30 : index
    %c0_80 = arith.constant 0 : index
    %c0_81 = arith.constant 0 : index
    %417 = vector.load %arg3[%c30, %c0_80, %c0_81] : memref<79x8x128xf32, #tpu.memory_space<vmem>>, vector<1x8x128xf32>
    %418 = vector.shape_cast %417 : vector<1x8x128xf32> to vector<8x128xf32>
    %c55 = arith.constant 55 : index
    %c0_82 = arith.constant 0 : index
    %c0_83 = arith.constant 0 : index
    %419 = vector.load %arg3[%c55, %c0_82, %c0_83] : memref<79x8x128xf32, #tpu.memory_space<vmem>>, vector<1x8x128xf32>
    %420 = vector.shape_cast %419 : vector<1x8x128xf32> to vector<8x128xf32>
    %421 = vector.extract_strided_slice %416 {offsets = [0, 0], sizes = [8, 128], strides = [1, 1]} : vector<8x384xf32> to vector<8x128xf32>
    %422 = arith.mulf %421, %418 : vector<8x128xf32>
    %423 = arith.addf %409, %422 : vector<8x128xf32>
    %424 = arith.mulf %421, %420 : vector<8x128xf32>
    %425 = arith.addf %357, %424 : vector<8x128xf32>
    %426 = vector.extract_strided_slice %416 {offsets = [0, 128], sizes = [8, 128], strides = [1, 1]} : vector<8x384xf32> to vector<8x128xf32>
    %427 = arith.mulf %426, %418 : vector<8x128xf32>
    %428 = arith.addf %412, %427 : vector<8x128xf32>
    %429 = arith.mulf %426, %420 : vector<8x128xf32>
    %430 = arith.addf %362, %429 : vector<8x128xf32>
    %431 = vector.extract_strided_slice %416 {offsets = [0, 256], sizes = [8, 128], strides = [1, 1]} : vector<8x384xf32> to vector<8x128xf32>
    %432 = arith.mulf %431, %418 : vector<8x128xf32>
    %433 = arith.addf %415, %432 : vector<8x128xf32>
    %434 = arith.mulf %431, %420 : vector<8x128xf32>
    %435 = arith.addf %367, %434 : vector<8x128xf32>
    %436 = vector.extract_strided_slice %1 {offsets = [0, 99], sizes = [8, 384], strides = [1, 1]} : vector<8x640xf32> to vector<8x384xf32>
    %c31 = arith.constant 31 : index
    %c0_84 = arith.constant 0 : index
    %c0_85 = arith.constant 0 : index
    %437 = vector.load %arg3[%c31, %c0_84, %c0_85] : memref<79x8x128xf32, #tpu.memory_space<vmem>>, vector<1x8x128xf32>
    %438 = vector.shape_cast %437 : vector<1x8x128xf32> to vector<8x128xf32>
    %c56 = arith.constant 56 : index
    %c0_86 = arith.constant 0 : index
    %c0_87 = arith.constant 0 : index
    %439 = vector.load %arg3[%c56, %c0_86, %c0_87] : memref<79x8x128xf32, #tpu.memory_space<vmem>>, vector<1x8x128xf32>
    %440 = vector.shape_cast %439 : vector<1x8x128xf32> to vector<8x128xf32>
    %441 = vector.extract_strided_slice %436 {offsets = [0, 0], sizes = [8, 128], strides = [1, 1]} : vector<8x384xf32> to vector<8x128xf32>
    %442 = arith.mulf %441, %438 : vector<8x128xf32>
    %443 = arith.addf %423, %442 : vector<8x128xf32>
    %444 = arith.mulf %441, %440 : vector<8x128xf32>
    %445 = arith.addf %425, %444 : vector<8x128xf32>
    %446 = vector.extract_strided_slice %436 {offsets = [0, 128], sizes = [8, 128], strides = [1, 1]} : vector<8x384xf32> to vector<8x128xf32>
    %447 = arith.mulf %446, %438 : vector<8x128xf32>
    %448 = arith.addf %428, %447 : vector<8x128xf32>
    %449 = arith.mulf %446, %440 : vector<8x128xf32>
    %450 = arith.addf %430, %449 : vector<8x128xf32>
    %451 = vector.extract_strided_slice %436 {offsets = [0, 256], sizes = [8, 128], strides = [1, 1]} : vector<8x384xf32> to vector<8x128xf32>
    %452 = arith.mulf %451, %438 : vector<8x128xf32>
    %453 = arith.addf %433, %452 : vector<8x128xf32>
    %454 = arith.mulf %451, %440 : vector<8x128xf32>
    %455 = arith.addf %435, %454 : vector<8x128xf32>
    %456 = vector.extract_strided_slice %1 {offsets = [0, 100], sizes = [8, 384], strides = [1, 1]} : vector<8x640xf32> to vector<8x384xf32>
    %c32 = arith.constant 32 : index
    %c0_88 = arith.constant 0 : index
    %c0_89 = arith.constant 0 : index
    %457 = vector.load %arg3[%c32, %c0_88, %c0_89] : memref<79x8x128xf32, #tpu.memory_space<vmem>>, vector<1x8x128xf32>
    %458 = vector.shape_cast %457 : vector<1x8x128xf32> to vector<8x128xf32>
    %c57 = arith.constant 57 : index
    %c0_90 = arith.constant 0 : index
    %c0_91 = arith.constant 0 : index
    %459 = vector.load %arg3[%c57, %c0_90, %c0_91] : memref<79x8x128xf32, #tpu.memory_space<vmem>>, vector<1x8x128xf32>
    %460 = vector.shape_cast %459 : vector<1x8x128xf32> to vector<8x128xf32>
    %461 = vector.extract_strided_slice %456 {offsets = [0, 0], sizes = [8, 128], strides = [1, 1]} : vector<8x384xf32> to vector<8x128xf32>
    %462 = arith.mulf %461, %458 : vector<8x128xf32>
    %463 = arith.addf %443, %462 : vector<8x128xf32>
    %464 = arith.mulf %461, %460 : vector<8x128xf32>
    %465 = arith.addf %445, %464 : vector<8x128xf32>
    %466 = vector.extract_strided_slice %456 {offsets = [0, 128], sizes = [8, 128], strides = [1, 1]} : vector<8x384xf32> to vector<8x128xf32>
    %467 = arith.mulf %466, %458 : vector<8x128xf32>
    %468 = arith.addf %448, %467 : vector<8x128xf32>
    %469 = arith.mulf %466, %460 : vector<8x128xf32>
    %470 = arith.addf %450, %469 : vector<8x128xf32>
    %471 = vector.extract_strided_slice %456 {offsets = [0, 256], sizes = [8, 128], strides = [1, 1]} : vector<8x384xf32> to vector<8x128xf32>
    %472 = arith.mulf %471, %458 : vector<8x128xf32>
    %473 = arith.addf %453, %472 : vector<8x128xf32>
    %474 = arith.mulf %471, %460 : vector<8x128xf32>
    %475 = arith.addf %455, %474 : vector<8x128xf32>
    %476 = vector.extract_strided_slice %1 {offsets = [0, 101], sizes = [8, 384], strides = [1, 1]} : vector<8x640xf32> to vector<8x384xf32>
    %c33 = arith.constant 33 : index
    %c0_92 = arith.constant 0 : index
    %c0_93 = arith.constant 0 : index
    %477 = vector.load %arg3[%c33, %c0_92, %c0_93] : memref<79x8x128xf32, #tpu.memory_space<vmem>>, vector<1x8x128xf32>
    %478 = vector.shape_cast %477 : vector<1x8x128xf32> to vector<8x128xf32>
    %479 = vector.extract_strided_slice %476 {offsets = [0, 0], sizes = [8, 128], strides = [1, 1]} : vector<8x384xf32> to vector<8x128xf32>
    %480 = arith.mulf %479, %478 : vector<8x128xf32>
    %481 = arith.addf %463, %480 : vector<8x128xf32>
    %482 = vector.extract_strided_slice %476 {offsets = [0, 128], sizes = [8, 128], strides = [1, 1]} : vector<8x384xf32> to vector<8x128xf32>
    %483 = arith.mulf %482, %478 : vector<8x128xf32>
    %484 = arith.addf %468, %483 : vector<8x128xf32>
    %485 = vector.extract_strided_slice %476 {offsets = [0, 256], sizes = [8, 128], strides = [1, 1]} : vector<8x384xf32> to vector<8x128xf32>
    %486 = arith.mulf %485, %478 : vector<8x128xf32>
    %487 = arith.addf %473, %486 : vector<8x128xf32>
    %488 = vector.extract_strided_slice %1 {offsets = [0, 102], sizes = [8, 384], strides = [1, 1]} : vector<8x640xf32> to vector<8x384xf32>
    %c34 = arith.constant 34 : index
    %c0_94 = arith.constant 0 : index
    %c0_95 = arith.constant 0 : index
    %489 = vector.load %arg3[%c34, %c0_94, %c0_95] : memref<79x8x128xf32, #tpu.memory_space<vmem>>, vector<1x8x128xf32>
    %490 = vector.shape_cast %489 : vector<1x8x128xf32> to vector<8x128xf32>
    %491 = vector.extract_strided_slice %488 {offsets = [0, 0], sizes = [8, 128], strides = [1, 1]} : vector<8x384xf32> to vector<8x128xf32>
    %492 = arith.mulf %491, %490 : vector<8x128xf32>
    %493 = arith.addf %481, %492 : vector<8x128xf32>
    %494 = vector.extract_strided_slice %488 {offsets = [0, 128], sizes = [8, 128], strides = [1, 1]} : vector<8x384xf32> to vector<8x128xf32>
    %495 = arith.mulf %494, %490 : vector<8x128xf32>
    %496 = arith.addf %484, %495 : vector<8x128xf32>
    %497 = vector.extract_strided_slice %488 {offsets = [0, 256], sizes = [8, 128], strides = [1, 1]} : vector<8x384xf32> to vector<8x128xf32>
    %498 = arith.mulf %497, %490 : vector<8x128xf32>
    %499 = arith.addf %487, %498 : vector<8x128xf32>
    %500 = vector.extract_strided_slice %1 {offsets = [0, 120], sizes = [8, 384], strides = [1, 1]} : vector<8x640xf32> to vector<8x384xf32>
    %c35 = arith.constant 35 : index
    %c0_96 = arith.constant 0 : index
    %c0_97 = arith.constant 0 : index
    %501 = vector.load %arg3[%c35, %c0_96, %c0_97] : memref<79x8x128xf32, #tpu.memory_space<vmem>>, vector<1x8x128xf32>
    %502 = vector.shape_cast %501 : vector<1x8x128xf32> to vector<8x128xf32>
    %503 = vector.extract_strided_slice %500 {offsets = [0, 0], sizes = [8, 128], strides = [1, 1]} : vector<8x384xf32> to vector<8x128xf32>
    %504 = arith.mulf %503, %502 : vector<8x128xf32>
    %505 = arith.addf %493, %504 : vector<8x128xf32>
    %506 = vector.extract_strided_slice %500 {offsets = [0, 128], sizes = [8, 128], strides = [1, 1]} : vector<8x384xf32> to vector<8x128xf32>
    %507 = arith.mulf %506, %502 : vector<8x128xf32>
    %508 = arith.addf %496, %507 : vector<8x128xf32>
    %509 = vector.extract_strided_slice %500 {offsets = [0, 256], sizes = [8, 128], strides = [1, 1]} : vector<8x384xf32> to vector<8x128xf32>
    %510 = arith.mulf %509, %502 : vector<8x128xf32>
    %511 = arith.addf %499, %510 : vector<8x128xf32>
    %512 = vector.extract_strided_slice %1 {offsets = [0, 121], sizes = [8, 384], strides = [1, 1]} : vector<8x640xf32> to vector<8x384xf32>
    %c36 = arith.constant 36 : index
    %c0_98 = arith.constant 0 : index
    %c0_99 = arith.constant 0 : index
    %513 = vector.load %arg3[%c36, %c0_98, %c0_99] : memref<79x8x128xf32, #tpu.memory_space<vmem>>, vector<1x8x128xf32>
    %514 = vector.shape_cast %513 : vector<1x8x128xf32> to vector<8x128xf32>
    %515 = vector.extract_strided_slice %512 {offsets = [0, 0], sizes = [8, 128], strides = [1, 1]} : vector<8x384xf32> to vector<8x128xf32>
    %516 = arith.mulf %515, %514 : vector<8x128xf32>
    %517 = arith.addf %505, %516 : vector<8x128xf32>
    %518 = vector.extract_strided_slice %512 {offsets = [0, 128], sizes = [8, 128], strides = [1, 1]} : vector<8x384xf32> to vector<8x128xf32>
    %519 = arith.mulf %518, %514 : vector<8x128xf32>
    %520 = arith.addf %508, %519 : vector<8x128xf32>
    %521 = vector.extract_strided_slice %512 {offsets = [0, 256], sizes = [8, 128], strides = [1, 1]} : vector<8x384xf32> to vector<8x128xf32>
    %522 = arith.mulf %521, %514 : vector<8x128xf32>
    %523 = arith.addf %511, %522 : vector<8x128xf32>
    %524 = vector.extract_strided_slice %1 {offsets = [0, 122], sizes = [8, 384], strides = [1, 1]} : vector<8x640xf32> to vector<8x384xf32>
    %c37 = arith.constant 37 : index
    %c0_100 = arith.constant 0 : index
    %c0_101 = arith.constant 0 : index
    %525 = vector.load %arg3[%c37, %c0_100, %c0_101] : memref<79x8x128xf32, #tpu.memory_space<vmem>>, vector<1x8x128xf32>
    %526 = vector.shape_cast %525 : vector<1x8x128xf32> to vector<8x128xf32>
    %527 = vector.extract_strided_slice %524 {offsets = [0, 0], sizes = [8, 128], strides = [1, 1]} : vector<8x384xf32> to vector<8x128xf32>
    %528 = arith.mulf %527, %526 : vector<8x128xf32>
    %529 = arith.addf %517, %528 : vector<8x128xf32>
    %530 = vector.extract_strided_slice %524 {offsets = [0, 128], sizes = [8, 128], strides = [1, 1]} : vector<8x384xf32> to vector<8x128xf32>
    %531 = arith.mulf %530, %526 : vector<8x128xf32>
    %532 = arith.addf %520, %531 : vector<8x128xf32>
    %533 = vector.extract_strided_slice %524 {offsets = [0, 256], sizes = [8, 128], strides = [1, 1]} : vector<8x384xf32> to vector<8x128xf32>
    %534 = arith.mulf %533, %526 : vector<8x128xf32>
    %535 = arith.addf %523, %534 : vector<8x128xf32>
    %536 = vector.extract_strided_slice %1 {offsets = [0, 123], sizes = [8, 384], strides = [1, 1]} : vector<8x640xf32> to vector<8x384xf32>
    %c38 = arith.constant 38 : index
    %c0_102 = arith.constant 0 : index
    %c0_103 = arith.constant 0 : index
    %537 = vector.load %arg3[%c38, %c0_102, %c0_103] : memref<79x8x128xf32, #tpu.memory_space<vmem>>, vector<1x8x128xf32>
    %538 = vector.shape_cast %537 : vector<1x8x128xf32> to vector<8x128xf32>
    %539 = vector.extract_strided_slice %536 {offsets = [0, 0], sizes = [8, 128], strides = [1, 1]} : vector<8x384xf32> to vector<8x128xf32>
    %540 = arith.mulf %539, %538 : vector<8x128xf32>
    %541 = arith.addf %529, %540 : vector<8x128xf32>
    %542 = vector.extract_strided_slice %536 {offsets = [0, 128], sizes = [8, 128], strides = [1, 1]} : vector<8x384xf32> to vector<8x128xf32>
    %543 = arith.mulf %542, %538 : vector<8x128xf32>
    %544 = arith.addf %532, %543 : vector<8x128xf32>
    %545 = vector.extract_strided_slice %536 {offsets = [0, 256], sizes = [8, 128], strides = [1, 1]} : vector<8x384xf32> to vector<8x128xf32>
    %546 = arith.mulf %545, %538 : vector<8x128xf32>
    %547 = arith.addf %535, %546 : vector<8x128xf32>
    %548 = vector.extract_strided_slice %1 {offsets = [0, 124], sizes = [8, 384], strides = [1, 1]} : vector<8x640xf32> to vector<8x384xf32>
    %c39 = arith.constant 39 : index
    %c0_104 = arith.constant 0 : index
    %c0_105 = arith.constant 0 : index
    %549 = vector.load %arg3[%c39, %c0_104, %c0_105] : memref<79x8x128xf32, #tpu.memory_space<vmem>>, vector<1x8x128xf32>
    %550 = vector.shape_cast %549 : vector<1x8x128xf32> to vector<8x128xf32>
    %551 = vector.extract_strided_slice %548 {offsets = [0, 0], sizes = [8, 128], strides = [1, 1]} : vector<8x384xf32> to vector<8x128xf32>
    %552 = arith.mulf %551, %550 : vector<8x128xf32>
    %553 = arith.addf %541, %552 : vector<8x128xf32>
    %554 = vector.extract_strided_slice %548 {offsets = [0, 128], sizes = [8, 128], strides = [1, 1]} : vector<8x384xf32> to vector<8x128xf32>
    %555 = arith.mulf %554, %550 : vector<8x128xf32>
    %556 = arith.addf %544, %555 : vector<8x128xf32>
    %557 = vector.extract_strided_slice %548 {offsets = [0, 256], sizes = [8, 128], strides = [1, 1]} : vector<8x384xf32> to vector<8x128xf32>
    %558 = arith.mulf %557, %550 : vector<8x128xf32>
    %559 = arith.addf %547, %558 : vector<8x128xf32>
    %560 = vector.extract_strided_slice %1 {offsets = [0, 125], sizes = [8, 384], strides = [1, 1]} : vector<8x640xf32> to vector<8x384xf32>
    %c40 = arith.constant 40 : index
    %c0_106 = arith.constant 0 : index
    %c0_107 = arith.constant 0 : index
    %561 = vector.load %arg3[%c40, %c0_106, %c0_107] : memref<79x8x128xf32, #tpu.memory_space<vmem>>, vector<1x8x128xf32>
    %562 = vector.shape_cast %561 : vector<1x8x128xf32> to vector<8x128xf32>
    %563 = vector.extract_strided_slice %560 {offsets = [0, 0], sizes = [8, 128], strides = [1, 1]} : vector<8x384xf32> to vector<8x128xf32>
    %564 = arith.mulf %563, %562 : vector<8x128xf32>
    %565 = arith.addf %553, %564 : vector<8x128xf32>
    %566 = vector.extract_strided_slice %560 {offsets = [0, 128], sizes = [8, 128], strides = [1, 1]} : vector<8x384xf32> to vector<8x128xf32>
    %567 = arith.mulf %566, %562 : vector<8x128xf32>
    %568 = arith.addf %556, %567 : vector<8x128xf32>
    %569 = vector.extract_strided_slice %560 {offsets = [0, 256], sizes = [8, 128], strides = [1, 1]} : vector<8x384xf32> to vector<8x128xf32>
    %570 = arith.mulf %569, %562 : vector<8x128xf32>
    %571 = arith.addf %559, %570 : vector<8x128xf32>
    %572 = vector.extract_strided_slice %1 {offsets = [0, 126], sizes = [8, 384], strides = [1, 1]} : vector<8x640xf32> to vector<8x384xf32>
    %c41 = arith.constant 41 : index
    %c0_108 = arith.constant 0 : index
    %c0_109 = arith.constant 0 : index
    %573 = vector.load %arg3[%c41, %c0_108, %c0_109] : memref<79x8x128xf32, #tpu.memory_space<vmem>>, vector<1x8x128xf32>
    %574 = vector.shape_cast %573 : vector<1x8x128xf32> to vector<8x128xf32>
    %575 = vector.extract_strided_slice %572 {offsets = [0, 0], sizes = [8, 128], strides = [1, 1]} : vector<8x384xf32> to vector<8x128xf32>
    %576 = arith.mulf %575, %574 : vector<8x128xf32>
    %577 = arith.addf %565, %576 : vector<8x128xf32>
    %578 = vector.extract_strided_slice %572 {offsets = [0, 128], sizes = [8, 128], strides = [1, 1]} : vector<8x384xf32> to vector<8x128xf32>
    %579 = arith.mulf %578, %574 : vector<8x128xf32>
    %580 = arith.addf %568, %579 : vector<8x128xf32>
    %581 = vector.extract_strided_slice %572 {offsets = [0, 256], sizes = [8, 128], strides = [1, 1]} : vector<8x384xf32> to vector<8x128xf32>
    %582 = arith.mulf %581, %574 : vector<8x128xf32>
    %583 = arith.addf %571, %582 : vector<8x128xf32>
    %584 = vector.extract_strided_slice %1 {offsets = [0, 144], sizes = [8, 384], strides = [1, 1]} : vector<8x640xf32> to vector<8x384xf32>
    %c42 = arith.constant 42 : index
    %c0_110 = arith.constant 0 : index
    %c0_111 = arith.constant 0 : index
    %585 = vector.load %arg3[%c42, %c0_110, %c0_111] : memref<79x8x128xf32, #tpu.memory_space<vmem>>, vector<1x8x128xf32>
    %586 = vector.shape_cast %585 : vector<1x8x128xf32> to vector<8x128xf32>
    %587 = vector.extract_strided_slice %584 {offsets = [0, 0], sizes = [8, 128], strides = [1, 1]} : vector<8x384xf32> to vector<8x128xf32>
    %588 = arith.mulf %587, %586 : vector<8x128xf32>
    %589 = arith.addf %577, %588 : vector<8x128xf32>
    %590 = vector.extract_strided_slice %584 {offsets = [0, 128], sizes = [8, 128], strides = [1, 1]} : vector<8x384xf32> to vector<8x128xf32>
    %591 = arith.mulf %590, %586 : vector<8x128xf32>
    %592 = arith.addf %580, %591 : vector<8x128xf32>
    %593 = vector.extract_strided_slice %584 {offsets = [0, 256], sizes = [8, 128], strides = [1, 1]} : vector<8x384xf32> to vector<8x128xf32>
    %594 = arith.mulf %593, %586 : vector<8x128xf32>
    %595 = arith.addf %583, %594 : vector<8x128xf32>
    %596 = vector.extract_strided_slice %1 {offsets = [0, 145], sizes = [8, 384], strides = [1, 1]} : vector<8x640xf32> to vector<8x384xf32>
    %c43 = arith.constant 43 : index
    %c0_112 = arith.constant 0 : index
    %c0_113 = arith.constant 0 : index
    %597 = vector.load %arg3[%c43, %c0_112, %c0_113] : memref<79x8x128xf32, #tpu.memory_space<vmem>>, vector<1x8x128xf32>
    %598 = vector.shape_cast %597 : vector<1x8x128xf32> to vector<8x128xf32>
    %599 = vector.extract_strided_slice %596 {offsets = [0, 0], sizes = [8, 128], strides = [1, 1]} : vector<8x384xf32> to vector<8x128xf32>
    %600 = arith.mulf %599, %598 : vector<8x128xf32>
    %601 = arith.addf %589, %600 : vector<8x128xf32>
    %602 = vector.extract_strided_slice %596 {offsets = [0, 128], sizes = [8, 128], strides = [1, 1]} : vector<8x384xf32> to vector<8x128xf32>
    %603 = arith.mulf %602, %598 : vector<8x128xf32>
    %604 = arith.addf %592, %603 : vector<8x128xf32>
    %605 = vector.extract_strided_slice %596 {offsets = [0, 256], sizes = [8, 128], strides = [1, 1]} : vector<8x384xf32> to vector<8x128xf32>
    %606 = arith.mulf %605, %598 : vector<8x128xf32>
    %607 = arith.addf %595, %606 : vector<8x128xf32>
    %608 = vector.extract_strided_slice %1 {offsets = [0, 146], sizes = [8, 384], strides = [1, 1]} : vector<8x640xf32> to vector<8x384xf32>
    %c44 = arith.constant 44 : index
    %c0_114 = arith.constant 0 : index
    %c0_115 = arith.constant 0 : index
    %609 = vector.load %arg3[%c44, %c0_114, %c0_115] : memref<79x8x128xf32, #tpu.memory_space<vmem>>, vector<1x8x128xf32>
    %610 = vector.shape_cast %609 : vector<1x8x128xf32> to vector<8x128xf32>
    %611 = vector.extract_strided_slice %608 {offsets = [0, 0], sizes = [8, 128], strides = [1, 1]} : vector<8x384xf32> to vector<8x128xf32>
    %612 = arith.mulf %611, %610 : vector<8x128xf32>
    %613 = arith.addf %601, %612 : vector<8x128xf32>
    %614 = vector.extract_strided_slice %608 {offsets = [0, 128], sizes = [8, 128], strides = [1, 1]} : vector<8x384xf32> to vector<8x128xf32>
    %615 = arith.mulf %614, %610 : vector<8x128xf32>
    %616 = arith.addf %604, %615 : vector<8x128xf32>
    %617 = vector.extract_strided_slice %608 {offsets = [0, 256], sizes = [8, 128], strides = [1, 1]} : vector<8x384xf32> to vector<8x128xf32>
    %618 = arith.mulf %617, %610 : vector<8x128xf32>
    %619 = arith.addf %607, %618 : vector<8x128xf32>
    %620 = vector.extract_strided_slice %1 {offsets = [0, 147], sizes = [8, 384], strides = [1, 1]} : vector<8x640xf32> to vector<8x384xf32>
    %c45 = arith.constant 45 : index
    %c0_116 = arith.constant 0 : index
    %c0_117 = arith.constant 0 : index
    %621 = vector.load %arg3[%c45, %c0_116, %c0_117] : memref<79x8x128xf32, #tpu.memory_space<vmem>>, vector<1x8x128xf32>
    %622 = vector.shape_cast %621 : vector<1x8x128xf32> to vector<8x128xf32>
    %623 = vector.extract_strided_slice %620 {offsets = [0, 0], sizes = [8, 128], strides = [1, 1]} : vector<8x384xf32> to vector<8x128xf32>
    %624 = arith.mulf %623, %622 : vector<8x128xf32>
    %625 = arith.addf %613, %624 : vector<8x128xf32>
    %626 = vector.extract_strided_slice %620 {offsets = [0, 128], sizes = [8, 128], strides = [1, 1]} : vector<8x384xf32> to vector<8x128xf32>
    %627 = arith.mulf %626, %622 : vector<8x128xf32>
    %628 = arith.addf %616, %627 : vector<8x128xf32>
    %629 = vector.extract_strided_slice %620 {offsets = [0, 256], sizes = [8, 128], strides = [1, 1]} : vector<8x384xf32> to vector<8x128xf32>
    %630 = arith.mulf %629, %622 : vector<8x128xf32>
    %631 = arith.addf %619, %630 : vector<8x128xf32>
    %632 = vector.extract_strided_slice %1 {offsets = [0, 148], sizes = [8, 384], strides = [1, 1]} : vector<8x640xf32> to vector<8x384xf32>
    %c46 = arith.constant 46 : index
    %c0_118 = arith.constant 0 : index
    %c0_119 = arith.constant 0 : index
    %633 = vector.load %arg3[%c46, %c0_118, %c0_119] : memref<79x8x128xf32, #tpu.memory_space<vmem>>, vector<1x8x128xf32>
    %634 = vector.shape_cast %633 : vector<1x8x128xf32> to vector<8x128xf32>
    %635 = vector.extract_strided_slice %632 {offsets = [0, 0], sizes = [8, 128], strides = [1, 1]} : vector<8x384xf32> to vector<8x128xf32>
    %636 = arith.mulf %635, %634 : vector<8x128xf32>
    %637 = arith.addf %625, %636 : vector<8x128xf32>
    %638 = vector.extract_strided_slice %632 {offsets = [0, 128], sizes = [8, 128], strides = [1, 1]} : vector<8x384xf32> to vector<8x128xf32>
    %639 = arith.mulf %638, %634 : vector<8x128xf32>
    %640 = arith.addf %628, %639 : vector<8x128xf32>
    %641 = vector.extract_strided_slice %632 {offsets = [0, 256], sizes = [8, 128], strides = [1, 1]} : vector<8x384xf32> to vector<8x128xf32>
    %642 = arith.mulf %641, %634 : vector<8x128xf32>
    %643 = arith.addf %631, %642 : vector<8x128xf32>
    %644 = vector.extract_strided_slice %1 {offsets = [0, 149], sizes = [8, 384], strides = [1, 1]} : vector<8x640xf32> to vector<8x384xf32>
    %c47 = arith.constant 47 : index
    %c0_120 = arith.constant 0 : index
    %c0_121 = arith.constant 0 : index
    %645 = vector.load %arg3[%c47, %c0_120, %c0_121] : memref<79x8x128xf32, #tpu.memory_space<vmem>>, vector<1x8x128xf32>
    %646 = vector.shape_cast %645 : vector<1x8x128xf32> to vector<8x128xf32>
    %647 = vector.extract_strided_slice %644 {offsets = [0, 0], sizes = [8, 128], strides = [1, 1]} : vector<8x384xf32> to vector<8x128xf32>
    %648 = arith.mulf %647, %646 : vector<8x128xf32>
    %649 = arith.addf %637, %648 : vector<8x128xf32>
    %650 = vector.extract_strided_slice %644 {offsets = [0, 128], sizes = [8, 128], strides = [1, 1]} : vector<8x384xf32> to vector<8x128xf32>
    %651 = arith.mulf %650, %646 : vector<8x128xf32>
    %652 = arith.addf %640, %651 : vector<8x128xf32>
    %653 = vector.extract_strided_slice %644 {offsets = [0, 256], sizes = [8, 128], strides = [1, 1]} : vector<8x384xf32> to vector<8x128xf32>
    %654 = arith.mulf %653, %646 : vector<8x128xf32>
    %655 = arith.addf %643, %654 : vector<8x128xf32>
    %656 = vector.extract_strided_slice %1 {offsets = [0, 150], sizes = [8, 384], strides = [1, 1]} : vector<8x640xf32> to vector<8x384xf32>
    %c48 = arith.constant 48 : index
    %c0_122 = arith.constant 0 : index
    %c0_123 = arith.constant 0 : index
    %657 = vector.load %arg3[%c48, %c0_122, %c0_123] : memref<79x8x128xf32, #tpu.memory_space<vmem>>, vector<1x8x128xf32>
    %658 = vector.shape_cast %657 : vector<1x8x128xf32> to vector<8x128xf32>
    %659 = vector.extract_strided_slice %656 {offsets = [0, 0], sizes = [8, 128], strides = [1, 1]} : vector<8x384xf32> to vector<8x128xf32>
    %660 = arith.mulf %659, %658 : vector<8x128xf32>
    %661 = arith.addf %649, %660 : vector<8x128xf32>
    %662 = vector.extract_strided_slice %656 {offsets = [0, 128], sizes = [8, 128], strides = [1, 1]} : vector<8x384xf32> to vector<8x128xf32>
    %663 = arith.mulf %662, %658 : vector<8x128xf32>
    %664 = arith.addf %652, %663 : vector<8x128xf32>
    %665 = vector.extract_strided_slice %656 {offsets = [0, 256], sizes = [8, 128], strides = [1, 1]} : vector<8x384xf32> to vector<8x128xf32>
    %666 = arith.mulf %665, %658 : vector<8x128xf32>
    %667 = arith.addf %655, %666 : vector<8x128xf32>
    %c58 = arith.constant 58 : index
    %c0_124 = arith.constant 0 : index
    %c0_125 = arith.constant 0 : index
    %668 = vector.load %arg3[%c58, %c0_124, %c0_125] : memref<79x8x128xf32, #tpu.memory_space<vmem>>, vector<1x8x128xf32>
    %669 = vector.shape_cast %668 : vector<1x8x128xf32> to vector<8x128xf32>
    %c59 = arith.constant 59 : index
    %c0_126 = arith.constant 0 : index
    %c0_127 = arith.constant 0 : index
    %670 = vector.load %arg3[%c59, %c0_126, %c0_127] : memref<79x8x128xf32, #tpu.memory_space<vmem>>, vector<1x8x128xf32>
    %671 = vector.shape_cast %670 : vector<1x8x128xf32> to vector<8x128xf32>
    %c60 = arith.constant 60 : index
    %c0_128 = arith.constant 0 : index
    %c0_129 = arith.constant 0 : index
    %672 = vector.load %arg3[%c60, %c0_128, %c0_129] : memref<79x8x128xf32, #tpu.memory_space<vmem>>, vector<1x8x128xf32>
    %673 = vector.shape_cast %672 : vector<1x8x128xf32> to vector<8x128xf32>
    %c61 = arith.constant 61 : index
    %c0_130 = arith.constant 0 : index
    %c0_131 = arith.constant 0 : index
    %674 = vector.load %arg3[%c61, %c0_130, %c0_131] : memref<79x8x128xf32, #tpu.memory_space<vmem>>, vector<1x8x128xf32>
    %675 = vector.shape_cast %674 : vector<1x8x128xf32> to vector<8x128xf32>
    %c62 = arith.constant 62 : index
    %c0_132 = arith.constant 0 : index
    %c0_133 = arith.constant 0 : index
    %676 = vector.load %arg3[%c62, %c0_132, %c0_133] : memref<79x8x128xf32, #tpu.memory_space<vmem>>, vector<1x8x128xf32>
    %677 = vector.shape_cast %676 : vector<1x8x128xf32> to vector<8x128xf32>
    %c8_134 = arith.constant 8 : index
    %c0_135 = arith.constant 0 : index
    %c0_136 = arith.constant 0 : index
    %678 = vector.load %arg4[%c8_134, %c0_135, %c0_136] : memref<9x16x128xf32, #tpu.memory_space<vmem>>, vector<1x16x128xf32>
    %679 = vector.shape_cast %678 : vector<1x16x128xf32> to vector<16x128xf32>
    %680 = arith.addf %661, %669 : vector<8x128xf32>
    %cst_137 = arith.constant 5.000000e-01 : f32
    %681 = vector.broadcast %cst_137 : f32 to vector<8x128xf32>
    %682 = arith.mulf %681, %680 : vector<8x128xf32>
    %cst_138 = arith.constant 0.707106769 : f32
    %683 = vector.broadcast %cst_138 : f32 to vector<8x128xf32>
    %684 = arith.mulf %680, %683 : vector<8x128xf32>
    %cst_139 = arith.constant 0.000000e+00 : f32
    %685 = vector.broadcast %cst_139 : f32 to vector<8x128xf32>
    %686 = arith.cmpf olt, %684, %685 : vector<8x128xf32>
    %cst_140 = arith.constant -1.000000e+00 : f32
    %cst_141 = arith.constant 1.000000e+00 : f32
    %687 = vector.broadcast %cst_140 : f32 to vector<8x128xf32>
    %688 = vector.broadcast %cst_141 : f32 to vector<8x128xf32>
    %689 = arith.select %686, %687, %688 : vector<8x128xi1>, vector<8x128xf32>
    %690 = math.absf %684 : vector<8x128xf32>
    %cst_142 = arith.constant 0.327591091 : f32
    %691 = vector.broadcast %cst_142 : f32 to vector<8x128xf32>
    %692 = arith.mulf %691, %690 : vector<8x128xf32>
    %cst_143 = arith.constant 1.000000e+00 : f32
    %693 = vector.broadcast %cst_143 : f32 to vector<8x128xf32>
    %694 = arith.addf %693, %692 : vector<8x128xf32>
    %695 = tpu.reciprocal %694 {approx = true} : vector<8x128xf32> -> vector<8x128xf32>
    %696 = arith.mulf %694, %695 : vector<8x128xf32>
    %cst_144 = arith.constant 2.000000e+00 : f32
    %697 = vector.broadcast %cst_144 : f32 to vector<8x128xf32>
    %698 = arith.subf %697, %696 : vector<8x128xf32>
    %699 = arith.mulf %695, %698 : vector<8x128xf32>
    %cst_145 = arith.constant 1.06140542 : f32
    %700 = vector.broadcast %cst_145 : f32 to vector<8x128xf32>
    %701 = arith.mulf %700, %699 : vector<8x128xf32>
    %cst_146 = arith.constant -1.45315206 : f32
    %702 = vector.broadcast %cst_146 : f32 to vector<8x128xf32>
    %703 = arith.addf %701, %702 : vector<8x128xf32>
    %704 = arith.mulf %703, %699 : vector<8x128xf32>
    %cst_147 = arith.constant 1.42141378 : f32
    %705 = vector.broadcast %cst_147 : f32 to vector<8x128xf32>
    %706 = arith.addf %704, %705 : vector<8x128xf32>
    %707 = arith.mulf %706, %699 : vector<8x128xf32>
    %cst_148 = arith.constant -0.284496725 : f32
    %708 = vector.broadcast %cst_148 : f32 to vector<8x128xf32>
    %709 = arith.addf %707, %708 : vector<8x128xf32>
    %710 = arith.mulf %709, %699 : vector<8x128xf32>
    %cst_149 = arith.constant 0.254829586 : f32
    %711 = vector.broadcast %cst_149 : f32 to vector<8x128xf32>
    %712 = arith.addf %710, %711 : vector<8x128xf32>
    %713 = arith.mulf %712, %699 : vector<8x128xf32>
    %cst_150 = arith.constant 0.000000e+00 : f32
    %714 = vector.broadcast %cst_150 : f32 to vector<8x128xf32>
    %715 = arith.subf %714, %690 : vector<8x128xf32>
    %716 = arith.mulf %715, %690 : vector<8x128xf32>
    %717 = math.exp %716 : vector<8x128xf32>
    %718 = arith.mulf %713, %717 : vector<8x128xf32>
    %cst_151 = arith.constant 1.000000e+00 : f32
    %719 = vector.broadcast %cst_151 : f32 to vector<8x128xf32>
    %720 = arith.subf %719, %718 : vector<8x128xf32>
    %721 = arith.mulf %689, %720 : vector<8x128xf32>
    %cst_152 = arith.constant 1.000000e+00 : f32
    %722 = vector.broadcast %cst_152 : f32 to vector<8x128xf32>
    %723 = arith.addf %722, %721 : vector<8x128xf32>
    %724 = arith.mulf %682, %723 : vector<8x128xf32>
    %725 = arith.mulf %724, %673 : vector<8x128xf32>
    %726 = arith.addf %465, %671 : vector<8x128xf32>
    %cst_153 = arith.constant 5.000000e-01 : f32
    %727 = vector.broadcast %cst_153 : f32 to vector<8x128xf32>
    %728 = arith.mulf %727, %726 : vector<8x128xf32>
    %cst_154 = arith.constant 0.707106769 : f32
    %729 = vector.broadcast %cst_154 : f32 to vector<8x128xf32>
    %730 = arith.mulf %726, %729 : vector<8x128xf32>
    %cst_155 = arith.constant 0.000000e+00 : f32
    %731 = vector.broadcast %cst_155 : f32 to vector<8x128xf32>
    %732 = arith.cmpf olt, %730, %731 : vector<8x128xf32>
    %cst_156 = arith.constant -1.000000e+00 : f32
    %cst_157 = arith.constant 1.000000e+00 : f32
    %733 = vector.broadcast %cst_156 : f32 to vector<8x128xf32>
    %734 = vector.broadcast %cst_157 : f32 to vector<8x128xf32>
    %735 = arith.select %732, %733, %734 : vector<8x128xi1>, vector<8x128xf32>
    %736 = math.absf %730 : vector<8x128xf32>
    %cst_158 = arith.constant 0.327591091 : f32
    %737 = vector.broadcast %cst_158 : f32 to vector<8x128xf32>
    %738 = arith.mulf %737, %736 : vector<8x128xf32>
    %cst_159 = arith.constant 1.000000e+00 : f32
    %739 = vector.broadcast %cst_159 : f32 to vector<8x128xf32>
    %740 = arith.addf %739, %738 : vector<8x128xf32>
    %741 = tpu.reciprocal %740 {approx = true} : vector<8x128xf32> -> vector<8x128xf32>
    %742 = arith.mulf %740, %741 : vector<8x128xf32>
    %cst_160 = arith.constant 2.000000e+00 : f32
    %743 = vector.broadcast %cst_160 : f32 to vector<8x128xf32>
    %744 = arith.subf %743, %742 : vector<8x128xf32>
    %745 = arith.mulf %741, %744 : vector<8x128xf32>
    %cst_161 = arith.constant 1.06140542 : f32
    %746 = vector.broadcast %cst_161 : f32 to vector<8x128xf32>
    %747 = arith.mulf %746, %745 : vector<8x128xf32>
    %cst_162 = arith.constant -1.45315206 : f32
    %748 = vector.broadcast %cst_162 : f32 to vector<8x128xf32>
    %749 = arith.addf %747, %748 : vector<8x128xf32>
    %750 = arith.mulf %749, %745 : vector<8x128xf32>
    %cst_163 = arith.constant 1.42141378 : f32
    %751 = vector.broadcast %cst_163 : f32 to vector<8x128xf32>
    %752 = arith.addf %750, %751 : vector<8x128xf32>
    %753 = arith.mulf %752, %745 : vector<8x128xf32>
    %cst_164 = arith.constant -0.284496725 : f32
    %754 = vector.broadcast %cst_164 : f32 to vector<8x128xf32>
    %755 = arith.addf %753, %754 : vector<8x128xf32>
    %756 = arith.mulf %755, %745 : vector<8x128xf32>
    %cst_165 = arith.constant 0.254829586 : f32
    %757 = vector.broadcast %cst_165 : f32 to vector<8x128xf32>
    %758 = arith.addf %756, %757 : vector<8x128xf32>
    %759 = arith.mulf %758, %745 : vector<8x128xf32>
    %cst_166 = arith.constant 0.000000e+00 : f32
    %760 = vector.broadcast %cst_166 : f32 to vector<8x128xf32>
    %761 = arith.subf %760, %736 : vector<8x128xf32>
    %762 = arith.mulf %761, %736 : vector<8x128xf32>
    %763 = math.exp %762 : vector<8x128xf32>
    %764 = arith.mulf %759, %763 : vector<8x128xf32>
    %cst_167 = arith.constant 1.000000e+00 : f32
    %765 = vector.broadcast %cst_167 : f32 to vector<8x128xf32>
    %766 = arith.subf %765, %764 : vector<8x128xf32>
    %767 = arith.mulf %735, %766 : vector<8x128xf32>
    %cst_168 = arith.constant 1.000000e+00 : f32
    %768 = vector.broadcast %cst_168 : f32 to vector<8x128xf32>
    %769 = arith.addf %768, %767 : vector<8x128xf32>
    %770 = arith.mulf %728, %769 : vector<8x128xf32>
    %771 = arith.mulf %770, %675 : vector<8x128xf32>
    %772 = arith.addf %725, %771 : vector<8x128xf32>
    %c0_169 = arith.constant 0 : index
    %c0_170 = arith.constant 0 : index
    %c0_171 = arith.constant 0 : index
    %773 = vector.load %arg4[%c0_169, %c0_170, %c0_171] : memref<9x16x128xf32, #tpu.memory_space<vmem>>, vector<1x16x128xf32>
    %774 = vector.shape_cast %773 : vector<1x16x128xf32> to vector<16x128xf32>
    %775 = vector.extract_strided_slice %772 {offsets = [0, 0], sizes = [1, 128], strides = [1, 1]} : vector<8x128xf32> to vector<1x128xf32>
    %776 = vector.shape_cast %775 : vector<1x128xf32> to vector<1x128xf32>
    %777 = vector.broadcast %776 : vector<1x128xf32> to vector<16x128xf32>
    %778 = arith.mulf %774, %777 : vector<16x128xf32>
    %779 = arith.addf %679, %778 : vector<16x128xf32>
    %c1_172 = arith.constant 1 : index
    %c0_173 = arith.constant 0 : index
    %c0_174 = arith.constant 0 : index
    %780 = vector.load %arg4[%c1_172, %c0_173, %c0_174] : memref<9x16x128xf32, #tpu.memory_space<vmem>>, vector<1x16x128xf32>
    %781 = vector.shape_cast %780 : vector<1x16x128xf32> to vector<16x128xf32>
    %782 = vector.extract_strided_slice %772 {offsets = [1, 0], sizes = [1, 128], strides = [1, 1]} : vector<8x128xf32> to vector<1x128xf32>
    %783 = vector.shape_cast %782 : vector<1x128xf32> to vector<1x128xf32>
    %784 = vector.broadcast %783 : vector<1x128xf32> to vector<16x128xf32>
    %785 = arith.mulf %781, %784 : vector<16x128xf32>
    %786 = arith.addf %779, %785 : vector<16x128xf32>
    %c2_175 = arith.constant 2 : index
    %c0_176 = arith.constant 0 : index
    %c0_177 = arith.constant 0 : index
    %787 = vector.load %arg4[%c2_175, %c0_176, %c0_177] : memref<9x16x128xf32, #tpu.memory_space<vmem>>, vector<1x16x128xf32>
    %788 = vector.shape_cast %787 : vector<1x16x128xf32> to vector<16x128xf32>
    %789 = vector.extract_strided_slice %772 {offsets = [2, 0], sizes = [1, 128], strides = [1, 1]} : vector<8x128xf32> to vector<1x128xf32>
    %790 = vector.shape_cast %789 : vector<1x128xf32> to vector<1x128xf32>
    %791 = vector.broadcast %790 : vector<1x128xf32> to vector<16x128xf32>
    %792 = arith.mulf %788, %791 : vector<16x128xf32>
    %793 = arith.addf %786, %792 : vector<16x128xf32>
    %c3_178 = arith.constant 3 : index
    %c0_179 = arith.constant 0 : index
    %c0_180 = arith.constant 0 : index
    %794 = vector.load %arg4[%c3_178, %c0_179, %c0_180] : memref<9x16x128xf32, #tpu.memory_space<vmem>>, vector<1x16x128xf32>
    %795 = vector.shape_cast %794 : vector<1x16x128xf32> to vector<16x128xf32>
    %796 = vector.extract_strided_slice %772 {offsets = [3, 0], sizes = [1, 128], strides = [1, 1]} : vector<8x128xf32> to vector<1x128xf32>
    %797 = vector.shape_cast %796 : vector<1x128xf32> to vector<1x128xf32>
    %798 = vector.broadcast %797 : vector<1x128xf32> to vector<16x128xf32>
    %799 = arith.mulf %795, %798 : vector<16x128xf32>
    %800 = arith.addf %793, %799 : vector<16x128xf32>
    %c4_181 = arith.constant 4 : index
    %c0_182 = arith.constant 0 : index
    %c0_183 = arith.constant 0 : index
    %801 = vector.load %arg4[%c4_181, %c0_182, %c0_183] : memref<9x16x128xf32, #tpu.memory_space<vmem>>, vector<1x16x128xf32>
    %802 = vector.shape_cast %801 : vector<1x16x128xf32> to vector<16x128xf32>
    %803 = vector.extract_strided_slice %772 {offsets = [4, 0], sizes = [1, 128], strides = [1, 1]} : vector<8x128xf32> to vector<1x128xf32>
    %804 = vector.shape_cast %803 : vector<1x128xf32> to vector<1x128xf32>
    %805 = vector.broadcast %804 : vector<1x128xf32> to vector<16x128xf32>
    %806 = arith.mulf %802, %805 : vector<16x128xf32>
    %807 = arith.addf %800, %806 : vector<16x128xf32>
    %c5_184 = arith.constant 5 : index
    %c0_185 = arith.constant 0 : index
    %c0_186 = arith.constant 0 : index
    %808 = vector.load %arg4[%c5_184, %c0_185, %c0_186] : memref<9x16x128xf32, #tpu.memory_space<vmem>>, vector<1x16x128xf32>
    %809 = vector.shape_cast %808 : vector<1x16x128xf32> to vector<16x128xf32>
    %810 = vector.extract_strided_slice %772 {offsets = [5, 0], sizes = [1, 128], strides = [1, 1]} : vector<8x128xf32> to vector<1x128xf32>
    %811 = vector.shape_cast %810 : vector<1x128xf32> to vector<1x128xf32>
    %812 = vector.broadcast %811 : vector<1x128xf32> to vector<16x128xf32>
    %813 = arith.mulf %809, %812 : vector<16x128xf32>
    %814 = arith.addf %807, %813 : vector<16x128xf32>
    %c6_187 = arith.constant 6 : index
    %c0_188 = arith.constant 0 : index
    %c0_189 = arith.constant 0 : index
    %815 = vector.load %arg4[%c6_187, %c0_188, %c0_189] : memref<9x16x128xf32, #tpu.memory_space<vmem>>, vector<1x16x128xf32>
    %816 = vector.shape_cast %815 : vector<1x16x128xf32> to vector<16x128xf32>
    %817 = vector.extract_strided_slice %772 {offsets = [6, 0], sizes = [1, 128], strides = [1, 1]} : vector<8x128xf32> to vector<1x128xf32>
    %818 = vector.shape_cast %817 : vector<1x128xf32> to vector<1x128xf32>
    %819 = vector.broadcast %818 : vector<1x128xf32> to vector<16x128xf32>
    %820 = arith.mulf %816, %819 : vector<16x128xf32>
    %821 = arith.addf %814, %820 : vector<16x128xf32>
    %c7_190 = arith.constant 7 : index
    %c0_191 = arith.constant 0 : index
    %c0_192 = arith.constant 0 : index
    %822 = vector.load %arg4[%c7_190, %c0_191, %c0_192] : memref<9x16x128xf32, #tpu.memory_space<vmem>>, vector<1x16x128xf32>
    %823 = vector.shape_cast %822 : vector<1x16x128xf32> to vector<16x128xf32>
    %824 = vector.extract_strided_slice %772 {offsets = [7, 0], sizes = [1, 128], strides = [1, 1]} : vector<8x128xf32> to vector<1x128xf32>
    %825 = vector.shape_cast %824 : vector<1x128xf32> to vector<1x128xf32>
    %826 = vector.broadcast %825 : vector<1x128xf32> to vector<16x128xf32>
    %827 = arith.mulf %823, %826 : vector<16x128xf32>
    %828 = arith.addf %821, %827 : vector<16x128xf32>
    %cst_193 = arith.constant 5.000000e-01 : f32
    %829 = vector.broadcast %cst_193 : f32 to vector<16x128xf32>
    %830 = arith.mulf %829, %828 : vector<16x128xf32>
    %cst_194 = arith.constant 0.707106769 : f32
    %831 = vector.broadcast %cst_194 : f32 to vector<16x128xf32>
    %832 = arith.mulf %828, %831 : vector<16x128xf32>
    %cst_195 = arith.constant 0.000000e+00 : f32
    %833 = vector.broadcast %cst_195 : f32 to vector<16x128xf32>
    %834 = arith.cmpf olt, %832, %833 : vector<16x128xf32>
    %cst_196 = arith.constant -1.000000e+00 : f32
    %cst_197 = arith.constant 1.000000e+00 : f32
    %835 = vector.broadcast %cst_196 : f32 to vector<16x128xf32>
    %836 = vector.broadcast %cst_197 : f32 to vector<16x128xf32>
    %837 = arith.select %834, %835, %836 : vector<16x128xi1>, vector<16x128xf32>
    %838 = math.absf %832 : vector<16x128xf32>
    %cst_198 = arith.constant 0.327591091 : f32
    %839 = vector.broadcast %cst_198 : f32 to vector<16x128xf32>
    %840 = arith.mulf %839, %838 : vector<16x128xf32>
    %cst_199 = arith.constant 1.000000e+00 : f32
    %841 = vector.broadcast %cst_199 : f32 to vector<16x128xf32>
    %842 = arith.addf %841, %840 : vector<16x128xf32>
    %843 = tpu.reciprocal %842 {approx = true} : vector<16x128xf32> -> vector<16x128xf32>
    %844 = arith.mulf %842, %843 : vector<16x128xf32>
    %cst_200 = arith.constant 2.000000e+00 : f32
    %845 = vector.broadcast %cst_200 : f32 to vector<16x128xf32>
    %846 = arith.subf %845, %844 : vector<16x128xf32>
    %847 = arith.mulf %843, %846 : vector<16x128xf32>
    %cst_201 = arith.constant 1.06140542 : f32
    %848 = vector.broadcast %cst_201 : f32 to vector<16x128xf32>
    %849 = arith.mulf %848, %847 : vector<16x128xf32>
    %cst_202 = arith.constant -1.45315206 : f32
    %850 = vector.broadcast %cst_202 : f32 to vector<16x128xf32>
    %851 = arith.addf %849, %850 : vector<16x128xf32>
    %852 = arith.mulf %851, %847 : vector<16x128xf32>
    %cst_203 = arith.constant 1.42141378 : f32
    %853 = vector.broadcast %cst_203 : f32 to vector<16x128xf32>
    %854 = arith.addf %852, %853 : vector<16x128xf32>
    %855 = arith.mulf %854, %847 : vector<16x128xf32>
    %cst_204 = arith.constant -0.284496725 : f32
    %856 = vector.broadcast %cst_204 : f32 to vector<16x128xf32>
    %857 = arith.addf %855, %856 : vector<16x128xf32>
    %858 = arith.mulf %857, %847 : vector<16x128xf32>
    %cst_205 = arith.constant 0.254829586 : f32
    %859 = vector.broadcast %cst_205 : f32 to vector<16x128xf32>
    %860 = arith.addf %858, %859 : vector<16x128xf32>
    %861 = arith.mulf %860, %847 : vector<16x128xf32>
    %cst_206 = arith.constant 0.000000e+00 : f32
    %862 = vector.broadcast %cst_206 : f32 to vector<16x128xf32>
    %863 = arith.subf %862, %838 : vector<16x128xf32>
    %864 = arith.mulf %863, %838 : vector<16x128xf32>
    %865 = math.exp %864 : vector<16x128xf32>
    %866 = arith.mulf %861, %865 : vector<16x128xf32>
    %cst_207 = arith.constant 1.000000e+00 : f32
    %867 = vector.broadcast %cst_207 : f32 to vector<16x128xf32>
    %868 = arith.subf %867, %866 : vector<16x128xf32>
    %869 = arith.mulf %837, %868 : vector<16x128xf32>
    %cst_208 = arith.constant 1.000000e+00 : f32
    %870 = vector.broadcast %cst_208 : f32 to vector<16x128xf32>
    %871 = arith.addf %870, %869 : vector<16x128xf32>
    %872 = arith.mulf %830, %871 : vector<16x128xf32>
    %c63 = arith.constant 63 : index
    %c0_209 = arith.constant 0 : index
    %c0_210 = arith.constant 0 : index
    %873 = vector.load %arg3[%c63, %c0_209, %c0_210] : memref<79x8x128xf32, #tpu.memory_space<vmem>>, vector<1x8x128xf32>
    %874 = vector.shape_cast %873 : vector<1x8x128xf32> to vector<8x128xf32>
    %875 = vector.extract_strided_slice %872 {offsets = [0, 0], sizes = [1, 128], strides = [1, 1]} : vector<16x128xf32> to vector<1x128xf32>
    %876 = vector.shape_cast %875 : vector<1x128xf32> to vector<1x128xf32>
    %877 = vector.broadcast %876 : vector<1x128xf32> to vector<8x128xf32>
    %878 = arith.mulf %874, %877 : vector<8x128xf32>
    %879 = arith.addf %677, %878 : vector<8x128xf32>
    %c64 = arith.constant 64 : index
    %c0_211 = arith.constant 0 : index
    %c0_212 = arith.constant 0 : index
    %880 = vector.load %arg3[%c64, %c0_211, %c0_212] : memref<79x8x128xf32, #tpu.memory_space<vmem>>, vector<1x8x128xf32>
    %881 = vector.shape_cast %880 : vector<1x8x128xf32> to vector<8x128xf32>
    %882 = vector.extract_strided_slice %872 {offsets = [1, 0], sizes = [1, 128], strides = [1, 1]} : vector<16x128xf32> to vector<1x128xf32>
    %883 = vector.shape_cast %882 : vector<1x128xf32> to vector<1x128xf32>
    %884 = vector.broadcast %883 : vector<1x128xf32> to vector<8x128xf32>
    %885 = arith.mulf %881, %884 : vector<8x128xf32>
    %886 = arith.addf %879, %885 : vector<8x128xf32>
    %c65 = arith.constant 65 : index
    %c0_213 = arith.constant 0 : index
    %c0_214 = arith.constant 0 : index
    %887 = vector.load %arg3[%c65, %c0_213, %c0_214] : memref<79x8x128xf32, #tpu.memory_space<vmem>>, vector<1x8x128xf32>
    %888 = vector.shape_cast %887 : vector<1x8x128xf32> to vector<8x128xf32>
    %889 = vector.extract_strided_slice %872 {offsets = [2, 0], sizes = [1, 128], strides = [1, 1]} : vector<16x128xf32> to vector<1x128xf32>
    %890 = vector.shape_cast %889 : vector<1x128xf32> to vector<1x128xf32>
    %891 = vector.broadcast %890 : vector<1x128xf32> to vector<8x128xf32>
    %892 = arith.mulf %888, %891 : vector<8x128xf32>
    %893 = arith.addf %886, %892 : vector<8x128xf32>
    %c66 = arith.constant 66 : index
    %c0_215 = arith.constant 0 : index
    %c0_216 = arith.constant 0 : index
    %894 = vector.load %arg3[%c66, %c0_215, %c0_216] : memref<79x8x128xf32, #tpu.memory_space<vmem>>, vector<1x8x128xf32>
    %895 = vector.shape_cast %894 : vector<1x8x128xf32> to vector<8x128xf32>
    %896 = vector.extract_strided_slice %872 {offsets = [3, 0], sizes = [1, 128], strides = [1, 1]} : vector<16x128xf32> to vector<1x128xf32>
    %897 = vector.shape_cast %896 : vector<1x128xf32> to vector<1x128xf32>
    %898 = vector.broadcast %897 : vector<1x128xf32> to vector<8x128xf32>
    %899 = arith.mulf %895, %898 : vector<8x128xf32>
    %900 = arith.addf %893, %899 : vector<8x128xf32>
    %c67 = arith.constant 67 : index
    %c0_217 = arith.constant 0 : index
    %c0_218 = arith.constant 0 : index
    %901 = vector.load %arg3[%c67, %c0_217, %c0_218] : memref<79x8x128xf32, #tpu.memory_space<vmem>>, vector<1x8x128xf32>
    %902 = vector.shape_cast %901 : vector<1x8x128xf32> to vector<8x128xf32>
    %903 = vector.extract_strided_slice %872 {offsets = [4, 0], sizes = [1, 128], strides = [1, 1]} : vector<16x128xf32> to vector<1x128xf32>
    %904 = vector.shape_cast %903 : vector<1x128xf32> to vector<1x128xf32>
    %905 = vector.broadcast %904 : vector<1x128xf32> to vector<8x128xf32>
    %906 = arith.mulf %902, %905 : vector<8x128xf32>
    %907 = arith.addf %900, %906 : vector<8x128xf32>
    %c68 = arith.constant 68 : index
    %c0_219 = arith.constant 0 : index
    %c0_220 = arith.constant 0 : index
    %908 = vector.load %arg3[%c68, %c0_219, %c0_220] : memref<79x8x128xf32, #tpu.memory_space<vmem>>, vector<1x8x128xf32>
    %909 = vector.shape_cast %908 : vector<1x8x128xf32> to vector<8x128xf32>
    %910 = vector.extract_strided_slice %872 {offsets = [5, 0], sizes = [1, 128], strides = [1, 1]} : vector<16x128xf32> to vector<1x128xf32>
    %911 = vector.shape_cast %910 : vector<1x128xf32> to vector<1x128xf32>
    %912 = vector.broadcast %911 : vector<1x128xf32> to vector<8x128xf32>
    %913 = arith.mulf %909, %912 : vector<8x128xf32>
    %914 = arith.addf %907, %913 : vector<8x128xf32>
    %c69 = arith.constant 69 : index
    %c0_221 = arith.constant 0 : index
    %c0_222 = arith.constant 0 : index
    %915 = vector.load %arg3[%c69, %c0_221, %c0_222] : memref<79x8x128xf32, #tpu.memory_space<vmem>>, vector<1x8x128xf32>
    %916 = vector.shape_cast %915 : vector<1x8x128xf32> to vector<8x128xf32>
    %917 = vector.extract_strided_slice %872 {offsets = [6, 0], sizes = [1, 128], strides = [1, 1]} : vector<16x128xf32> to vector<1x128xf32>
    %918 = vector.shape_cast %917 : vector<1x128xf32> to vector<1x128xf32>
    %919 = vector.broadcast %918 : vector<1x128xf32> to vector<8x128xf32>
    %920 = arith.mulf %916, %919 : vector<8x128xf32>
    %921 = arith.addf %914, %920 : vector<8x128xf32>
    %c70 = arith.constant 70 : index
    %c0_223 = arith.constant 0 : index
    %c0_224 = arith.constant 0 : index
    %922 = vector.load %arg3[%c70, %c0_223, %c0_224] : memref<79x8x128xf32, #tpu.memory_space<vmem>>, vector<1x8x128xf32>
    %923 = vector.shape_cast %922 : vector<1x8x128xf32> to vector<8x128xf32>
    %924 = vector.extract_strided_slice %872 {offsets = [7, 0], sizes = [1, 128], strides = [1, 1]} : vector<16x128xf32> to vector<1x128xf32>
    %925 = vector.shape_cast %924 : vector<1x128xf32> to vector<1x128xf32>
    %926 = vector.broadcast %925 : vector<1x128xf32> to vector<8x128xf32>
    %927 = arith.mulf %923, %926 : vector<8x128xf32>
    %928 = arith.addf %921, %927 : vector<8x128xf32>
    %c71 = arith.constant 71 : index
    %c0_225 = arith.constant 0 : index
    %c0_226 = arith.constant 0 : index
    %929 = vector.load %arg3[%c71, %c0_225, %c0_226] : memref<79x8x128xf32, #tpu.memory_space<vmem>>, vector<1x8x128xf32>
    %930 = vector.shape_cast %929 : vector<1x8x128xf32> to vector<8x128xf32>
    %931 = vector.extract_strided_slice %872 {offsets = [8, 0], sizes = [1, 128], strides = [1, 1]} : vector<16x128xf32> to vector<1x128xf32>
    %932 = vector.shape_cast %931 : vector<1x128xf32> to vector<1x128xf32>
    %933 = vector.broadcast %932 : vector<1x128xf32> to vector<8x128xf32>
    %934 = arith.mulf %930, %933 : vector<8x128xf32>
    %935 = arith.addf %928, %934 : vector<8x128xf32>
    %c72 = arith.constant 72 : index
    %c0_227 = arith.constant 0 : index
    %c0_228 = arith.constant 0 : index
    %936 = vector.load %arg3[%c72, %c0_227, %c0_228] : memref<79x8x128xf32, #tpu.memory_space<vmem>>, vector<1x8x128xf32>
    %937 = vector.shape_cast %936 : vector<1x8x128xf32> to vector<8x128xf32>
    %938 = vector.extract_strided_slice %872 {offsets = [9, 0], sizes = [1, 128], strides = [1, 1]} : vector<16x128xf32> to vector<1x128xf32>
    %939 = vector.shape_cast %938 : vector<1x128xf32> to vector<1x128xf32>
    %940 = vector.broadcast %939 : vector<1x128xf32> to vector<8x128xf32>
    %941 = arith.mulf %937, %940 : vector<8x128xf32>
    %942 = arith.addf %935, %941 : vector<8x128xf32>
    %c73 = arith.constant 73 : index
    %c0_229 = arith.constant 0 : index
    %c0_230 = arith.constant 0 : index
    %943 = vector.load %arg3[%c73, %c0_229, %c0_230] : memref<79x8x128xf32, #tpu.memory_space<vmem>>, vector<1x8x128xf32>
    %944 = vector.shape_cast %943 : vector<1x8x128xf32> to vector<8x128xf32>
    %945 = vector.extract_strided_slice %872 {offsets = [10, 0], sizes = [1, 128], strides = [1, 1]} : vector<16x128xf32> to vector<1x128xf32>
    %946 = vector.shape_cast %945 : vector<1x128xf32> to vector<1x128xf32>
    %947 = vector.broadcast %946 : vector<1x128xf32> to vector<8x128xf32>
    %948 = arith.mulf %944, %947 : vector<8x128xf32>
    %949 = arith.addf %942, %948 : vector<8x128xf32>
    %c74 = arith.constant 74 : index
    %c0_231 = arith.constant 0 : index
    %c0_232 = arith.constant 0 : index
    %950 = vector.load %arg3[%c74, %c0_231, %c0_232] : memref<79x8x128xf32, #tpu.memory_space<vmem>>, vector<1x8x128xf32>
    %951 = vector.shape_cast %950 : vector<1x8x128xf32> to vector<8x128xf32>
    %952 = vector.extract_strided_slice %872 {offsets = [11, 0], sizes = [1, 128], strides = [1, 1]} : vector<16x128xf32> to vector<1x128xf32>
    %953 = vector.shape_cast %952 : vector<1x128xf32> to vector<1x128xf32>
    %954 = vector.broadcast %953 : vector<1x128xf32> to vector<8x128xf32>
    %955 = arith.mulf %951, %954 : vector<8x128xf32>
    %956 = arith.addf %949, %955 : vector<8x128xf32>
    %c75 = arith.constant 75 : index
    %c0_233 = arith.constant 0 : index
    %c0_234 = arith.constant 0 : index
    %957 = vector.load %arg3[%c75, %c0_233, %c0_234] : memref<79x8x128xf32, #tpu.memory_space<vmem>>, vector<1x8x128xf32>
    %958 = vector.shape_cast %957 : vector<1x8x128xf32> to vector<8x128xf32>
    %959 = vector.extract_strided_slice %872 {offsets = [12, 0], sizes = [1, 128], strides = [1, 1]} : vector<16x128xf32> to vector<1x128xf32>
    %960 = vector.shape_cast %959 : vector<1x128xf32> to vector<1x128xf32>
    %961 = vector.broadcast %960 : vector<1x128xf32> to vector<8x128xf32>
    %962 = arith.mulf %958, %961 : vector<8x128xf32>
    %963 = arith.addf %956, %962 : vector<8x128xf32>
    %c76 = arith.constant 76 : index
    %c0_235 = arith.constant 0 : index
    %c0_236 = arith.constant 0 : index
    %964 = vector.load %arg3[%c76, %c0_235, %c0_236] : memref<79x8x128xf32, #tpu.memory_space<vmem>>, vector<1x8x128xf32>
    %965 = vector.shape_cast %964 : vector<1x8x128xf32> to vector<8x128xf32>
    %966 = vector.extract_strided_slice %872 {offsets = [13, 0], sizes = [1, 128], strides = [1, 1]} : vector<16x128xf32> to vector<1x128xf32>
    %967 = vector.shape_cast %966 : vector<1x128xf32> to vector<1x128xf32>
    %968 = vector.broadcast %967 : vector<1x128xf32> to vector<8x128xf32>
    %969 = arith.mulf %965, %968 : vector<8x128xf32>
    %970 = arith.addf %963, %969 : vector<8x128xf32>
    %c77 = arith.constant 77 : index
    %c0_237 = arith.constant 0 : index
    %c0_238 = arith.constant 0 : index
    %971 = vector.load %arg3[%c77, %c0_237, %c0_238] : memref<79x8x128xf32, #tpu.memory_space<vmem>>, vector<1x8x128xf32>
    %972 = vector.shape_cast %971 : vector<1x8x128xf32> to vector<8x128xf32>
    %973 = vector.extract_strided_slice %872 {offsets = [14, 0], sizes = [1, 128], strides = [1, 1]} : vector<16x128xf32> to vector<1x128xf32>
    %974 = vector.shape_cast %973 : vector<1x128xf32> to vector<1x128xf32>
    %975 = vector.broadcast %974 : vector<1x128xf32> to vector<8x128xf32>
    %976 = arith.mulf %972, %975 : vector<8x128xf32>
    %977 = arith.addf %970, %976 : vector<8x128xf32>
    %c78 = arith.constant 78 : index
    %c0_239 = arith.constant 0 : index
    %c0_240 = arith.constant 0 : index
    %978 = vector.load %arg3[%c78, %c0_239, %c0_240] : memref<79x8x128xf32, #tpu.memory_space<vmem>>, vector<1x8x128xf32>
    %979 = vector.shape_cast %978 : vector<1x8x128xf32> to vector<8x128xf32>
    %980 = vector.extract_strided_slice %872 {offsets = [15, 0], sizes = [1, 128], strides = [1, 1]} : vector<16x128xf32> to vector<1x128xf32>
    %981 = vector.shape_cast %980 : vector<1x128xf32> to vector<1x128xf32>
    %982 = vector.broadcast %981 : vector<1x128xf32> to vector<8x128xf32>
    %983 = arith.mulf %979, %982 : vector<8x128xf32>
    %984 = arith.addf %977, %983 : vector<8x128xf32>
    %c0_241 = arith.constant 0 : index
    %c0_242 = arith.constant 0 : index
    %c0_243 = arith.constant 0 : index
    %985 = vector.load %arg2[%c0_241, %c0_242, %c0_243] : memref<1x8x384xf32, #tpu.memory_space<vmem>>, vector<1x8x128xf32>
    %986 = vector.shape_cast %985 : vector<1x8x128xf32> to vector<8x128xf32>
    %987 = arith.addf %984, %986 : vector<8x128xf32>
    %c0_244 = arith.constant 0 : index
    %c0_245 = arith.constant 0 : index
    %c0_246 = arith.constant 0 : index
    %988 = vector.load %arg5[%c0_244, %c0_245, %c0_246] : memref<1x8x384xf32, #tpu.memory_space<vmem>>, vector<1x8x128xf32>
    %989 = vector.shape_cast %988 : vector<1x8x128xf32> to vector<8x128xf32>
    %990 = vector.shape_cast %987 : vector<8x128xf32> to vector<1x8x128xf32>
    tpu.vector_store %arg5[%c0_244, %c0_245, %c0_246], %990 {strides = array<i32>} : memref<1x8x384xf32, #tpu.memory_space<vmem>>, vector<1x8x128xf32>,
    %991 = arith.addf %664, %669 : vector<8x128xf32>
    %cst_247 = arith.constant 5.000000e-01 : f32
    %992 = vector.broadcast %cst_247 : f32 to vector<8x128xf32>
    %993 = arith.mulf %992, %991 : vector<8x128xf32>
    %cst_248 = arith.constant 0.707106769 : f32
    %994 = vector.broadcast %cst_248 : f32 to vector<8x128xf32>
    %995 = arith.mulf %991, %994 : vector<8x128xf32>
    %cst_249 = arith.constant 0.000000e+00 : f32
    %996 = vector.broadcast %cst_249 : f32 to vector<8x128xf32>
    %997 = arith.cmpf olt, %995, %996 : vector<8x128xf32>
    %cst_250 = arith.constant -1.000000e+00 : f32
    %cst_251 = arith.constant 1.000000e+00 : f32
    %998 = vector.broadcast %cst_250 : f32 to vector<8x128xf32>
    %999 = vector.broadcast %cst_251 : f32 to vector<8x128xf32>
    %1000 = arith.select %997, %998, %999 : vector<8x128xi1>, vector<8x128xf32>
    %1001 = math.absf %995 : vector<8x128xf32>
    %cst_252 = arith.constant 0.327591091 : f32
    %1002 = vector.broadcast %cst_252 : f32 to vector<8x128xf32>
    %1003 = arith.mulf %1002, %1001 : vector<8x128xf32>
    %cst_253 = arith.constant 1.000000e+00 : f32
    %1004 = vector.broadcast %cst_253 : f32 to vector<8x128xf32>
    %1005 = arith.addf %1004, %1003 : vector<8x128xf32>
    %1006 = tpu.reciprocal %1005 {approx = true} : vector<8x128xf32> -> vector<8x128xf32>
    %1007 = arith.mulf %1005, %1006 : vector<8x128xf32>
    %cst_254 = arith.constant 2.000000e+00 : f32
    %1008 = vector.broadcast %cst_254 : f32 to vector<8x128xf32>
    %1009 = arith.subf %1008, %1007 : vector<8x128xf32>
    %1010 = arith.mulf %1006, %1009 : vector<8x128xf32>
    %cst_255 = arith.constant 1.06140542 : f32
    %1011 = vector.broadcast %cst_255 : f32 to vector<8x128xf32>
    %1012 = arith.mulf %1011, %1010 : vector<8x128xf32>
    %cst_256 = arith.constant -1.45315206 : f32
    %1013 = vector.broadcast %cst_256 : f32 to vector<8x128xf32>
    %1014 = arith.addf %1012, %1013 : vector<8x128xf32>
    %1015 = arith.mulf %1014, %1010 : vector<8x128xf32>
    %cst_257 = arith.constant 1.42141378 : f32
    %1016 = vector.broadcast %cst_257 : f32 to vector<8x128xf32>
    %1017 = arith.addf %1015, %1016 : vector<8x128xf32>
    %1018 = arith.mulf %1017, %1010 : vector<8x128xf32>
    %cst_258 = arith.constant -0.284496725 : f32
    %1019 = vector.broadcast %cst_258 : f32 to vector<8x128xf32>
    %1020 = arith.addf %1018, %1019 : vector<8x128xf32>
    %1021 = arith.mulf %1020, %1010 : vector<8x128xf32>
    %cst_259 = arith.constant 0.254829586 : f32
    %1022 = vector.broadcast %cst_259 : f32 to vector<8x128xf32>
    %1023 = arith.addf %1021, %1022 : vector<8x128xf32>
    %1024 = arith.mulf %1023, %1010 : vector<8x128xf32>
    %cst_260 = arith.constant 0.000000e+00 : f32
    %1025 = vector.broadcast %cst_260 : f32 to vector<8x128xf32>
    %1026 = arith.subf %1025, %1001 : vector<8x128xf32>
    %1027 = arith.mulf %1026, %1001 : vector<8x128xf32>
    %1028 = math.exp %1027 : vector<8x128xf32>
    %1029 = arith.mulf %1024, %1028 : vector<8x128xf32>
    %cst_261 = arith.constant 1.000000e+00 : f32
    %1030 = vector.broadcast %cst_261 : f32 to vector<8x128xf32>
    %1031 = arith.subf %1030, %1029 : vector<8x128xf32>
    %1032 = arith.mulf %1000, %1031 : vector<8x128xf32>
    %cst_262 = arith.constant 1.000000e+00 : f32
    %1033 = vector.broadcast %cst_262 : f32 to vector<8x128xf32>
    %1034 = arith.addf %1033, %1032 : vector<8x128xf32>
    %1035 = arith.mulf %993, %1034 : vector<8x128xf32>
    %1036 = arith.mulf %1035, %673 : vector<8x128xf32>
    %1037 = arith.addf %470, %671 : vector<8x128xf32>
    %cst_263 = arith.constant 5.000000e-01 : f32
    %1038 = vector.broadcast %cst_263 : f32 to vector<8x128xf32>
    %1039 = arith.mulf %1038, %1037 : vector<8x128xf32>
    %cst_264 = arith.constant 0.707106769 : f32
    %1040 = vector.broadcast %cst_264 : f32 to vector<8x128xf32>
    %1041 = arith.mulf %1037, %1040 : vector<8x128xf32>
    %cst_265 = arith.constant 0.000000e+00 : f32
    %1042 = vector.broadcast %cst_265 : f32 to vector<8x128xf32>
    %1043 = arith.cmpf olt, %1041, %1042 : vector<8x128xf32>
    %cst_266 = arith.constant -1.000000e+00 : f32
    %cst_267 = arith.constant 1.000000e+00 : f32
    %1044 = vector.broadcast %cst_266 : f32 to vector<8x128xf32>
    %1045 = vector.broadcast %cst_267 : f32 to vector<8x128xf32>
    %1046 = arith.select %1043, %1044, %1045 : vector<8x128xi1>, vector<8x128xf32>
    %1047 = math.absf %1041 : vector<8x128xf32>
    %cst_268 = arith.constant 0.327591091 : f32
    %1048 = vector.broadcast %cst_268 : f32 to vector<8x128xf32>
    %1049 = arith.mulf %1048, %1047 : vector<8x128xf32>
    %cst_269 = arith.constant 1.000000e+00 : f32
    %1050 = vector.broadcast %cst_269 : f32 to vector<8x128xf32>
    %1051 = arith.addf %1050, %1049 : vector<8x128xf32>
    %1052 = tpu.reciprocal %1051 {approx = true} : vector<8x128xf32> -> vector<8x128xf32>
    %1053 = arith.mulf %1051, %1052 : vector<8x128xf32>
    %cst_270 = arith.constant 2.000000e+00 : f32
    %1054 = vector.broadcast %cst_270 : f32 to vector<8x128xf32>
    %1055 = arith.subf %1054, %1053 : vector<8x128xf32>
    %1056 = arith.mulf %1052, %1055 : vector<8x128xf32>
    %cst_271 = arith.constant 1.06140542 : f32
    %1057 = vector.broadcast %cst_271 : f32 to vector<8x128xf32>
    %1058 = arith.mulf %1057, %1056 : vector<8x128xf32>
    %cst_272 = arith.constant -1.45315206 : f32
    %1059 = vector.broadcast %cst_272 : f32 to vector<8x128xf32>
    %1060 = arith.addf %1058, %1059 : vector<8x128xf32>
    %1061 = arith.mulf %1060, %1056 : vector<8x128xf32>
    %cst_273 = arith.constant 1.42141378 : f32
    %1062 = vector.broadcast %cst_273 : f32 to vector<8x128xf32>
    %1063 = arith.addf %1061, %1062 : vector<8x128xf32>
    %1064 = arith.mulf %1063, %1056 : vector<8x128xf32>
    %cst_274 = arith.constant -0.284496725 : f32
    %1065 = vector.broadcast %cst_274 : f32 to vector<8x128xf32>
    %1066 = arith.addf %1064, %1065 : vector<8x128xf32>
    %1067 = arith.mulf %1066, %1056 : vector<8x128xf32>
    %cst_275 = arith.constant 0.254829586 : f32
    %1068 = vector.broadcast %cst_275 : f32 to vector<8x128xf32>
    %1069 = arith.addf %1067, %1068 : vector<8x128xf32>
    %1070 = arith.mulf %1069, %1056 : vector<8x128xf32>
    %cst_276 = arith.constant 0.000000e+00 : f32
    %1071 = vector.broadcast %cst_276 : f32 to vector<8x128xf32>
    %1072 = arith.subf %1071, %1047 : vector<8x128xf32>
    %1073 = arith.mulf %1072, %1047 : vector<8x128xf32>
    %1074 = math.exp %1073 : vector<8x128xf32>
    %1075 = arith.mulf %1070, %1074 : vector<8x128xf32>
    %cst_277 = arith.constant 1.000000e+00 : f32
    %1076 = vector.broadcast %cst_277 : f32 to vector<8x128xf32>
    %1077 = arith.subf %1076, %1075 : vector<8x128xf32>
    %1078 = arith.mulf %1046, %1077 : vector<8x128xf32>
    %cst_278 = arith.constant 1.000000e+00 : f32
    %1079 = vector.broadcast %cst_278 : f32 to vector<8x128xf32>
    %1080 = arith.addf %1079, %1078 : vector<8x128xf32>
    %1081 = arith.mulf %1039, %1080 : vector<8x128xf32>
    %1082 = arith.mulf %1081, %675 : vector<8x128xf32>
    %1083 = arith.addf %1036, %1082 : vector<8x128xf32>
    %c0_279 = arith.constant 0 : index
    %c0_280 = arith.constant 0 : index
    %c0_281 = arith.constant 0 : index
    %1084 = vector.load %arg4[%c0_279, %c0_280, %c0_281] : memref<9x16x128xf32, #tpu.memory_space<vmem>>, vector<1x16x128xf32>
    %1085 = vector.shape_cast %1084 : vector<1x16x128xf32> to vector<16x128xf32>
    %1086 = vector.extract_strided_slice %1083 {offsets = [0, 0], sizes = [1, 128], strides = [1, 1]} : vector<8x128xf32> to vector<1x128xf32>
    %1087 = vector.shape_cast %1086 : vector<1x128xf32> to vector<1x128xf32>
    %1088 = vector.broadcast %1087 : vector<1x128xf32> to vector<16x128xf32>
    %1089 = arith.mulf %1085, %1088 : vector<16x128xf32>
    %1090 = arith.addf %679, %1089 : vector<16x128xf32>
    %c1_282 = arith.constant 1 : index
    %c0_283 = arith.constant 0 : index
    %c0_284 = arith.constant 0 : index
    %1091 = vector.load %arg4[%c1_282, %c0_283, %c0_284] : memref<9x16x128xf32, #tpu.memory_space<vmem>>, vector<1x16x128xf32>
    %1092 = vector.shape_cast %1091 : vector<1x16x128xf32> to vector<16x128xf32>
    %1093 = vector.extract_strided_slice %1083 {offsets = [1, 0], sizes = [1, 128], strides = [1, 1]} : vector<8x128xf32> to vector<1x128xf32>
    %1094 = vector.shape_cast %1093 : vector<1x128xf32> to vector<1x128xf32>
    %1095 = vector.broadcast %1094 : vector<1x128xf32> to vector<16x128xf32>
    %1096 = arith.mulf %1092, %1095 : vector<16x128xf32>
    %1097 = arith.addf %1090, %1096 : vector<16x128xf32>
    %c2_285 = arith.constant 2 : index
    %c0_286 = arith.constant 0 : index
    %c0_287 = arith.constant 0 : index
    %1098 = vector.load %arg4[%c2_285, %c0_286, %c0_287] : memref<9x16x128xf32, #tpu.memory_space<vmem>>, vector<1x16x128xf32>
    %1099 = vector.shape_cast %1098 : vector<1x16x128xf32> to vector<16x128xf32>
    %1100 = vector.extract_strided_slice %1083 {offsets = [2, 0], sizes = [1, 128], strides = [1, 1]} : vector<8x128xf32> to vector<1x128xf32>
    %1101 = vector.shape_cast %1100 : vector<1x128xf32> to vector<1x128xf32>
    %1102 = vector.broadcast %1101 : vector<1x128xf32> to vector<16x128xf32>
    %1103 = arith.mulf %1099, %1102 : vector<16x128xf32>
    %1104 = arith.addf %1097, %1103 : vector<16x128xf32>
    %c3_288 = arith.constant 3 : index
    %c0_289 = arith.constant 0 : index
    %c0_290 = arith.constant 0 : index
    %1105 = vector.load %arg4[%c3_288, %c0_289, %c0_290] : memref<9x16x128xf32, #tpu.memory_space<vmem>>, vector<1x16x128xf32>
    %1106 = vector.shape_cast %1105 : vector<1x16x128xf32> to vector<16x128xf32>
    %1107 = vector.extract_strided_slice %1083 {offsets = [3, 0], sizes = [1, 128], strides = [1, 1]} : vector<8x128xf32> to vector<1x128xf32>
    %1108 = vector.shape_cast %1107 : vector<1x128xf32> to vector<1x128xf32>
    %1109 = vector.broadcast %1108 : vector<1x128xf32> to vector<16x128xf32>
    %1110 = arith.mulf %1106, %1109 : vector<16x128xf32>
    %1111 = arith.addf %1104, %1110 : vector<16x128xf32>
    %c4_291 = arith.constant 4 : index
    %c0_292 = arith.constant 0 : index
    %c0_293 = arith.constant 0 : index
    %1112 = vector.load %arg4[%c4_291, %c0_292, %c0_293] : memref<9x16x128xf32, #tpu.memory_space<vmem>>, vector<1x16x128xf32>
    %1113 = vector.shape_cast %1112 : vector<1x16x128xf32> to vector<16x128xf32>
    %1114 = vector.extract_strided_slice %1083 {offsets = [4, 0], sizes = [1, 128], strides = [1, 1]} : vector<8x128xf32> to vector<1x128xf32>
    %1115 = vector.shape_cast %1114 : vector<1x128xf32> to vector<1x128xf32>
    %1116 = vector.broadcast %1115 : vector<1x128xf32> to vector<16x128xf32>
    %1117 = arith.mulf %1113, %1116 : vector<16x128xf32>
    %1118 = arith.addf %1111, %1117 : vector<16x128xf32>
    %c5_294 = arith.constant 5 : index
    %c0_295 = arith.constant 0 : index
    %c0_296 = arith.constant 0 : index
    %1119 = vector.load %arg4[%c5_294, %c0_295, %c0_296] : memref<9x16x128xf32, #tpu.memory_space<vmem>>, vector<1x16x128xf32>
    %1120 = vector.shape_cast %1119 : vector<1x16x128xf32> to vector<16x128xf32>
    %1121 = vector.extract_strided_slice %1083 {offsets = [5, 0], sizes = [1, 128], strides = [1, 1]} : vector<8x128xf32> to vector<1x128xf32>
    %1122 = vector.shape_cast %1121 : vector<1x128xf32> to vector<1x128xf32>
    %1123 = vector.broadcast %1122 : vector<1x128xf32> to vector<16x128xf32>
    %1124 = arith.mulf %1120, %1123 : vector<16x128xf32>
    %1125 = arith.addf %1118, %1124 : vector<16x128xf32>
    %c6_297 = arith.constant 6 : index
    %c0_298 = arith.constant 0 : index
    %c0_299 = arith.constant 0 : index
    %1126 = vector.load %arg4[%c6_297, %c0_298, %c0_299] : memref<9x16x128xf32, #tpu.memory_space<vmem>>, vector<1x16x128xf32>
    %1127 = vector.shape_cast %1126 : vector<1x16x128xf32> to vector<16x128xf32>
    %1128 = vector.extract_strided_slice %1083 {offsets = [6, 0], sizes = [1, 128], strides = [1, 1]} : vector<8x128xf32> to vector<1x128xf32>
    %1129 = vector.shape_cast %1128 : vector<1x128xf32> to vector<1x128xf32>
    %1130 = vector.broadcast %1129 : vector<1x128xf32> to vector<16x128xf32>
    %1131 = arith.mulf %1127, %1130 : vector<16x128xf32>
    %1132 = arith.addf %1125, %1131 : vector<16x128xf32>
    %c7_300 = arith.constant 7 : index
    %c0_301 = arith.constant 0 : index
    %c0_302 = arith.constant 0 : index
    %1133 = vector.load %arg4[%c7_300, %c0_301, %c0_302] : memref<9x16x128xf32, #tpu.memory_space<vmem>>, vector<1x16x128xf32>
    %1134 = vector.shape_cast %1133 : vector<1x16x128xf32> to vector<16x128xf32>
    %1135 = vector.extract_strided_slice %1083 {offsets = [7, 0], sizes = [1, 128], strides = [1, 1]} : vector<8x128xf32> to vector<1x128xf32>
    %1136 = vector.shape_cast %1135 : vector<1x128xf32> to vector<1x128xf32>
    %1137 = vector.broadcast %1136 : vector<1x128xf32> to vector<16x128xf32>
    %1138 = arith.mulf %1134, %1137 : vector<16x128xf32>
    %1139 = arith.addf %1132, %1138 : vector<16x128xf32>
    %cst_303 = arith.constant 5.000000e-01 : f32
    %1140 = vector.broadcast %cst_303 : f32 to vector<16x128xf32>
    %1141 = arith.mulf %1140, %1139 : vector<16x128xf32>
    %cst_304 = arith.constant 0.707106769 : f32
    %1142 = vector.broadcast %cst_304 : f32 to vector<16x128xf32>
    %1143 = arith.mulf %1139, %1142 : vector<16x128xf32>
    %cst_305 = arith.constant 0.000000e+00 : f32
    %1144 = vector.broadcast %cst_305 : f32 to vector<16x128xf32>
    %1145 = arith.cmpf olt, %1143, %1144 : vector<16x128xf32>
    %cst_306 = arith.constant -1.000000e+00 : f32
    %cst_307 = arith.constant 1.000000e+00 : f32
    %1146 = vector.broadcast %cst_306 : f32 to vector<16x128xf32>
    %1147 = vector.broadcast %cst_307 : f32 to vector<16x128xf32>
    %1148 = arith.select %1145, %1146, %1147 : vector<16x128xi1>, vector<16x128xf32>
    %1149 = math.absf %1143 : vector<16x128xf32>
    %cst_308 = arith.constant 0.327591091 : f32
    %1150 = vector.broadcast %cst_308 : f32 to vector<16x128xf32>
    %1151 = arith.mulf %1150, %1149 : vector<16x128xf32>
    %cst_309 = arith.constant 1.000000e+00 : f32
    %1152 = vector.broadcast %cst_309 : f32 to vector<16x128xf32>
    %1153 = arith.addf %1152, %1151 : vector<16x128xf32>
    %1154 = tpu.reciprocal %1153 {approx = true} : vector<16x128xf32> -> vector<16x128xf32>
    %1155 = arith.mulf %1153, %1154 : vector<16x128xf32>
    %cst_310 = arith.constant 2.000000e+00 : f32
    %1156 = vector.broadcast %cst_310 : f32 to vector<16x128xf32>
    %1157 = arith.subf %1156, %1155 : vector<16x128xf32>
    %1158 = arith.mulf %1154, %1157 : vector<16x128xf32>
    %cst_311 = arith.constant 1.06140542 : f32
    %1159 = vector.broadcast %cst_311 : f32 to vector<16x128xf32>
    %1160 = arith.mulf %1159, %1158 : vector<16x128xf32>
    %cst_312 = arith.constant -1.45315206 : f32
    %1161 = vector.broadcast %cst_312 : f32 to vector<16x128xf32>
    %1162 = arith.addf %1160, %1161 : vector<16x128xf32>
    %1163 = arith.mulf %1162, %1158 : vector<16x128xf32>
    %cst_313 = arith.constant 1.42141378 : f32
    %1164 = vector.broadcast %cst_313 : f32 to vector<16x128xf32>
    %1165 = arith.addf %1163, %1164 : vector<16x128xf32>
    %1166 = arith.mulf %1165, %1158 : vector<16x128xf32>
    %cst_314 = arith.constant -0.284496725 : f32
    %1167 = vector.broadcast %cst_314 : f32 to vector<16x128xf32>
    %1168 = arith.addf %1166, %1167 : vector<16x128xf32>
    %1169 = arith.mulf %1168, %1158 : vector<16x128xf32>
    %cst_315 = arith.constant 0.254829586 : f32
    %1170 = vector.broadcast %cst_315 : f32 to vector<16x128xf32>
    %1171 = arith.addf %1169, %1170 : vector<16x128xf32>
    %1172 = arith.mulf %1171, %1158 : vector<16x128xf32>
    %cst_316 = arith.constant 0.000000e+00 : f32
    %1173 = vector.broadcast %cst_316 : f32 to vector<16x128xf32>
    %1174 = arith.subf %1173, %1149 : vector<16x128xf32>
    %1175 = arith.mulf %1174, %1149 : vector<16x128xf32>
    %1176 = math.exp %1175 : vector<16x128xf32>
    %1177 = arith.mulf %1172, %1176 : vector<16x128xf32>
    %cst_317 = arith.constant 1.000000e+00 : f32
    %1178 = vector.broadcast %cst_317 : f32 to vector<16x128xf32>
    %1179 = arith.subf %1178, %1177 : vector<16x128xf32>
    %1180 = arith.mulf %1148, %1179 : vector<16x128xf32>
    %cst_318 = arith.constant 1.000000e+00 : f32
    %1181 = vector.broadcast %cst_318 : f32 to vector<16x128xf32>
    %1182 = arith.addf %1181, %1180 : vector<16x128xf32>
    %1183 = arith.mulf %1141, %1182 : vector<16x128xf32>
    %c63_319 = arith.constant 63 : index
    %c0_320 = arith.constant 0 : index
    %c0_321 = arith.constant 0 : index
    %1184 = vector.load %arg3[%c63_319, %c0_320, %c0_321] : memref<79x8x128xf32, #tpu.memory_space<vmem>>, vector<1x8x128xf32>
    %1185 = vector.shape_cast %1184 : vector<1x8x128xf32> to vector<8x128xf32>
    %1186 = vector.extract_strided_slice %1183 {offsets = [0, 0], sizes = [1, 128], strides = [1, 1]} : vector<16x128xf32> to vector<1x128xf32>
    %1187 = vector.shape_cast %1186 : vector<1x128xf32> to vector<1x128xf32>
    %1188 = vector.broadcast %1187 : vector<1x128xf32> to vector<8x128xf32>
    %1189 = arith.mulf %1185, %1188 : vector<8x128xf32>
    %1190 = arith.addf %677, %1189 : vector<8x128xf32>
    %c64_322 = arith.constant 64 : index
    %c0_323 = arith.constant 0 : index
    %c0_324 = arith.constant 0 : index
    %1191 = vector.load %arg3[%c64_322, %c0_323, %c0_324] : memref<79x8x128xf32, #tpu.memory_space<vmem>>, vector<1x8x128xf32>
    %1192 = vector.shape_cast %1191 : vector<1x8x128xf32> to vector<8x128xf32>
    %1193 = vector.extract_strided_slice %1183 {offsets = [1, 0], sizes = [1, 128], strides = [1, 1]} : vector<16x128xf32> to vector<1x128xf32>
    %1194 = vector.shape_cast %1193 : vector<1x128xf32> to vector<1x128xf32>
    %1195 = vector.broadcast %1194 : vector<1x128xf32> to vector<8x128xf32>
    %1196 = arith.mulf %1192, %1195 : vector<8x128xf32>
    %1197 = arith.addf %1190, %1196 : vector<8x128xf32>
    %c65_325 = arith.constant 65 : index
    %c0_326 = arith.constant 0 : index
    %c0_327 = arith.constant 0 : index
    %1198 = vector.load %arg3[%c65_325, %c0_326, %c0_327] : memref<79x8x128xf32, #tpu.memory_space<vmem>>, vector<1x8x128xf32>
    %1199 = vector.shape_cast %1198 : vector<1x8x128xf32> to vector<8x128xf32>
    %1200 = vector.extract_strided_slice %1183 {offsets = [2, 0], sizes = [1, 128], strides = [1, 1]} : vector<16x128xf32> to vector<1x128xf32>
    %1201 = vector.shape_cast %1200 : vector<1x128xf32> to vector<1x128xf32>
    %1202 = vector.broadcast %1201 : vector<1x128xf32> to vector<8x128xf32>
    %1203 = arith.mulf %1199, %1202 : vector<8x128xf32>
    %1204 = arith.addf %1197, %1203 : vector<8x128xf32>
    %c66_328 = arith.constant 66 : index
    %c0_329 = arith.constant 0 : index
    %c0_330 = arith.constant 0 : index
    %1205 = vector.load %arg3[%c66_328, %c0_329, %c0_330] : memref<79x8x128xf32, #tpu.memory_space<vmem>>, vector<1x8x128xf32>
    %1206 = vector.shape_cast %1205 : vector<1x8x128xf32> to vector<8x128xf32>
    %1207 = vector.extract_strided_slice %1183 {offsets = [3, 0], sizes = [1, 128], strides = [1, 1]} : vector<16x128xf32> to vector<1x128xf32>
    %1208 = vector.shape_cast %1207 : vector<1x128xf32> to vector<1x128xf32>
    %1209 = vector.broadcast %1208 : vector<1x128xf32> to vector<8x128xf32>
    %1210 = arith.mulf %1206, %1209 : vector<8x128xf32>
    %1211 = arith.addf %1204, %1210 : vector<8x128xf32>
    %c67_331 = arith.constant 67 : index
    %c0_332 = arith.constant 0 : index
    %c0_333 = arith.constant 0 : index
    %1212 = vector.load %arg3[%c67_331, %c0_332, %c0_333] : memref<79x8x128xf32, #tpu.memory_space<vmem>>, vector<1x8x128xf32>
    %1213 = vector.shape_cast %1212 : vector<1x8x128xf32> to vector<8x128xf32>
    %1214 = vector.extract_strided_slice %1183 {offsets = [4, 0], sizes = [1, 128], strides = [1, 1]} : vector<16x128xf32> to vector<1x128xf32>
    %1215 = vector.shape_cast %1214 : vector<1x128xf32> to vector<1x128xf32>
    %1216 = vector.broadcast %1215 : vector<1x128xf32> to vector<8x128xf32>
    %1217 = arith.mulf %1213, %1216 : vector<8x128xf32>
    %1218 = arith.addf %1211, %1217 : vector<8x128xf32>
    %c68_334 = arith.constant 68 : index
    %c0_335 = arith.constant 0 : index
    %c0_336 = arith.constant 0 : index
    %1219 = vector.load %arg3[%c68_334, %c0_335, %c0_336] : memref<79x8x128xf32, #tpu.memory_space<vmem>>, vector<1x8x128xf32>
    %1220 = vector.shape_cast %1219 : vector<1x8x128xf32> to vector<8x128xf32>
    %1221 = vector.extract_strided_slice %1183 {offsets = [5, 0], sizes = [1, 128], strides = [1, 1]} : vector<16x128xf32> to vector<1x128xf32>
    %1222 = vector.shape_cast %1221 : vector<1x128xf32> to vector<1x128xf32>
    %1223 = vector.broadcast %1222 : vector<1x128xf32> to vector<8x128xf32>
    %1224 = arith.mulf %1220, %1223 : vector<8x128xf32>
    %1225 = arith.addf %1218, %1224 : vector<8x128xf32>
    %c69_337 = arith.constant 69 : index
    %c0_338 = arith.constant 0 : index
    %c0_339 = arith.constant 0 : index
    %1226 = vector.load %arg3[%c69_337, %c0_338, %c0_339] : memref<79x8x128xf32, #tpu.memory_space<vmem>>, vector<1x8x128xf32>
    %1227 = vector.shape_cast %1226 : vector<1x8x128xf32> to vector<8x128xf32>
    %1228 = vector.extract_strided_slice %1183 {offsets = [6, 0], sizes = [1, 128], strides = [1, 1]} : vector<16x128xf32> to vector<1x128xf32>
    %1229 = vector.shape_cast %1228 : vector<1x128xf32> to vector<1x128xf32>
    %1230 = vector.broadcast %1229 : vector<1x128xf32> to vector<8x128xf32>
    %1231 = arith.mulf %1227, %1230 : vector<8x128xf32>
    %1232 = arith.addf %1225, %1231 : vector<8x128xf32>
    %c70_340 = arith.constant 70 : index
    %c0_341 = arith.constant 0 : index
    %c0_342 = arith.constant 0 : index
    %1233 = vector.load %arg3[%c70_340, %c0_341, %c0_342] : memref<79x8x128xf32, #tpu.memory_space<vmem>>, vector<1x8x128xf32>
    %1234 = vector.shape_cast %1233 : vector<1x8x128xf32> to vector<8x128xf32>
    %1235 = vector.extract_strided_slice %1183 {offsets = [7, 0], sizes = [1, 128], strides = [1, 1]} : vector<16x128xf32> to vector<1x128xf32>
    %1236 = vector.shape_cast %1235 : vector<1x128xf32> to vector<1x128xf32>
    %1237 = vector.broadcast %1236 : vector<1x128xf32> to vector<8x128xf32>
    %1238 = arith.mulf %1234, %1237 : vector<8x128xf32>
    %1239 = arith.addf %1232, %1238 : vector<8x128xf32>
    %c71_343 = arith.constant 71 : index
    %c0_344 = arith.constant 0 : index
    %c0_345 = arith.constant 0 : index
    %1240 = vector.load %arg3[%c71_343, %c0_344, %c0_345] : memref<79x8x128xf32, #tpu.memory_space<vmem>>, vector<1x8x128xf32>
    %1241 = vector.shape_cast %1240 : vector<1x8x128xf32> to vector<8x128xf32>
    %1242 = vector.extract_strided_slice %1183 {offsets = [8, 0], sizes = [1, 128], strides = [1, 1]} : vector<16x128xf32> to vector<1x128xf32>
    %1243 = vector.shape_cast %1242 : vector<1x128xf32> to vector<1x128xf32>
    %1244 = vector.broadcast %1243 : vector<1x128xf32> to vector<8x128xf32>
    %1245 = arith.mulf %1241, %1244 : vector<8x128xf32>
    %1246 = arith.addf %1239, %1245 : vector<8x128xf32>
    %c72_346 = arith.constant 72 : index
    %c0_347 = arith.constant 0 : index
    %c0_348 = arith.constant 0 : index
    %1247 = vector.load %arg3[%c72_346, %c0_347, %c0_348] : memref<79x8x128xf32, #tpu.memory_space<vmem>>, vector<1x8x128xf32>
    %1248 = vector.shape_cast %1247 : vector<1x8x128xf32> to vector<8x128xf32>
    %1249 = vector.extract_strided_slice %1183 {offsets = [9, 0], sizes = [1, 128], strides = [1, 1]} : vector<16x128xf32> to vector<1x128xf32>
    %1250 = vector.shape_cast %1249 : vector<1x128xf32> to vector<1x128xf32>
    %1251 = vector.broadcast %1250 : vector<1x128xf32> to vector<8x128xf32>
    %1252 = arith.mulf %1248, %1251 : vector<8x128xf32>
    %1253 = arith.addf %1246, %1252 : vector<8x128xf32>
    %c73_349 = arith.constant 73 : index
    %c0_350 = arith.constant 0 : index
    %c0_351 = arith.constant 0 : index
    %1254 = vector.load %arg3[%c73_349, %c0_350, %c0_351] : memref<79x8x128xf32, #tpu.memory_space<vmem>>, vector<1x8x128xf32>
    %1255 = vector.shape_cast %1254 : vector<1x8x128xf32> to vector<8x128xf32>
    %1256 = vector.extract_strided_slice %1183 {offsets = [10, 0], sizes = [1, 128], strides = [1, 1]} : vector<16x128xf32> to vector<1x128xf32>
    %1257 = vector.shape_cast %1256 : vector<1x128xf32> to vector<1x128xf32>
    %1258 = vector.broadcast %1257 : vector<1x128xf32> to vector<8x128xf32>
    %1259 = arith.mulf %1255, %1258 : vector<8x128xf32>
    %1260 = arith.addf %1253, %1259 : vector<8x128xf32>
    %c74_352 = arith.constant 74 : index
    %c0_353 = arith.constant 0 : index
    %c0_354 = arith.constant 0 : index
    %1261 = vector.load %arg3[%c74_352, %c0_353, %c0_354] : memref<79x8x128xf32, #tpu.memory_space<vmem>>, vector<1x8x128xf32>
    %1262 = vector.shape_cast %1261 : vector<1x8x128xf32> to vector<8x128xf32>
    %1263 = vector.extract_strided_slice %1183 {offsets = [11, 0], sizes = [1, 128], strides = [1, 1]} : vector<16x128xf32> to vector<1x128xf32>
    %1264 = vector.shape_cast %1263 : vector<1x128xf32> to vector<1x128xf32>
    %1265 = vector.broadcast %1264 : vector<1x128xf32> to vector<8x128xf32>
    %1266 = arith.mulf %1262, %1265 : vector<8x128xf32>
    %1267 = arith.addf %1260, %1266 : vector<8x128xf32>
    %c75_355 = arith.constant 75 : index
    %c0_356 = arith.constant 0 : index
    %c0_357 = arith.constant 0 : index
    %1268 = vector.load %arg3[%c75_355, %c0_356, %c0_357] : memref<79x8x128xf32, #tpu.memory_space<vmem>>, vector<1x8x128xf32>
    %1269 = vector.shape_cast %1268 : vector<1x8x128xf32> to vector<8x128xf32>
    %1270 = vector.extract_strided_slice %1183 {offsets = [12, 0], sizes = [1, 128], strides = [1, 1]} : vector<16x128xf32> to vector<1x128xf32>
    %1271 = vector.shape_cast %1270 : vector<1x128xf32> to vector<1x128xf32>
    %1272 = vector.broadcast %1271 : vector<1x128xf32> to vector<8x128xf32>
    %1273 = arith.mulf %1269, %1272 : vector<8x128xf32>
    %1274 = arith.addf %1267, %1273 : vector<8x128xf32>
    %c76_358 = arith.constant 76 : index
    %c0_359 = arith.constant 0 : index
    %c0_360 = arith.constant 0 : index
    %1275 = vector.load %arg3[%c76_358, %c0_359, %c0_360] : memref<79x8x128xf32, #tpu.memory_space<vmem>>, vector<1x8x128xf32>
    %1276 = vector.shape_cast %1275 : vector<1x8x128xf32> to vector<8x128xf32>
    %1277 = vector.extract_strided_slice %1183 {offsets = [13, 0], sizes = [1, 128], strides = [1, 1]} : vector<16x128xf32> to vector<1x128xf32>
    %1278 = vector.shape_cast %1277 : vector<1x128xf32> to vector<1x128xf32>
    %1279 = vector.broadcast %1278 : vector<1x128xf32> to vector<8x128xf32>
    %1280 = arith.mulf %1276, %1279 : vector<8x128xf32>
    %1281 = arith.addf %1274, %1280 : vector<8x128xf32>
    %c77_361 = arith.constant 77 : index
    %c0_362 = arith.constant 0 : index
    %c0_363 = arith.constant 0 : index
    %1282 = vector.load %arg3[%c77_361, %c0_362, %c0_363] : memref<79x8x128xf32, #tpu.memory_space<vmem>>, vector<1x8x128xf32>
    %1283 = vector.shape_cast %1282 : vector<1x8x128xf32> to vector<8x128xf32>
    %1284 = vector.extract_strided_slice %1183 {offsets = [14, 0], sizes = [1, 128], strides = [1, 1]} : vector<16x128xf32> to vector<1x128xf32>
    %1285 = vector.shape_cast %1284 : vector<1x128xf32> to vector<1x128xf32>
    %1286 = vector.broadcast %1285 : vector<1x128xf32> to vector<8x128xf32>
    %1287 = arith.mulf %1283, %1286 : vector<8x128xf32>
    %1288 = arith.addf %1281, %1287 : vector<8x128xf32>
    %c78_364 = arith.constant 78 : index
    %c0_365 = arith.constant 0 : index
    %c0_366 = arith.constant 0 : index
    %1289 = vector.load %arg3[%c78_364, %c0_365, %c0_366] : memref<79x8x128xf32, #tpu.memory_space<vmem>>, vector<1x8x128xf32>
    %1290 = vector.shape_cast %1289 : vector<1x8x128xf32> to vector<8x128xf32>
    %1291 = vector.extract_strided_slice %1183 {offsets = [15, 0], sizes = [1, 128], strides = [1, 1]} : vector<16x128xf32> to vector<1x128xf32>
    %1292 = vector.shape_cast %1291 : vector<1x128xf32> to vector<1x128xf32>
    %1293 = vector.broadcast %1292 : vector<1x128xf32> to vector<8x128xf32>
    %1294 = arith.mulf %1290, %1293 : vector<8x128xf32>
    %1295 = arith.addf %1288, %1294 : vector<8x128xf32>
    %c0_367 = arith.constant 0 : index
    %c0_368 = arith.constant 0 : index
    %c128 = arith.constant 128 : index
    %1296 = vector.load %arg2[%c0_367, %c0_368, %c128] : memref<1x8x384xf32, #tpu.memory_space<vmem>>, vector<1x8x128xf32>
    %1297 = vector.shape_cast %1296 : vector<1x8x128xf32> to vector<8x128xf32>
    %1298 = arith.addf %1295, %1297 : vector<8x128xf32>
    %c0_369 = arith.constant 0 : index
    %c0_370 = arith.constant 0 : index
    %c128_371 = arith.constant 128 : index
    %1299 = vector.load %arg5[%c0_369, %c0_370, %c128_371] : memref<1x8x384xf32, #tpu.memory_space<vmem>>, vector<1x8x128xf32>
    %1300 = vector.shape_cast %1299 : vector<1x8x128xf32> to vector<8x128xf32>
    %1301 = vector.shape_cast %1298 : vector<8x128xf32> to vector<1x8x128xf32>
    tpu.vector_store %arg5[%c0_369, %c0_370, %c128_371], %1301 {strides = array<i32>} : memref<1x8x384xf32, #tpu.memory_space<vmem>>, vector<1x8x128xf32>,
    %1302 = arith.addf %667, %669 : vector<8x128xf32>
    %cst_372 = arith.constant 5.000000e-01 : f32
    %1303 = vector.broadcast %cst_372 : f32 to vector<8x128xf32>
    %1304 = arith.mulf %1303, %1302 : vector<8x128xf32>
    %cst_373 = arith.constant 0.707106769 : f32
    %1305 = vector.broadcast %cst_373 : f32 to vector<8x128xf32>
    %1306 = arith.mulf %1302, %1305 : vector<8x128xf32>
    %cst_374 = arith.constant 0.000000e+00 : f32
    %1307 = vector.broadcast %cst_374 : f32 to vector<8x128xf32>
    %1308 = arith.cmpf olt, %1306, %1307 : vector<8x128xf32>
    %cst_375 = arith.constant -1.000000e+00 : f32
    %cst_376 = arith.constant 1.000000e+00 : f32
    %1309 = vector.broadcast %cst_375 : f32 to vector<8x128xf32>
    %1310 = vector.broadcast %cst_376 : f32 to vector<8x128xf32>
    %1311 = arith.select %1308, %1309, %1310 : vector<8x128xi1>, vector<8x128xf32>
    %1312 = math.absf %1306 : vector<8x128xf32>
    %cst_377 = arith.constant 0.327591091 : f32
    %1313 = vector.broadcast %cst_377 : f32 to vector<8x128xf32>
    %1314 = arith.mulf %1313, %1312 : vector<8x128xf32>
    %cst_378 = arith.constant 1.000000e+00 : f32
    %1315 = vector.broadcast %cst_378 : f32 to vector<8x128xf32>
    %1316 = arith.addf %1315, %1314 : vector<8x128xf32>
    %1317 = tpu.reciprocal %1316 {approx = true} : vector<8x128xf32> -> vector<8x128xf32>
    %1318 = arith.mulf %1316, %1317 : vector<8x128xf32>
    %cst_379 = arith.constant 2.000000e+00 : f32
    %1319 = vector.broadcast %cst_379 : f32 to vector<8x128xf32>
    %1320 = arith.subf %1319, %1318 : vector<8x128xf32>
    %1321 = arith.mulf %1317, %1320 : vector<8x128xf32>
    %cst_380 = arith.constant 1.06140542 : f32
    %1322 = vector.broadcast %cst_380 : f32 to vector<8x128xf32>
    %1323 = arith.mulf %1322, %1321 : vector<8x128xf32>
    %cst_381 = arith.constant -1.45315206 : f32
    %1324 = vector.broadcast %cst_381 : f32 to vector<8x128xf32>
    %1325 = arith.addf %1323, %1324 : vector<8x128xf32>
    %1326 = arith.mulf %1325, %1321 : vector<8x128xf32>
    %cst_382 = arith.constant 1.42141378 : f32
    %1327 = vector.broadcast %cst_382 : f32 to vector<8x128xf32>
    %1328 = arith.addf %1326, %1327 : vector<8x128xf32>
    %1329 = arith.mulf %1328, %1321 : vector<8x128xf32>
    %cst_383 = arith.constant -0.284496725 : f32
    %1330 = vector.broadcast %cst_383 : f32 to vector<8x128xf32>
    %1331 = arith.addf %1329, %1330 : vector<8x128xf32>
    %1332 = arith.mulf %1331, %1321 : vector<8x128xf32>
    %cst_384 = arith.constant 0.254829586 : f32
    %1333 = vector.broadcast %cst_384 : f32 to vector<8x128xf32>
    %1334 = arith.addf %1332, %1333 : vector<8x128xf32>
    %1335 = arith.mulf %1334, %1321 : vector<8x128xf32>
    %cst_385 = arith.constant 0.000000e+00 : f32
    %1336 = vector.broadcast %cst_385 : f32 to vector<8x128xf32>
    %1337 = arith.subf %1336, %1312 : vector<8x128xf32>
    %1338 = arith.mulf %1337, %1312 : vector<8x128xf32>
    %1339 = math.exp %1338 : vector<8x128xf32>
    %1340 = arith.mulf %1335, %1339 : vector<8x128xf32>
    %cst_386 = arith.constant 1.000000e+00 : f32
    %1341 = vector.broadcast %cst_386 : f32 to vector<8x128xf32>
    %1342 = arith.subf %1341, %1340 : vector<8x128xf32>
    %1343 = arith.mulf %1311, %1342 : vector<8x128xf32>
    %cst_387 = arith.constant 1.000000e+00 : f32
    %1344 = vector.broadcast %cst_387 : f32 to vector<8x128xf32>
    %1345 = arith.addf %1344, %1343 : vector<8x128xf32>
    %1346 = arith.mulf %1304, %1345 : vector<8x128xf32>
    %1347 = arith.mulf %1346, %673 : vector<8x128xf32>
    %1348 = arith.addf %475, %671 : vector<8x128xf32>
    %cst_388 = arith.constant 5.000000e-01 : f32
    %1349 = vector.broadcast %cst_388 : f32 to vector<8x128xf32>
    %1350 = arith.mulf %1349, %1348 : vector<8x128xf32>
    %cst_389 = arith.constant 0.707106769 : f32
    %1351 = vector.broadcast %cst_389 : f32 to vector<8x128xf32>
    %1352 = arith.mulf %1348, %1351 : vector<8x128xf32>
    %cst_390 = arith.constant 0.000000e+00 : f32
    %1353 = vector.broadcast %cst_390 : f32 to vector<8x128xf32>
    %1354 = arith.cmpf olt, %1352, %1353 : vector<8x128xf32>
    %cst_391 = arith.constant -1.000000e+00 : f32
    %cst_392 = arith.constant 1.000000e+00 : f32
    %1355 = vector.broadcast %cst_391 : f32 to vector<8x128xf32>
    %1356 = vector.broadcast %cst_392 : f32 to vector<8x128xf32>
    %1357 = arith.select %1354, %1355, %1356 : vector<8x128xi1>, vector<8x128xf32>
    %1358 = math.absf %1352 : vector<8x128xf32>
    %cst_393 = arith.constant 0.327591091 : f32
    %1359 = vector.broadcast %cst_393 : f32 to vector<8x128xf32>
    %1360 = arith.mulf %1359, %1358 : vector<8x128xf32>
    %cst_394 = arith.constant 1.000000e+00 : f32
    %1361 = vector.broadcast %cst_394 : f32 to vector<8x128xf32>
    %1362 = arith.addf %1361, %1360 : vector<8x128xf32>
    %1363 = tpu.reciprocal %1362 {approx = true} : vector<8x128xf32> -> vector<8x128xf32>
    %1364 = arith.mulf %1362, %1363 : vector<8x128xf32>
    %cst_395 = arith.constant 2.000000e+00 : f32
    %1365 = vector.broadcast %cst_395 : f32 to vector<8x128xf32>
    %1366 = arith.subf %1365, %1364 : vector<8x128xf32>
    %1367 = arith.mulf %1363, %1366 : vector<8x128xf32>
    %cst_396 = arith.constant 1.06140542 : f32
    %1368 = vector.broadcast %cst_396 : f32 to vector<8x128xf32>
    %1369 = arith.mulf %1368, %1367 : vector<8x128xf32>
    %cst_397 = arith.constant -1.45315206 : f32
    %1370 = vector.broadcast %cst_397 : f32 to vector<8x128xf32>
    %1371 = arith.addf %1369, %1370 : vector<8x128xf32>
    %1372 = arith.mulf %1371, %1367 : vector<8x128xf32>
    %cst_398 = arith.constant 1.42141378 : f32
    %1373 = vector.broadcast %cst_398 : f32 to vector<8x128xf32>
    %1374 = arith.addf %1372, %1373 : vector<8x128xf32>
    %1375 = arith.mulf %1374, %1367 : vector<8x128xf32>
    %cst_399 = arith.constant -0.284496725 : f32
    %1376 = vector.broadcast %cst_399 : f32 to vector<8x128xf32>
    %1377 = arith.addf %1375, %1376 : vector<8x128xf32>
    %1378 = arith.mulf %1377, %1367 : vector<8x128xf32>
    %cst_400 = arith.constant 0.254829586 : f32
    %1379 = vector.broadcast %cst_400 : f32 to vector<8x128xf32>
    %1380 = arith.addf %1378, %1379 : vector<8x128xf32>
    %1381 = arith.mulf %1380, %1367 : vector<8x128xf32>
    %cst_401 = arith.constant 0.000000e+00 : f32
    %1382 = vector.broadcast %cst_401 : f32 to vector<8x128xf32>
    %1383 = arith.subf %1382, %1358 : vector<8x128xf32>
    %1384 = arith.mulf %1383, %1358 : vector<8x128xf32>
    %1385 = math.exp %1384 : vector<8x128xf32>
    %1386 = arith.mulf %1381, %1385 : vector<8x128xf32>
    %cst_402 = arith.constant 1.000000e+00 : f32
    %1387 = vector.broadcast %cst_402 : f32 to vector<8x128xf32>
    %1388 = arith.subf %1387, %1386 : vector<8x128xf32>
    %1389 = arith.mulf %1357, %1388 : vector<8x128xf32>
    %cst_403 = arith.constant 1.000000e+00 : f32
    %1390 = vector.broadcast %cst_403 : f32 to vector<8x128xf32>
    %1391 = arith.addf %1390, %1389 : vector<8x128xf32>
    %1392 = arith.mulf %1350, %1391 : vector<8x128xf32>
    %1393 = arith.mulf %1392, %675 : vector<8x128xf32>
    %1394 = arith.addf %1347, %1393 : vector<8x128xf32>
    %c0_404 = arith.constant 0 : index
    %c0_405 = arith.constant 0 : index
    %c0_406 = arith.constant 0 : index
    %1395 = vector.load %arg4[%c0_404, %c0_405, %c0_406] : memref<9x16x128xf32, #tpu.memory_space<vmem>>, vector<1x16x128xf32>
    %1396 = vector.shape_cast %1395 : vector<1x16x128xf32> to vector<16x128xf32>
    %1397 = vector.extract_strided_slice %1394 {offsets = [0, 0], sizes = [1, 128], strides = [1, 1]} : vector<8x128xf32> to vector<1x128xf32>
    %1398 = vector.shape_cast %1397 : vector<1x128xf32> to vector<1x128xf32>
    %1399 = vector.broadcast %1398 : vector<1x128xf32> to vector<16x128xf32>
    %1400 = arith.mulf %1396, %1399 : vector<16x128xf32>
    %1401 = arith.addf %679, %1400 : vector<16x128xf32>
    %c1_407 = arith.constant 1 : index
    %c0_408 = arith.constant 0 : index
    %c0_409 = arith.constant 0 : index
    %1402 = vector.load %arg4[%c1_407, %c0_408, %c0_409] : memref<9x16x128xf32, #tpu.memory_space<vmem>>, vector<1x16x128xf32>
    %1403 = vector.shape_cast %1402 : vector<1x16x128xf32> to vector<16x128xf32>
    %1404 = vector.extract_strided_slice %1394 {offsets = [1, 0], sizes = [1, 128], strides = [1, 1]} : vector<8x128xf32> to vector<1x128xf32>
    %1405 = vector.shape_cast %1404 : vector<1x128xf32> to vector<1x128xf32>
    %1406 = vector.broadcast %1405 : vector<1x128xf32> to vector<16x128xf32>
    %1407 = arith.mulf %1403, %1406 : vector<16x128xf32>
    %1408 = arith.addf %1401, %1407 : vector<16x128xf32>
    %c2_410 = arith.constant 2 : index
    %c0_411 = arith.constant 0 : index
    %c0_412 = arith.constant 0 : index
    %1409 = vector.load %arg4[%c2_410, %c0_411, %c0_412] : memref<9x16x128xf32, #tpu.memory_space<vmem>>, vector<1x16x128xf32>
    %1410 = vector.shape_cast %1409 : vector<1x16x128xf32> to vector<16x128xf32>
    %1411 = vector.extract_strided_slice %1394 {offsets = [2, 0], sizes = [1, 128], strides = [1, 1]} : vector<8x128xf32> to vector<1x128xf32>
    %1412 = vector.shape_cast %1411 : vector<1x128xf32> to vector<1x128xf32>
    %1413 = vector.broadcast %1412 : vector<1x128xf32> to vector<16x128xf32>
    %1414 = arith.mulf %1410, %1413 : vector<16x128xf32>
    %1415 = arith.addf %1408, %1414 : vector<16x128xf32>
    %c3_413 = arith.constant 3 : index
    %c0_414 = arith.constant 0 : index
    %c0_415 = arith.constant 0 : index
    %1416 = vector.load %arg4[%c3_413, %c0_414, %c0_415] : memref<9x16x128xf32, #tpu.memory_space<vmem>>, vector<1x16x128xf32>
    %1417 = vector.shape_cast %1416 : vector<1x16x128xf32> to vector<16x128xf32>
    %1418 = vector.extract_strided_slice %1394 {offsets = [3, 0], sizes = [1, 128], strides = [1, 1]} : vector<8x128xf32> to vector<1x128xf32>
    %1419 = vector.shape_cast %1418 : vector<1x128xf32> to vector<1x128xf32>
    %1420 = vector.broadcast %1419 : vector<1x128xf32> to vector<16x128xf32>
    %1421 = arith.mulf %1417, %1420 : vector<16x128xf32>
    %1422 = arith.addf %1415, %1421 : vector<16x128xf32>
    %c4_416 = arith.constant 4 : index
    %c0_417 = arith.constant 0 : index
    %c0_418 = arith.constant 0 : index
    %1423 = vector.load %arg4[%c4_416, %c0_417, %c0_418] : memref<9x16x128xf32, #tpu.memory_space<vmem>>, vector<1x16x128xf32>
    %1424 = vector.shape_cast %1423 : vector<1x16x128xf32> to vector<16x128xf32>
    %1425 = vector.extract_strided_slice %1394 {offsets = [4, 0], sizes = [1, 128], strides = [1, 1]} : vector<8x128xf32> to vector<1x128xf32>
    %1426 = vector.shape_cast %1425 : vector<1x128xf32> to vector<1x128xf32>
    %1427 = vector.broadcast %1426 : vector<1x128xf32> to vector<16x128xf32>
    %1428 = arith.mulf %1424, %1427 : vector<16x128xf32>
    %1429 = arith.addf %1422, %1428 : vector<16x128xf32>
    %c5_419 = arith.constant 5 : index
    %c0_420 = arith.constant 0 : index
    %c0_421 = arith.constant 0 : index
    %1430 = vector.load %arg4[%c5_419, %c0_420, %c0_421] : memref<9x16x128xf32, #tpu.memory_space<vmem>>, vector<1x16x128xf32>
    %1431 = vector.shape_cast %1430 : vector<1x16x128xf32> to vector<16x128xf32>
    %1432 = vector.extract_strided_slice %1394 {offsets = [5, 0], sizes = [1, 128], strides = [1, 1]} : vector<8x128xf32> to vector<1x128xf32>
    %1433 = vector.shape_cast %1432 : vector<1x128xf32> to vector<1x128xf32>
    %1434 = vector.broadcast %1433 : vector<1x128xf32> to vector<16x128xf32>
    %1435 = arith.mulf %1431, %1434 : vector<16x128xf32>
    %1436 = arith.addf %1429, %1435 : vector<16x128xf32>
    %c6_422 = arith.constant 6 : index
    %c0_423 = arith.constant 0 : index
    %c0_424 = arith.constant 0 : index
    %1437 = vector.load %arg4[%c6_422, %c0_423, %c0_424] : memref<9x16x128xf32, #tpu.memory_space<vmem>>, vector<1x16x128xf32>
    %1438 = vector.shape_cast %1437 : vector<1x16x128xf32> to vector<16x128xf32>
    %1439 = vector.extract_strided_slice %1394 {offsets = [6, 0], sizes = [1, 128], strides = [1, 1]} : vector<8x128xf32> to vector<1x128xf32>
    %1440 = vector.shape_cast %1439 : vector<1x128xf32> to vector<1x128xf32>
    %1441 = vector.broadcast %1440 : vector<1x128xf32> to vector<16x128xf32>
    %1442 = arith.mulf %1438, %1441 : vector<16x128xf32>
    %1443 = arith.addf %1436, %1442 : vector<16x128xf32>
    %c7_425 = arith.constant 7 : index
    %c0_426 = arith.constant 0 : index
    %c0_427 = arith.constant 0 : index
    %1444 = vector.load %arg4[%c7_425, %c0_426, %c0_427] : memref<9x16x128xf32, #tpu.memory_space<vmem>>, vector<1x16x128xf32>
    %1445 = vector.shape_cast %1444 : vector<1x16x128xf32> to vector<16x128xf32>
    %1446 = vector.extract_strided_slice %1394 {offsets = [7, 0], sizes = [1, 128], strides = [1, 1]} : vector<8x128xf32> to vector<1x128xf32>
    %1447 = vector.shape_cast %1446 : vector<1x128xf32> to vector<1x128xf32>
    %1448 = vector.broadcast %1447 : vector<1x128xf32> to vector<16x128xf32>
    %1449 = arith.mulf %1445, %1448 : vector<16x128xf32>
    %1450 = arith.addf %1443, %1449 : vector<16x128xf32>
    %cst_428 = arith.constant 5.000000e-01 : f32
    %1451 = vector.broadcast %cst_428 : f32 to vector<16x128xf32>
    %1452 = arith.mulf %1451, %1450 : vector<16x128xf32>
    %cst_429 = arith.constant 0.707106769 : f32
    %1453 = vector.broadcast %cst_429 : f32 to vector<16x128xf32>
    %1454 = arith.mulf %1450, %1453 : vector<16x128xf32>
    %cst_430 = arith.constant 0.000000e+00 : f32
    %1455 = vector.broadcast %cst_430 : f32 to vector<16x128xf32>
    %1456 = arith.cmpf olt, %1454, %1455 : vector<16x128xf32>
    %cst_431 = arith.constant -1.000000e+00 : f32
    %cst_432 = arith.constant 1.000000e+00 : f32
    %1457 = vector.broadcast %cst_431 : f32 to vector<16x128xf32>
    %1458 = vector.broadcast %cst_432 : f32 to vector<16x128xf32>
    %1459 = arith.select %1456, %1457, %1458 : vector<16x128xi1>, vector<16x128xf32>
    %1460 = math.absf %1454 : vector<16x128xf32>
    %cst_433 = arith.constant 0.327591091 : f32
    %1461 = vector.broadcast %cst_433 : f32 to vector<16x128xf32>
    %1462 = arith.mulf %1461, %1460 : vector<16x128xf32>
    %cst_434 = arith.constant 1.000000e+00 : f32
    %1463 = vector.broadcast %cst_434 : f32 to vector<16x128xf32>
    %1464 = arith.addf %1463, %1462 : vector<16x128xf32>
    %1465 = tpu.reciprocal %1464 {approx = true} : vector<16x128xf32> -> vector<16x128xf32>
    %1466 = arith.mulf %1464, %1465 : vector<16x128xf32>
    %cst_435 = arith.constant 2.000000e+00 : f32
    %1467 = vector.broadcast %cst_435 : f32 to vector<16x128xf32>
    %1468 = arith.subf %1467, %1466 : vector<16x128xf32>
    %1469 = arith.mulf %1465, %1468 : vector<16x128xf32>
    %cst_436 = arith.constant 1.06140542 : f32
    %1470 = vector.broadcast %cst_436 : f32 to vector<16x128xf32>
    %1471 = arith.mulf %1470, %1469 : vector<16x128xf32>
    %cst_437 = arith.constant -1.45315206 : f32
    %1472 = vector.broadcast %cst_437 : f32 to vector<16x128xf32>
    %1473 = arith.addf %1471, %1472 : vector<16x128xf32>
    %1474 = arith.mulf %1473, %1469 : vector<16x128xf32>
    %cst_438 = arith.constant 1.42141378 : f32
    %1475 = vector.broadcast %cst_438 : f32 to vector<16x128xf32>
    %1476 = arith.addf %1474, %1475 : vector<16x128xf32>
    %1477 = arith.mulf %1476, %1469 : vector<16x128xf32>
    %cst_439 = arith.constant -0.284496725 : f32
    %1478 = vector.broadcast %cst_439 : f32 to vector<16x128xf32>
    %1479 = arith.addf %1477, %1478 : vector<16x128xf32>
    %1480 = arith.mulf %1479, %1469 : vector<16x128xf32>
    %cst_440 = arith.constant 0.254829586 : f32
    %1481 = vector.broadcast %cst_440 : f32 to vector<16x128xf32>
    %1482 = arith.addf %1480, %1481 : vector<16x128xf32>
    %1483 = arith.mulf %1482, %1469 : vector<16x128xf32>
    %cst_441 = arith.constant 0.000000e+00 : f32
    %1484 = vector.broadcast %cst_441 : f32 to vector<16x128xf32>
    %1485 = arith.subf %1484, %1460 : vector<16x128xf32>
    %1486 = arith.mulf %1485, %1460 : vector<16x128xf32>
    %1487 = math.exp %1486 : vector<16x128xf32>
    %1488 = arith.mulf %1483, %1487 : vector<16x128xf32>
    %cst_442 = arith.constant 1.000000e+00 : f32
    %1489 = vector.broadcast %cst_442 : f32 to vector<16x128xf32>
    %1490 = arith.subf %1489, %1488 : vector<16x128xf32>
    %1491 = arith.mulf %1459, %1490 : vector<16x128xf32>
    %cst_443 = arith.constant 1.000000e+00 : f32
    %1492 = vector.broadcast %cst_443 : f32 to vector<16x128xf32>
    %1493 = arith.addf %1492, %1491 : vector<16x128xf32>
    %1494 = arith.mulf %1452, %1493 : vector<16x128xf32>
    %c63_444 = arith.constant 63 : index
    %c0_445 = arith.constant 0 : index
    %c0_446 = arith.constant 0 : index
    %1495 = vector.load %arg3[%c63_444, %c0_445, %c0_446] : memref<79x8x128xf32, #tpu.memory_space<vmem>>, vector<1x8x128xf32>
    %1496 = vector.shape_cast %1495 : vector<1x8x128xf32> to vector<8x128xf32>
    %1497 = vector.extract_strided_slice %1494 {offsets = [0, 0], sizes = [1, 128], strides = [1, 1]} : vector<16x128xf32> to vector<1x128xf32>
    %1498 = vector.shape_cast %1497 : vector<1x128xf32> to vector<1x128xf32>
    %1499 = vector.broadcast %1498 : vector<1x128xf32> to vector<8x128xf32>
    %1500 = arith.mulf %1496, %1499 : vector<8x128xf32>
    %1501 = arith.addf %677, %1500 : vector<8x128xf32>
    %c64_447 = arith.constant 64 : index
    %c0_448 = arith.constant 0 : index
    %c0_449 = arith.constant 0 : index
    %1502 = vector.load %arg3[%c64_447, %c0_448, %c0_449] : memref<79x8x128xf32, #tpu.memory_space<vmem>>, vector<1x8x128xf32>
    %1503 = vector.shape_cast %1502 : vector<1x8x128xf32> to vector<8x128xf32>
    %1504 = vector.extract_strided_slice %1494 {offsets = [1, 0], sizes = [1, 128], strides = [1, 1]} : vector<16x128xf32> to vector<1x128xf32>
    %1505 = vector.shape_cast %1504 : vector<1x128xf32> to vector<1x128xf32>
    %1506 = vector.broadcast %1505 : vector<1x128xf32> to vector<8x128xf32>
    %1507 = arith.mulf %1503, %1506 : vector<8x128xf32>
    %1508 = arith.addf %1501, %1507 : vector<8x128xf32>
    %c65_450 = arith.constant 65 : index
    %c0_451 = arith.constant 0 : index
    %c0_452 = arith.constant 0 : index
    %1509 = vector.load %arg3[%c65_450, %c0_451, %c0_452] : memref<79x8x128xf32, #tpu.memory_space<vmem>>, vector<1x8x128xf32>
    %1510 = vector.shape_cast %1509 : vector<1x8x128xf32> to vector<8x128xf32>
    %1511 = vector.extract_strided_slice %1494 {offsets = [2, 0], sizes = [1, 128], strides = [1, 1]} : vector<16x128xf32> to vector<1x128xf32>
    %1512 = vector.shape_cast %1511 : vector<1x128xf32> to vector<1x128xf32>
    %1513 = vector.broadcast %1512 : vector<1x128xf32> to vector<8x128xf32>
    %1514 = arith.mulf %1510, %1513 : vector<8x128xf32>
    %1515 = arith.addf %1508, %1514 : vector<8x128xf32>
    %c66_453 = arith.constant 66 : index
    %c0_454 = arith.constant 0 : index
    %c0_455 = arith.constant 0 : index
    %1516 = vector.load %arg3[%c66_453, %c0_454, %c0_455] : memref<79x8x128xf32, #tpu.memory_space<vmem>>, vector<1x8x128xf32>
    %1517 = vector.shape_cast %1516 : vector<1x8x128xf32> to vector<8x128xf32>
    %1518 = vector.extract_strided_slice %1494 {offsets = [3, 0], sizes = [1, 128], strides = [1, 1]} : vector<16x128xf32> to vector<1x128xf32>
    %1519 = vector.shape_cast %1518 : vector<1x128xf32> to vector<1x128xf32>
    %1520 = vector.broadcast %1519 : vector<1x128xf32> to vector<8x128xf32>
    %1521 = arith.mulf %1517, %1520 : vector<8x128xf32>
    %1522 = arith.addf %1515, %1521 : vector<8x128xf32>
    %c67_456 = arith.constant 67 : index
    %c0_457 = arith.constant 0 : index
    %c0_458 = arith.constant 0 : index
    %1523 = vector.load %arg3[%c67_456, %c0_457, %c0_458] : memref<79x8x128xf32, #tpu.memory_space<vmem>>, vector<1x8x128xf32>
    %1524 = vector.shape_cast %1523 : vector<1x8x128xf32> to vector<8x128xf32>
    %1525 = vector.extract_strided_slice %1494 {offsets = [4, 0], sizes = [1, 128], strides = [1, 1]} : vector<16x128xf32> to vector<1x128xf32>
    %1526 = vector.shape_cast %1525 : vector<1x128xf32> to vector<1x128xf32>
    %1527 = vector.broadcast %1526 : vector<1x128xf32> to vector<8x128xf32>
    %1528 = arith.mulf %1524, %1527 : vector<8x128xf32>
    %1529 = arith.addf %1522, %1528 : vector<8x128xf32>
    %c68_459 = arith.constant 68 : index
    %c0_460 = arith.constant 0 : index
    %c0_461 = arith.constant 0 : index
    %1530 = vector.load %arg3[%c68_459, %c0_460, %c0_461] : memref<79x8x128xf32, #tpu.memory_space<vmem>>, vector<1x8x128xf32>
    %1531 = vector.shape_cast %1530 : vector<1x8x128xf32> to vector<8x128xf32>
    %1532 = vector.extract_strided_slice %1494 {offsets = [5, 0], sizes = [1, 128], strides = [1, 1]} : vector<16x128xf32> to vector<1x128xf32>
    %1533 = vector.shape_cast %1532 : vector<1x128xf32> to vector<1x128xf32>
    %1534 = vector.broadcast %1533 : vector<1x128xf32> to vector<8x128xf32>
    %1535 = arith.mulf %1531, %1534 : vector<8x128xf32>
    %1536 = arith.addf %1529, %1535 : vector<8x128xf32>
    %c69_462 = arith.constant 69 : index
    %c0_463 = arith.constant 0 : index
    %c0_464 = arith.constant 0 : index
    %1537 = vector.load %arg3[%c69_462, %c0_463, %c0_464] : memref<79x8x128xf32, #tpu.memory_space<vmem>>, vector<1x8x128xf32>
    %1538 = vector.shape_cast %1537 : vector<1x8x128xf32> to vector<8x128xf32>
    %1539 = vector.extract_strided_slice %1494 {offsets = [6, 0], sizes = [1, 128], strides = [1, 1]} : vector<16x128xf32> to vector<1x128xf32>
    %1540 = vector.shape_cast %1539 : vector<1x128xf32> to vector<1x128xf32>
    %1541 = vector.broadcast %1540 : vector<1x128xf32> to vector<8x128xf32>
    %1542 = arith.mulf %1538, %1541 : vector<8x128xf32>
    %1543 = arith.addf %1536, %1542 : vector<8x128xf32>
    %c70_465 = arith.constant 70 : index
    %c0_466 = arith.constant 0 : index
    %c0_467 = arith.constant 0 : index
    %1544 = vector.load %arg3[%c70_465, %c0_466, %c0_467] : memref<79x8x128xf32, #tpu.memory_space<vmem>>, vector<1x8x128xf32>
    %1545 = vector.shape_cast %1544 : vector<1x8x128xf32> to vector<8x128xf32>
    %1546 = vector.extract_strided_slice %1494 {offsets = [7, 0], sizes = [1, 128], strides = [1, 1]} : vector<16x128xf32> to vector<1x128xf32>
    %1547 = vector.shape_cast %1546 : vector<1x128xf32> to vector<1x128xf32>
    %1548 = vector.broadcast %1547 : vector<1x128xf32> to vector<8x128xf32>
    %1549 = arith.mulf %1545, %1548 : vector<8x128xf32>
    %1550 = arith.addf %1543, %1549 : vector<8x128xf32>
    %c71_468 = arith.constant 71 : index
    %c0_469 = arith.constant 0 : index
    %c0_470 = arith.constant 0 : index
    %1551 = vector.load %arg3[%c71_468, %c0_469, %c0_470] : memref<79x8x128xf32, #tpu.memory_space<vmem>>, vector<1x8x128xf32>
    %1552 = vector.shape_cast %1551 : vector<1x8x128xf32> to vector<8x128xf32>
    %1553 = vector.extract_strided_slice %1494 {offsets = [8, 0], sizes = [1, 128], strides = [1, 1]} : vector<16x128xf32> to vector<1x128xf32>
    %1554 = vector.shape_cast %1553 : vector<1x128xf32> to vector<1x128xf32>
    %1555 = vector.broadcast %1554 : vector<1x128xf32> to vector<8x128xf32>
    %1556 = arith.mulf %1552, %1555 : vector<8x128xf32>
    %1557 = arith.addf %1550, %1556 : vector<8x128xf32>
    %c72_471 = arith.constant 72 : index
    %c0_472 = arith.constant 0 : index
    %c0_473 = arith.constant 0 : index
    %1558 = vector.load %arg3[%c72_471, %c0_472, %c0_473] : memref<79x8x128xf32, #tpu.memory_space<vmem>>, vector<1x8x128xf32>
    %1559 = vector.shape_cast %1558 : vector<1x8x128xf32> to vector<8x128xf32>
    %1560 = vector.extract_strided_slice %1494 {offsets = [9, 0], sizes = [1, 128], strides = [1, 1]} : vector<16x128xf32> to vector<1x128xf32>
    %1561 = vector.shape_cast %1560 : vector<1x128xf32> to vector<1x128xf32>
    %1562 = vector.broadcast %1561 : vector<1x128xf32> to vector<8x128xf32>
    %1563 = arith.mulf %1559, %1562 : vector<8x128xf32>
    %1564 = arith.addf %1557, %1563 : vector<8x128xf32>
    %c73_474 = arith.constant 73 : index
    %c0_475 = arith.constant 0 : index
    %c0_476 = arith.constant 0 : index
    %1565 = vector.load %arg3[%c73_474, %c0_475, %c0_476] : memref<79x8x128xf32, #tpu.memory_space<vmem>>, vector<1x8x128xf32>
    %1566 = vector.shape_cast %1565 : vector<1x8x128xf32> to vector<8x128xf32>
    %1567 = vector.extract_strided_slice %1494 {offsets = [10, 0], sizes = [1, 128], strides = [1, 1]} : vector<16x128xf32> to vector<1x128xf32>
    %1568 = vector.shape_cast %1567 : vector<1x128xf32> to vector<1x128xf32>
    %1569 = vector.broadcast %1568 : vector<1x128xf32> to vector<8x128xf32>
    %1570 = arith.mulf %1566, %1569 : vector<8x128xf32>
    %1571 = arith.addf %1564, %1570 : vector<8x128xf32>
    %c74_477 = arith.constant 74 : index
    %c0_478 = arith.constant 0 : index
    %c0_479 = arith.constant 0 : index
    %1572 = vector.load %arg3[%c74_477, %c0_478, %c0_479] : memref<79x8x128xf32, #tpu.memory_space<vmem>>, vector<1x8x128xf32>
    %1573 = vector.shape_cast %1572 : vector<1x8x128xf32> to vector<8x128xf32>
    %1574 = vector.extract_strided_slice %1494 {offsets = [11, 0], sizes = [1, 128], strides = [1, 1]} : vector<16x128xf32> to vector<1x128xf32>
    %1575 = vector.shape_cast %1574 : vector<1x128xf32> to vector<1x128xf32>
    %1576 = vector.broadcast %1575 : vector<1x128xf32> to vector<8x128xf32>
    %1577 = arith.mulf %1573, %1576 : vector<8x128xf32>
    %1578 = arith.addf %1571, %1577 : vector<8x128xf32>
    %c75_480 = arith.constant 75 : index
    %c0_481 = arith.constant 0 : index
    %c0_482 = arith.constant 0 : index
    %1579 = vector.load %arg3[%c75_480, %c0_481, %c0_482] : memref<79x8x128xf32, #tpu.memory_space<vmem>>, vector<1x8x128xf32>
    %1580 = vector.shape_cast %1579 : vector<1x8x128xf32> to vector<8x128xf32>
    %1581 = vector.extract_strided_slice %1494 {offsets = [12, 0], sizes = [1, 128], strides = [1, 1]} : vector<16x128xf32> to vector<1x128xf32>
    %1582 = vector.shape_cast %1581 : vector<1x128xf32> to vector<1x128xf32>
    %1583 = vector.broadcast %1582 : vector<1x128xf32> to vector<8x128xf32>
    %1584 = arith.mulf %1580, %1583 : vector<8x128xf32>
    %1585 = arith.addf %1578, %1584 : vector<8x128xf32>
    %c76_483 = arith.constant 76 : index
    %c0_484 = arith.constant 0 : index
    %c0_485 = arith.constant 0 : index
    %1586 = vector.load %arg3[%c76_483, %c0_484, %c0_485] : memref<79x8x128xf32, #tpu.memory_space<vmem>>, vector<1x8x128xf32>
    %1587 = vector.shape_cast %1586 : vector<1x8x128xf32> to vector<8x128xf32>
    %1588 = vector.extract_strided_slice %1494 {offsets = [13, 0], sizes = [1, 128], strides = [1, 1]} : vector<16x128xf32> to vector<1x128xf32>
    %1589 = vector.shape_cast %1588 : vector<1x128xf32> to vector<1x128xf32>
    %1590 = vector.broadcast %1589 : vector<1x128xf32> to vector<8x128xf32>
    %1591 = arith.mulf %1587, %1590 : vector<8x128xf32>
    %1592 = arith.addf %1585, %1591 : vector<8x128xf32>
    %c77_486 = arith.constant 77 : index
    %c0_487 = arith.constant 0 : index
    %c0_488 = arith.constant 0 : index
    %1593 = vector.load %arg3[%c77_486, %c0_487, %c0_488] : memref<79x8x128xf32, #tpu.memory_space<vmem>>, vector<1x8x128xf32>
    %1594 = vector.shape_cast %1593 : vector<1x8x128xf32> to vector<8x128xf32>
    %1595 = vector.extract_strided_slice %1494 {offsets = [14, 0], sizes = [1, 128], strides = [1, 1]} : vector<16x128xf32> to vector<1x128xf32>
    %1596 = vector.shape_cast %1595 : vector<1x128xf32> to vector<1x128xf32>
    %1597 = vector.broadcast %1596 : vector<1x128xf32> to vector<8x128xf32>
    %1598 = arith.mulf %1594, %1597 : vector<8x128xf32>
    %1599 = arith.addf %1592, %1598 : vector<8x128xf32>
    %c78_489 = arith.constant 78 : index
    %c0_490 = arith.constant 0 : index
    %c0_491 = arith.constant 0 : index
    %1600 = vector.load %arg3[%c78_489, %c0_490, %c0_491] : memref<79x8x128xf32, #tpu.memory_space<vmem>>, vector<1x8x128xf32>
    %1601 = vector.shape_cast %1600 : vector<1x8x128xf32> to vector<8x128xf32>
    %1602 = vector.extract_strided_slice %1494 {offsets = [15, 0], sizes = [1, 128], strides = [1, 1]} : vector<16x128xf32> to vector<1x128xf32>
    %1603 = vector.shape_cast %1602 : vector<1x128xf32> to vector<1x128xf32>
    %1604 = vector.broadcast %1603 : vector<1x128xf32> to vector<8x128xf32>
    %1605 = arith.mulf %1601, %1604 : vector<8x128xf32>
    %1606 = arith.addf %1599, %1605 : vector<8x128xf32>
    %c0_492 = arith.constant 0 : index
    %c0_493 = arith.constant 0 : index
    %c256 = arith.constant 256 : index
    %1607 = vector.load %arg2[%c0_492, %c0_493, %c256] : memref<1x8x384xf32, #tpu.memory_space<vmem>>, vector<1x8x128xf32>
    %1608 = vector.shape_cast %1607 : vector<1x8x128xf32> to vector<8x128xf32>
    %1609 = arith.addf %1606, %1608 : vector<8x128xf32>
    %c0_494 = arith.constant 0 : index
    %c0_495 = arith.constant 0 : index
    %c256_496 = arith.constant 256 : index
    %1610 = vector.load %arg5[%c0_494, %c0_495, %c256_496] : memref<1x8x384xf32, #tpu.memory_space<vmem>>, vector<1x8x128xf32>
    %1611 = vector.shape_cast %1610 : vector<1x8x128xf32> to vector<8x128xf32>
    %1612 = vector.shape_cast %1609 : vector<8x128xf32> to vector<1x8x128xf32>
    tpu.vector_store %arg5[%c0_494, %c0_495, %c256_496], %1612 {strides = array<i32>} : memref<1x8x384xf32, #tpu.memory_space<vmem>>, vector<1x8x128xf32>,
    return
  }
  func.func @transform_0(%arg0: i32) -> (i32, i32, i32) {
    %c0_i32 = arith.constant 0 : i32
    %c0_i32_0 = arith.constant 0 : i32
    %c0_i32_1 = arith.constant 0 : i32
    return %arg0, %c0_i32, %c0_i32_0 : i32, i32, i32
  }
  func.func @transform_1(%arg0: i32) -> (i32, i32, i32) {
    %c0_i32 = arith.constant 0 : i32
    %c0_i32_0 = arith.constant 0 : i32
    %c0_i32_1 = arith.constant 0 : i32
    return %arg0, %c0_i32, %c0_i32_0 : i32, i32, i32
  }
  func.func @transform_2(%arg0: i32) -> (i32, i32, i32) {
    %c0_i32 = arith.constant 0 : i32
    %c0_i32_0 = arith.constant 0 : i32
    %c0_i32_1 = arith.constant 0 : i32
    %c0_i32_2 = arith.constant 0 : i32
    return %c0_i32, %c0_i32_0, %c0_i32_1 : i32, i32, i32
  }
  func.func @transform_3(%arg0: i32) -> (i32, i32, i32) {
    %c0_i32 = arith.constant 0 : i32
    %c0_i32_0 = arith.constant 0 : i32
    %c0_i32_1 = arith.constant 0 : i32
    %c0_i32_2 = arith.constant 0 : i32
    return %c0_i32, %c0_i32_0, %c0_i32_1 : i32, i32, i32
  }
  func.func @transform_4(%arg0: i32) -> (i32, i32, i32) {
    %c0_i32 = arith.constant 0 : i32
    %c0_i32_0 = arith.constant 0 : i32
    %c0_i32_1 = arith.constant 0 : i32
    return %arg0, %c0_i32, %c0_i32_0 : i32, i32, i32
  }
}

</mosaic_0001>

<bundles_post_ra>
// kernel: tpu_custom_call.1
= control target key start
LH: loop header
LB: loop body
LE: loop exit
PB: predicated region body
PF: predicated region fallthrough
CT: control target
= control target key end

     0   :  { %9 = vsyncpa [#allocation3], 0  ;;  %s5971_s0 = inlined_call_operand.hbm [shape: f32[2,8,640], index: 0, kind: input, shape index: {}]   ;;  %s5972_s1 = inlined_call_operand.hbm [shape: f32[2,8,384], index: 1, kind: input, shape index: {}]   ;;  %s5973_s2 = inlined_call_operand.hbm [shape: f32[79,8,128], index: 2, kind: input, shape index: {}]   ;;  %s5974_s3 = inlined_call_operand.hbm [shape: f32[9,16,128], index: 3, kind: input, shape index: {}]   ;;  %s5975_s4 = inlined_call_operand.hbm [shape: f32[2,8,384], index: 4, kind: output, shape index: {}]  }
   0x1   :  { %11 = vsyncpa [#allocation3 + $0x1], 0 }
   0x2   :  { %12 = vsyncpa [#allocation6], 0 }
   0x3   :  { %14 = vsyncpa [#allocation6 + $0x1], 0 }
   0x4   :  { %15 = vsyncpa [#allocation9], 0 }
   0x5   :  { %16 = vsyncpa [#allocation4], 0 }
   0x6   :  { %18 = vsyncpa [#allocation4 + $0x1], 0  ;;  %s3889_s15 = smov 0   ;;  %s3891_s16 = smov 0  }
   0x7   :  { %s3893_s17 = smov 0   ;;  %s3895_s18 = smov 0  }
   0x8 LB: > { %s3910_s19 = sadd.s32 4294967295, %s3788_s18   ;;  %s3375_s20 = sadd.s32 4294967294, %s3788_s18   ;;  %s3788_s18 = sphi %s3895_s18, %s6280_s18   ;;  %s3784_s17 = sphi %s3893_s17, %s6279_s17   ;;  %s3780_s16 = sphi %s3891_s16, %s6278_s16   ;;  %s3776_s15 = sphi %s3889_s15, %s6277_s15  }
   0x9   : > { %p44_p0 = scmp.ne.s32.totalorder %s3780_s16, %s3776_s15  ;;  %p5976_p1 = scmp.eq.s32.totalorder %s3910_s19, 0 }
   0xa   : > { %p142_p3 = scmp.eq.s32.totalorder %s3375_s20, 1  ;;  %p3376_p5 = scmp.ge.s32.totalorder %s3788_s18, 1 }
   0xb   : > { %p3919_p4 = por %p5976_p1, %p44_p0  ;;  %p149_p7 = scmp.lt.s32.totalorder %s3788_s18, 3 }
   0xc   : > { %p3924_p6 = por %p142_p3, %p44_p0  ;;  %s3790_s24 = smov [#allocation7]  }
   0xd   : > { %s6077_s21 = scalar_select %p3919_p4, 1, 0 }
   0xe   : > { %s6078_s22 = scalar_select %p3924_p6, 1, 0 }
   0xf   : > { %p3929_p8 = pnand %p3376_p5, %p149_p7  ;;  %s161_s25 = sshll.u32 %s3790_s24, 4  ;;  %s162_s25 = int_to_ptr.vmem [resolvable:$true] %s161_s25 }
  0x10   : > { %s3791_s27 = smov [#allocation8]   ;;  %s3615_s29 = scalar_lea.vmem %s162_s25, 10112 }
  0x11   : > { %s6079_s23 = scalar_select %p3929_p8, 1, 0 }
  0x12   : > { %p3409_p9 = pneg %p3929_p8  ;;  %s174_s28 = sshll.u32 %s3791_s27, 4  ;;  %s175_s28 = int_to_ptr.vmem [resolvable:$true] %s174_s28 }
  0x13   : > { %p3616_p13 = scmp.ne.s32.totalorder %s162_s25, %s3615_s29  ;;  %p3623_p5 = scmp.lt.s32.totalorder %s162_s25, %s162_s25 }
  0x14   : > { %p3938_p11 = pnand %p3409_p9, %p5976_p1  ;;  %p3624_p7 = scmp.lt.s32.totalorder %s3615_s29, %s3615_s29 }
  0x16   : > { %p3606_p12 = pneg %p3938_p11  ;;  %p3625_p10 = por %p3624_p7, %p3623_p5 }
  0x18   : > { %p3618_p0 = pnand %p3616_p13, %p3606_p12 }
  0x1a   : > { %p3619_p3 = pneg %p3618_p0 }
  0x1c   : > { %p3626_p9 = pnand %p3625_p10, %p3619_p3 }
  0x1e   : > { %3629 = shalt.err (!%p3626_p9)
}
  0x1f   : > { %s3792_s30 = smov 128   ;;  %s3793_s5 = smov 8  }
  0x20   : > { %3412 = dma.hbm_to_vmem [thread:$0]  (!%p3938_p11), %s5973_s2, 10112, %s162_s25, [#allocation6], %s3792_s30, %s3792_s30, %s3793_s5  }
  0x21   : > { %s3641_s8 = scalar_lea.vmem %s175_s28, 2304  ;;  %p3649_p2 = scmp.lt.s32.totalorder %s175_s28, %s175_s28 }
  0x22   : > { %p3642_p1 = scmp.ne.s32.totalorder %s175_s28, %s3641_s8  ;;  %p3650_p6 = scmp.lt.s32.totalorder %s3641_s8, %s3641_s8 }
  0x24   : > { %p3644_p13 = pnand %p3642_p1, %p3606_p12  ;;  %p3651_p5 = por %p3650_p6, %p3649_p2 }
  0x26   : > { %p3645_p0 = pneg %p3644_p13 }
  0x28   : > { %p3652_p10 = pnand %p3651_p5, %p3645_p0 }
  0x2a   : > { %3655 = shalt.err (!%p3652_p10)
}
  0x2b   : > { %3415 = dma.hbm_to_vmem [thread:$0]  (!%p3938_p11), %s5974_s3, 2304, %s175_s28, [#allocation9], %s3792_s30, %s3792_s30, %s3793_s5  }
  0x2c   : > { %s3961_s11 = sadd.s32 1, %s3788_s18   ;;  %s31_s12 = sadd.s32 1, %s3784_s17 }
  0x2d   : > { %s28_s13 = ssub.s32 %s3788_s18, %s3961_s11  ;;  %p38_p1 = scmp.ne.s32.totalorder %s3784_s17, %s3780_s16 }
  0x2e   : > { %p29_p2 = scmp.eq.s32.totalorder %s28_s13, 0  ;;  %p39_p6 = scmp.eq.s32.totalorder %s3788_s18, 0 }
  0x2f   : > { %p6081_p12 = scmp.eq.s32.totalorder %s3910_s19, 1  ;;  %p3429_p7 = scmp.lt.s32.totalorder %s3788_s18, 2 }
  0x30   : > { %s3977_s20 = scalar_select %p29_p2, %s3784_s17, %s31_s12  }
  0x31   : > { %p3971_p3 = por %p6081_p12, %p38_p1  ;;  %p40_p9 = por %p39_p6, %p38_p1 }
  0x32   : > { %s3980_s24 = sand.u32 1, %s3784_s17   ;;  %s3389_s26 = smul.u32 640, %s3788_s18 }
  0x33   : > { %s6082_s14 = scalar_select %p3971_p3, 1, 0 }
  0x34   : > { %s3388_s25 = smul.u32 40, %s3980_s24  ;;  %p3984_p11 = pnand %p3429_p7, %p40_p9 }
  0x35   : > { %s207_s28 = sand.u32 1, %s3788_s18   ;;  %s3992_s5 = scalar_lea.hbm %s5971_s0, %s3389_s26 }
  0x36   : > { %s192_s6 = scalar_lea.vmem [#allocation2], %s3388_s25  ;;  %s189_s8 = scalar_lea.sflag [#allocation3], %s3980_s24 }
  0x37   : > { %s200_s7 = sshll.u32 %s192_s6, 4  ;;  %s3656_s9 = scalar_lea.hbm %s3992_s5, 640  ;;  %s201_s7 = int_to_ptr.vmem [resolvable:$true] %s200_s7 }
  0x38   : > { %p3657_p13 = scmp.ne.s32.totalorder %s3992_s5, %s3656_s9  ;;  %p3658_p0 = pneg %p3984_p11 }
  0x39   : > { %s3661_s13 = scalar_lea.hbm %s5971_s0, 1280  ;;  %p3662_p1 = scmp.lt.s32.totalorder %s3992_s5, %s5971_s0 }
  0x3a   : > { %p3659_p5 = pnand %p3658_p0, %p3657_p13  ;;  %p3663_p2 = scmp.lt.s32.totalorder %s3661_s13, %s3656_s9 }
  0x3c   : > { %p3660_p10 = pneg %p3659_p5  ;;  %p3664_p6 = por %p3663_p2, %p3662_p1 }
  0x3e   : > { %p3665_p12 = pnand %p3664_p6, %p3660_p10 }
  0x40   : > { %3668 = shalt.err (!%p3665_p12)
}
  0x41   : > { %s3669_s25 = scalar_lea.vmem %s201_s7, 640  ;;  %s3794_s30 = smov [#allocation2]  }
  0x42   : > { %p3670_p7 = scmp.ne.s32.totalorder %s201_s7, %s3669_s25  ;;  %s3674_s6 = sshll.u32 %s3794_s30, 4  ;;  %s3675_s6 = int_to_ptr.vmem [resolvable:$false] %s3674_s6 }
  0x43   : > { %s3676_s10 = scalar_lea.vmem %s3675_s6, 1280  ;;  %p3677_p5 = scmp.lt.s32.totalorder %s201_s7, %s3675_s6 }
  0x44   : > { %p3672_p9 = pnand %p3670_p7, %p3658_p0  ;;  %p3678_p3 = scmp.lt.s32.totalorder %s3676_s10, %s3669_s25 }
  0x46   : > { %p3673_p13 = pneg %p3672_p9  ;;  %p3679_p4 = por %p3678_p3, %p3677_p5 }
  0x48   : > { %p3680_p8 = pnand %p3679_p4, %p3673_p13 }
  0x4a   : > { %3683 = shalt.err (!%p3680_p8)
}
  0x4b   : > { %3419 = dma.hbm_to_vmem [thread:$0]  (!%p3984_p11), %s3992_s5, 640, %s201_s7, %s189_s8  }
  0x4c   : > { %s3390_s9 = smul.u32 24, %s3980_s24  ;;  %s208_s6 = scalar_lea.sflag [#allocation6], %s207_s28 }
  0x4d   : > { %s3391_s12 = smul.u32 384, %s3788_s18  ;;  %s3689_s7 = scalar_lea.hbm %s5972_s1, 768 }
  0x4e   : > { %s211_s25 = scalar_lea.vmem [#allocation5], %s3390_s9 }
  0x4f   : > { %s4020_s29 = scalar_lea.hbm %s5972_s1, %s3391_s12  ;;  %s219_s30 = sshll.u32 %s211_s25, 4  ;;  %s220_s30 = int_to_ptr.vmem [resolvable:$true] %s219_s30 }
  0x50   : > { %s3684_s10 = scalar_lea.hbm %s4020_s29, 384  ;;  %p3690_p10 = scmp.lt.s32.totalorder %s4020_s29, %s5972_s1 }
  0x51   : > { %p3685_p4 = scmp.ne.s32.totalorder %s4020_s29, %s3684_s10  ;;  %p3691_p1 = scmp.lt.s32.totalorder %s3689_s7, %s3684_s10 }
  0x53   : > { %p3687_p8 = pnand %p3685_p4, %p3658_p0  ;;  %p3692_p2 = por %p3691_p1, %p3690_p10 }
  0x55   : > { %p3688_p3 = pneg %p3687_p8 }
  0x57   : > { %p3693_p6 = pnand %p3692_p2, %p3688_p3 }
  0x59   : > { %3696 = shalt.err (!%p3693_p6)
}
  0x5a   : > { %s3697_s9 = scalar_lea.vmem %s220_s30, 384  ;;  %s3795_s28 = smov [#allocation5]  }
  0x5b   : > { %p3698_p12 = scmp.ne.s32.totalorder %s220_s30, %s3697_s9  ;;  %s3702_s13 = sshll.u32 %s3795_s28, 4  ;;  %s3703_s13 = int_to_ptr.vmem [resolvable:$false] %s3702_s13 }
  0x5c   : > { %s3704_s26 = scalar_lea.vmem %s3703_s13, 768  ;;  %p3705_p13 = scmp.lt.s32.totalorder %s220_s30, %s3703_s13 }
  0x5d   : > { %p3700_p7 = pnand %p3698_p12, %p3658_p0  ;;  %p3706_p5 = scmp.lt.s32.totalorder %s3704_s26, %s3697_s9 }
  0x5f   : > { %p3701_p9 = pneg %p3700_p7  ;;  %p3707_p4 = por %p3706_p5, %p3705_p13 }
  0x61   : > { %p3708_p8 = pnand %p3707_p4, %p3701_p9 }
  0x63   : > { %3711 = shalt.err (!%p3708_p8)
}
  0x64   : > { %3422 = dma.hbm_to_vmem [thread:$0]  (!%p3984_p11), %s4020_s29, 384, %s220_s30, %s208_s6  }
  0x65   : > { %p6084_p3 = scmp.ne.s32.totalorder %s6079_s23, 0 }
  0x67   : > { %228 = sbr.rel (%p6084_p3) target bundleno = 2140 (0x85c), region = 36 }
  0x6c   : > { %s4045_s25 = sand.u32 1, %s3780_s16   ;;  %p6085_p0 = scmp.ne.s32.totalorder %s6077_s21, 0 }
  0x6d   : > { %s3392_s10 = smul.u32 40, %s4045_s25  ;;  %s231_s24 = scalar_lea.sflag [#allocation3], %s4045_s25 }
  0x6f   : > { %s4049_s5 = scalar_lea.vmem [#allocation2], %s3392_s10 }
  0x70   : > { %3755 = dma.done.wait (%p6085_p0), %s231_s24, 640  }
  0x71   : > { %3757 = vsyncadd (%p6085_p0), %s231_s24, 4294966656  ;;  %s239_s23 = sand.u32 1, %s3910_s19   ;;  %s5980_s27 = smul.u32 24, %s4045_s25 }
  0x72   : > { %s240_s29 = scalar_lea.sflag [#allocation6], %s239_s23 }
  0x73   : > { %s4059_s30 = scalar_lea.vmem [#allocation5], %s5980_s27 }
  0x74   : > { %3759 = dma.done.wait (%p6085_p0), %s240_s29, 384  }
  0x75   : > { %3761 = vsyncadd (%p6085_p0), %s240_s29, 4294966912  ;;  %p6086_p11 = scmp.eq.s32.totalorder %s3910_s19, 0 }
  0x77   : > { %3763 = dma.done.wait (%p6086_p11), [#allocation6], 10112   ;;  %p6087_p10 = pmov %p6086_p11 }
  0x79   : > { %3765 = vsyncadd (%p6087_p10), [#allocation6], 4294957184  ;;  %p6088_p1 = pmov %p6087_p10 }
  0x7b   : > { %3767 = dma.done.wait (%p6088_p1), [#allocation9], 2304   ;;  %p6089_p2 = pmov %p6088_p1 }
  0x7c   : > { %v294_v0 = vld [vmem:[#allocation7 + $0x8] sm:$0xff]  ;;  %v326_v1 = vld [vmem:[#allocation7 + $0x10] sm:$0xff]  ;;  %s3796_s6 = smov 1   ;;  %s5981_s7 = smov 2   ;;  %v358_v2 = vld [vmem:[#allocation7 + $0x18] sm:$0xff]  ;;  %vm307_vm0 = vcmask 1039360  }
  0x7d   : > { %3769 = vsyncadd (%p6089_p2), [#allocation9], 4294964992  ;;  %296 = vrot.lane.b32.xlu0 %v294_v0, %s3796_s6  ;;  %328 = vrot.lane.b32.xlu1 %v326_v1, %s5981_s7  ;;  %v390_v3 = vld [vmem:[#allocation7 + $0x20] sm:$0xff]  ;;  %s5983_s21 = smov 3   ;;  %s5985_s8 = smov 4   ;;  %v422_v4 = vld [vmem:[#allocation7 + $0x28] sm:$0xff] }
  0x7e   : > { %v454_v5 = vld [vmem:[#allocation7 + $0x30] sm:$0xff]  ;;  %s5987_s12 = smov 5   ;;  %s5989_s9 = smov 6   ;;  %v486_v6 = vld [vmem:[#allocation7 + $0x38] sm:$0xff]  ;;  %v518_v7 = vld [vmem:[#allocation7 + $0x40] sm:$0xff]  ;;  %vm339_vm1 = vcmask 1031168  }
  0x7f   : > { %s3802_s28 = smov 24   ;;  %s3803_s13 = smov 25   ;;  %v550_v8 = vld [vmem:[#allocation7 + $0x48] sm:$0xff]  ;;  %v582_v9 = vld [vmem:[#allocation7 + $0x50] sm:$0xff]  ;;  %v614_v10 = vld [vmem:[#allocation7 + $0x58] sm:$0xff]  ;;  %vm371_vm2 = vcmask 1022976  }
  0x80   : > { %s5991_s26 = smov 26   ;;  %s5993_s10 = smov 27   ;;  %v646_v11 = vld [vmem:[#allocation7 + $0x60] sm:$0xff]  ;;  %v678_v12 = vld [vmem:[#allocation7 + $0x68] sm:$0xff]  ;;  %v4092_v18 = vld [vmem:[%s4049_s5 + $0x10] sm:$0xff]  ;;  %vm403_vm3 = vcmask 1014784  }
  0x81   : > { %360 = vrot.lane.b32.xlu0 %v358_v2, %s5983_s21  ;;  %392 = vrot.lane.b32.xlu1 %v390_v3, %s5985_s8  ;;  %s5995_s24 = smov 28   ;;  %s5997_s23 = smov 29   ;;  %v4084_v13 = vld [vmem:[%s4049_s5 + $0x8] sm:$0xff]  ;;  %v4087_v14 = vld [vmem:[%s4049_s5] sm:$0xff]  ;;  %vm435_vm4 = vcmask 1006592   ;;  %vm467_vm5 = vcmask 998400  }
  0x82   : > { %s5999_s29 = smov 30   ;;  %v4095_v19 = vld [vmem:[%s4049_s5 + $0x18] sm:$0xff]  ;;  %s3809_s6 = smov 127   ;;  %vm499_vm6 = vcmask 850944   ;;  %vm531_vm7 = vcmask 842752   ;;  %vm563_vm8 = vcmask 834560  }
  0x83   : > { %s6034_s27 = smov 124   ;;  %s6033_s7 = smov 123   ;;  %vm595_vm9 = vcmask 826368   ;;  %vm627_vm10 = vcmask 818176   ;;  %vm659_vm11 = vcmask 809984   ;;  %vm691_vm12 = vcmask 801792  }
  0x84   : > { %s3814_s21 = smov 122   ;;  %s6007_s8 = smov 104   ;;  %vm723_vm13 = vcmask 654336   ;;  %vm755_vm14 = vcmask 646144   ;;  %vm789_vm15 = vcmask 637952  }
  0x85   : > { %424 = vrot.lane.b32.xlu0 %v422_v4, %s5987_s12  ;;  %456 = vrot.lane.b32.xlu1 %v454_v5, %s5989_s9  ;;  %s6001_s12 = smov 103   ;;  %s3817_s9 = smov 102  }
  0x86   : > { %p6274_p12 = scmp.ne.s32.totalorder %s6082_s14, 0 }
  0x89   : > { %488 = vrot.lane.b32.xlu0 %v486_v6, %s3802_s28  ;;  %520 = vrot.lane.b32.xlu1 %v518_v7, %s3803_s13  ;;  %s6032_s28 = smov 126   ;;  %s6013_s13 = smov 125  }
  0x8d   : > { %552 = vrot.lane.b32.xlu0 %v550_v8, %s5991_s26  ;;  %584 = vrot.lane.b32.xlu1 %v582_v9, %s5993_s10  ;;  %s3818_s26 = smov 101   ;;  %s3819_s10 = smov 100  }
  0x91   : > { %616 = vrot.lane.b32.xlu0 %v614_v10, %s5995_s24  ;;  %648 = vrot.lane.b32.xlu1 %v646_v11, %s5997_s23  ;;  %s3820_s24 = smov 99   ;;  %s3821_s23 = smov 98  }
  0x95   : > { %680 = vrot.lane.b32.xlu0 %v678_v12, %s5999_s29  ;;  %s3822_s29 = smov 48  }
  0xef   : > { %v297_v15 = vpop.permute.xlu0 %296  ;;  %v329_v20 = vpop.permute.xlu1 %328 }
  0xf0   : > { %v300_v16 = vmul.f32 %v297_v15, %v4084_v13  ;;  %v299_v17 = vmul.f32 %v297_v15, %v4087_v14  ;;  %v311_v21 = vmul.f32 %v297_v15, %v4092_v18  ;;  %v318_v22 = vmul.f32 %v297_v15, %v4095_v19 }
  0xf1   : > { %v332_v23 = vmul.f32 %v329_v20, %v4084_v13  ;;  %v331_v24 = vmul.f32 %v329_v20, %v4087_v14  ;;  %v350_v26 = vmul.f32 %v329_v20, %v4095_v19  ;;  %v343_v27 = vmul.f32 %v329_v20, %v4092_v18 }
  0xf2   : > { %305 = vrot.lane.b32.xlu1 %v300_v16, %s3809_s6  ;;  %303 = vrot.lane.b32.xlu0 %v299_v17, %s3809_s6 }
  0xf3   : > { %v361_v25 = vpop.permute.xlu0 %360  ;;  %v393_v30 = vpop.permute.xlu1 %392 }
  0xf4   : > { %v363_v28 = vmul.f32 %v361_v25, %v4087_v14  ;;  %v364_v29 = vmul.f32 %v361_v25, %v4084_v13  ;;  %v375_v31 = vmul.f32 %v361_v25, %v4092_v18  ;;  %v382_v32 = vmul.f32 %v361_v25, %v4095_v19 }
  0xf5   : > { %v396_v33 = vmul.f32 %v393_v30, %v4084_v13  ;;  %v395_v34 = vmul.f32 %v393_v30, %v4087_v14  ;;  %v414_v36 = vmul.f32 %v393_v30, %v4095_v19  ;;  %v407_v37 = vmul.f32 %v393_v30, %v4092_v18 }
  0xf6   : > { %313 = vrot.lane.b32.xlu1 %v311_v21, %s3809_s6  ;;  %320 = vrot.lane.b32.xlu0 %v318_v22, %s3809_s6  ;;  %v710_v22 = vld [vmem:[#allocation7 + $0x70] sm:$0xff] }
  0xf7   : > { %v425_v35 = vpop.permute.xlu0 %424  ;;  %v457_v40 = vpop.permute.xlu1 %456 }
  0xf8   : > { %v427_v38 = vmul.f32 %v425_v35, %v4087_v14  ;;  %v428_v39 = vmul.f32 %v425_v35, %v4084_v13  ;;  %v439_v41 = vmul.f32 %v425_v35, %v4092_v18  ;;  %v446_v42 = vmul.f32 %v425_v35, %v4095_v19 }
  0xf9   : > { %v460_v43 = vmul.f32 %v457_v40, %v4084_v13  ;;  %v459_v44 = vmul.f32 %v457_v40, %v4087_v14  ;;  %v478_v46 = vmul.f32 %v457_v40, %v4095_v19  ;;  %v471_v47 = vmul.f32 %v457_v40, %v4092_v18 }
  0xfa   : > { %337 = vrot.lane.b32.xlu1 %v332_v23, %s6032_s28  ;;  %335 = vrot.lane.b32.xlu0 %v331_v24, %s6032_s28 }
  0xfb   : > { %v489_v45 = vpop.permute.xlu0 %488  ;;  %v521_v50 = vpop.permute.xlu1 %520 }
  0xfc   : > { %v491_v48 = vmul.f32 %v489_v45, %v4087_v14  ;;  %v492_v49 = vmul.f32 %v489_v45, %v4084_v13  ;;  %v503_v51 = vmul.f32 %v489_v45, %v4092_v18  ;;  %v510_v52 = vmul.f32 %v489_v45, %v4095_v19 }
  0xfd   : > { %v524_v53 = vmul.f32 %v521_v50, %v4084_v13  ;;  %v523_v54 = vmul.f32 %v521_v50, %v4087_v14  ;;  %v542_v56 = vmul.f32 %v521_v50, %v4095_v19  ;;  %v535_v57 = vmul.f32 %v521_v50, %v4092_v18 }
  0xfe   : > { %352 = vrot.lane.b32.xlu1 %v350_v26, %s6032_s28  ;;  %345 = vrot.lane.b32.xlu0 %v343_v27, %s6032_s28 }
  0xff   : > { %v553_v55 = vpop.permute.xlu0 %552  ;;  %v585_v60 = vpop.permute.xlu1 %584 }
 0x100   : > { %v555_v58 = vmul.f32 %v553_v55, %v4087_v14  ;;  %v556_v59 = vmul.f32 %v553_v55, %v4084_v13  ;;  %v567_v61 = vmul.f32 %v553_v55, %v4092_v18  ;;  %v574_v62 = vmul.f32 %v553_v55, %v4095_v19 }
 0x101   : > { %v588_v63 = vmul.f32 %v585_v60, %v4084_v13  ;;  %v587_v0 = vmul.f32 %v585_v60, %v4087_v14  ;;  %v606_v2 = vmul.f32 %v585_v60, %v4095_v19  ;;  %v599_v3 = vmul.f32 %v585_v60, %v4092_v18 }
 0x102   : > { %367 = vrot.lane.b32.xlu1 %v363_v28, %s6013_s13  ;;  %369 = vrot.lane.b32.xlu0 %v364_v29, %s6013_s13 }
 0x103   : > { %v617_v1 = vpop.permute.xlu0 %616  ;;  %v649_v6 = vpop.permute.xlu1 %648 }
 0x104   : > { %v619_v4 = vmul.f32 %v617_v1, %v4087_v14  ;;  %v620_v5 = vmul.f32 %v617_v1, %v4084_v13  ;;  %v631_v7 = vmul.f32 %v617_v1, %v4092_v18  ;;  %v638_v8 = vmul.f32 %v617_v1, %v4095_v19 }
 0x105   : > { %v652_v9 = vmul.f32 %v649_v6, %v4084_v13  ;;  %v651_v10 = vmul.f32 %v649_v6, %v4087_v14  ;;  %v670_v12 = vmul.f32 %v649_v6, %v4095_v19  ;;  %v663_v15 = vmul.f32 %v649_v6, %v4092_v18 }
 0x106   : > { %377 = vrot.lane.b32.xlu1 %v375_v31, %s6013_s13  ;;  %384 = vrot.lane.b32.xlu0 %v382_v32, %s6013_s13  ;;  %s3829_s13 = smov 77  }
 0x107   : > { %v681_v11 = vpop.permute.xlu0 %680 }
 0x108   : > { %v683_v16 = vmul.f32 %v681_v11, %v4087_v14  ;;  %v684_v17 = vmul.f32 %v681_v11, %v4084_v13  ;;  %v695_v20 = vmul.f32 %v681_v11, %v4092_v18  ;;  %v702_v21 = vmul.f32 %v681_v11, %v4095_v19 }
 0x10a   : > { %401 = vrot.lane.b32.xlu1 %v396_v33, %s6034_s27  ;;  %399 = vrot.lane.b32.xlu0 %v395_v34, %s6034_s27 }
 0x10e   : > { %416 = vrot.lane.b32.xlu1 %v414_v36, %s6034_s27  ;;  %409 = vrot.lane.b32.xlu0 %v407_v37, %s6034_s27  ;;  %s3837_s27 = smov 73  }
 0x112   : > { %431 = vrot.lane.b32.xlu1 %v427_v38, %s6033_s7  ;;  %433 = vrot.lane.b32.xlu0 %v428_v39, %s6033_s7 }
 0x116   : > { %441 = vrot.lane.b32.xlu1 %v439_v41, %s6033_s7  ;;  %448 = vrot.lane.b32.xlu0 %v446_v42, %s6033_s7  ;;  %s3836_s7 = smov 72  }
 0x11a   : > { %465 = vrot.lane.b32.xlu1 %v460_v43, %s3814_s21  ;;  %463 = vrot.lane.b32.xlu0 %v459_v44, %s3814_s21 }
 0x11e   : > { %480 = vrot.lane.b32.xlu1 %v478_v46, %s3814_s21  ;;  %473 = vrot.lane.b32.xlu0 %v471_v47, %s3814_s21 }
 0x122   : > { %495 = vrot.lane.b32.xlu1 %v491_v48, %s6007_s8  ;;  %497 = vrot.lane.b32.xlu0 %v492_v49, %s6007_s8 }
 0x126   : > { %505 = vrot.lane.b32.xlu1 %v503_v51, %s6007_s8  ;;  %512 = vrot.lane.b32.xlu0 %v510_v52, %s6007_s8  ;;  %s3827_s8 = smov 78  }
 0x12a   : > { %529 = vrot.lane.b32.xlu1 %v524_v53, %s6001_s12  ;;  %527 = vrot.lane.b32.xlu0 %v523_v54, %s6001_s12 }
 0x12e   : > { %544 = vrot.lane.b32.xlu1 %v542_v56, %s6001_s12  ;;  %537 = vrot.lane.b32.xlu0 %v535_v57, %s6001_s12  ;;  %s3824_s12 = smov 49  }
 0x132   : > { %559 = vrot.lane.b32.xlu1 %v555_v58, %s3817_s9  ;;  %561 = vrot.lane.b32.xlu0 %v556_v59, %s3817_s9 }
 0x136   : > { %569 = vrot.lane.b32.xlu1 %v567_v61, %s3817_s9  ;;  %576 = vrot.lane.b32.xlu0 %v574_v62, %s3817_s9  ;;  %v742_v62 = vld [vmem:[#allocation7 + $0x78] sm:$0xff] }
 0x13a   : > { %593 = vrot.lane.b32.xlu1 %v588_v63, %s3818_s26  ;;  %591 = vrot.lane.b32.xlu0 %v587_v0, %s3818_s26 }
 0x13e   : > { %608 = vrot.lane.b32.xlu1 %v606_v2, %s3818_s26  ;;  %601 = vrot.lane.b32.xlu0 %v599_v3, %s3818_s26 }
 0x142   : > { %623 = vrot.lane.b32.xlu1 %v619_v4, %s3819_s10  ;;  %625 = vrot.lane.b32.xlu0 %v620_v5, %s3819_s10 }
 0x146   : > { %633 = vrot.lane.b32.xlu1 %v631_v7, %s3819_s10  ;;  %640 = vrot.lane.b32.xlu0 %v638_v8, %s3819_s10 }
 0x14a   : > { %657 = vrot.lane.b32.xlu1 %v652_v9, %s3820_s24  ;;  %655 = vrot.lane.b32.xlu0 %v651_v10, %s3820_s24 }
 0x14e   : > { %672 = vrot.lane.b32.xlu1 %v670_v12, %s3820_s24  ;;  %665 = vrot.lane.b32.xlu0 %v663_v15, %s3820_s24 }
 0x152   : > { %687 = vrot.lane.b32.xlu1 %v683_v16, %s3821_s23  ;;  %689 = vrot.lane.b32.xlu0 %v684_v17, %s3821_s23 }
 0x156   : > { %697 = vrot.lane.b32.xlu1 %v695_v20, %s3821_s23  ;;  %704 = vrot.lane.b32.xlu0 %v702_v21, %s3821_s23 }
 0x15a   : > { %712 = vrot.lane.b32.xlu1 %v710_v22, %s3822_s29  ;;  %s6003_s29 = smov 80  }
 0x164   : > { %v4199_v23 = vpop.permute.xlu1 %305  ;;  %v4233_v40 = vpop.permute.xlu0 %303 }
 0x168   : > { %v4201_v24 = vpop.permute.xlu1 %313  ;;  %v4239_v43 = vpop.permute.xlu0 %320 }
 0x16c   : > { %v4203_v25 = vpop.permute.xlu1 %337  ;;  %v4243_v45 = vpop.permute.xlu0 %335 }
 0x170   : > { %v4205_v26 = vpop.permute.xlu1 %352  ;;  %v4249_v48 = vpop.permute.xlu0 %345 }
 0x174   : > { %v4207_v27 = vpop.permute.xlu1 %367  ;;  %v4253_v50 = vpop.permute.xlu0 %369 }
 0x178   : > { %v4209_v28 = vpop.permute.xlu1 %377  ;;  %v4259_v53 = vpop.permute.xlu0 %384 }
 0x17c   : > { %v4211_v29 = vpop.permute.xlu1 %401  ;;  %v4263_v55 = vpop.permute.xlu0 %399 }
 0x180   : > { %v4213_v30 = vpop.permute.xlu1 %416  ;;  %v4269_v59 = vpop.permute.xlu0 %409 }
 0x184   : > { %v4215_v31 = vpop.permute.xlu1 %431  ;;  %v4275_v63 = vpop.permute.xlu0 %433 }
 0x188   : > { %v4217_v32 = vpop.permute.xlu1 %441  ;;  %v4277_v0 = vpop.permute.xlu0 %448 }
 0x18c   : > { %v4219_v33 = vpop.permute.xlu1 %465  ;;  %v4279_v1 = vpop.permute.xlu0 %463 }
 0x190   : > { %v4221_v34 = vpop.permute.xlu1 %480  ;;  %v4281_v2 = vpop.permute.xlu0 %473 }
 0x194   : > { %v4223_v35 = vpop.permute.xlu1 %495  ;;  %v4283_v3 = vpop.permute.xlu0 %497 }
 0x198   : > { %v4225_v36 = vpop.permute.xlu1 %505  ;;  %v4285_v4 = vpop.permute.xlu0 %512 }
 0x19c   : > { %v4227_v37 = vpop.permute.xlu1 %529  ;;  %v4287_v5 = vpop.permute.xlu0 %527 }
 0x1a0   : > { %v4229_v38 = vpop.permute.xlu1 %544  ;;  %v4289_v6 = vpop.permute.xlu0 %537 }
 0x1a4   : > { %v4231_v39 = vpop.permute.xlu1 %559  ;;  %v4291_v7 = vpop.permute.xlu0 %561 }
 0x1a8   : > { %v4235_v41 = vpop.permute.xlu1 %569  ;;  %v4293_v8 = vpop.permute.xlu0 %576 }
 0x1ac   : > { %v4237_v42 = vpop.permute.xlu1 %593  ;;  %v4295_v9 = vpop.permute.xlu0 %591 }
 0x1b0   : > { %v4241_v44 = vpop.permute.xlu1 %608  ;;  %v4297_v10 = vpop.permute.xlu0 %601 }
 0x1b4   : > { %v4245_v46 = vpop.permute.xlu1 %623  ;;  %v4299_v11 = vpop.permute.xlu0 %625 }
 0x1b5   : > { %6090 = vst [vmem:[#allocation16_spill] sm:$0xff] %v4245_v46  ;;  %6096 = vst [vmem:[#allocation22_spill] sm:$0xff] %v4299_v11 }
 0x1b8   : > { %v4247_v47 = vpop.permute.xlu1 %633  ;;  %v4301_v12 = vpop.permute.xlu0 %640 }
 0x1b9   : > { %6091 = vst [vmem:[#allocation17_spill] sm:$0xff] %v4247_v47  ;;  %6097 = vst [vmem:[#allocation23_spill] sm:$0xff] %v4301_v12 }
 0x1bc   : > { %v4251_v49 = vpop.permute.xlu1 %657  ;;  %v4303_v15 = vpop.permute.xlu0 %655 }
 0x1bd   : > { %6092 = vst [vmem:[#allocation18_spill] sm:$0xff] %v4251_v49  ;;  %6098 = vst [vmem:[#allocation24_spill] sm:$0xff] %v4303_v15 }
 0x1c0   : > { %v4255_v51 = vpop.permute.xlu1 %672  ;;  %v4305_v16 = vpop.permute.xlu0 %665 }
 0x1c1   : > { %6093 = vst [vmem:[#allocation19_spill] sm:$0xff] %v4255_v51  ;;  %6099 = vst [vmem:[#allocation25_spill] sm:$0xff] %v4305_v16 }
 0x1c4   : > { %v4257_v52 = vpop.permute.xlu1 %687  ;;  %v4307_v17 = vpop.permute.xlu0 %689 }
 0x1c5   : > { %6094 = vst [vmem:[#allocation20_spill] sm:$0xff] %v4257_v52  ;;  %6100 = vst [vmem:[#allocation26_spill] sm:$0xff] %v4307_v17 }
 0x1c8   : > { %v4261_v54 = vpop.permute.xlu1 %697  ;;  %v4309_v20 = vpop.permute.xlu0 %704 }
 0x1c9   : > { %6095 = vst [vmem:[#allocation21_spill] sm:$0xff] %v4261_v54  ;;  %6101 = vst [vmem:[#allocation27_spill] sm:$0xff] %v4309_v20 }
 0x1cc   : > { %v713_v56 = vpop.permute.xlu1 %712 }
 0x1cd   : > { %v716_v57 = vmul.f32 %v713_v56, %v4084_v13  ;;  %v715_v58 = vmul.f32 %v713_v56, %v4087_v14  ;;  %v734_v60 = vmul.f32 %v713_v56, %v4095_v19  ;;  %v727_v61 = vmul.f32 %v713_v56, %v4092_v18 }
 0x1cf   : > { %721 = vrot.lane.b32.xlu1 %v716_v57, %s6003_s29  ;;  %719 = vrot.lane.b32.xlu0 %v715_v58, %s6003_s29 }
 0x1d3   : > { %736 = vrot.lane.b32.xlu1 %v734_v60, %s6003_s29  ;;  %729 = vrot.lane.b32.xlu0 %v727_v61, %s6003_s29  ;;  %s6027_s29 = smov 50  }
 0x1d7   : > { %744 = vrot.lane.b32.xlu0 %v742_v62, %s3824_s12  ;;  %s6010_s12 = smov 79   ;;  %v774_v62 = vld [vmem:[#allocation7 + $0x80] sm:$0xff] }
 0x241   : > { %v4311_v21 = vpop.permute.xlu0 %719 }
 0x242   : > { %6102 = vst [vmem:[#allocation28_spill] sm:$0xff] %v4311_v21 }
 0x245   : > { %v4313_v22 = vpop.permute.xlu0 %729 }
 0x246   : > { %6103 = vst [vmem:[#allocation29_spill] sm:$0xff] %v4313_v22  ;;  %v4324_v22 = vpop.permute.xlu1 %721 }
 0x247   : > { %6104 = vst [vmem:[#allocation30_spill] sm:$0xff] %v4324_v22 }
 0x249   : > { %v745_v56 = vpop.permute.xlu0 %744 }
 0x24a   : > { %v748_v57 = vmul.f32 %v745_v56, %v4084_v13  ;;  %v747_v58 = vmul.f32 %v745_v56, %v4087_v14  ;;  %v766_v60 = vmul.f32 %v745_v56, %v4095_v19  ;;  %v759_v61 = vmul.f32 %v745_v56, %v4092_v18  ;;  %v4326_v21 = vpop.permute.xlu1 %736 }
 0x24b   : > { %6105 = vst [vmem:[#allocation31_spill] sm:$0xff] %v4326_v21 }
 0x24c   : > { %753 = vrot.lane.b32.xlu0 %v748_v57, %s6010_s12  ;;  %751 = vrot.lane.b32.xlu1 %v747_v58, %s6010_s12 }
 0x250   : > { %768 = vrot.lane.b32.xlu0 %v766_v60, %s6010_s12  ;;  %761 = vrot.lane.b32.xlu1 %v759_v61, %s6010_s12  ;;  %v776_v60 = vld [vmem:[#allocation7 + $0x188] sm:$0xff]  ;;  %s6017_s12 = smov 51  }
 0x254   : > { %778 = vrot.lane.b32.xlu1 %v774_v62, %s6027_s29  ;;  %v820_v62 = vld [vmem:[#allocation7 + $0x88] sm:$0xff] }
 0x2be   : > { %v4328_v20 = vpop.permute.xlu1 %751 }
 0x2bf   : > { %6106 = vst [vmem:[#allocation32_spill] sm:$0xff] %v4328_v20 }
 0x2c2   : > { %v4330_v57 = vpop.permute.xlu1 %761 }
 0x2c3   : > { %6107 = vst [vmem:[#allocation33_spill] sm:$0xff] %v4330_v57 }
 0x2c6   : > { %v779_v58 = vpop.permute.xlu1 %778 }
 0x2c7   : > { %v782_v54 = vmul.f32 %v779_v58, %v4084_v13  ;;  %v781_v56 = vmul.f32 %v779_v58, %v4087_v14  ;;  %v801_v61 = vmul.f32 %v779_v58, %v4092_v18  ;;  %v810_v57 = vmul.f32 %v779_v58, %v4095_v19  ;;  %v822_v58 = vld [vmem:[#allocation7 + $0x190] sm:$0xff] }
 0x2c9   : > { %787 = vrot.lane.b32.xlu1 %v782_v54, %s3827_s8  ;;  %785 = vrot.lane.b32.xlu0 %v781_v56, %s3827_s8 }
 0x2cd   : > { %803 = vrot.lane.b32.xlu1 %v801_v61, %s3827_s8  ;;  %794 = vrot.lane.b32.xlu0 %v776_v60, %s6027_s29  ;;  %v4351_v60 = vpop.permute.xlu0 %753  ;;  %s3833_s29 = smov 75  }
 0x2ce   : > { %6110 = vst [vmem:[#allocation36_spill] sm:$0xff] %v4351_v60 }
 0x2d1   : > { %824 = vrot.lane.b32.xlu1 %v820_v62, %s6017_s12  ;;  %812 = vrot.lane.b32.xlu0 %v810_v57, %s3827_s8  ;;  %v4353_v57 = vpop.permute.xlu0 %768 }
 0x2d2   : > { %6111 = vst [vmem:[#allocation37_spill] sm:$0xff] %v4353_v57 }
 0x33b   : > { %v4342_v21 = vpop.permute.xlu1 %787  ;;  %v4355_v61 = vpop.permute.xlu0 %785 }
 0x33c   : > { %6108 = vst [vmem:[#allocation34_spill] sm:$0xff] %v4342_v21  ;;  %6112 = vst [vmem:[#allocation38_spill] sm:$0xff] %v4355_v61 }
 0x33f   : > { %v4344_v54 = vpop.permute.xlu1 %803  ;;  %v4357_v62 = vpop.permute.xlu0 %794 }
 0x340   : > { %6109 = vst [vmem:[#allocation35_spill] sm:$0xff] %v4344_v54  ;;  %6113 = vst [vmem:[#allocation39_spill] sm:$0xff] %v4357_v62 }
 0x343   : > { %v825_v56 = vpop.permute.xlu1 %824  ;;  %v4359_v54 = vpop.permute.xlu0 %812 }
 0x344   : > { %v828_v20 = vmul.f32 %v825_v56, %v4084_v13  ;;  %v827_v22 = vmul.f32 %v825_v56, %v4087_v14  ;;  %6114 = vst [vmem:[#allocation40_spill] sm:$0xff] %v4359_v54  ;;  %v856_v57 = vmul.f32 %v825_v56, %v4092_v18  ;;  %v872_v54 = vmul.f32 %v825_v56, %v4095_v19 }
 0x346   : > { %833 = vrot.lane.b32.xlu1 %v828_v20, %s3829_s13  ;;  %831 = vrot.lane.b32.xlu0 %v827_v22, %s3829_s13 }
 0x34a   : > { %840 = vrot.lane.b32.xlu0 %v822_v58, %s6017_s12  ;;  %s6024_s12 = smov 52  }
 0x3b8   : > { %v4361_v21 = vpop.permute.xlu0 %831 }
 0x3b9   : > { %6115 = vst [vmem:[#allocation41_spill] sm:$0xff] %v4361_v21  ;;  %v889_v21 = vld [vmem:[#allocation7 + $0x90] sm:$0xff] }
 0x3bc   : > { %v841_v52 = vpop.permute.xlu0 %840 }
 0x3bd   : > { %v844_v20 = vmul.f32 %v841_v52, %v4084_v13  ;;  %v843_v22 = vmul.f32 %v841_v52, %v4087_v14  ;;  %v863_v58 = vmul.f32 %v841_v52, %v4092_v18  ;;  %v879_v62 = vmul.f32 %v841_v52, %v4095_v19 }
 0x3bf   : > { %849 = vrot.lane.b32.xlu0 %v844_v20, %s3809_s6  ;;  %847 = vrot.lane.b32.xlu1 %v843_v22, %s3809_s6  ;;  %v4376_v20 = vpop.permute.xlu1 %833 }
 0x3c0   : > { %6116 = vst [vmem:[#allocation42_spill] sm:$0xff] %v4376_v20 }
 0x3c3   : > { %865 = vrot.lane.b32.xlu0 %v863_v58, %s3809_s6  ;;  %858 = vrot.lane.b32.xlu1 %v856_v57, %s3829_s13 }
 0x3c7   : > { %881 = vrot.lane.b32.xlu0 %v879_v62, %s3809_s6  ;;  %874 = vrot.lane.b32.xlu1 %v872_v54, %s3829_s13  ;;  %s3831_s6 = smov 76   ;;  %v891_v54 = vld [vmem:[#allocation7 + $0x198] sm:$0xff] }
 0x3cb   : > { %893 = vrot.lane.b32.xlu1 %v889_v21, %s6024_s12 }
 0x431   : > { %v4378_v22 = vpop.permute.xlu1 %847  ;;  %v4389_v21 = vpop.permute.xlu0 %849 }
 0x432   : > { %6117 = vst [vmem:[#allocation43_spill] sm:$0xff] %v4378_v22  ;;  %6120 = vst [vmem:[#allocation46_spill] sm:$0xff] %v4389_v21 }
 0x435   : > { %v4380_v61 = vpop.permute.xlu1 %858  ;;  %v4391_v62 = vpop.permute.xlu0 %865 }
 0x436   : > { %6118 = vst [vmem:[#allocation44_spill] sm:$0xff] %v4380_v61  ;;  %6121 = vst [vmem:[#allocation47_spill] sm:$0xff] %v4391_v62  ;;  %v958_v62 = vld [vmem:[#allocation7 + $0x98] sm:$0xff] }
 0x439   : > { %v4382_v58 = vpop.permute.xlu1 %874  ;;  %v4393_v22 = vpop.permute.xlu0 %881 }
 0x43a   : > { %6119 = vst [vmem:[#allocation45_spill] sm:$0xff] %v4382_v58  ;;  %6122 = vst [vmem:[#allocation48_spill] sm:$0xff] %v4393_v22 }
 0x43d   : > { %v894_v57 = vpop.permute.xlu1 %893 }
 0x43e   : > { %v897_v52 = vmul.f32 %v894_v57, %v4084_v13  ;;  %v896_v56 = vmul.f32 %v894_v57, %v4087_v14  ;;  %v941_v22 = vmul.f32 %v894_v57, %v4095_v19 }
 0x440   : > { %902 = vrot.lane.b32.xlu1 %v897_v52, %s3831_s6  ;;  %900 = vrot.lane.b32.xlu0 %v896_v56, %s3831_s6  ;;  %v925_v56 = vmul.f32 %v894_v57, %v4092_v18 }
 0x444   : > { %909 = vrot.lane.b32.xlu0 %v891_v54, %s6024_s12  ;;  %s6029_s12 = smov 53  }
 0x4b2   : > { %v4395_v58 = vpop.permute.xlu0 %900 }
 0x4b3   : > { %6123 = vst [vmem:[#allocation49_spill] sm:$0xff] %v4395_v58 }
 0x4b6   : > { %v910_v61 = vpop.permute.xlu0 %909 }
 0x4b7   : > { %v913_v20 = vmul.f32 %v910_v61, %v4084_v13  ;;  %v912_v60 = vmul.f32 %v910_v61, %v4087_v14  ;;  %v932_v52 = vmul.f32 %v910_v61, %v4092_v18  ;;  %v948_v54 = vmul.f32 %v910_v61, %v4095_v19 }
 0x4b9   : > { %918 = vrot.lane.b32.xlu0 %v913_v20, %s6032_s28  ;;  %916 = vrot.lane.b32.xlu1 %v912_v60, %s6032_s28  ;;  %v4410_v60 = vpop.permute.xlu1 %902 }
 0x4ba   : > { %6124 = vst [vmem:[#allocation50_spill] sm:$0xff] %v4410_v60 }
 0x4bd   : > { %934 = vrot.lane.b32.xlu0 %v932_v52, %s6032_s28  ;;  %927 = vrot.lane.b32.xlu1 %v925_v56, %s3831_s6 }
 0x4c1   : > { %950 = vrot.lane.b32.xlu0 %v948_v54, %s6032_s28  ;;  %943 = vrot.lane.b32.xlu1 %v941_v22, %s3831_s6  ;;  %v1088_v54 = vld [vmem:[#allocation7 + $0x1a0] sm:$0xff]  ;;  %s6035_s28 = smov 54  }
 0x4c5   : > { %960 = vrot.lane.b32.xlu1 %v958_v62, %s6029_s12  ;;  %s3834_s12 = smov 74  }
 0x52b   : > { %v4412_v20 = vpop.permute.xlu1 %916 }
 0x52c   : > { %6125 = vst [vmem:[#allocation51_spill] sm:$0xff] %v4412_v20  ;;  %v1157_v20 = vld [vmem:[#allocation7 + $0x1a8] sm:$0xff] }
 0x52f   : > { %v4414_v21 = vpop.permute.xlu1 %927 }
 0x530   : > { %6126 = vst [vmem:[#allocation52_spill] sm:$0xff] %v4414_v21  ;;  %v1423_v21 = vld [vmem:[#allocation7 + $0x1b8] sm:$0xff] }
 0x533   : > { %v4416_v52 = vpop.permute.xlu1 %943 }
 0x534   : > { %6127 = vst [vmem:[#allocation53_spill] sm:$0xff] %v4416_v52  ;;  %v1226_v52 = vld [vmem:[#allocation7 + $0x1b0] sm:$0xff] }
 0x537   : > { %v961_v56 = vpop.permute.xlu1 %960 }
 0x538   : > { %v964_v61 = vmul.f32 %v961_v56, %v4084_v13  ;;  %v963_v57 = vmul.f32 %v961_v56, %v4087_v14  ;;  %v982_v22 = vmul.f32 %v961_v56, %v4095_v19  ;;  %v975_v62 = vmul.f32 %v961_v56, %v4092_v18  ;;  %v990_v56 = vld [vmem:[#allocation7 + $0xa0] sm:$0xff] }
 0x53a   : > { %969 = vrot.lane.b32.xlu1 %v964_v61, %s3833_s29  ;;  %967 = vrot.lane.b32.xlu0 %v963_v57, %s3833_s29  ;;  %v1492_v61 = vld [vmem:[#allocation7 + $0x1c0] sm:$0xff]  ;;  %v1561_v57 = vld [vmem:[#allocation7 + $0x1c8] sm:$0xff] }
 0x53e   : > { %984 = vrot.lane.b32.xlu1 %v982_v22, %s3833_s29  ;;  %977 = vrot.lane.b32.xlu0 %v975_v62, %s3833_s29  ;;  %v1022_v22 = vld [vmem:[#allocation7 + $0xa8] sm:$0xff]  ;;  %v1054_v62 = vld [vmem:[#allocation7 + $0xb0] sm:$0xff] }
 0x542   : > { %1106 = vrot.lane.b32.xlu0 %v1088_v54, %s3834_s12  ;;  %1175 = vrot.lane.b32.xlu1 %v1157_v20, %s3833_s29  ;;  %v1086_v20 = vld [vmem:[#allocation7 + $0xb8] sm:$0xff] }
 0x543   : > { %v1325_v54 = vld [vmem:[#allocation7 + $0xd8] sm:$0xff] }
 0x546   : > { %1244 = vrot.lane.b32.xlu0 %v1226_v52, %s3831_s6  ;;  %1441 = vrot.lane.b32.xlu1 %v1423_v21, %s3821_s23  ;;  %v1224_v21 = vld [vmem:[#allocation7 + $0xc8] sm:$0xff]  ;;  %v1155_v52 = vld [vmem:[#allocation7 + $0xc0] sm:$0xff] }
 0x54a   : > { %1510 = vrot.lane.b32.xlu0 %v1492_v61, %s3820_s24  ;;  %1579 = vrot.lane.b32.xlu1 %v1561_v57, %s3819_s10  ;;  %v1293_v61 = vld [vmem:[#allocation7 + $0xd0] sm:$0xff]  ;;  %v1389_v57 = vld [vmem:[#allocation7 + $0xe8] sm:$0xff] }
 0x54e   : > { %992 = vrot.lane.b32.xlu0 %v990_v56, %s6035_s28  ;;  %1024 = vrot.lane.b32.xlu1 %v1022_v22, %s3836_s7  ;;  %v1357_v56 = vld [vmem:[#allocation7 + $0xe0] sm:$0xff]  ;;  %s3838_s7 = smov 97   ;;  %s3839_s28 = smov 96   ;;  %v1490_v22 = vld [vmem:[#allocation7 + $0xf8] sm:$0xff] }
 0x552   : > { %1090 = vrot.lane.b32.xlu1 %v1086_v20, %s3834_s12  ;;  %1056 = vrot.lane.b32.xlu0 %v1054_v62, %s3837_s27  ;;  %v1421_v20 = vld [vmem:[#allocation7 + $0xf0] sm:$0xff]  ;;  %v1628_v62 = vld [vmem:[#allocation7 + $0x108] sm:$0xff]  ;;  %s3840_s27 = smov 120  }
 0x556   : > { %1228 = vrot.lane.b32.xlu1 %v1224_v21, %s3831_s6  ;;  %1159 = vrot.lane.b32.xlu0 %v1155_v52, %s3833_s29  ;;  %v1559_v21 = vld [vmem:[#allocation7 + $0x100] sm:$0xff]  ;;  %v1692_v52 = vld [vmem:[#allocation7 + $0x118] sm:$0xff]  ;;  %s3843_s29 = smov 16   ;;  %s6140_s6 = smov 103  }
 0x55a   : > { %1327 = vrot.lane.b32.xlu1 %v1325_v54, %s3827_s8  ;;  %1295 = vrot.lane.b32.xlu0 %v1293_v61, %s3829_s13  ;;  %v1660_v54 = vld [vmem:[#allocation7 + $0x110] sm:$0xff]  ;;  %v1756_v61 = vld [vmem:[#allocation7 + $0x128] sm:$0xff]  ;;  %s3842_s13 = smov 17  }
 0x55e   : > { %1391 = vrot.lane.b32.xlu1 %v1389_v57, %s3838_s7  ;;  %1359 = vrot.lane.b32.xlu0 %v1357_v56, %s3839_s28  ;;  %v1724_v57 = vld [vmem:[#allocation7 + $0x120] sm:$0xff]  ;;  %s3841_s28 = smov 121   ;;  %v1820_v56 = vld [vmem:[#allocation7 + $0x138] sm:$0xff]  ;;  %s3844_s7 = smov 18  }
 0x562   : > { %1494 = vrot.lane.b32.xlu1 %v1490_v22, %s3820_s24  ;;  %1425 = vrot.lane.b32.xlu0 %v1421_v20, %s3821_s23  ;;  %v1788_v22 = vld [vmem:[#allocation7 + $0x130] sm:$0xff]  ;;  %s6128_s24 = smov 124   ;;  %s6129_s23 = smov 123   ;;  %v1884_v20 = vld [vmem:[#allocation7 + $0x148] sm:$0xff] }
 0x566   : > { %1630 = vrot.lane.b32.xlu1 %v1628_v62, %s3818_s26  ;;  %1563 = vrot.lane.b32.xlu0 %v1559_v21, %s3819_s10  ;;  %v1852_v62 = vld [vmem:[#allocation7 + $0x140] sm:$0xff]  ;;  %s6130_s26 = smov 126   ;;  %s6131_s10 = smov 125   ;;  %v1948_v21 = vld [vmem:[#allocation7 + $0x158] sm:$0xff] }
 0x56a   : > { %1694 = vrot.lane.b32.xlu1 %v1692_v52, %s3840_s27  ;;  %1662 = vrot.lane.b32.xlu0 %v1660_v54, %s3817_s9  ;;  %v1916_v52 = vld [vmem:[#allocation7 + $0x150] sm:$0xff]  ;;  %v4448_v54 = vpop.permute.xlu0 %918  ;;  %s3845_s27 = smov 19  }
 0x56b   : > { %6132 = vst [vmem:[#allocation54_spill] sm:$0xff] %v4448_v54 }
 0x56e   : > { %1758 = vrot.lane.b32.xlu1 %v1756_v61, %s3814_s21  ;;  %1726 = vrot.lane.b32.xlu0 %v1724_v57, %s3841_s28  ;;  %v4450_v61 = vpop.permute.xlu0 %934  ;;  %s6139_s21 = smov 104   ;;  %s6141_s28 = smov 80  }
 0x56f   : > { %6133 = vst [vmem:[#allocation55_spill] sm:$0xff] %v4450_v61 }
 0x572   : > { %1822 = vrot.lane.b32.xlu1 %v1820_v56, %s6128_s24  ;;  %1790 = vrot.lane.b32.xlu0 %v1788_v22, %s6129_s23  ;;  %v4452_v57 = vpop.permute.xlu0 %950  ;;  %s3846_s24 = smov 20   ;;  %s6142_s23 = smov 79  }
 0x573   : > { %6134 = vst [vmem:[#allocation56_spill] sm:$0xff] %v4452_v57 }
 0x576   : > { %1886 = vrot.lane.b32.xlu1 %v1884_v20, %s6130_s26  ;;  %1854 = vrot.lane.b32.xlu0 %v1852_v62, %s6131_s10  ;;  %s3848_s26 = smov 22   ;;  %s6143_s10 = smov 50  }
 0x57a   : > { %1950 = vrot.lane.b32.xlu1 %v1948_v21, %s3842_s13  ;;  %1918 = vrot.lane.b32.xlu0 %v1916_v52, %s3843_s29  ;;  %s3849_s13 = smov 56   ;;  %s6144_s29 = smov 54  }
 0x5ac   : > { %v4454_v56 = vpop.permute.xlu0 %967  ;;  %v4456_v22 = vpop.permute.xlu1 %969 }
 0x5ad   : > { %6135 = vst [vmem:[#allocation57_spill] sm:$0xff] %v4454_v56  ;;  %6136 = vst [vmem:[#allocation58_spill] sm:$0xff] %v4456_v22 }
 0x5b0   : > { %v4458_v58 = vpop.permute.xlu0 %977  ;;  %v4460_v20 = vpop.permute.xlu1 %984 }
 0x5b1   : > { %6137 = vst [vmem:[#allocation59_spill] sm:$0xff] %v4458_v58  ;;  %6138 = vst [vmem:[#allocation60_spill] sm:$0xff] %v4460_v20  ;;  %v1980_v20 = vld [vmem:[#allocation7 + $0x160] sm:$0xff] }
 0x5b4   : > { %v1107_v62 = vpop.permute.xlu0 %1106  ;;  %v1176_v52 = vpop.permute.xlu1 %1175 }
 0x5b5   : > { %v1110_v60 = vmul.f32 %v1107_v62, %v4084_v13  ;;  %v1109_v21 = vmul.f32 %v1107_v62, %v4087_v14  ;;  %v1145_v57 = vmul.f32 %v1107_v62, %v4095_v19  ;;  %v1129_v61 = vmul.f32 %v1107_v62, %v4092_v18  ;;  %v2012_v62 = vld [vmem:[#allocation7 + $0x168] sm:$0xff] }
 0x5b6   : > { %v1178_v54 = vmul.f32 %v1176_v52, %v4087_v14 }
 0x5b7   : > { %1115 = vrot.lane.b32.xlu1 %v1110_v60, %s6139_s21  ;;  %1113 = vrot.lane.b32.xlu0 %v1109_v21, %s6139_s21  ;;  %v1198_v60 = vmul.f32 %v1176_v52, %v4092_v18  ;;  %v1179_v21 = vmul.f32 %v1176_v52, %v4084_v13 }
 0x5b8   : > { %v1245_v58 = vpop.permute.xlu0 %1244 }
 0x5bb   : > { %1147 = vrot.lane.b32.xlu1 %v1145_v57, %s6139_s21  ;;  %1131 = vrot.lane.b32.xlu0 %v1129_v61, %s6139_s21  ;;  %v1214_v57 = vmul.f32 %v1176_v52, %v4095_v19  ;;  %v1247_v61 = vmul.f32 %v1245_v58, %v4087_v14  ;;  %s6146_s21 = smov 53  }
 0x5bf   : > { %1182 = vrot.lane.b32.xlu1 %v1178_v54, %s6140_s6  ;;  %1982 = vrot.lane.b32.xlu0 %v1980_v20, %s3844_s7  ;;  %v1248_v54 = vmul.f32 %v1245_v58, %v4084_v13  ;;  %v1442_v20 = vpop.permute.xlu1 %1441  ;;  %s6150_s7 = smov 51  }
 0x5c0   : > { %v1444_v52 = vmul.f32 %v1442_v20, %v4087_v14 }
 0x5c3   : > { %1200 = vrot.lane.b32.xlu1 %v1198_v60, %s6140_s6  ;;  %1184 = vrot.lane.b32.xlu0 %v1179_v21, %s6140_s6  ;;  %v1283_v60 = vmul.f32 %v1245_v58, %v4095_v19  ;;  %v1267_v21 = vmul.f32 %v1245_v58, %v4092_v18  ;;  %v2076_v58 = vld [vmem:[#allocation7 + $0x178] sm:$0xff] }
 0x5c7   : > { %2014 = vrot.lane.b32.xlu1 %v2012_v62, %s3845_s27  ;;  %1216 = vrot.lane.b32.xlu0 %v1214_v57, %s6140_s6  ;;  %v2044_v62 = vld [vmem:[#allocation7 + $0x170] sm:$0xff]  ;;  %v1464_v57 = vmul.f32 %v1442_v20, %v4092_v18  ;;  %s6148_s6 = smov 52   ;;  %s3851_s27 = smov 32  }
 0x5cb   : > { %1253 = vrot.lane.b32.xlu1 %v1248_v54, %s3817_s9  ;;  %1251 = vrot.lane.b32.xlu0 %v1247_v61, %s3817_s9  ;;  %v1445_v54 = vmul.f32 %v1442_v20, %v4084_v13  ;;  %v1511_v61 = vpop.permute.xlu0 %1510 }
 0x5cf   : > { %1285 = vrot.lane.b32.xlu1 %v1283_v60, %s3817_s9  ;;  %1269 = vrot.lane.b32.xlu0 %v1267_v21, %s3817_s9  ;;  %v1480_v60 = vmul.f32 %v1442_v20, %v4095_v19  ;;  %s3847_s9 = smov 21   ;;  %v1514_v21 = vmul.f32 %v1511_v61, %v4084_v13 }
 0x5d3   : > { %1448 = vrot.lane.b32.xlu1 %v1444_v52, %s6141_s28  ;;  %2046 = vrot.lane.b32.xlu0 %v2044_v62, %s3846_s24  ;;  %v1513_v52 = vmul.f32 %v1511_v61, %v4087_v14  ;;  %v1580_v62 = vpop.permute.xlu1 %1579  ;;  %s6167_s24 = smov 30  }
 0x5d4   : > { %v1582_v20 = vmul.f32 %v1580_v62, %v4087_v14 }
 0x5d7   : > { %1466 = vrot.lane.b32.xlu1 %v1464_v57, %s6141_s28  ;;  %1450 = vrot.lane.b32.xlu0 %v1445_v54, %s6141_s28  ;;  %v1549_v57 = vmul.f32 %v1511_v61, %v4095_v19  ;;  %v1533_v54 = vmul.f32 %v1511_v61, %v4092_v18  ;;  %v1025_v56 = vpop.permute.xlu1 %1024 }
 0x5d8   : > { %v1046_v49 = vmul.f32 %v1025_v56, %v4095_v19 }
 0x5db   : > { %2078 = vrot.lane.b32.xlu1 %v2076_v58, %s3847_s9  ;;  %1482 = vrot.lane.b32.xlu0 %v1480_v60, %s6141_s28  ;;  %v993_v58 = vpop.permute.xlu0 %992  ;;  %v2108_v60 = vld [vmem:[#allocation7 + $0x180] sm:$0xff]  ;;  %v1091_v22 = vpop.permute.xlu1 %1090  ;;  %s3852_s28 = smov 31   ;;  %s6172_s9 = smov 29  }
 0x5dc   : > { %v995_v61 = vmul.f32 %v993_v58, %v4087_v14  ;;  %v1014_v16 = vmul.f32 %v993_v58, %v4095_v19  ;;  %v1122_v46 = vmul.f32 %v1091_v22, %v4092_v18 }
 0x5df   : > { %1519 = vrot.lane.b32.xlu1 %v1514_v21, %s6142_s23  ;;  %1517 = vrot.lane.b32.xlu0 %v1513_v52, %s6142_s23  ;;  %v1602_v21 = vmul.f32 %v1580_v62, %v4092_v18  ;;  %v1583_v52 = vmul.f32 %v1580_v62, %v4084_v13  ;;  %v1057_v17 = vpop.permute.xlu0 %1056 }
 0x5e0   : > { %v1059_v12 = vmul.f32 %v1057_v17, %v4087_v14 }
 0x5e3   : > { %1551 = vrot.lane.b32.xlu1 %v1549_v57, %s6142_s23  ;;  %1535 = vrot.lane.b32.xlu0 %v1533_v54, %s6142_s23  ;;  %v1618_v57 = vmul.f32 %v1580_v62, %v4095_v19  ;;  %v4510_v54 = vpop.permute.xlu1 %1228  ;;  %v1160_v51 = vpop.permute.xlu0 %1159  ;;  %v2142_v62 = vld [vmem:[#allocation7 + $0x1d8] sm:$0xff]  ;;  %s6177_s23 = smov 28  }
 0x5e7   : > { %1586 = vrot.lane.b32.xlu1 %v1582_v20, %s3827_s8  ;;  %2110 = vrot.lane.b32.xlu0 %v2108_v60, %s3848_s26  ;;  %v996_v20 = vmul.f32 %v993_v58, %v4084_v13  ;;  %v1007_v60 = vmul.f32 %v993_v58, %v4092_v18  ;;  %s6182_s26 = smov 27  }
 0x5eb   : > { %1604 = vrot.lane.b32.xlu1 %v1602_v21, %s3827_s8  ;;  %1588 = vrot.lane.b32.xlu0 %v1583_v52, %s3827_s8  ;;  %v4518_v21 = vpop.permute.xlu1 %1327  ;;  %v4520_v52 = vpop.permute.xlu0 %1295 }
 0x5ef   : > { %1620 = vrot.lane.b32.xlu0 %v1618_v57, %s3827_s8  ;;  %999 = vrot.lane.b32.xlu1 %v995_v61, %s3834_s12  ;;  %v1027_v61 = vmul.f32 %v1025_v56, %v4087_v14  ;;  %v1028_v57 = vmul.f32 %v1025_v56, %v4084_v13  ;;  %v4527_v15 = vpop.permute.xlu1 %1391 }
 0x5f3   : > { %1001 = vrot.lane.b32.xlu0 %v996_v20, %s3834_s12  ;;  %1009 = vrot.lane.b32.xlu1 %v1007_v60, %s3834_s12  ;;  %v4529_v20 = vpop.permute.xlu0 %1359  ;;  %v1039_v60 = vmul.f32 %v1025_v56, %v4092_v18  ;;  %v1094_v56 = vmul.f32 %v1091_v22, %v4084_v13 }
 0x5f7   : > { %1016 = vrot.lane.b32.xlu0 %v1014_v16, %s3834_s12  ;;  %2184 = vrot.lane.b32.xlu1 %v2142_v62, %s6143_s10  ;;  %v4533_v16 = vpop.permute.xlu1 %1494  ;;  %v4535_v58 = vpop.permute.xlu0 %1425  ;;  %v1060_v62 = vmul.f32 %v1057_v17, %v4084_v13  ;;  %s3850_s12 = smov 55   ;;  %v4558_v13 = vld [vmem:[%s4049_s5 + $0x8] sm:$0xff] }
 0x5fb   : > { %1031 = vrot.lane.b32.xlu0 %v1027_v61, %s3849_s13  ;;  %1033 = vrot.lane.b32.xlu1 %v1028_v57, %s3849_s13  ;;  %v1078_v61 = vmul.f32 %v1057_v17, %v4095_v19  ;;  %v1071_v57 = vmul.f32 %v1057_v17, %v4092_v18  ;;  %v4541_v47 = vpop.permute.xlu1 %1630  ;;  %v1138_v17 = vmul.f32 %v1091_v22, %v4095_v19 }
 0x5fc   : > { %v1207_v18 = vmul.f32 %v1160_v51, %v4095_v19  ;;  %v4589_v19 = vld [vmem:[%s4049_s5 + $0x18] sm:$0xff] }
 0x5ff   : > { %1041 = vrot.lane.b32.xlu0 %v1039_v60, %s3849_s13  ;;  %1048 = vrot.lane.b32.xlu1 %v1046_v49, %s3849_s13  ;;  %v4543_v49 = vpop.permute.xlu0 %1563  ;;  %v1093_v60 = vmul.f32 %v1091_v22, %v4087_v14  ;;  %v1163_v14 = vmul.f32 %v4558_v13, %v1160_v51  ;;  %s6186_s13 = smov 26  }
 0x603   : > { %1065 = vrot.lane.b32.xlu1 %v1060_v62, %s3850_s12  ;;  %1063 = vrot.lane.b32.xlu0 %v1059_v12, %s3850_s12  ;;  %v4549_v12 = vpop.permute.xlu1 %1694  ;;  %v4551_v62 = vpop.permute.xlu0 %1662 }
 0x607   : > { %1080 = vrot.lane.b32.xlu1 %v1078_v61, %s3850_s12  ;;  %1073 = vrot.lane.b32.xlu0 %v1071_v57, %s3850_s12  ;;  %v4562_v61 = vld [vmem:[%s4049_s5] sm:$0xff]  ;;  %s3853_s12 = smov 8  }
 0x608   : > { %v1162_v57 = vmul.f32 %v4562_v61, %v1160_v51  ;;  %v1231_v11 = vmul.f32 %v4562_v61, %v4510_v54 }
 0x60b   : > { %1099 = vrot.lane.b32.xlu1 %v1094_v56, %s6144_s29  ;;  %1097 = vrot.lane.b32.xlu0 %v1093_v60, %s6144_s29  ;;  %v4565_v56 = vpop.permute.xlu1 %1758  ;;  %v4567_v60 = vpop.permute.xlu0 %1726 }
 0x60c   : > { %6145 = vst [vmem:[#allocation61_spill] sm:$0xff] %v4565_v56 }
 0x60f   : > { %1140 = vrot.lane.b32.xlu1 %v1138_v17, %s6144_s29  ;;  %1124 = vrot.lane.b32.xlu0 %v1122_v46, %s6144_s29  ;;  %v4573_v46 = vld [vmem:[%s4049_s5 + $0x10] sm:$0xff]  ;;  %v1232_v17 = vmul.f32 %v4558_v13, %v4510_v54  ;;  %v4582_v56 = vpop.permute.xlu1 %1822  ;;  %s3854_s29 = smov 7  }
 0x610   : > { %v1191_v22 = vmul.f32 %v4573_v46, %v1160_v51  ;;  %6147 = vst [vmem:[#allocation62_spill] sm:$0xff] %v4582_v56  ;;  %v1276_v51 = vmul.f32 %v4589_v19, %v4510_v54 }
 0x613   : > { %1168 = vrot.lane.b32.xlu1 %v1163_v14, %s6146_s21  ;;  %1166 = vrot.lane.b32.xlu0 %v1162_v57, %s6146_s21  ;;  %v4584_v14 = vpop.permute.xlu0 %1790  ;;  %v1260_v57 = vmul.f32 %v4573_v46, %v4510_v54 }
 0x617   : > { %1209 = vrot.lane.b32.xlu1 %v1207_v18, %s6146_s21  ;;  %1193 = vrot.lane.b32.xlu0 %v1191_v22, %s6146_s21  ;;  %v4595_v18 = vpop.permute.xlu1 %1886  ;;  %v4597_v22 = vpop.permute.xlu0 %1854  ;;  %s6192_s21 = smov 6  }
 0x618   : > { %6149 = vst [vmem:[#allocation63_spill] sm:$0xff] %v4595_v18  ;;  %v1317_v18 = vmul.f32 %v4589_v19, %v4520_v52 }
 0x61b   : > { %1237 = vrot.lane.b32.xlu1 %v1232_v17, %s6148_s6  ;;  %1235 = vrot.lane.b32.xlu0 %v1231_v11, %s6148_s6  ;;  %v1299_v17 = vmul.f32 %v4558_v13, %v4520_v52  ;;  %v1298_v11 = vmul.f32 %v4562_v61, %v4520_v52  ;;  %v4607_v56 = vpop.permute.xlu1 %1950  ;;  %v4609_v54 = vpop.permute.xlu0 %1918 }
 0x61c   : > { %6151 = vst [vmem:[#allocation64_spill] sm:$0xff] %v4607_v56  ;;  %6152 = vst [vmem:[#allocation65_spill] sm:$0xff] %v4609_v54 }
 0x61f   : > { %1278 = vrot.lane.b32.xlu1 %v1276_v51, %s6148_s6  ;;  %1262 = vrot.lane.b32.xlu0 %v1260_v57, %s6148_s6  ;;  %v1310_v51 = vmul.f32 %v4573_v46, %v4520_v52  ;;  %v1331_v57 = vmul.f32 %v4558_v13, %v4518_v21  ;;  %s6207_s6 = smov 5  }
 0x623   : > { %1304 = vrot.lane.b32.xlu1 %v1299_v17, %s6150_s7  ;;  %1302 = vrot.lane.b32.xlu0 %v1298_v11, %s6150_s7  ;;  %v1330_v17 = vmul.f32 %v4562_v61, %v4518_v21 }
 0x627   : > { %1319 = vrot.lane.b32.xlu1 %v1317_v18, %s6150_s7  ;;  %1312 = vrot.lane.b32.xlu0 %v1310_v51, %s6150_s7  ;;  %v1349_v18 = vmul.f32 %v4589_v19, %v4518_v21  ;;  %v1342_v51 = vmul.f32 %v4573_v46, %v4518_v21  ;;  %s6222_s7 = smov 4  }
 0x629   : > { %v4621_v11 = vpop.permute.xlu1 %1115  ;;  %v4623_v56 = vpop.permute.xlu0 %1113 }
 0x62a   : > { %6153 = vst [vmem:[#allocation66_spill] sm:$0xff] %v4621_v11  ;;  %6154 = vst [vmem:[#allocation67_spill] sm:$0xff] %v4623_v56 }
 0x62b   : > { %1336 = vrot.lane.b32.xlu1 %v1331_v57, %s6143_s10  ;;  %1334 = vrot.lane.b32.xlu0 %v1330_v17, %s6143_s10  ;;  %v1363_v57 = vmul.f32 %v4558_v13, %v4529_v20  ;;  %v1362_v17 = vmul.f32 %v4562_v61, %v4529_v20 }
 0x62d   : > { %v4627_v54 = vpop.permute.xlu1 %1147  ;;  %v4629_v52 = vpop.permute.xlu0 %1131 }
 0x62e   : > { %6155 = vst [vmem:[#allocation68_spill] sm:$0xff] %v4627_v54  ;;  %6156 = vst [vmem:[#allocation69_spill] sm:$0xff] %v4629_v52  ;;  %v1394_v54 = vmul.f32 %v4562_v61, %v4527_v15 }
 0x62f   : > { %1351 = vrot.lane.b32.xlu1 %v1349_v18, %s6143_s10  ;;  %1344 = vrot.lane.b32.xlu0 %v1342_v51, %s6143_s10  ;;  %v1381_v18 = vmul.f32 %v4589_v19, %v4529_v20  ;;  %v1374_v51 = vmul.f32 %v4573_v46, %v4529_v20  ;;  %v1413_v20 = vmul.f32 %v4589_v19, %v4527_v15 }
 0x631   : > { %v4637_v11 = vpop.permute.xlu1 %1182  ;;  %v4639_v56 = vpop.permute.xlu0 %1982 }
 0x632   : > { %6157 = vst [vmem:[#allocation70_spill] sm:$0xff] %v4637_v11  ;;  %6158 = vst [vmem:[#allocation71_spill] sm:$0xff] %v4639_v56  ;;  %v1395_v11 = vmul.f32 %v4558_v13, %v4527_v15 }
 0x633   : > { %1368 = vrot.lane.b32.xlu1 %v1363_v57, %s3851_s27  ;;  %1366 = vrot.lane.b32.xlu0 %v1362_v17, %s3851_s27 }
 0x635   : > { %v4645_v52 = vpop.permute.xlu1 %1200  ;;  %v4647_v21 = vpop.permute.xlu0 %1184 }
 0x636   : > { %6159 = vst [vmem:[#allocation72_spill] sm:$0xff] %v4645_v52  ;;  %6160 = vst [vmem:[#allocation73_spill] sm:$0xff] %v4647_v21 }
 0x637   : > { %1383 = vrot.lane.b32.xlu1 %v1381_v18, %s3851_s27  ;;  %1376 = vrot.lane.b32.xlu0 %v1374_v51, %s3851_s27  ;;  %v1406_v18 = vmul.f32 %v4573_v46, %v4527_v15  ;;  %v1473_v15 = vmul.f32 %v4589_v19, %v4535_v58  ;;  %s6229_s27 = smov 3  }
 0x639   : > { %v4657_v57 = vpop.permute.xlu1 %2014  ;;  %v4659_v17 = vpop.permute.xlu0 %1216 }
 0x63a   : > { %6161 = vst [vmem:[#allocation74_spill] sm:$0xff] %v4657_v57  ;;  %6162 = vst [vmem:[#allocation75_spill] sm:$0xff] %v4659_v17 }
 0x63b   : > { %1400 = vrot.lane.b32.xlu1 %v1395_v11, %s3852_s28  ;;  %1398 = vrot.lane.b32.xlu0 %v1394_v54, %s3852_s28  ;;  %v1429_v11 = vmul.f32 %v4558_v13, %v4535_v58  ;;  %v1428_v54 = vmul.f32 %v4562_v61, %v4535_v58 }
 0x63d   : > { %v4661_v52 = vpop.permute.xlu1 %1253  ;;  %v4663_v21 = vpop.permute.xlu0 %1251 }
 0x63e   : > { %6163 = vst [vmem:[#allocation76_spill] sm:$0xff] %v4661_v52  ;;  %6164 = vst [vmem:[#allocation77_spill] sm:$0xff] %v4663_v21  ;;  %v315_v52 = vsel %vm307_vm0, %v4199_v23, %v4201_v24 }
 0x63f   : > { %1415 = vrot.lane.b32.xlu1 %v1413_v20, %s3852_s28  ;;  %1408 = vrot.lane.b32.xlu0 %v1406_v18, %s3852_s28  ;;  %v1457_v20 = vmul.f32 %v4573_v46, %v4535_v58  ;;  %v1498_v18 = vmul.f32 %v4558_v13, %v4533_v16  ;;  %s6231_s28 = smov 2  }
 0x641   : > { %v4669_v51 = vpop.permute.xlu1 %1285  ;;  %v4671_v57 = vpop.permute.xlu0 %1269 }
 0x642   : > { %6165 = vst [vmem:[#allocation78_spill] sm:$0xff] %v4669_v51  ;;  %6166 = vst [vmem:[#allocation79_spill] sm:$0xff] %v4671_v57 }
 0x643   : > { %1434 = vrot.lane.b32.xlu1 %v1429_v11, %s6167_s24  ;;  %1432 = vrot.lane.b32.xlu0 %v1428_v54, %s6167_s24  ;;  %v1497_v11 = vmul.f32 %v4562_v61, %v4533_v16 }
 0x645   : > { %v4679_v17 = vpop.permute.xlu1 %1448  ;;  %v4681_v21 = vpop.permute.xlu0 %2046 }
 0x646   : > { %6168 = vst [vmem:[#allocation80_spill] sm:$0xff] %v4679_v17  ;;  %6169 = vst [vmem:[#allocation81_spill] sm:$0xff] %v4681_v21 }
 0x647   : > { %1475 = vrot.lane.b32.xlu1 %v1473_v15, %s6167_s24  ;;  %1459 = vrot.lane.b32.xlu0 %v1457_v20, %s6167_s24  ;;  %v1542_v15 = vmul.f32 %v4589_v19, %v4533_v16  ;;  %v1526_v20 = vmul.f32 %v4573_v46, %v4533_v16  ;;  %s3855_s24 = smov 112  }
 0x649   : > { %v4693_v54 = vpop.permute.xlu1 %1466  ;;  %v4695_v51 = vpop.permute.xlu0 %1450 }
 0x64a   : > { %6170 = vst [vmem:[#allocation82_spill] sm:$0xff] %v4693_v54  ;;  %6171 = vst [vmem:[#allocation83_spill] sm:$0xff] %v4695_v51 }
 0x64b   : > { %1503 = vrot.lane.b32.xlu1 %v1498_v18, %s6172_s9  ;;  %1501 = vrot.lane.b32.xlu0 %v1497_v11, %s6172_s9  ;;  %v1567_v18 = vmul.f32 %v4558_v13, %v4543_v49  ;;  %v1566_v11 = vmul.f32 %v4562_v61, %v4543_v49 }
 0x64d   : > { %v4699_v57 = vpop.permute.xlu1 %2078  ;;  %v4701_v58 = vpop.permute.xlu0 %1482 }
 0x64e   : > { %6173 = vst [vmem:[#allocation84_spill] sm:$0xff] %v4699_v57  ;;  %6174 = vst [vmem:[#allocation85_spill] sm:$0xff] %v4701_v58 }
 0x64f   : > { %1544 = vrot.lane.b32.xlu1 %v1542_v15, %s6172_s9  ;;  %1528 = vrot.lane.b32.xlu0 %v1526_v20, %s6172_s9  ;;  %v1611_v15 = vmul.f32 %v4589_v19, %v4543_v49  ;;  %v1595_v20 = vmul.f32 %v4573_v46, %v4543_v49  ;;  %s3856_s9 = smov 111  }
 0x651   : > { %v4709_v54 = vpop.permute.xlu1 %1519  ;;  %v4711_v17 = vpop.permute.xlu0 %1517 }
 0x652   : > { %6175 = vst [vmem:[#allocation86_spill] sm:$0xff] %v4709_v54  ;;  %6176 = vst [vmem:[#allocation87_spill] sm:$0xff] %v4711_v17 }
 0x653   : > { %1572 = vrot.lane.b32.xlu1 %v1567_v18, %s6177_s23  ;;  %1570 = vrot.lane.b32.xlu0 %v1566_v11, %s6177_s23  ;;  %v1634_v18 = vmul.f32 %v4558_v13, %v4541_v47  ;;  %v1633_v11 = vmul.f32 %v4562_v61, %v4541_v47 }
 0x655   : > { %v4719_v58 = vpop.permute.xlu1 %1551  ;;  %v4721_v16 = vpop.permute.xlu0 %1535 }
 0x656   : > { %6178 = vst [vmem:[#allocation88_spill] sm:$0xff] %v4719_v58  ;;  %6179 = vst [vmem:[#allocation89_spill] sm:$0xff] %v4721_v16 }
 0x657   : > { %1613 = vrot.lane.b32.xlu1 %v1611_v15, %s6177_s23  ;;  %1597 = vrot.lane.b32.xlu0 %v1595_v20, %s6177_s23  ;;  %v1652_v15 = vmul.f32 %v4589_v19, %v4541_v47  ;;  %v1645_v20 = vmul.f32 %v4573_v46, %v4541_v47  ;;  %s3857_s23 = smov 110  }
 0x659   : > { %v4729_v17 = vpop.permute.xlu1 %1586  ;;  %v4731_v54 = vpop.permute.xlu0 %2110 }
 0x65a   : > { %6180 = vst [vmem:[#allocation90_spill] sm:$0xff] %v4729_v17  ;;  %6181 = vst [vmem:[#allocation91_spill] sm:$0xff] %v4731_v54  ;;  %v322_v54 = vsel %vm307_vm0, %v4201_v24, %v4239_v43  ;;  %v1698_v43 = vmul.f32 %v4558_v13, %v4549_v12 }
 0x65b   : > { %1639 = vrot.lane.b32.xlu1 %v1634_v18, %s6182_s26  ;;  %1637 = vrot.lane.b32.xlu0 %v1633_v11, %s6182_s26  ;;  %v1666_v18 = vmul.f32 %v4558_v13, %v4551_v62  ;;  %v1665_v11 = vmul.f32 %v4562_v61, %v4551_v62 }
 0x65d   : > { %v4739_v58 = vpop.permute.xlu1 %1604  ;;  %v4741_v49 = vpop.permute.xlu0 %1588 }
 0x65e   : > { %6183 = vst [vmem:[#allocation92_spill] sm:$0xff] %v4739_v58  ;;  %6184 = vst [vmem:[#allocation93_spill] sm:$0xff] %v4741_v49  ;;  %v286_v58 = vld [vmem:[#allocation7] sm:$0xff] }
 0x65f   : > { %1654 = vrot.lane.b32.xlu1 %v1652_v15, %s6182_s26  ;;  %1647 = vrot.lane.b32.xlu0 %v1645_v20, %s6182_s26  ;;  %v1684_v20 = vmul.f32 %v4589_v19, %v4551_v62  ;;  %v287_v49 = vmul.f32 %v4562_v61, %v286_v58  ;;  %v289_v51 = vmul.f32 %v4558_v13, %v286_v58  ;;  %s3858_s26 = smov 109  }
 0x661   : > { %v4749_v16 = vpop.permute.xlu1 %999  ;;  %v4751_v17 = vpop.permute.xlu0 %1620 }
 0x662   : > { %6185 = vst [vmem:[#allocation94_spill] sm:$0xff] %v4751_v17  ;;  %v1677_v17 = vmul.f32 %v4573_v46, %v4551_v62  ;;  %v340_v62 = vsel %vm339_vm1, %v4243_v45, %v4203_v25  ;;  %v1697_v45 = vmul.f32 %v4562_v61, %v4549_v12 }
 0x663   : > { %1671 = vrot.lane.b32.xlu1 %v1666_v18, %s6186_s13  ;;  %1669 = vrot.lane.b32.xlu0 %v1665_v11, %s6186_s13  ;;  %v291_v18 = vmul.f32 %v4573_v46, %v286_v58  ;;  %v308_v11 = vsel %vm307_vm0, %v4233_v40, %v4199_v23  ;;  %v347_v40 = vsel %vm339_vm1, %v4203_v25, %v4249_v48 }
 0x664   : > { %v354_v23 = vsel %vm339_vm1, %v4249_v48, %v4205_v26  ;;  %v372_v25 = vsel %vm371_vm2, %v4207_v27, %v4253_v50  ;;  %v379_v26 = vsel %vm371_vm2, %v4253_v50, %v4209_v28  ;;  %v386_v48 = vsel %vm371_vm2, %v4209_v28, %v4259_v53 }
 0x665   : > { %v4759_v47 = vpop.permute.xlu1 %1009  ;;  %v4761_v15 = vpop.permute.xlu0 %1001  ;;  %v324_v57 = vadd.f32 %v322_v54, %v291_v18  ;;  %v411_v27 = vsel %vm403_vm3, %v4211_v29, %v4269_v59  ;;  %v418_v50 = vsel %vm403_vm3, %v4269_v59, %v4213_v30  ;;  %v443_v30 = vsel %vm435_vm4, %v4275_v63, %v4217_v32 }
 0x666   : > { %v450_v59 = vsel %vm435_vm4, %v4217_v32, %v4277_v0  ;;  %v1730_v0 = vmul.f32 %v4558_v13, %v4567_v60  ;;  %vm835_vm2 = vcmask 629760  }
 0x667   : > { %1686 = vrot.lane.b32.xlu1 %v1684_v20, %s6186_s13  ;;  %1679 = vrot.lane.b32.xlu0 %v1677_v17, %s6186_s13  ;;  %v310_v17 = vadd.f32 %v308_v11, %v287_v49  ;;  %v317_v20 = vadd.f32 %v315_v52, %v289_v51  ;;  %v356_v56 = vadd.f32 %v354_v23, %v324_v57  ;;  %s3859_s13 = smov 108  }
 0x668   : > { %v404_v52 = vsel %vm403_vm3, %v4263_v55, %v4211_v29  ;;  %v1716_v51 = vmul.f32 %v4589_v19, %v4549_v12  ;;  %v1709_v57 = vmul.f32 %v4573_v46, %v4549_v12  ;;  %v436_v29 = vsel %vm435_vm4, %v4215_v31, %v4275_v63 }
 0x669   : > { %v4790_v58 = vpop.permute.xlu1 %2184  ;;  %v4792_v24 = vpop.permute.xlu0 %1016  ;;  %v349_v21 = vadd.f32 %v347_v40, %v317_v20  ;;  %v388_v49 = vadd.f32 %v386_v48, %v356_v56  ;;  %v468_v56 = vsel %vm467_vm5, %v4279_v1, %v4219_v33  ;;  %v475_v31 = vsel %vm467_vm5, %v4219_v33, %v4281_v2 }
 0x66a   : > { %6187 = vst [vmem:[#allocation95_spill] sm:$0xff] %v4790_v58  ;;  %v342_v58 = vadd.f32 %v340_v62, %v310_v17  ;;  %v482_v63 = vsel %vm467_vm5, %v4281_v2, %v4221_v34  ;;  %v1729_v62 = vmul.f32 %v4562_v61, %v4567_v60  ;;  %v500_v33 = vsel %vm499_vm6, %v4223_v35, %v4283_v3 }
 0x66b   : > { %1703 = vrot.lane.b32.xlu1 %v1698_v43, %s3853_s12  ;;  %1701 = vrot.lane.b32.xlu0 %v1697_v45, %s3853_s12  ;;  %v381_v55 = vadd.f32 %v379_v26, %v349_v21  ;;  %v420_v21 = vadd.f32 %v418_v50, %v388_v49  ;;  %v507_v34 = vsel %vm499_vm6, %v4283_v3, %v4225_v36  ;;  %vm904_vm3 = vcmask 621568  }
 0x66c   : > { %v374_v54 = vadd.f32 %v372_v25, %v342_v58  ;;  %v514_v2 = vsel %vm499_vm6, %v4225_v36, %v4285_v4  ;;  %v532_v17 = vsel %vm531_vm7, %v4287_v5, %v4227_v37  ;;  %v539_v35 = vsel %vm531_vm7, %v4227_v37, %v4289_v6 }
 0x66d   : > { %v4813_v28 = vpop.permute.xlu1 %1033  ;;  %v4815_v53 = vpop.permute.xlu0 %1031  ;;  %v413_v18 = vadd.f32 %v411_v27, %v381_v55  ;;  %v452_v23 = vadd.f32 %v450_v59, %v420_v21  ;;  %v546_v3 = vsel %vm531_vm7, %v4289_v6, %v4229_v38  ;;  %v1748_v20 = vmul.f32 %v4589_v19, %v4567_v60  ;;  %v6191_v59 = vld [vmem:[#allocation17_spill] sm:$0xff]  ;;  %v6193_v21 = vld [vmem:[#allocation23_spill] sm:$0xff] }
 0x66e   : > { %v406_v12 = vadd.f32 %v404_v52, %v374_v54  ;;  %v1741_v25 = vmul.f32 %v4573_v46, %v4567_v60  ;;  %v564_v37 = vsel %vm563_vm8, %v4231_v39, %v4291_v7  ;;  %v571_v38 = vsel %vm563_vm8, %v4291_v7, %v4235_v41 }
 0x66f   : > { %1718 = vrot.lane.b32.xlu1 %v1716_v51, %s3853_s12  ;;  %1711 = vrot.lane.b32.xlu0 %v1709_v57, %s3853_s12  ;;  %v445_v1 = vadd.f32 %v443_v30, %v413_v18  ;;  %v484_v45 = vadd.f32 %v482_v63, %v452_v23  ;;  %v578_v6 = vsel %vm563_vm8, %v4235_v41, %v4293_v8  ;;  %v6188_v8 = vld [vmem:[#allocation61_spill] sm:$0xff]  ;;  %v6195_v63 = vld [vmem:[#allocation24_spill] sm:$0xff]  ;;  %vm971_vm4 = vcmask 613376   ;;  %s3860_s12 = smov 107  }
 0x670   : > { %v438_v40 = vadd.f32 %v436_v29, %v406_v12  ;;  %v596_v50 = vsel %vm595_vm9, %v4295_v9, %v4237_v42  ;;  %v603_v39 = vsel %vm595_vm9, %v4237_v42, %v4297_v10  ;;  %v610_v7 = vsel %vm595_vm9, %v4297_v10, %v4241_v44  ;;  %v6189_v29 = vld [vmem:[#allocation22_spill] sm:$0xff]  ;;  %v6190_v42 = vld [vmem:[#allocation16_spill] sm:$0xff] }
 0x671   : > { %v4839_v11 = vpop.permute.xlu1 %1048  ;;  %v4841_v32 = vpop.permute.xlu0 %1041  ;;  %v477_v43 = vadd.f32 %v475_v31, %v445_v1  ;;  %v516_v48 = vadd.f32 %v514_v2, %v484_v45  ;;  %v1762_v57 = vmul.f32 %v4558_v13, %v6188_v8  ;;  %v1761_v54 = vmul.f32 %v4562_v61, %v6188_v8  ;;  %v6194_v31 = vld [vmem:[#allocation18_spill] sm:$0xff]  ;;  %v6197_v45 = vld [vmem:[#allocation19_spill] sm:$0xff] }
 0x672   : > { %v470_v58 = vadd.f32 %v468_v56, %v438_v40  ;;  %v628_v30 = vsel %vm627_vm10, %v6190_v42, %v6189_v29  ;;  %v635_v44 = vsel %vm627_vm10, %v6189_v29, %v6191_v59  ;;  %v642_v56 = vsel %vm627_vm10, %v6191_v59, %v6193_v21  ;;  %v6206_v29 = vld [vmem:[#allocation32_spill] sm:$0xff]  ;;  %v6210_v21 = vld [vmem:[#allocation34_spill] sm:$0xff] }
 0x673   : > { %1735 = vrot.lane.b32.xlu1 %v1730_v0, %s3854_s29  ;;  %1733 = vrot.lane.b32.xlu0 %v1729_v62, %s3854_s29  ;;  %v509_v5 = vadd.f32 %v507_v34, %v477_v43  ;;  %v548_v27 = vadd.f32 %v546_v3, %v516_v48  ;;  %v660_v0 = vsel %vm659_vm11, %v6195_v63, %v6194_v31  ;;  %v6196_v62 = vld [vmem:[#allocation25_spill] sm:$0xff]  ;;  %v6199_v3 = vld [vmem:[#allocation20_spill] sm:$0xff]  ;;  %vm1003_vm5 = vcmask 605184  }
 0x674   : > { %v502_v26 = vadd.f32 %v500_v33, %v470_v58  ;;  %v667_v40 = vsel %vm659_vm11, %v6194_v31, %v6196_v62  ;;  %v1780_v33 = vmul.f32 %v4589_v19, %v6188_v8  ;;  %v1773_v34 = vmul.f32 %v4573_v46, %v6188_v8 }
 0x675   : > { %v4865_v36 = vpop.permute.xlu1 %1065  ;;  %v4867_v4 = vpop.permute.xlu0 %1063  ;;  %v541_v60 = vadd.f32 %v539_v35, %v509_v5  ;;  %v580_v49 = vadd.f32 %v578_v6, %v548_v27  ;;  %v6198_v35 = vld [vmem:[#allocation26_spill] sm:$0xff]  ;;  %v6200_v5 = vld [vmem:[#allocation21_spill] sm:$0xff]  ;;  %vm1035_vm9 = vcmask 457728   ;;  %vm1067_vm10 = vcmask 449536  }
 0x676   : > { %v534_v52 = vadd.f32 %v532_v17, %v502_v26  ;;  %v674_v17 = vsel %vm659_vm11, %v6196_v62, %v6197_v45  ;;  %v699_v48 = vsel %vm691_vm12, %v6198_v35, %v6200_v5  ;;  %v6202_v6 = vld [vmem:[#allocation30_spill] sm:$0xff]  ;;  %v1812_v62 = vmul.f32 %v4589_v19, %v4584_v14 }
 0x677   : > { %1750 = vrot.lane.b32.xlu1 %v1748_v20, %s3854_s29  ;;  %1743 = vrot.lane.b32.xlu0 %v1741_v25, %s3854_s29  ;;  %v573_v9 = vadd.f32 %v571_v38, %v541_v60  ;;  %v612_v18 = vadd.f32 %v610_v7, %v580_v49  ;;  %v692_v20 = vsel %vm691_vm12, %v6199_v3, %v6198_v35  ;;  %v6205_v49 = vld [vmem:[#allocation36_spill] sm:$0xff]  ;;  %v6213_v45 = vld [vmem:[#allocation42_spill] sm:$0xff]  ;;  %vm1101_vm11 = vcmask 441344   ;;  %s3394_s29 = smul.u32 384, %s3910_s19 }
 0x678   : > { %v566_v55 = vadd.f32 %v564_v37, %v534_v52  ;;  %v6201_v37 = vld [vmem:[#allocation27_spill] sm:$0xff]  ;;  %v6203_v52 = vld [vmem:[#allocation28_spill] sm:$0xff]  ;;  %v1793_v7 = vmul.f32 %v4562_v61, %v4584_v14  ;;  %v756_v42 = vsel %vm755_vm14, %v6206_v29, %v6205_v49 }
 0x679   : > { %v4891_v51 = vpop.permute.xlu1 %1080  ;;  %v4893_v41 = vpop.permute.xlu0 %1073  ;;  %v605_v12 = vadd.f32 %v603_v39, %v573_v9  ;;  %v644_v43 = vadd.f32 %v642_v56, %v612_v18  ;;  %v706_v38 = vsel %vm691_vm12, %v6200_v5, %v6201_v37  ;;  %v724_v60 = vsel %vm723_vm13, %v6203_v52, %v6202_v6  ;;  %v6211_v56 = vld [vmem:[#allocation38_spill] sm:$0xff]  ;;  %v6218_v37 = vld [vmem:[#allocation49_spill] sm:$0xff] }
 0x67a   : > { %v598_v10 = vadd.f32 %v596_v50, %v566_v55  ;;  %v1794_v39 = vmul.f32 %v4558_v13, %v4584_v14  ;;  %v6204_v55 = vld [vmem:[#allocation29_spill] sm:$0xff]  ;;  %v790_v31 = vsel %vm789_vm15, %v6211_v56, %v6210_v21  ;;  %vm1170_vm12 = vcmask 433152  }
 0x67b   : > { %1767 = vrot.lane.b32.xlu1 %v1762_v57, %s6192_s21  ;;  %1765 = vrot.lane.b32.xlu0 %v1761_v54, %s6192_s21  ;;  %v637_v58 = vadd.f32 %v635_v44, %v605_v12  ;;  %v676_v8 = vadd.f32 %v674_v17, %v644_v43  ;;  %v731_v9 = vsel %vm723_vm13, %v6202_v6, %v6204_v55  ;;  %v6208_v44 = vld [vmem:[#allocation31_spill] sm:$0xff]  ;;  %v6209_v12 = vld [vmem:[#allocation33_spill] sm:$0xff] }
 0x67c   : > { %v630_v2 = vadd.f32 %v628_v30, %v598_v10  ;;  %v738_v10 = vsel %vm723_vm13, %v6204_v55, %v6208_v44  ;;  %v763_v18 = vsel %vm755_vm14, %v6205_v49, %v6209_v12  ;;  %v6214_v17 = vld [vmem:[#allocation41_spill] sm:$0xff]  ;;  %v6220_v55 = vld [vmem:[#allocation44_spill] sm:$0xff] }
 0x67d   : > { %v4916_v1 = vpop.permute.xlu1 %1099  ;;  %v4918_v23 = vpop.permute.xlu0 %1097  ;;  %v669_v26 = vadd.f32 %v667_v40, %v637_v58  ;;  %v708_v30 = vadd.f32 %v706_v38, %v676_v8  ;;  %v1805_v40 = vmul.f32 %v4573_v46, %v4584_v14  ;;  %v6212_v58 = vld [vmem:[#allocation37_spill] sm:$0xff]  ;;  %v836_v35 = vsel %vm835_vm2, %v6214_v17, %v6213_v45 }
 0x67e   : > { %v662_v25 = vadd.f32 %v660_v0, %v630_v2  ;;  %v770_v43 = vsel %vm755_vm14, %v6209_v12, %v6212_v58  ;;  %v6221_v49 = vld [vmem:[#allocation45_spill] sm:$0xff]  ;;  %v1004_v58 = vsel %vm1003_vm5, %v4749_v16, %v4761_v15  ;;  %v1036_v16 = vsel %vm1035_vm9, %v4815_v53, %v4813_v28 }
 0x67f   : > { %1782 = vrot.lane.b32.xlu1 %v1780_v33, %s6192_s21  ;;  %1775 = vrot.lane.b32.xlu0 %v1773_v34, %s6192_s21  ;;  %v701_v54 = vadd.f32 %v699_v48, %v669_v26  ;;  %v740_v2 = vadd.f32 %v738_v10, %v708_v30  ;;  %v6216_v26 = vld [vmem:[#allocation40_spill] sm:$0xff]  ;;  %v6217_v48 = vld [vmem:[#allocation50_spill] sm:$0xff]  ;;  %v876_v29 = vsel %vm835_vm2, %v6220_v55, %v6221_v49  ;;  %v6225_v12 = vld [vmem:[#allocation57_spill] sm:$0xff] }
 0x680   : > { %v694_v57 = vadd.f32 %v692_v20, %v662_v25  ;;  %v6215_v25 = vld [vmem:[#allocation35_spill] sm:$0xff]  ;;  %v905_v38 = vsel %vm904_vm3, %v6218_v37, %v6217_v48  ;;  %v6224_v10 = vld [vmem:[#allocation58_spill] sm:$0xff]  ;;  %v1857_v37 = vmul.f32 %v4562_v61, %v4597_v22  ;;  %v1068_v53 = vsel %vm1067_vm10, %v4867_v4, %v4865_v36 }
 0x681   : > { %v4941_v27 = vpop.permute.xlu1 %1140  ;;  %v4943_v50 = vpop.permute.xlu0 %1124  ;;  %v733_v33 = vadd.f32 %v731_v9, %v701_v54  ;;  %v805_v14 = vsel %vm789_vm15, %v6210_v21, %v6215_v25  ;;  %v814_v5 = vsel %vm789_vm15, %v6215_v25, %v6216_v26  ;;  %v772_v8 = vadd.f32 %v770_v43, %v740_v2  ;;  %v6226_v21 = vld [vmem:[#allocation53_spill] sm:$0xff] }
 0x682   : > { %v726_v59 = vadd.f32 %v724_v60, %v694_v57  ;;  %v6219_v60 = vld [vmem:[#allocation62_spill] sm:$0xff]  ;;  %v860_v9 = vsel %vm835_vm2, %v6213_v45, %v6220_v55  ;;  %v6227_v45 = vld [vmem:[#allocation59_spill] sm:$0xff]  ;;  %v1869_v4 = vmul.f32 %v4573_v46, %v4597_v22  ;;  %vm1239_vm2 = vcmask 424960  }
 0x683   : > { %1799 = vrot.lane.b32.xlu1 %v1794_v39, %s6207_s6  ;;  %1797 = vrot.lane.b32.xlu0 %v1793_v7, %s6207_s6  ;;  %v765_v3 = vadd.f32 %v763_v18, %v733_v33  ;;  %v1826_v39 = vmul.f32 %v4558_v13, %v6219_v60  ;;  %v1825_v7 = vmul.f32 %v4562_v61, %v6219_v60 }
 0x684   : > { %v758_v34 = vadd.f32 %v756_v42, %v726_v59  ;;  %v816_v42 = vadd.f32 %v814_v5, %v772_v8  ;;  %v6223_v59 = vld [vmem:[#allocation52_spill] sm:$0xff]  ;;  %v972_v18 = vsel %vm971_vm4, %v6225_v12, %v6224_v10  ;;  %v1837_v33 = vmul.f32 %v4573_v46, %v6219_v60 }
 0x685   : > { %v4966_v63 = vpop.permute.xlu1 %1168  ;;  %v4968_v0 = vpop.permute.xlu0 %1166  ;;  %v807_v54 = vadd.f32 %v805_v14, %v765_v3  ;;  %v929_v44 = vsel %vm904_vm3, %v6217_v48, %v6223_v59  ;;  %v945_v56 = vsel %vm904_vm3, %v6223_v59, %v6226_v21  ;;  %v979_v17 = vsel %vm971_vm4, %v6224_v10, %v6227_v45 }
 0x686   : > { %v792_v20 = vadd.f32 %v790_v31, %v758_v34  ;;  %v878_v2 = vadd.f32 %v876_v29, %v816_v42  ;;  %v1858_v48 = vmul.f32 %v4558_v13, %v4597_v22  ;;  %vm1306_vm3 = vcmask 416768  }
 0x687   : > { %1814 = vrot.lane.b32.xlu1 %v1812_v62, %s6207_s6  ;;  %1807 = vrot.lane.b32.xlu0 %v1805_v40, %s6207_s6  ;;  %v1844_v40 = vmul.f32 %v4589_v19, %v6219_v60  ;;  %v862_v34 = vadd.f32 %v860_v9, %v807_v54  ;;  %v1011_v60 = vsel %vm1003_vm5, %v4761_v15, %v4759_v47 }
 0x688   : > { %v838_v57 = vadd.f32 %v836_v35, %v792_v20  ;;  %v947_v3 = vadd.f32 %v945_v56, %v878_v2  ;;  %v6228_v20 = vld [vmem:[#allocation60_spill] sm:$0xff]  ;;  %v1043_v15 = vsel %vm1035_vm9, %v4813_v28, %v4841_v32  ;;  %v1075_v28 = vsel %vm1067_vm10, %v4865_v36, %v4893_v41 }
 0x689   : > { %v4991_v6 = vpop.permute.xlu1 %1209  ;;  %v4993_v52 = vpop.permute.xlu0 %1193  ;;  %v931_v35 = vadd.f32 %v929_v44, %v862_v34  ;;  %v986_v25 = vsel %vm971_vm4, %v6227_v45, %v6228_v20  ;;  %v1126_v36 = vsel %vm1101_vm11, %v4916_v1, %v4943_v50  ;;  %vm1338_vm4 = vcmask 408576  }
 0x68a   : > { %v907_v30 = vadd.f32 %v905_v38, %v838_v57  ;;  %v1876_v57 = vmul.f32 %v4589_v19, %v4597_v22 }
 0x68b   : > { %1831 = vrot.lane.b32.xlu1 %v1826_v39, %s6222_s7  ;;  %1829 = vrot.lane.b32.xlu0 %v1825_v7, %s6222_s7  ;;  %v981_v38 = vadd.f32 %v979_v17, %v931_v35  ;;  %v1018_v39 = vsel %vm1003_vm5, %v4759_v47, %v4792_v24  ;;  %v988_v7 = vadd.f32 %v986_v25, %v947_v3  ;;  %vm1370_vm5 = vcmask 261120  }
 0x68c   : > { %v974_v43 = vadd.f32 %v972_v18, %v907_v30  ;;  %v1050_v47 = vsel %vm1035_vm9, %v4841_v32, %v4839_v11  ;;  %v1102_v24 = vsel %vm1101_vm11, %v4918_v23, %v4916_v1  ;;  %v1082_v11 = vsel %vm1067_vm10, %v4893_v41, %v4891_v51  ;;  %v6230_v23 = vld [vmem:[#allocation63_spill] sm:$0xff] }
 0x68d   : > { %v5016_v31 = vpop.permute.xlu1 %1237  ;;  %v1236_v62 = vpop.permute.xlu0 %1235  ;;  %v1013_v54 = vadd.f32 %v1011_v60, %v981_v38  ;;  %v1020_v55 = vadd.f32 %v1018_v39, %v988_v7  ;;  %v1171_v32 = vsel %vm1170_vm12, %v4968_v0, %v4966_v63  ;;  %v1890_v22 = vmul.f32 %v4558_v13, %v6230_v23  ;;  %v5115_v39 = vld [vmem:[%s4049_s5 + $0x20] sm:$0xff] }
 0x68e   : > { %v1006_v14 = vadd.f32 %v1004_v58, %v974_v43  ;;  %v1142_v51 = vsel %vm1101_vm11, %v4943_v50, %v4941_v27  ;;  %v1240_v41 = vsel %vm1239_vm2, %v1236_v62, %v5016_v31  ;;  %v1889_v0 = vmul.f32 %v4562_v61, %v6230_v23 }
 0x68f   : > { %1846 = vrot.lane.b32.xlu1 %v1844_v40, %s6222_s7  ;;  %1839 = vrot.lane.b32.xlu0 %v1837_v33, %s6222_s7  ;;  %v1045_v42 = vadd.f32 %v1043_v15, %v1013_v54  ;;  %v1052_v30 = vadd.f32 %v1050_v47, %v1020_v55  ;;  %v1195_v18 = vsel %vm1170_vm12, %v4966_v63, %v4993_v52  ;;  %vm1402_vm9 = vcmask 252928  }
 0x690   : > { %v1038_v8 = vadd.f32 %v1036_v16, %v1006_v14  ;;  %v1211_v1 = vsel %vm1170_vm12, %v4993_v52, %v4991_v6  ;;  %v1908_v6 = vmul.f32 %v4589_v19, %v6230_v23  ;;  %v1901_v17 = vmul.f32 %v4573_v46, %v6230_v23 }
 0x691   : > { %v1279_v26 = vpop.permute.xlu1 %1278  ;;  %v1263_v5 = vpop.permute.xlu0 %1262  ;;  %v1077_v44 = vadd.f32 %v1075_v28, %v1045_v42  ;;  %v1084_v10 = vadd.f32 %v1082_v11, %v1052_v30  ;;  %vm1436_vm10 = vcmask 244736   ;;  %vm1505_vm11 = vcmask 236544  }
 0x692   : > { %v1070_v9 = vadd.f32 %v1068_v53, %v1038_v8  ;;  %v1264_v63 = vsel %vm1239_vm2, %v5016_v31, %v1263_v5  ;;  %v1280_v34 = vsel %vm1239_vm2, %v1263_v5, %v1279_v26  ;;  %v6232_v5 = vld [vmem:[#allocation65_spill] sm:$0xff]  ;;  %vm1574_vm12 = vcmask 228352  }
 0x693   : > { %1863 = vrot.lane.b32.xlu1 %v1858_v48, %s6229_s27  ;;  %1861 = vrot.lane.b32.xlu0 %v1857_v37, %s6229_s27  ;;  %v1128_v61 = vadd.f32 %v1126_v36, %v1077_v44  ;;  %v1144_v40 = vadd.f32 %v1142_v51, %v1084_v10  ;;  %v1922_v48 = vmul.f32 %v4573_v46, %v6232_v5  ;;  %v6234_v44 = vld [vmem:[#allocation71_spill] sm:$0xff]  ;;  %vm1641_vm2 = vcmask 220160  }
 0x694   : > { %v1104_v59 = vadd.f32 %v1102_v24, %v1070_v9  ;;  %v1921_v37 = vmul.f32 %v4558_v13, %v6232_v5  ;;  %v1940_v15 = vmul.f32 %v6232_v5, %v5115_v39  ;;  %v1933_v47 = vmul.f32 %v4589_v19, %v6232_v5  ;;  %v6233_v9 = vld [vmem:[#allocation64_spill] sm:$0xff]  ;;  %v6236_v5 = vld [vmem:[#allocation81_spill] sm:$0xff] }
 0x695   : > { %v1305_v49 = vpop.permute.xlu1 %1304  ;;  %v1303_v29 = vpop.permute.xlu0 %1302  ;;  %v1197_v52 = vadd.f32 %v1195_v18, %v1128_v61  ;;  %v1213_v2 = vadd.f32 %v1211_v1, %v1144_v40  ;;  %v1972_v30 = vmul.f32 %v6233_v9, %v5115_v39  ;;  %v1986_v10 = vmul.f32 %v4573_v46, %v6234_v44 }
 0x696   : > { %v1173_v12 = vadd.f32 %v1171_v32, %v1104_v59  ;;  %v1307_v27 = vsel %vm1306_vm3, %v1303_v29, %v1305_v49  ;;  %v1953_v29 = vmul.f32 %v4558_v13, %v6233_v9  ;;  %v1965_v59 = vmul.f32 %v4589_v19, %v6233_v9 }
 0x697   : > { %1878 = vrot.lane.b32.xlu1 %v1876_v57, %s6229_s27  ;;  %1871 = vrot.lane.b32.xlu0 %v1869_v4, %s6229_s27  ;;  %v1266_v3 = vadd.f32 %v1264_v63, %v1197_v52  ;;  %v1282_v20 = vadd.f32 %v1280_v34, %v1213_v2  ;;  %v1997_v61 = vmul.f32 %v4589_v19, %v6234_v44  ;;  %s3261_s27 = scalar_lea.hbm %s5975_s4, %s3394_s29 }
 0x698   : > { %v1242_v33 = vadd.f32 %v1240_v41, %v1173_v12  ;;  %v1985_v12 = vmul.f32 %v4558_v13, %v6234_v44 }
 0x699   : > { %v1320_v21 = vpop.permute.xlu1 %1319  ;;  %v1313_v56 = vpop.permute.xlu0 %1312 }
 0x69a   : > { %v1314_v50 = vsel %vm1306_vm3, %v1305_v49, %v1313_v56  ;;  %v1321_v62 = vsel %vm1306_vm3, %v1313_v56, %v1320_v21  ;;  %v1309_v58 = vadd.f32 %v1307_v27, %v1242_v33  ;;  %v1954_v49 = vmul.f32 %v4573_v46, %v6233_v9  ;;  %v6237_v9 = vld [vmem:[#allocation84_spill] sm:$0xff] }
 0x69b   : > { %1895 = vrot.lane.b32.xlu1 %v1890_v22, %s6231_s28  ;;  %1893 = vrot.lane.b32.xlu0 %v1889_v0, %s6231_s28  ;;  %v1316_v31 = vadd.f32 %v1314_v50, %v1266_v3  ;;  %v1323_v16 = vadd.f32 %v1321_v62, %v1282_v20  ;;  %v2004_v62 = vmul.f32 %v6234_v44, %v5115_v39  ;;  %v6240_v44 = vld [vmem:[#allocation39_spill] sm:$0xff]  ;;  %vm1673_vm3 = vcmask 211968  }
 0x69d   : > { %v1337_v43 = vpop.permute.xlu1 %1336  ;;  %v1335_v45 = vpop.permute.xlu0 %1334 }
 0x69e   : > { %v1339_v35 = vsel %vm1338_vm4, %v1335_v45, %v1337_v43 }
 0x69f   : > { %v1341_v25 = vadd.f32 %v1339_v35, %v1309_v58  ;;  %1910 = vrot.lane.b32.xlu1 %v1908_v6, %s6231_s28  ;;  %1903 = vrot.lane.b32.xlu0 %v1901_v17, %s6231_s28  ;;  %v6235_v6 = vld [vmem:[#allocation74_spill] sm:$0xff]  ;;  %s3249_s28 = scalar_lea.sflag [#allocation4], %s4045_s25 }
 0x6a0   : > { %v2018_v52 = vmul.f32 %v4573_v46, %v6235_v6  ;;  %v2017_v2 = vmul.f32 %v4558_v13, %v6235_v6  ;;  %v2036_v20 = vmul.f32 %v6235_v6, %v5115_v39 }
 0x6a1   : > { %v1352_v14 = vpop.permute.xlu1 %1351  ;;  %v1345_v26 = vpop.permute.xlu0 %1344 }
 0x6a2   : > { %v1346_v38 = vsel %vm1338_vm4, %v1337_v43, %v1345_v26  ;;  %v1353_v60 = vsel %vm1338_vm4, %v1345_v26, %v1352_v14  ;;  %vm1929_vm4 = vcmask 916480  }
 0x6a3   : > { %v1348_v53 = vadd.f32 %v1346_v38, %v1316_v31  ;;  %v1355_v7 = vadd.f32 %v1353_v60, %v1323_v16  ;;  %1927 = vrot.lane.b32.xlu1 %v1922_v48, %s3855_s24  ;;  %1925 = vrot.lane.b32.xlu0 %v1921_v37, %s3855_s24  ;;  %v2050_v48 = vmul.f32 %v4573_v46, %v6236_v5 }
 0x6a4   : > { %v2049_v37 = vmul.f32 %v4558_v13, %v6236_v5 }
 0x6a5   : > { %v1369_v8 = vpop.permute.xlu1 %1368  ;;  %v1367_v57 = vpop.permute.xlu0 %1366 }
 0x6a6   : > { %v1371_v24 = vsel %vm1370_vm5, %v1367_v57, %v1369_v8 }
 0x6a7   : > { %v1373_v4 = vadd.f32 %v1371_v24, %v1341_v25  ;;  %1942 = vrot.lane.b32.xlu1 %v1940_v15, %s3855_s24  ;;  %1935 = vrot.lane.b32.xlu0 %v1933_v47, %s3855_s24  ;;  %v2029_v25 = vmul.f32 %v4589_v19, %v6235_v6  ;;  %v2068_v15 = vmul.f32 %v6236_v5, %v5115_v39 }
 0x6a8   : > { %v2061_v47 = vmul.f32 %v4589_v19, %v6236_v5  ;;  %v6247_v5 = vld [vmem:[#allocation56_spill] sm:$0xff] }
 0x6a9   : > { %v1384_v54 = vpop.permute.xlu1 %1383  ;;  %v1377_v55 = vpop.permute.xlu0 %1376 }
 0x6aa   : > { %v1378_v28 = vsel %vm1370_vm5, %v1369_v8, %v1377_v55  ;;  %v1385_v11 = vsel %vm1370_vm5, %v1377_v55, %v1384_v54  ;;  %vm1961_vm5 = vcmask 908288  }
 0x6ab   : > { %v1380_v32 = vadd.f32 %v1378_v28, %v1348_v53  ;;  %v1387_v23 = vadd.f32 %v1385_v11, %v1355_v7  ;;  %1959 = vrot.lane.b32.xlu1 %v1954_v49, %s3856_s9  ;;  %1957 = vrot.lane.b32.xlu0 %v1953_v29, %s3856_s9  ;;  %v2082_v49 = vmul.f32 %v4573_v46, %v6237_v9 }
 0x6ac   : > { %v2081_v29 = vmul.f32 %v4558_v13, %v6237_v9  ;;  %v2100_v46 = vmul.f32 %v6237_v9, %v5115_v39  ;;  %v2093_v13 = vmul.f32 %v4589_v19, %v6237_v9 }
 0x6ad   : > { %v1401_v22 = vpop.permute.xlu1 %1400  ;;  %v1399_v42 = vpop.permute.xlu0 %1398 }
 0x6ae   : > { %v1403_v36 = vsel %vm1402_vm9, %v1399_v42, %v1401_v22 }
 0x6af   : > { %v1405_v51 = vadd.f32 %v1403_v36, %v1373_v4  ;;  %1974 = vrot.lane.b32.xlu1 %v1972_v30, %s3856_s9  ;;  %1967 = vrot.lane.b32.xlu0 %v1965_v59, %s3856_s9  ;;  %v6238_v59 = vld [vmem:[#allocation46_spill] sm:$0xff]  ;;  %v6239_v36 = vld [vmem:[#allocation43_spill] sm:$0xff]  ;;  %s3863_s9 = smov [#allocation10]  }
 0x6b1   : > { %v1416_v41 = vpop.permute.xlu1 %1415  ;;  %v1409_v0 = vpop.permute.xlu0 %1408 }
 0x6b2   : > { %v1410_v18 = vsel %vm1402_vm9, %v1401_v22, %v1409_v0  ;;  %v1417_v21 = vsel %vm1402_vm9, %v1409_v0, %v1416_v41  ;;  %v3600_v0 = vld [vmem:[%s4049_s5 + $0x8] sm:$0xff]  ;;  %vm1993_vm9 = vcmask 900096  }
 0x6b3   : > { %v1412_v56 = vadd.f32 %v1410_v18, %v1380_v32  ;;  %v1419_v1 = vadd.f32 %v1417_v21, %v1387_v23  ;;  %1991 = vrot.lane.b32.xlu1 %v1986_v10, %s3857_s23  ;;  %1989 = vrot.lane.b32.xlu0 %v1985_v12, %s3857_s23  ;;  %v798_v10 = vmul.f32 %v3600_v0, %v6240_v44  ;;  %v3601_v12 = vld [vmem:[%s4049_s5] sm:$0xff]  ;;  %v3602_v21 = vld [vmem:[%s4049_s5 + $0x10] sm:$0xff] }
 0x6b4   : > { %v797_v18 = vmul.f32 %v3601_v12, %v6240_v44  ;;  %v6255_v12 = vld [vmem:[#allocation77_spill] sm:$0xff] }
 0x6b5   : > { %v1435_v27 = vpop.permute.xlu1 %1434  ;;  %v1433_v50 = vpop.permute.xlu0 %1432 }
 0x6b6   : > { %v1437_v40 = vsel %vm1436_vm10, %v1433_v50, %v1435_v27 }
 0x6b7   : > { %v1439_v33 = vadd.f32 %v1437_v40, %v1405_v51  ;;  %2006 = vrot.lane.b32.xlu1 %v2004_v62, %s3857_s23  ;;  %1999 = vrot.lane.b32.xlu0 %v1997_v61, %s3857_s23  ;;  %v851_v51 = vsel %vm307_vm0, %v6239_v36, %v6238_v59  ;;  %v6242_v40 = vld [vmem:[#allocation91_spill] sm:$0xff]  ;;  %s3716_s23 = sshll.u32 %s3863_s9, 4  ;;  %s3717_s23 = int_to_ptr.vmem [resolvable:$false] %s3716_s23 }
 0x6b8   : > { %v854_v6 = vadd.f32 %v851_v51, %v797_v18  ;;  %s3718_s19 = scalar_lea.vmem %s3717_s23, 768 }
 0x6b9   : > { %v1476_v63 = vpop.permute.xlu1 %1475  ;;  %v1460_v34 = vpop.permute.xlu0 %1459 }
 0x6ba   : > { %v1461_v58 = vsel %vm1436_vm10, %v1435_v27, %v1460_v34  ;;  %v1477_v43 = vsel %vm1436_vm10, %v1460_v34, %v1476_v63  ;;  %v3603_v27 = vld [vmem:[%s4049_s5 + $0x18] sm:$0xff]  ;;  %v2113_v63 = vmul.f32 %v3600_v0, %v6242_v40  ;;  %v855_v34 = vadd.f32 %v6238_v59, %v798_v10  ;;  %s3861_s5 = smov 106  }
 0x6bb   : > { %v1463_v45 = vadd.f32 %v1461_v58, %v1412_v56  ;;  %v1479_v17 = vadd.f32 %v1477_v43, %v1419_v1  ;;  %2023 = vrot.lane.b32.xlu1 %v2018_v52, %s3858_s26  ;;  %2021 = vrot.lane.b32.xlu0 %v2017_v2, %s3858_s26  ;;  %v808_v56 = vmul.f32 %v3602_v21, %v6240_v44  ;;  %v6241_v1 = vld [vmem:[#allocation47_spill] sm:$0xff]  ;;  %v6243_v58 = vld [vmem:[#allocation48_spill] sm:$0xff]  ;;  %vm2025_vm10 = vcmask 891904  }
 0x6bc   : > { %v867_v19 = vsel %vm307_vm0, %v6238_v59, %v6241_v1  ;;  %v817_v50 = vmul.f32 %v3603_v27, %v6240_v44  ;;  %v883_v43 = vsel %vm307_vm0, %v6241_v1, %v6243_v58  ;;  %vm1705_vm0 = vcmask 64512  }
 0x6bd   : > { %v1504_v35 = vpop.permute.xlu1 %1503  ;;  %v1502_v3 = vpop.permute.xlu0 %1501 }
 0x6be   : > { %v1506_v31 = vsel %vm1505_vm11, %v1502_v3, %v1504_v35  ;;  %v871_v3 = vadd.f32 %v6241_v1, %v808_v56 }
 0x6bf   : > { %v1508_v16 = vadd.f32 %v1506_v31, %v1439_v33  ;;  %2038 = vrot.lane.b32.xlu1 %v2036_v20, %s3858_s26  ;;  %2031 = vrot.lane.b32.xlu0 %v2029_v25, %s3858_s26  ;;  %v2114_v33 = vmul.f32 %v3602_v21, %v6242_v40  ;;  %v887_v20 = vadd.f32 %v6243_v58, %v817_v50  ;;  %v6244_v25 = vld [vmem:[#allocation54_spill] sm:$0xff]  ;;  %v6245_v31 = vld [vmem:[#allocation51_spill] sm:$0xff] }
 0x6c1   : > { %v1545_v14 = vpop.permute.xlu1 %1544  ;;  %v1529_v26 = vpop.permute.xlu0 %1528 }
 0x6c2   : > { %v1530_v38 = vsel %vm1505_vm11, %v1504_v35, %v1529_v26  ;;  %v1546_v60 = vsel %vm1505_vm11, %v1529_v26, %v1545_v14  ;;  %v870_v35 = vadd.f32 %v867_v19, %v798_v10  ;;  %v6246_v14 = vld [vmem:[#allocation55_spill] sm:$0xff]  ;;  %v6254_v10 = vld [vmem:[#allocation76_spill] sm:$0xff]  ;;  %vm2057_vm11 = vcmask 883712  }
 0x6c3   : > { %v1532_v53 = vadd.f32 %v1530_v38, %v1463_v45  ;;  %v1548_v7 = vadd.f32 %v1546_v60, %v1479_v17  ;;  %2055 = vrot.lane.b32.xlu1 %v2050_v48, %s3859_s13  ;;  %2053 = vrot.lane.b32.xlu0 %v2049_v37, %s3859_s13  ;;  %v936_v26 = vsel %vm339_vm1, %v6244_v25, %v6246_v14 }
 0x6c4   : > { %v952_v48 = vsel %vm339_vm1, %v6246_v14, %v6247_v5  ;;  %v2132_v60 = vmul.f32 %v6242_v40, %v5115_v39  ;;  %v939_v9 = vadd.f32 %v936_v26, %v870_v35  ;;  %v940_v39 = vadd.f32 %v6246_v14, %v871_v3 }
 0x6c5   : > { %v1573_v8 = vpop.permute.xlu1 %1572  ;;  %v1571_v57 = vpop.permute.xlu0 %1570  ;;  %v1255_v18 = vsel %vm563_vm8, %v6255_v12, %v6254_v10  ;;  %v6270_v12 = vld [vmem:[#allocation92_spill] sm:$0xff] }
 0x6c6   : > { %v1575_v24 = vsel %vm1574_vm12, %v1571_v57, %v1573_v8  ;;  %v6248_v57 = vld [vmem:[#allocation66_spill] sm:$0xff] }
 0x6c7   : > { %v1577_v4 = vadd.f32 %v1575_v24, %v1508_v16  ;;  %2070 = vrot.lane.b32.xlu1 %v2068_v15, %s3859_s13  ;;  %2063 = vrot.lane.b32.xlu0 %v2061_v47, %s3859_s13  ;;  %v920_v16 = vsel %vm339_vm1, %v6245_v31, %v6244_v25  ;;  %v6249_v15 = vld [vmem:[#allocation67_spill] sm:$0xff]  ;;  %v6261_v31 = vld [vmem:[#allocation86_spill] sm:$0xff]  ;;  %vm1737_vm1 = vcmask 56320  }
 0x6c8   : > { %v1117_v47 = vsel %vm499_vm6, %v6249_v15, %v6248_v57  ;;  %v6265_v15 = vld [vmem:[#allocation90_spill] sm:$0xff] }
 0x6c9   : > { %v1614_v54 = vpop.permute.xlu1 %1613  ;;  %v1598_v55 = vpop.permute.xlu0 %1597 }
 0x6ca   : > { %v1599_v28 = vsel %vm1574_vm12, %v1573_v8, %v1598_v55  ;;  %v1615_v11 = vsel %vm1574_vm12, %v1598_v55, %v1614_v54  ;;  %v924_v8 = vadd.f32 %v6244_v25, %v855_v34  ;;  %v956_v54 = vadd.f32 %v6247_v5, %v887_v20  ;;  %v6258_v34 = vld [vmem:[#allocation83_spill] sm:$0xff] }
 0x6cb   : > { %v1601_v32 = vadd.f32 %v1599_v28, %v1532_v53  ;;  %v1617_v23 = vadd.f32 %v1615_v11, %v1548_v7  ;;  %2087 = vrot.lane.b32.xlu1 %v2082_v49, %s3860_s12  ;;  %2085 = vrot.lane.b32.xlu0 %v2081_v29, %s3860_s12  ;;  %v2125_v53 = vmul.f32 %v3603_v27, %v6242_v40  ;;  %v2146_v28 = vld [vmem:[#allocation7 + $0x1e8] sm:$0xff]  ;;  %v6256_v27 = vld [vmem:[#allocation72_spill] sm:$0xff]  ;;  %v6257_v40 = vld [vmem:[#allocation75_spill] sm:$0xff]  ;;  %vm2089_vm12 = vcmask 875520  }
 0x6cc   : > { %v886_v7 = vadd.f32 %v883_v43, %v808_v56  ;;  %v1121_v29 = vadd.f32 %v6248_v57, %v924_v8 }
 0x6cd   : > { %v1640_v22 = vpop.permute.xlu1 %1639  ;;  %v1638_v42 = vpop.permute.xlu0 %1637 }
 0x6ce   : > { %v1642_v30 = vsel %vm1641_vm2, %v1638_v42, %v1640_v22  ;;  %v955_v49 = vadd.f32 %v952_v48, %v886_v7 }
 0x6cf   : > { %v1644_v41 = vadd.f32 %v1642_v30, %v1577_v4  ;;  %2102 = vrot.lane.b32.xlu1 %v2100_v46, %s3860_s12  ;;  %2095 = vrot.lane.b32.xlu0 %v2093_v13, %s3860_s12  ;;  %v923_v4 = vadd.f32 %v920_v16, %v854_v6  ;;  %v6252_v46 = vld [vmem:[#allocation73_spill] sm:$0xff]  ;;  %v6253_v13 = vld [vmem:[#allocation70_spill] sm:$0xff]  ;;  %v6259_v6 = vld [vmem:[#allocation80_spill] sm:$0xff] }
 0x6d0   : > { %v1186_v30 = vsel %vm531_vm7, %v6253_v13, %v6252_v46  ;;  %v1202_v50 = vsel %vm531_vm7, %v6252_v46, %v6256_v27  ;;  %v6262_v16 = vld [vmem:[#allocation87_spill] sm:$0xff] }
 0x6d1   : > { %v1655_v62 = vpop.permute.xlu1 %1654  ;;  %v1648_v61 = vpop.permute.xlu0 %1647  ;;  %v1120_v11 = vadd.f32 %v1117_v47, %v923_v4  ;;  %v1521_v14 = vsel %vm755_vm14, %v6262_v16, %v6261_v31 }
 0x6d2   : > { %v1649_v52 = vsel %vm1641_vm2, %v1640_v22, %v1648_v61  ;;  %v1656_v2 = vsel %vm1641_vm2, %v1648_v61, %v1655_v62  ;;  %v6251_v22 = vld [vmem:[#allocation69_spill] sm:$0xff] }
 0x6d3   : > { %v1651_v45 = vadd.f32 %v1649_v52, %v1601_v32  ;;  %v1658_v17 = vadd.f32 %v1656_v2, %v1617_v23  ;;  %2119 = vrot.lane.b32.xlu1 %v2114_v33, %s3861_s5  ;;  %2117 = vrot.lane.b32.xlu0 %v2113_v63, %s3861_s5  ;;  %v6250_v32 = vld [vmem:[#allocation68_spill] sm:$0xff]  ;;  %v1133_v42 = vsel %vm499_vm6, %v6248_v57, %v6251_v22  ;;  %v6264_v57 = vld [vmem:[#allocation93_spill] sm:$0xff] }
 0x6d4   : > { %v1153_v23 = vadd.f32 %v6250_v32, %v956_v54  ;;  %v1149_v51 = vsel %vm499_vm6, %v6251_v22, %v6250_v32  ;;  %v1136_v1 = vadd.f32 %v1133_v42, %v939_v9  ;;  %v1137_v19 = vadd.f32 %v6251_v22, %v940_v39  ;;  %v6266_v54 = vld [vmem:[#allocation82_spill] sm:$0xff]  ;;  %v6267_v22 = vld [vmem:[#allocation89_spill] sm:$0xff] }
 0x6d5   : > { %v1672_v37 = vpop.permute.xlu1 %1671  ;;  %v1670_v38 = vpop.permute.xlu0 %1669  ;;  %v1189_v62 = vadd.f32 %v1186_v30, %v1120_v11  ;;  %v1152_v61 = vadd.f32 %v1149_v51, %v955_v49  ;;  %v1218_v33 = vsel %vm531_vm7, %v6256_v27, %v6257_v40  ;;  %v1452_v52 = vsel %vm723_vm13, %v6259_v6, %v6258_v34 }
 0x6d6   : > { %v1674_v24 = vsel %vm1673_vm3, %v1670_v38, %v1672_v37  ;;  %v1206_v43 = vadd.f32 %v6256_v27, %v1137_v19  ;;  %v1205_v20 = vadd.f32 %v1202_v50, %v1136_v1  ;;  %v1222_v48 = vadd.f32 %v6257_v40, %v1153_v23 }
 0x6d7   : > { %v1676_v55 = vadd.f32 %v1674_v24, %v1644_v41  ;;  %2134 = vrot.lane.b32.xlu1 %v2132_v60, %s3861_s5  ;;  %2127 = vrot.lane.b32.xlu0 %v2125_v53, %s3861_s5  ;;  %v1190_v41 = vadd.f32 %v6252_v46, %v1121_v29  ;;  %v1221_v5 = vadd.f32 %v1218_v33, %v1152_v61  ;;  %v6263_v53 = vld [vmem:[#allocation78_spill] sm:$0xff]  ;;  %v6271_v61 = vld [vmem:[#allocation88_spill] sm:$0xff]  ;;  %vm1769_vm6 = vcmask 48128  }
 0x6d8   : > { %v1590_v47 = vsel %vm789_vm15, %v6265_v15, %v6264_v57  ;;  %v1291_v32 = vadd.f32 %v6263_v53, %v1222_v48  ;;  %v1537_v42 = vsel %vm755_vm14, %v6261_v31, %v6267_v22  ;;  %v1553_v33 = vsel %vm755_vm14, %v6267_v22, %v6271_v61 }
 0x6d9   : > { %v1687_v59 = vpop.permute.xlu1 %1686  ;;  %v1680_v36 = vpop.permute.xlu0 %1679  ;;  %v1259_v63 = vadd.f32 %v6254_v10, %v1190_v41  ;;  %vm1801_vm7 = vcmask 39936   ;;  %vm1897_vm14 = vcmask 15360  }
 0x6da   : > { %v1681_v0 = vsel %vm1673_vm3, %v1672_v37, %v1680_v36  ;;  %v1688_v44 = vsel %vm1673_vm3, %v1680_v36, %v1687_v59  ;;  %v6268_v59 = vld [vmem:[#allocation85_spill] sm:$0xff] }
 0x6db   : > { %v1683_v21 = vadd.f32 %v1681_v0, %v1651_v45  ;;  %v1690_v56 = vadd.f32 %v1688_v44, %v1658_v17  ;;  %2248 = vrot.lane.b32.xlu0 %v2146_v28, %s6143_s10  ;;  %v1258_v45 = vadd.f32 %v1255_v18, %v1189_v62  ;;  %v6260_v17 = vld [vmem:[#allocation79_spill] sm:$0xff]  ;;  %v1456_v25 = vadd.f32 %v6258_v34, %v1259_v63 }
 0x6dc   : > { %v1271_v35 = vsel %vm563_vm8, %v6254_v10, %v6260_v17  ;;  %v1275_v37 = vadd.f32 %v6260_v17, %v1206_v43  ;;  %v1287_v7 = vsel %vm563_vm8, %v6260_v17, %v6263_v53  ;;  %v1484_v36 = vsel %vm723_vm13, %v6266_v54, %v6268_v59  ;;  %v6269_v0 = vld [vmem:[#allocation95_spill] sm:$0xff]  ;;  %v6272_v17 = vld [vmem:[#allocation94_spill] sm:$0xff] }
 0x6dd   : > { %v1704_v2 = vpop.permute.xlu1 %1703  ;;  %v1702_v58 = vpop.permute.xlu0 %1701  ;;  %v1455_v38 = vadd.f32 %v1452_v52, %v1258_v45  ;;  %v1274_v60 = vadd.f32 %v1271_v35, %v1205_v20  ;;  %v1525_v8 = vadd.f32 %v6261_v31, %v1456_v25  ;;  %v1290_v30 = vadd.f32 %v1287_v7, %v1221_v5 }
 0x6de   : > { %v1706_v3 = vsel %vm1705_vm0, %v1702_v58, %v1704_v2  ;;  %v1472_v23 = vadd.f32 %v6266_v54, %v1275_v37  ;;  %v1606_v18 = vsel %vm789_vm15, %v6264_v57, %v6270_v12  ;;  %v1488_v1 = vadd.f32 %v6268_v59, %v1291_v32 }
 0x6df   : > { %v1708_v26 = vadd.f32 %v1706_v3, %v1676_v55  ;;  %v1468_v55 = vsel %vm723_vm13, %v6258_v34, %v6266_v54  ;;  %v1524_v9 = vadd.f32 %v1521_v14, %v1455_v38  ;;  %v1594_v29 = vadd.f32 %v6264_v57, %v1525_v8 }
 0x6e0   : > { %v1471_v13 = vadd.f32 %v1468_v55, %v1274_v60  ;;  %v1541_v10 = vadd.f32 %v6267_v22, %v1472_v23  ;;  %v1487_v50 = vadd.f32 %v1484_v36, %v1290_v30  ;;  %v1557_v40 = vadd.f32 %v6271_v61, %v1488_v1 }
 0x6e1   : > { %v1719_v24 = vpop.permute.xlu1 %1718  ;;  %v1712_v4 = vpop.permute.xlu0 %1711  ;;  %v1593_v46 = vadd.f32 %v1590_v47, %v1524_v9  ;;  %v5267_v44 = vadd.f32 %v6269_v0, %v1594_v29  ;;  %v1622_v35 = vsel %vm789_vm15, %v6270_v12, %v6272_v17  ;;  %vm1833_vm8 = vcmask 31744  }
 0x6e2   : > { %v1713_v39 = vsel %vm1705_vm0, %v1704_v2, %v1712_v4  ;;  %v1720_v49 = vsel %vm1705_vm0, %v1712_v4, %v1719_v24  ;;  %v1540_v19 = vadd.f32 %v1537_v42, %v1471_v13  ;;  %v1610_v62 = vadd.f32 %v6270_v12, %v1541_v10 }
 0x6e3   : > { %v1715_v28 = vadd.f32 %v1713_v39, %v1683_v21  ;;  %v1722_v11 = vadd.f32 %v1720_v49, %v1690_v56  ;;  %v5275_v56 = vadd.f32 %v6269_v0, %v1593_v46  ;;  %v5284_v52 = vmul.f32 0.70710677, %v5267_v44 }
 0x6e4   : > { %v1609_v63 = vadd.f32 %v1606_v18, %v1540_v19  ;;  %v5292_v45 = vadd.f32 %v6269_v0, %v1610_v62  ;;  %v1556_v25 = vadd.f32 %v1553_v33, %v1487_v50  ;;  %v1626_v16 = vadd.f32 %v6272_v17, %v1557_v40 }
 0x6e5   : > { %v1736_v51 = vpop.permute.xlu1 %1735  ;;  %v1734_v41 = vpop.permute.xlu0 %1733  ;;  %v5289_v43 = vmul.f32 0.70710677, %v5275_v56  ;;  %v5302_v5 = vand.u32 2147483647, %v5284_v52  ;;  %vm1865_vm13 = vcmask 23552   ;;  %vm2194_vm2 = vcmp.lt.f32.partialorder %v5284_v52, 0.0 }
 0x6e6   : > { %v1738_v21 = vsel %vm1737_vm1, %v1734_v41, %v1736_v51  ;;  %v5298_v31 = vadd.f32 %v6269_v0, %v1609_v63  ;;  %v1625_v48 = vadd.f32 %v1622_v35, %v1556_v25  ;;  %v5309_v60 = vmul.f32 0.70710677, %v5292_v45 }
 0x6e7   : > { %v1740_v27 = vadd.f32 %v1738_v21, %v1708_v26  ;;  %v5306_v38 = vand.u32 2147483647, %v5289_v43  ;;  %v5312_v7 = vadd.f32 %v6269_v0, %v1626_v16  ;;  %v2200_v24 = vmul.f32 0.3275911, %v5302_v5 }
 0x6e8   : > { %v5315_v8 = vmul.f32 0.70710677, %v5298_v31  ;;  %v5318_v57 = vadd.f32 %v6269_v0, %v1625_v48  ;;  %v5325_v9 = vand.u32 2147483647, %v5309_v60  ;;  %vm2193_vm3 = vcmp.lt.f32.partialorder %v5289_v43, 0.0 }
 0x6e9   : > { %v1751_v34 = vpop.permute.xlu1 %1750  ;;  %v1744_v6 = vpop.permute.xlu0 %1743  ;;  %v2199_v55 = vmul.f32 0.3275911, %v5306_v38  ;;  %v5328_v29 = vmul.f32 0.70710677, %v5312_v7  ;;  %v2202_v22 = vadd.f32 1.0, %v2200_v24  ;;  %vm2576_vm0 = vcmp.lt.f32.partialorder %v5309_v60, 0.0 }
 0x6ea   : > { %v1745_v2 = vsel %vm1737_vm1, %v1736_v51, %v1744_v6  ;;  %v1752_v58 = vsel %vm1737_vm1, %v1744_v6, %v1751_v34  ;;  %v2582_v13 = vmul.f32 0.3275911, %v5325_v9  ;;  %vm2575_vm1 = vcmp.lt.f32.partialorder %v5315_v8, 0.0 }
 0x6eb   : > { %v1747_v3 = vadd.f32 %v1745_v2, %v1715_v28  ;;  %v1754_v20 = vadd.f32 %v1752_v58, %v1722_v11  ;;  %v5331_v28 = vand.u32 2147483647, %v5315_v8  ;;  %v5334_v11 = vmul.f32 0.70710677, %v5318_v57 }
 0x6ec   : > { %v2201_v46 = vadd.f32 1.0, %v2199_v55  ;;  %v5339_v59 = vand.u32 2147483647, %v5328_v29  ;;  %3536 = vrcp.f32 %v2202_v22  ;;  %v2584_v18 = vadd.f32 1.0, %v2582_v13 }
 0x6ed   : > { %v1768_v14 = vpop.permute.xlu1 %1767  ;;  %v1766_v26 = vpop.permute.xlu0 %1765  ;;  %v2581_v36 = vmul.f32 0.3275911, %v5331_v28  ;;  %v5343_v51 = vand.u32 2147483647, %v5334_v11 }
 0x6ee   : > { %v1770_v37 = vsel %vm1769_vm6, %v1766_v26, %v1768_v14  ;;  %3538 = vrcp.f32 %v2201_v46  ;;  %v2937_v19 = vmul.f32 0.3275911, %v5339_v59 }
 0x6ef   : > { %v1772_v53 = vadd.f32 %v1770_v37, %v1740_v27  ;;  %v2583_v27 = vadd.f32 1.0, %v2581_v36  ;;  %v2936_v50 = vmul.f32 0.3275911, %v5343_v51  ;;  %3540 = vrcp.f32 %v2584_v18 }
 0x6f0   : > { %v2939_v63 = vadd.f32 1.0, %v2937_v19 }
 0x6f1   : > { %v1783_v15 = vpop.permute.xlu1 %1782  ;;  %v1776_v47 = vpop.permute.xlu0 %1775  ;;  %3542 = vrcp.f32 %v2583_v27  ;;  %v2938_v34 = vadd.f32 1.0, %v2936_v50 }
 0x6f2   : > { %v1777_v4 = vsel %vm1769_vm6, %v1768_v14, %v1776_v47  ;;  %v1784_v54 = vsel %vm1769_vm6, %v1776_v47, %v1783_v15  ;;  %3544 = vrcp.f32 %v2939_v63  ;;  %vm2931_vm6 = vcmp.lt.f32.partialorder %v5328_v29, 0.0 }
 0x6f3   : > { %v1779_v39 = vadd.f32 %v1777_v4, %v1747_v3  ;;  %v1786_v49 = vadd.f32 %v1784_v54, %v1754_v20  ;;  %3546 = vrcp.f32 %v2938_v34 }
 0x6f5   : > { %v1800_v32 = vpop.permute.xlu1 %1799  ;;  %v1798_v23 = vpop.permute.xlu0 %1797 }
 0x6f6   : > { %v1802_v42 = vsel %vm1801_vm7, %v1798_v23, %v1800_v32 }
 0x6f7   : > { %v1804_v30 = vadd.f32 %v1802_v42, %v1772_v53 }
 0x6f9   : > { %v1815_v41 = vpop.permute.xlu1 %1814  ;;  %v1808_v0 = vpop.permute.xlu0 %1807 }
 0x6fa   : > { %v1809_v10 = vsel %vm1801_vm7, %v1800_v32, %v1808_v0  ;;  %v1816_v12 = vsel %vm1801_vm7, %v1808_v0, %v1815_v41  ;;  %v3537_v16 = vpop.eup %3536  ;;  %vm2930_vm7 = vcmp.lt.f32.partialorder %v5334_v11, 0.0 }
 0x6fb   : > { %v1811_v21 = vadd.f32 %v1809_v10, %v1779_v39  ;;  %v1818_v1 = vadd.f32 %v1816_v12, %v1786_v49  ;;  %v3539_v26 = vpop.eup %3538  ;;  %v2206_v24 = vmul.f32 %v3537_v16, %v2202_v22 }
 0x6fc   : > { %v2205_v4 = vmul.f32 %v3539_v26, %v2201_v46  ;;  %v3541_v39 = vpop.eup %3540 }
 0x6fd   : > { %v1832_v62 = vpop.permute.xlu1 %1831  ;;  %v1830_v61 = vpop.permute.xlu0 %1829  ;;  %v2208_v13 = vsub.f32 2.0, %v2206_v24  ;;  %v2588_v41 = vmul.f32 %v3541_v39, %v2584_v18 }
 0x6fe   : > { %v1834_v40 = vsel %vm1833_vm8, %v1830_v61, %v1832_v62  ;;  %v3543_v49 = vpop.eup %3542 }
 0x6ff   : > { %v1836_v33 = vadd.f32 %v1834_v40, %v1804_v30  ;;  %v2207_v30 = vsub.f32 2.0, %v2205_v4  ;;  %v3545_v0 = vpop.eup %3544  ;;  %v2587_v10 = vmul.f32 %v3543_v49, %v2583_v27  ;;  %v5352_v19 = vmul.f32 %v3537_v16, %v2208_v13 }
 0x700   : > { %v3547_v12 = vpop.eup %3546  ;;  %v2590_v40 = vsub.f32 2.0, %v2588_v41  ;;  %v2229_v13 = vsub.f32 0.0, %v5306_v38 }
 0x701   : > { %v1847_v6 = vpop.permute.xlu1 %1846  ;;  %v1840_v2 = vpop.permute.xlu0 %1839  ;;  %v5354_v50 = vmul.f32 %v3539_v26, %v2207_v30  ;;  %v2942_v18 = vmul.f32 %v3547_v12, %v2938_v34 }
 0x702   : > { %v1841_v58 = vsel %vm1833_vm8, %v1832_v62, %v1840_v2  ;;  %v1848_v17 = vsel %vm1833_vm8, %v1840_v2, %v1847_v6  ;;  %v2943_v6 = vmul.f32 %v3545_v0, %v2939_v63  ;;  %vm2121_vm8 = vcmask 867328  }
 0x703   : > { %v1843_v35 = vadd.f32 %v1841_v58, %v1811_v21  ;;  %v1850_v3 = vadd.f32 %v1848_v17, %v1818_v1  ;;  %v2212_v17 = vmul.f32 1.0614054, %v5352_v19 }
 0x704   : > { %v2945_v16 = vsub.f32 2.0, %v2943_v6 }
 0x705   : > { %v1864_v20 = vpop.permute.xlu1 %1863  ;;  %v1862_v25 = vpop.permute.xlu0 %1861 }
 0x706   : > { %v1866_v14 = vsel %vm1865_vm13, %v1862_v25, %v1864_v20 }
 0x707   : > { %v1868_v48 = vadd.f32 %v1866_v14, %v1836_v33  ;;  %v2589_v33 = vsub.f32 2.0, %v2587_v10  ;;  %v2944_v14 = vsub.f32 2.0, %v2942_v18 }
 0x709   : > { %v1879_v37 = vpop.permute.xlu1 %1878  ;;  %v1872_v53 = vpop.permute.xlu0 %1871  ;;  %v5361_v25 = vmul.f32 %v3543_v49, %v2589_v33  ;;  %v2231_v33 = vmul.f32 %v2229_v13, %v5306_v38 }
 0x70a   : > { %v1873_v15 = vsel %vm1865_vm13, %v1864_v20, %v1872_v53  ;;  %v1880_v47 = vsel %vm1865_vm13, %v1872_v53, %v1879_v37  ;;  %v5359_v20 = vmul.f32 %v3541_v39, %v2590_v40  ;;  %v2214_v37 = vadd.f32 -1.4531521, %v2212_v17 }
 0x70b   : > { %v1875_v54 = vadd.f32 %v1873_v15, %v1843_v35  ;;  %v1882_v55 = vadd.f32 %v1880_v47, %v1850_v3  ;;  %v2211_v35 = vmul.f32 1.0614054, %v5354_v50  ;;  %v2593_v4 = vmul.f32 1.0614054, %v5361_v25 }
 0x70c   : > { %v2594_v24 = vmul.f32 1.0614054, %v5359_v20 }
 0x70d   : > { %v1896_v32 = vpop.permute.xlu1 %1895  ;;  %v1894_v23 = vpop.permute.xlu0 %1893  ;;  %v2213_v53 = vadd.f32 -1.4531521, %v2211_v35  ;;  %v2595_v10 = vadd.f32 -1.4531521, %v2593_v4 }
 0x70e   : > { %v1898_v42 = vsel %vm1897_vm14, %v1894_v23, %v1896_v32  ;;  %v2596_v41 = vadd.f32 -1.4531521, %v2594_v24 }
 0x70f   : > { %v1900_v36 = vadd.f32 %v1898_v42, %v1868_v48  ;;  %v2216_v42 = vmul.f32 %v2214_v37, %v5352_v19  ;;  %v2233_v37 = vmul.f32 1.442695, %v2231_v33 }
 0x711   : > { %v1911_v21 = vpop.permute.xlu1 %1910  ;;  %v1904_v1 = vpop.permute.xlu0 %1903  ;;  %v2218_v40 = vadd.f32 1.4214138, %v2216_v42 }
 0x712   : > { %v1905_v22 = vsel %vm1897_vm14, %v1896_v32, %v1904_v1  ;;  %v1912_v46 = vsel %vm1897_vm14, %v1904_v1, %v1911_v21  ;;  %v2230_v32 = vsub.f32 0.0, %v5302_v5 }
 0x713   : > { %v1907_v62 = vadd.f32 %v1905_v22, %v1875_v54  ;;  %v1914_v61 = vadd.f32 %v1912_v46, %v1882_v55  ;;  %v5367_v54 = vmul.f32 %v3545_v0, %v2945_v16  ;;  %v5369_v55 = vmul.f32 %v3547_v12, %v2944_v14 }
 0x714   : > { %v2232_v22 = vmul.f32 %v2230_v32, %v5302_v5  ;;  %v2612_v46 = vsub.f32 0.0, %v5325_v9  ;;  %v2220_v38 = vmul.f32 %v2218_v40, %v5352_v19  ;;  %v2967_v32 = vsub.f32 0.0, %v5339_v59 }
 0x715   : > { %v1928_v2 = vpop.permute.xlu1 %1927  ;;  %v1926_v27 = vpop.permute.xlu0 %1925  ;;  %v2949_v0 = vmul.f32 1.0614054, %v5367_v54  ;;  %v2948_v12 = vmul.f32 1.0614054, %v5369_v55 }
 0x716   : > { %v1930_v58 = vsel %vm1929_vm4, %v1926_v27, %v1928_v2  ;;  %v2598_v27 = vmul.f32 %v2596_v41, %v5359_v20  ;;  %v2235_v16 = vmul.f32 1.442695, %v2232_v22  ;;  %v2614_v14 = vmul.f32 %v2612_v46, %v5325_v9 }
 0x717   : > { %v1932_v3 = vadd.f32 %v1930_v58, %v1900_v36  ;;  %v2215_v36 = vmul.f32 %v2213_v53, %v5354_v50  ;;  %v2597_v58 = vmul.f32 %v2595_v10, %v5361_v25  ;;  %v2951_v17 = vadd.f32 -1.4531521, %v2949_v0 }
 0x718   : > { %v2950_v35 = vadd.f32 -1.4531521, %v2948_v12  ;;  %v2600_v53 = vadd.f32 1.4214138, %v2598_v27  ;;  %3548 = vpow2.f32 %v2235_v16  ;;  %v2617_v9 = vmul.f32 1.442695, %v2614_v14 }
 0x719   : > { %v1943_v26 = vpop.permute.xlu1 %1942  ;;  %v1936_v48 = vpop.permute.xlu0 %1935  ;;  %v2222_v13 = vadd.f32 -0.28449672, %v2220_v38  ;;  %3550 = vpow2.f32 %v2233_v37 }
 0x71a   : > { %v1937_v63 = vsel %vm1929_vm4, %v1928_v2, %v1936_v48  ;;  %v1944_v34 = vsel %vm1929_vm4, %v1936_v48, %v1943_v26  ;;  %v2217_v2 = vadd.f32 1.4214138, %v2215_v36  ;;  %v2611_v26 = vsub.f32 0.0, %v5331_v28 }
 0x71b   : > { %v1939_v15 = vadd.f32 %v1937_v63, %v1907_v62  ;;  %v1946_v47 = vadd.f32 %v1944_v34, %v1914_v61  ;;  %v2952_v24 = vmul.f32 %v2950_v35, %v5369_v55  ;;  %v2602_v0 = vmul.f32 %v2600_v53, %v5359_v20 }
 0x71c   : > { %v2219_v34 = vmul.f32 %v2217_v2, %v5354_v50  ;;  %v2224_v40 = vmul.f32 %v2222_v13, %v5352_v19  ;;  %3552 = vpow2.f32 %v2617_v9 }
 0x71d   : > { %v1960_v39 = vpop.permute.xlu1 %1959  ;;  %v1958_v49 = vpop.permute.xlu0 %1957  ;;  %v2604_v2 = vadd.f32 -0.28449672, %v2602_v0 }
 0x71e   : > { %v1962_v23 = vsel %vm1961_vm5, %v1958_v49, %v1960_v39  ;;  %v2613_v49 = vmul.f32 %v2611_v26, %v5331_v28  ;;  %v2221_v10 = vadd.f32 -0.28449672, %v2219_v34  ;;  %v2226_v14 = vadd.f32 0.2548296, %v2224_v40 }
 0x71f   : > { %v1964_v30 = vadd.f32 %v1962_v23, %v1932_v3 }
 0x720   : > { %v2615_v46 = vmul.f32 1.442695, %v2613_v49 }
 0x721   : > { %v1975_v21 = vpop.permute.xlu1 %1974  ;;  %v1968_v1 = vpop.permute.xlu0 %1967 }
 0x722   : > { %v1969_v62 = vsel %vm1961_vm5, %v1960_v39, %v1968_v1  ;;  %v1976_v61 = vsel %vm1961_vm5, %v1968_v1, %v1975_v21  ;;  %v2954_v1 = vadd.f32 1.4214138, %v2952_v24  ;;  %3554 = vpow2.f32 %v2615_v46 }
 0x723   : > { %v1971_v6 = vadd.f32 %v1969_v62, %v1939_v15  ;;  %v1978_v18 = vadd.f32 %v1976_v61, %v1946_v47  ;;  %v2599_v15 = vadd.f32 1.4214138, %v2597_v58  ;;  %v2953_v47 = vmul.f32 %v2951_v17, %v5367_v54 }
 0x724   : > { %v2969_v62 = vmul.f32 %v2967_v32, %v5339_v59  ;;  %v2956_v17 = vmul.f32 %v2954_v1, %v5369_v55 }
 0x725   : > { %v1992_v5 = vpop.permute.xlu1 %1991  ;;  %v1990_v3 = vpop.permute.xlu0 %1989  ;;  %v2601_v12 = vmul.f32 %v2599_v15, %v5361_v25  ;;  %v2955_v21 = vadd.f32 1.4214138, %v2953_v47 }
 0x726   : > { %v1994_v48 = vsel %vm1993_vm9, %v1990_v3, %v1992_v5  ;;  %v2972_v59 = vmul.f32 1.442695, %v2969_v62  ;;  %v2958_v53 = vadd.f32 -0.28449672, %v2956_v17  ;;  %v3549_v24 = vpop.eup %3548 }
 0x727   : > { %v1996_v63 = vadd.f32 %v1994_v48, %v1964_v30  ;;  %v2966_v30 = vsub.f32 0.0, %v5343_v51  ;;  %v2603_v27 = vadd.f32 -0.28449672, %v2601_v12  ;;  %v2957_v58 = vmul.f32 %v2955_v21, %v5367_v54 }
 0x728   : > { %3556 = vpow2.f32 %v2972_v59  ;;  %v2960_v13 = vmul.f32 %v2958_v53, %v5369_v55  ;;  %v3862_v59 = vmov 1.0  }
 0x729   : > { %v2007_v4 = vpop.permute.xlu1 %2006  ;;  %v2000_v39 = vpop.permute.xlu0 %1999  ;;  %v2968_v33 = vmul.f32 %v2966_v30, %v5343_v51  ;;  %v2605_v34 = vmul.f32 %v2603_v27, %v5361_v25  ;;  %v2959_v37 = vadd.f32 -0.28449672, %v2957_v58  ;;  %v2932_v29 = vsel %vm2930_vm7, -1.0, %v3862_v59 }
 0x72a   : > { %v2001_v23 = vsel %vm1993_vm9, %v1992_v5, %v2000_v39  ;;  %v2008_v42 = vsel %vm1993_vm9, %v2000_v39, %v2007_v4  ;;  %v2228_v39 = vmul.f32 %v2226_v14, %v5352_v19  ;;  %v2962_v62 = vadd.f32 0.2548296, %v2960_v13 }
 0x72b   : > { %v2003_v36 = vadd.f32 %v2001_v23, %v1971_v6  ;;  %v2010_v41 = vadd.f32 %v2008_v42, %v1978_v18  ;;  %v2223_v18 = vmul.f32 %v2221_v10, %v5354_v50  ;;  %v2970_v51 = vmul.f32 1.442695, %v2968_v33 }
 0x72c   : > { %v2607_v23 = vadd.f32 0.2548296, %v2605_v34  ;;  %v2961_v42 = vmul.f32 %v2959_v37, %v5367_v54  ;;  %v2238_v12 = vmul.f32 %v3549_v24, %v2228_v39  ;;  %v2577_v24 = vsel %vm2575_vm1, -1.0, %v3862_v59 }
 0x72d   : > { %v2024_v28 = vpop.permute.xlu1 %2023  ;;  %v2022_v22 = vpop.permute.xlu0 %2021  ;;  %v2225_v38 = vadd.f32 0.2548296, %v2223_v18  ;;  %3558 = vpow2.f32 %v2970_v51  ;;  %v2189_v13 = vmul.f32 0.5, %v5275_v56  ;;  %v2572_v56 = vmul.f32 0.5, %v5292_v45 }
 0x72e   : > { %v2026_v61 = vsel %vm2025_vm10, %v2022_v22, %v2024_v28  ;;  %v2609_v22 = vmul.f32 %v2607_v23, %v5361_v25  ;;  %v2963_v46 = vadd.f32 0.2548296, %v2961_v42  ;;  %v2964_v25 = vmul.f32 %v2962_v62, %v5369_v55 }
 0x72f   : > { %v2028_v6 = vadd.f32 %v2026_v61, %v1996_v63  ;;  %v2606_v63 = vmul.f32 %v2604_v2, %v5359_v20  ;;  %v2227_v49 = vmul.f32 %v2225_v38, %v5354_v50  ;;  %v2240_v2 = vsub.f32 1.0, %v2238_v12 }
 0x730   : > { %v2190_v42 = vmul.f32 0.5, %v5267_v44 }
 0x731   : > { %v2039_v35 = vpop.permute.xlu1 %2038  ;;  %v2032_v5 = vpop.permute.xlu0 %2031  ;;  %v2608_v32 = vadd.f32 0.2548296, %v2606_v63 }
 0x732   : > { %v2033_v3 = vsel %vm2025_vm10, %v2024_v28, %v2032_v5  ;;  %v2040_v16 = vsel %vm2025_vm10, %v2032_v5, %v2039_v35 }
 0x733   : > { %v2035_v26 = vadd.f32 %v2033_v3, %v2003_v36  ;;  %v2042_v48 = vadd.f32 %v2040_v16, %v2010_v41  ;;  %v3551_v41 = vpop.eup %3550  ;;  %v2610_v50 = vmul.f32 %v2608_v32, %v5359_v20  ;;  %v2965_v20 = vmul.f32 %v2963_v46, %v5367_v54 }
 0x734   : > { %v2237_v1 = vmul.f32 %v3551_v41, %v2227_v49  ;;  %v3553_v28 = vpop.eup %3552  ;;  %v2196_v3 = vsel %vm2194_vm2, -1.0, %v3862_v59  ;;  %v2195_v16 = vsel %vm2193_vm3, -1.0, %v3862_v59  ;;  %v2933_v41 = vsel %vm2931_vm6, -1.0, %v3862_v59 }
 0x735   : > { %v2056_v15 = vpop.permute.xlu1 %2055  ;;  %v2054_v47 = vpop.permute.xlu0 %2053  ;;  %v2620_v58 = vmul.f32 %v3553_v28, %v2610_v50  ;;  %v2242_v55 = vmul.f32 %v2240_v2, %v2196_v3  ;;  %v2571_v46 = vmul.f32 0.5, %v5298_v31 }
 0x736   : > { %v2058_v4 = vsel %vm2057_vm11, %v2054_v47, %v2056_v15  ;;  %v3555_v33 = vpop.eup %3554  ;;  %v2239_v27 = vsub.f32 1.0, %v2237_v1  ;;  %v2578_v47 = vsel %vm2576_vm0, -1.0, %v3862_v59 }
 0x737   : > { %v2060_v9 = vadd.f32 %v2058_v4, %v2028_v6  ;;  %v2619_v17 = vmul.f32 %v3555_v33, %v2609_v22  ;;  %v3557_v52 = vpop.eup %3556  ;;  %v2622_v38 = vsub.f32 1.0, %v2620_v58  ;;  %v2244_v4 = vadd.f32 1.0, %v2242_v55 }
 0x738   : > { %v2975_v34 = vmul.f32 %v3557_v52, %v2965_v20  ;;  %v2926_v58 = vmul.f32 0.5, %v5318_v57 }
 0x739   : > { %v2071_v30 = vpop.permute.xlu1 %2070  ;;  %v2064_v36 = vpop.permute.xlu0 %2063  ;;  %v2621_v63 = vsub.f32 1.0, %v2619_v17  ;;  %v2624_v60 = vmul.f32 %v2622_v38, %v2578_v47 }
 0x73a   : > { %v2065_v10 = vsel %vm2057_vm11, %v2056_v15, %v2064_v36  ;;  %v2072_v0 = vsel %vm2057_vm11, %v2064_v36, %v2071_v30  ;;  %v3559_v51 = vpop.eup %3558 }
 0x73b   : > { %v2067_v21 = vadd.f32 %v2065_v10, %v2035_v26  ;;  %v2074_v19 = vadd.f32 %v2072_v0, %v2042_v48  ;;  %v2241_v48 = vmul.f32 %v2239_v27, %v2195_v16  ;;  %v2974_v37 = vmul.f32 %v3559_v51, %v2964_v25 }
 0x73c   : > { %v2623_v8 = vmul.f32 %v2621_v63, %v2577_v24  ;;  %v2246_v0 = vmul.f32 %v2244_v4, %v2190_v42  ;;  %v2927_v27 = vmul.f32 0.5, %v5312_v7 }
 0x73d   : > { %v2088_v61 = vpop.permute.xlu1 %2087  ;;  %v2086_v40 = vpop.permute.xlu0 %2085  ;;  %v2243_v39 = vadd.f32 1.0, %v2241_v48  ;;  %v2976_v49 = vsub.f32 1.0, %v2974_v37 }
 0x73e   : > { %v2090_v6 = vsel %vm2089_vm12, %v2086_v40, %v2088_v61 }
 0x73f   : > { %v5422_v18 = vadd.f32 %v2090_v6, %v2060_v9  ;;  %v2977_v9 = vsub.f32 1.0, %v2975_v34  ;;  %v2245_v12 = vmul.f32 %v2243_v39, %v2189_v13  ;;  %v2978_v28 = vmul.f32 %v2976_v49, %v2932_v29 }
 0x741   : > { %v2103_v35 = vpop.permute.xlu1 %2102  ;;  %v2096_v5 = vpop.permute.xlu0 %2095  ;;  %v2979_v1 = vmul.f32 %v2977_v9, %v2933_v41  ;;  %v2980_v33 = vadd.f32 1.0, %v2978_v28 }
 0x742   : > { %v2097_v43 = vsel %vm2089_vm12, %v2088_v61, %v2096_v5  ;;  %v2104_v14 = vsel %vm2089_vm12, %v2096_v5, %v2103_v35  ;;  %v2140_v5 = vld [vmem:[#allocation7 + $0x1d0] sm:$0xff] }
 0x743   : > { %v2099_v54 = vadd.f32 %v2097_v43, %v2067_v21  ;;  %v2106_v26 = vadd.f32 %v2104_v14, %v2074_v19  ;;  %v2626_v21 = vadd.f32 1.0, %v2624_v60  ;;  %v2625_v19 = vadd.f32 1.0, %v2623_v8 }
 0x744   : > { %v2981_v40 = vadd.f32 1.0, %v2979_v1  ;;  %v2982_v31 = vmul.f32 %v2980_v33, %v2926_v58 }
 0x745   : > { %v2120_v53 = vpop.permute.xlu1 %2119  ;;  %v2118_v15 = vpop.permute.xlu0 %2117  ;;  %v2628_v62 = vmul.f32 %v2626_v21, %v2572_v56  ;;  %v2627_v61 = vmul.f32 %v2625_v19, %v2571_v46 }
 0x746   : > { %v2122_v17 = vsel %vm2121_vm8, %v2118_v15, %v2120_v53  ;;  %v2983_v45 = vmul.f32 %v2981_v40, %v2927_v27 }
 0x747   : > { %v2124_v20 = vadd.f32 %v2122_v17, %v5422_v18 }
 0x749   : > { %v2135_v32 = vpop.permute.xlu1 %2134  ;;  %v2128_v23 = vpop.permute.xlu0 %2127  ;;  %v5454_v7 = vadd.f32 %v2140_v5, %v2124_v20 }
 0x74a   : > { %v2129_v30 = vsel %vm2121_vm8, %v2120_v53, %v2128_v23  ;;  %v2136_v36 = vsel %vm2121_vm8, %v2128_v23, %v2135_v32 }
 0x74b   : > { %v2131_v11 = vadd.f32 %v2129_v30, %v2099_v54  ;;  %v2138_v10 = vadd.f32 %v2136_v36, %v2106_v26  ;;  %v5457_v57 = vmul.f32 0.70710677, %v5454_v7 }
 0x74d   : > { %v2249_v50 = vpop.permute.xlu0 %2248  ;;  %v2157_v3 = vand.u32 2147483647, %v5457_v57  ;;  %v5460_v16 = vadd.f32 %v2140_v5, %v2131_v11  ;;  %v5462_v52 = vadd.f32 %v2140_v5, %v2138_v10  ;;  %vm2155_vm13 = vcmp.lt.f32.partialorder %v5457_v57, 0.0 }
 0x74e   : > { %v2252_v44 = vmul.f32 %v2249_v50, %v2246_v0  ;;  %v2251_v22 = vmul.f32 %v2249_v50, %v2245_v12  ;;  %v2630_v6 = vmul.f32 %v2628_v62, %v2249_v50  ;;  %v2629_v2 = vmul.f32 %v2627_v61, %v2249_v50 }
 0x74f   : > { %v2985_v25 = vmul.f32 %v2983_v45, %v2249_v50  ;;  %v2984_v35 = vmul.f32 %v2982_v31, %v2249_v50  ;;  %v2158_v43 = vmul.f32 0.3275911, %v2157_v3  ;;  %v5465_v18 = vmul.f32 0.70710677, %v5460_v16 }
 0x750   : > { %2257 = vrot.lane.b32.xlu0 %v2252_v44, %s3827_s8  ;;  %2255 = vrot.lane.b32.xlu1 %v2251_v22, %s3827_s8  ;;  %v5468_v14 = vmul.f32 0.70710677, %v5462_v52  ;;  %v2173_v36 = vsub.f32 0.0, %v2157_v3  ;;  %v2153_v57 = vmul.f32 0.5, %v5454_v7 }
 0x751   : > { %v2159_v51 = vadd.f32 1.0, %v2158_v43  ;;  %v2543_v54 = vand.u32 2147483647, %v5465_v18  ;;  %vm2541_vm14 = vcmp.lt.f32.partialorder %v5465_v18, 0.0 }
 0x752   : > { %v2898_v26 = vand.u32 2147483647, %v5468_v14  ;;  %v2174_v10 = vmul.f32 %v2173_v36, %v2157_v3  ;;  %vm2896_vm4 = vcmp.lt.f32.partialorder %v5468_v14, 0.0 }
 0x753   : > { %3560 = vrcp.f32 %v2159_v51  ;;  %v2544_v55 = vmul.f32 0.3275911, %v2543_v54  ;;  %v2559_v1 = vsub.f32 0.0, %v2543_v54 }
 0x754   : > { %2635 = vrot.lane.b32.xlu0 %v2630_v6, %s3827_s8  ;;  %2633 = vrot.lane.b32.xlu1 %v2629_v2, %s3827_s8  ;;  %v2899_v48 = vmul.f32 0.3275911, %v2898_v26  ;;  %v2175_v19 = vmul.f32 1.442695, %v2174_v10  ;;  %v2914_v28 = vsub.f32 0.0, %v2898_v26  ;;  %v5490_v10 = vld [vmem:[#allocation8 + $0x8] sm:$0xff] }
 0x755   : > { %v2545_v38 = vadd.f32 1.0, %v2544_v55  ;;  %v2560_v56 = vmul.f32 %v2559_v1, %v2543_v54  ;;  %v5498_v1 = vld [vmem:[#allocation8 + $0x88] sm:$0xff] }
 0x756   : > { %v2900_v63 = vadd.f32 1.0, %v2899_v48  ;;  %v2915_v46 = vmul.f32 %v2914_v28, %v2898_v26  ;;  %v2156_v26 = vsel %vm2155_vm13, -1.0, %v3862_v59  ;;  %v5500_v28 = vld [vmem:[#allocation8 + $0x10] sm:$0xff] }
 0x757   : > { %3562 = vrcp.f32 %v2545_v38  ;;  %v2561_v33 = vmul.f32 1.442695, %v2560_v56 }
 0x758   : > { %2990 = vrot.lane.b32.xlu0 %v2985_v25, %s3827_s8  ;;  %2988 = vrot.lane.b32.xlu1 %v2984_v35, %s3827_s8  ;;  %3564 = vrcp.f32 %v2900_v63  ;;  %v2916_v6 = vmul.f32 1.442695, %v2915_v46  ;;  %s6273_s8 = smul.u32 24, %s4045_s25 }
 0x759   : > { %3566 = vpow2.f32 %v2175_v19 }
 0x75a   : > { %3568 = vpow2.f32 %v2561_v33  ;;  %s5890_s10 = scalar_lea.vmem [#allocation10], %s6273_s8 }
 0x75b   : > { %3570 = vpow2.f32 %v2916_v6  ;;  %s3263_s21 = sshll.u32 %s5890_s10, 4  ;;  %s3264_s21 = int_to_ptr.vmem [resolvable:$true] %s3263_s21 }
 0x75c   : > { %s3712_s24 = scalar_lea.vmem %s3264_s21, 384  ;;  %p3719_p13 = scmp.lt.s32.totalorder %s3264_s21, %s3717_s23 }
 0x75d   : > { %p3713_p6 = scmp.ne.s32.totalorder %s3264_s21, %s3712_s24  ;;  %p3720_p5 = scmp.lt.s32.totalorder %s3718_s19, %s3712_s24 }
 0x75f   : > { %p3714_p7 = pnand %p3713_p6, %p6274_p12  ;;  %p3721_p4 = por %p3720_p5, %p3719_p13 }
 0x760   : > { %v3561_v34 = vpop.eup %3560 }
 0x761   : > { %v2161_v37 = vmul.f32 %v3561_v34, %v2159_v51  ;;  %p3715_p9 = pneg %p3714_p7 }
 0x763   : > { %v2162_v53 = vsub.f32 2.0, %v2161_v37  ;;  %p3722_p8 = pnand %p3721_p4, %p3715_p9 }
 0x764   : > { %v3563_v15 = vpop.eup %3562 }
 0x765   : > { %v3565_v47 = vpop.eup %3564  ;;  %v2163_v24 = vmul.f32 %v3561_v34, %v2162_v53  ;;  %v2547_v4 = vmul.f32 %v3563_v15, %v2545_v38  ;;  %v2264_v34 = vlaneseq }
 0x766   : > { %v2902_v39 = vmul.f32 %v3565_v47, %v2900_v63  ;;  %v3567_v20 = vpop.eup %3566 }
 0x767   : > { %v2164_v60 = vmul.f32 1.0614054, %v2163_v24  ;;  %v2548_v8 = vsub.f32 2.0, %v2547_v4  ;;  %v3569_v54 = vpop.eup %3568  ;;  %v2265_v4 = vshrl.u32 %v2264_v34, 7 }
 0x768   : > { %v2903_v9 = vsub.f32 2.0, %v2902_v39  ;;  %v3571_v55 = vpop.eup %3570 }
 0x769   : > { %v2165_v49 = vadd.f32 -1.4531521, %v2164_v60  ;;  %v2549_v32 = vmul.f32 %v3563_v15, %v2548_v8  ;;  %v2144_v60 = vld [vmem:[#allocation7 + $0x1e0] sm:$0xff]  ;;  %v5515_v33 = vsub.s32 6, %v2265_v4  ;;  %v5517_v6 = vsub.s32 7, %v2265_v4 }
 0x76a   : > { %v2904_v23 = vmul.f32 %v3565_v47, %v2903_v9  ;;  %v2542_v47 = vsel %vm2541_vm14, -1.0, %v3862_v59 }
 0x76b   : > { %v2166_v42 = vmul.f32 %v2165_v49, %v2163_v24  ;;  %v2550_v13 = vmul.f32 1.0614054, %v2549_v32 }
 0x76c   : > { %v2905_v30 = vmul.f32 1.0614054, %v2904_v23 }
 0x76d   : > { %v2167_v41 = vadd.f32 1.4214138, %v2166_v42  ;;  %v2551_v29 = vadd.f32 -1.4531521, %v2550_v13 }
 0x76e   : > { %v2906_v11 = vadd.f32 -1.4531521, %v2905_v30  ;;  %v5484_v30 = vsub.s32 2, %v2265_v4 }
 0x76f   : > { %v2168_v0 = vmul.f32 %v2167_v41, %v2163_v24  ;;  %v2552_v12 = vmul.f32 %v2551_v29, %v2549_v32  ;;  %v2539_v41 = vmul.f32 0.5, %v5460_v16  ;;  %v2894_v29 = vmul.f32 0.5, %v5462_v52 }
 0x770   : > { %v2907_v21 = vmul.f32 %v2906_v11, %v2904_v23  ;;  %v5488_v11 = vld [vmem:[#allocation8] sm:$0xff]  ;;  %v5504_v16 = vsub.s32 4, %v2265_v4  ;;  %v5506_v52 = vsub.s32 5, %v2265_v4 }
 0x771   : > { %v2169_v50 = vadd.f32 -0.28449672, %v2168_v0  ;;  %v2553_v44 = vadd.f32 1.4214138, %v2552_v12  ;;  %v5492_v0 = vsub.s32 3, %v2265_v4  ;;  %v5494_v12 = vld [vmem:[#allocation8 + $0x80] sm:$0xff] }
 0x772   : > { %v2908_v22 = vadd.f32 1.4214138, %v2907_v21 }
 0x773   : > { %v2170_v62 = vmul.f32 %v2169_v50, %v2163_v24  ;;  %v2554_v61 = vmul.f32 %v2553_v44, %v2549_v32  ;;  %v5502_v50 = vld [vmem:[#allocation8 + $0x18] sm:$0xff] }
 0x774   : > { %v2909_v40 = vmul.f32 %v2908_v22, %v2904_v23 }
 0x775   : > { %v2171_v2 = vadd.f32 0.2548296, %v2170_v62  ;;  %v2555_v27 = vadd.f32 -0.28449672, %v2554_v61  ;;  %v5511_v61 = vld [vmem:[#allocation8 + $0x20] sm:$0xff] }
 0x776   : > { %v2910_v58 = vadd.f32 -0.28449672, %v2909_v40  ;;  %v5513_v40 = vld [vmem:[#allocation8 + $0x28] sm:$0xff] }
 0x777   : > { %v2172_v17 = vmul.f32 %v2171_v2, %v2163_v24  ;;  %v2556_v45 = vmul.f32 %v2555_v27, %v2549_v32  ;;  %v2897_v24 = vsel %vm2896_vm4, -1.0, %v3862_v59  ;;  %v5520_v27 = vld [vmem:[#allocation8 + $0x30] sm:$0xff] }
 0x778   : > { %v2911_v31 = vmul.f32 %v2910_v58, %v2904_v23 }
 0x779   : > { %v2177_v25 = vmul.f32 %v3567_v20, %v2172_v17  ;;  %v2557_v35 = vadd.f32 0.2548296, %v2556_v45 }
 0x77a   : > { %v2912_v5 = vadd.f32 0.2548296, %v2911_v31 }
 0x77b   : > { %v2178_v3 = vsub.f32 1.0, %v2177_v25  ;;  %v2558_v43 = vmul.f32 %v2557_v35, %v2549_v32  ;;  %v5479_v32 = vsub.s32 0, %v2265_v4  ;;  %v5526_v35 = vld [vmem:[#allocation8 + $0x38] sm:$0xff] }
 0x77c   : > { %v2913_v51 = vmul.f32 %v2912_v5, %v2904_v23  ;;  %v5481_v23 = vsub.s32 1, %v2265_v4  ;;  %v5528_v5 = vld [vmem:[#allocation8 + $0x40] sm:$0xff]  ;;  %v5546_v4 = vld [vmem:[#allocation8 + $0x68] sm:$0xff] }
 0x77d   : > { %v2179_v48 = vmul.f32 %v2178_v3, %v2156_v26  ;;  %v2563_v38 = vmul.f32 %v3569_v54, %v2558_v43  ;;  %v5532_v26 = vld [vmem:[#allocation8 + $0x48] sm:$0xff] }
 0x77e   : > { %v2918_v63 = vmul.f32 %v3571_v55, %v2913_v51  ;;  %v5534_v55 = vld [vmem:[#allocation8 + $0x50] sm:$0xff] }
 0x77f   : > { %v2180_v37 = vadd.f32 1.0, %v2179_v48  ;;  %v2564_v53 = vsub.f32 1.0, %v2563_v38  ;;  %v5536_v48 = vld [vmem:[#allocation8 + $0x58] sm:$0xff] }
 0x780   : > { %v2919_v15 = vsub.f32 1.0, %v2918_v63 }
 0x781   : > { %v2181_v39 = vmul.f32 %v2180_v37, %v2153_v57  ;;  %v2565_v8 = vmul.f32 %v2564_v53, %v2542_v47 }
 0x782   : > { %v2920_v9 = vmul.f32 %v2919_v15, %v2897_v24  ;;  %v5544_v24 = vld [vmem:[#allocation8 + $0x60] sm:$0xff] }
 0x783   : > { %v2182_v14 = vmul.f32 %v2181_v39, %v2144_v60  ;;  %v2566_v13 = vadd.f32 1.0, %v2565_v8  ;;  %v5548_v39 = vld [vmem:[#allocation8 + $0x70] sm:$0xff] }
 0x784   : > { %v2921_v7 = vadd.f32 1.0, %v2920_v9 }
 0x785   : > { %v2567_v44 = vmul.f32 %v2566_v13, %v2539_v41 }
 0x786   : > { %v2922_v22 = vmul.f32 %v2921_v7, %v2894_v29  ;;  %v5555_v7 = vld [vmem:[#allocation8 + $0x78] sm:$0xff] }
 0x787   : > { %v2568_v51 = vmul.f32 %v2567_v44, %v2144_v60 }
 0x788   : > { %v2923_v54 = vmul.f32 %v2922_v22, %v2144_v60 }
 0x7c2   : > { %v2258_v49 = vpop.permute.xlu0 %2257  ;;  %v2256_v18 = vpop.permute.xlu1 %2255 }
 0x7c3   : > { %v2259_v42 = vsel %vm789_vm15, %v2256_v18, %v2258_v49 }
 0x7c4   : > { %v2261_v36 = vadd.f32 %v2259_v42, %v2182_v14 }
 0x7c6   : > { %v2267_v21 = vrot.slane %v2261_v36, %v5479_v32  ;;  %v2278_v19 = vrot.slane %v2261_v36, %v5481_v23  ;;  %v2289_v62 = vrot.slane %v2261_v36, %v5484_v30  ;;  %v2300_v2 = vrot.slane %v2261_v36, %v5492_v0  ;;  %v2636_v20 = vpop.permute.xlu0 %2635  ;;  %v2634_v25 = vpop.permute.xlu1 %2633 }
 0x7c7   : > { %v2311_v3 = vrot.slane %v2261_v36, %v5504_v16  ;;  %v2322_v43 = vrot.slane %v2261_v36, %v5506_v52  ;;  %v2333_v15 = vrot.slane %v2261_v36, %v5515_v33  ;;  %v2344_v57 = vrot.slane %v2261_v36, %v5517_v6 }
 0x7c8   : > { %v2268_v56 = vmul.f32 %v2267_v21, %v5488_v11  ;;  %v2269_v46 = vmul.f32 %v2267_v21, %v5490_v10  ;;  %v2279_v45 = vmul.f32 %v2278_v19, %v5500_v28  ;;  %v2280_v31 = vmul.f32 %v2278_v19, %v5502_v50 }
 0x7c9   : > { %v2290_v34 = vmul.f32 %v2289_v62, %v5511_v61  ;;  %v2291_v37 = vmul.f32 %v2289_v62, %v5513_v40  ;;  %v2301_v53 = vmul.f32 %v2300_v2, %v5520_v27  ;;  %v2637_v47 = vsel %vm789_vm15, %v2634_v25, %v2636_v20 }
 0x7ca   : > { %v2270_v58 = vadd.f32 %v2268_v56, %v5494_v12  ;;  %v2271_v17 = vadd.f32 %v2269_v46, %v5498_v1  ;;  %v2302_v9 = vmul.f32 %v2300_v2, %v5526_v35  ;;  %v2639_v49 = vadd.f32 %v2637_v47, %v2568_v51  ;;  %v2991_v19 = vpop.permute.xlu0 %2990  ;;  %v2989_v44 = vpop.permute.xlu1 %2988 }
 0x7cb   : > { %v2312_v18 = vmul.f32 %v2311_v3, %v5528_v5  ;;  %v2313_v14 = vmul.f32 %v2311_v3, %v5532_v26  ;;  %v2323_v42 = vmul.f32 %v2322_v43, %v5534_v55  ;;  %v2324_v13 = vmul.f32 %v2322_v43, %v5536_v48 }
 0x7cc   : > { %v2281_v38 = vadd.f32 %v2279_v45, %v2270_v58  ;;  %v2282_v63 = vadd.f32 %v2280_v31, %v2271_v17  ;;  %v2645_v29 = vrot.slane %v2639_v49, %v5479_v32  ;;  %v2655_v21 = vrot.slane %v2639_v49, %v5481_v23 }
 0x7cd   : > { %v2334_v22 = vmul.f32 %v2333_v15, %v5544_v24  ;;  %v2335_v56 = vmul.f32 %v2333_v15, %v5546_v4  ;;  %v2345_v46 = vmul.f32 %v2344_v57, %v5548_v39  ;;  %v2665_v62 = vrot.slane %v2639_v49, %v5484_v30 }
 0x7ce   : > { %v2292_v60 = vadd.f32 %v2290_v34, %v2281_v38  ;;  %v2293_v8 = vadd.f32 %v2291_v37, %v2282_v63  ;;  %v2646_v17 = vmul.f32 %v2645_v29, %v5488_v11  ;;  %v2647_v45 = vmul.f32 %v2645_v29, %v5490_v10 }
 0x7cf   : > { %v2346_v31 = vmul.f32 %v2344_v57, %v5555_v7  ;;  %v2656_v20 = vmul.f32 %v2655_v21, %v5500_v28  ;;  %v2657_v25 = vmul.f32 %v2655_v21, %v5502_v50  ;;  %v2992_v3 = vsel %vm789_vm15, %v2989_v44, %v2991_v19 }
 0x7d0   : > { %v2303_v36 = vadd.f32 %v2301_v53, %v2292_v60  ;;  %v2304_v41 = vadd.f32 %v2302_v9, %v2293_v8  ;;  %v2648_v38 = vadd.f32 %v2646_v17, %v5494_v12  ;;  %v2649_v63 = vadd.f32 %v2647_v45, %v5498_v1 }
 0x7d1   : > { %v2666_v34 = vmul.f32 %v2665_v62, %v5511_v61  ;;  %v2667_v37 = vmul.f32 %v2665_v62, %v5513_v40  ;;  %v2675_v53 = vrot.slane %v2639_v49, %v5492_v0  ;;  %v2685_v15 = vrot.slane %v2639_v49, %v5504_v16 }
 0x7d2   : > { %v2314_v2 = vadd.f32 %v2312_v18, %v2303_v36  ;;  %v2315_v58 = vadd.f32 %v2313_v14, %v2304_v41  ;;  %v2658_v60 = vadd.f32 %v2656_v20, %v2648_v38  ;;  %v2659_v8 = vadd.f32 %v2657_v25, %v2649_v63 }
 0x7d3   : > { %v2695_v9 = vrot.slane %v2639_v49, %v5506_v52  ;;  %v5576_v18 = vadd.f32 %v2992_v3, %v2923_v54  ;;  %v2676_v41 = vmul.f32 %v2675_v53, %v5520_v27  ;;  %v2677_v29 = vmul.f32 %v2675_v53, %v5526_v35 }
 0x7d4   : > { %v2325_v43 = vadd.f32 %v2323_v42, %v2314_v2  ;;  %v2326_v51 = vadd.f32 %v2324_v13, %v2315_v58  ;;  %v2668_v13 = vadd.f32 %v2666_v34, %v2658_v60  ;;  %v2669_v36 = vadd.f32 %v2667_v37, %v2659_v8 }
 0x7d5   : > { %v2705_v21 = vrot.slane %v2639_v49, %v5515_v33  ;;  %v2686_v54 = vmul.f32 %v2685_v15, %v5528_v5  ;;  %v3000_v62 = vrot.slane %v5576_v18, %v5479_v32  ;;  %v2696_v17 = vmul.f32 %v2695_v9, %v5534_v55 }
 0x7d6   : > { %v2336_v57 = vadd.f32 %v2334_v22, %v2325_v43  ;;  %v2337_v47 = vadd.f32 %v2335_v56, %v2326_v51  ;;  %v2678_v22 = vadd.f32 %v2676_v41, %v2668_v13  ;;  %v2679_v56 = vadd.f32 %v2677_v29, %v2669_v36 }
 0x7d7   : > { %v2715_v45 = vrot.slane %v2639_v49, %v5517_v6  ;;  %v2697_v25 = vmul.f32 %v2695_v9, %v5536_v48  ;;  %v2706_v3 = vmul.f32 %v2705_v21, %v5544_v24  ;;  %v2707_v38 = vmul.f32 %v2705_v21, %v5546_v4 }
 0x7d8   : > { %v5578_v14 = vadd.f32 %v2345_v46, %v2336_v57  ;;  %v5580_v42 = vadd.f32 %v2346_v31, %v2337_v47  ;;  %v2687_v46 = vmul.f32 %v2685_v15, %v5532_v26  ;;  %v2688_v31 = vadd.f32 %v2686_v54, %v2678_v22 }
 0x7d9   : > { %v3010_v63 = vrot.slane %v5576_v18, %v5481_v23  ;;  %v3001_v53 = vmul.f32 %v3000_v62, %v5488_v11  ;;  %v3002_v49 = vmul.f32 %v3000_v62, %v5490_v10  ;;  %v2716_v47 = vmul.f32 %v2715_v45, %v5548_v39 }
 0x7da   : > { %v5586_v19 = vmul.f32 0.70710677, %v5578_v14  ;;  %v5589_v44 = vmul.f32 0.70710677, %v5580_v42  ;;  %v2689_v20 = vadd.f32 %v2687_v46, %v2679_v56  ;;  %v2698_v34 = vadd.f32 %v2696_v17, %v2688_v31 }
 0x7db   : > { %v2717_v9 = vmul.f32 %v2715_v45, %v5555_v7  ;;  %v3003_v13 = vadd.f32 %v3001_v53, %v5494_v12  ;;  %v3004_v36 = vadd.f32 %v3002_v49, %v5498_v1  ;;  %v3011_v41 = vmul.f32 %v3010_v63, %v5500_v28 }
 0x7dc   : > { %v5596_v2 = vand.u32 2147483647, %v5586_v19  ;;  %v5599_v58 = vand.u32 2147483647, %v5589_v44  ;;  %v2699_v37 = vadd.f32 %v2697_v25, %v2689_v20  ;;  %v2708_v60 = vadd.f32 %v2706_v3, %v2698_v34 }
 0x7dd   : > { %v3012_v10 = vmul.f32 %v3010_v63, %v5502_v50  ;;  %v3013_v21 = vadd.f32 %v3011_v41, %v3003_v13  ;;  %v3020_v54 = vrot.slane %v5576_v18, %v5484_v30  ;;  %v3030_v22 = vrot.slane %v5576_v18, %v5492_v0 }
 0x7de   : > { %v2359_v43 = vmul.f32 0.3275911, %v5596_v2  ;;  %v2360_v51 = vmul.f32 0.3275911, %v5599_v58  ;;  %v2709_v8 = vadd.f32 %v2707_v38, %v2699_v37  ;;  %v5617_v29 = vadd.f32 %v2716_v47, %v2708_v60 }
 0x7df   : > { %v3014_v28 = vadd.f32 %v3012_v10, %v3004_v36  ;;  %v3021_v56 = vmul.f32 %v3020_v54, %v5511_v61  ;;  %v3022_v50 = vmul.f32 %v3020_v54, %v5513_v40  ;;  %v3031_v45 = vmul.f32 %v3030_v22, %v5520_v27 }
 0x7e0   : > { %v2361_v15 = vadd.f32 1.0, %v2359_v43  ;;  %v2362_v57 = vadd.f32 1.0, %v2360_v51  ;;  %v5619_v11 = vadd.f32 %v2717_v9, %v2709_v8  ;;  %v5627_v12 = vmul.f32 0.70710677, %v5617_v29 }
 0x7e1   : > { %v3023_v17 = vadd.f32 %v3021_v56, %v3013_v21  ;;  %v3024_v20 = vadd.f32 %v3022_v50, %v3014_v28  ;;  %v3032_v25 = vmul.f32 %v3030_v22, %v5526_v35  ;;  %v3040_v61 = vrot.slane %v5576_v18, %v5504_v16 }
 0x7e2   : > { %3572 = vrcp.f32 %v2361_v15  ;;  %v5630_v1 = vmul.f32 0.70710677, %v5619_v11  ;;  %v5634_v46 = vand.u32 2147483647, %v5627_v12  ;;  %v3050_v40 = vrot.slane %v5576_v18, %v5506_v52 }
 0x7e3   : > { %3574 = vrcp.f32 %v2362_v57  ;;  %v3033_v43 = vadd.f32 %v3031_v45, %v3023_v17  ;;  %v3034_v38 = vadd.f32 %v3032_v25, %v3024_v20  ;;  %v3041_v34 = vmul.f32 %v3040_v61, %v5528_v5 }
 0x7e4   : > { %v5638_v62 = vand.u32 2147483647, %v5630_v1  ;;  %v2730_v31 = vmul.f32 0.3275911, %v5634_v46  ;;  %v3042_v27 = vmul.f32 %v3040_v61, %v5532_v26  ;;  %v2389_v37 = vsub.f32 0.0, %v5596_v2 }
 0x7e5   : > { %v3051_v35 = vmul.f32 %v3050_v40, %v5534_v55  ;;  %v3043_v53 = vadd.f32 %v3041_v34, %v3033_v43  ;;  %v3052_v47 = vmul.f32 %v3050_v40, %v5536_v48  ;;  %v3060_v8 = vrot.slane %v5576_v18, %v5515_v33 }
 0x7e6   : > { %v2731_v3 = vmul.f32 0.3275911, %v5638_v62  ;;  %v2732_v51 = vadd.f32 1.0, %v2730_v31  ;;  %v3044_v49 = vadd.f32 %v3042_v27, %v3034_v38  ;;  %v3070_v9 = vrot.slane %v5576_v18, %v5517_v6 }
 0x7e7   : > { %v2390_v26 = vsub.f32 0.0, %v5599_v58  ;;  %v3053_v36 = vadd.f32 %v3051_v35, %v3043_v53  ;;  %v3061_v55 = vmul.f32 %v3060_v8, %v5544_v24  ;;  %v3062_v21 = vmul.f32 %v3060_v8, %v5546_v4 }
 0x7e8   : > { %v2733_v63 = vadd.f32 1.0, %v2731_v3  ;;  %3576 = vrcp.f32 %v2732_v51  ;;  %v3054_v41 = vadd.f32 %v3052_v47, %v3044_v49  ;;  %v2391_v48 = vmul.f32 %v2389_v37, %v5596_v2 }
 0x7e9   : > { %v3071_v22 = vmul.f32 %v3070_v9, %v5548_v39  ;;  %v3063_v56 = vadd.f32 %v3061_v55, %v3053_v36  ;;  %v3072_v18 = vmul.f32 %v3070_v9, %v5555_v7  ;;  %v2392_v17 = vmul.f32 %v2390_v26, %v5599_v58 }
 0x7ea   : > { %3578 = vrcp.f32 %v2733_v63  ;;  %v3064_v50 = vadd.f32 %v3062_v21, %v3054_v41  ;;  %v2393_v4 = vmul.f32 1.442695, %v2391_v48  ;;  %v2760_v43 = vsub.f32 0.0, %v5634_v46 }
 0x7eb   : > { %v5664_v31 = vadd.f32 %v3071_v22, %v3063_v56  ;;  %v2395_v25 = vmul.f32 1.442695, %v2392_v17  ;;  %v2761_v21 = vsub.f32 0.0, %v5638_v62  ;;  %vm2353_vm15 = vcmp.lt.f32.partialorder %v5586_v19, 0.0 }
 0x7ec   : > { %3580 = vpow2.f32 %v2393_v4  ;;  %v2762_v9 = vmul.f32 %v2760_v43, %v5634_v46  ;;  %vm2354_vm5 = vcmp.lt.f32.partialorder %v5589_v44, 0.0  ;;  %vm2724_vm9 = vcmp.lt.f32.partialorder %v5627_v12, 0.0 }
 0x7ed   : > { %v5669_v2 = vmul.f32 0.70710677, %v5664_v31  ;;  %3582 = vpow2.f32 %v2395_v25  ;;  %v2763_v4 = vmul.f32 %v2761_v21, %v5638_v62  ;;  %v2355_v62 = vsel %vm2353_vm15, -1.0, %v3862_v59 }
 0x7ee   : > { %v2764_v48 = vmul.f32 1.442695, %v2762_v9  ;;  %vm2725_vm10 = vcmp.lt.f32.partialorder %v5630_v1, 0.0  ;;  %v5782_v1 = vld [vmem:[#allocation7 + $0x238] sm:$0xff] }
 0x7ef   : > { %v3573_v60 = vpop.eup %3572  ;;  %v5676_v58 = vand.u32 2147483647, %v5669_v2  ;;  %vm3079_vm11 = vcmp.lt.f32.partialorder %v5669_v2, 0.0 }
 0x7f0   : > { %v3575_v5 = vpop.eup %3574  ;;  %v2365_v13 = vmul.f32 %v3573_v60, %v2361_v15 }
 0x7f1   : > { %v2366_v10 = vmul.f32 %v3575_v5, %v2362_v57  ;;  %v5666_v57 = vadd.f32 %v3072_v18, %v3064_v50  ;;  %v3085_v35 = vmul.f32 0.3275911, %v5676_v58 }
 0x7f2   : > { %v2367_v54 = vsub.f32 2.0, %v2365_v13 }
 0x7f3   : > { %v2368_v28 = vsub.f32 2.0, %v2366_v10  ;;  %v5672_v3 = vmul.f32 0.70710677, %v5666_v57 }
 0x7f4   : > { %v2369_v15 = vmul.f32 %v3573_v60, %v2367_v54 }
 0x7f5   : > { %v2370_v45 = vmul.f32 %v3575_v5, %v2368_v28  ;;  %v3577_v61 = vpop.eup %3576  ;;  %v5679_v40 = vand.u32 2147483647, %v5672_v3  ;;  %v3087_v5 = vadd.f32 1.0, %v3085_v35  ;;  %vm3080_vm12 = vcmp.lt.f32.partialorder %v5672_v3, 0.0 }
 0x7f6   : > { %v2371_v24 = vmul.f32 1.0614054, %v2369_v15  ;;  %v2736_v37 = vmul.f32 %v3577_v61, %v2732_v51 }
 0x7f7   : > { %v2372_v20 = vmul.f32 1.0614054, %v2370_v45  ;;  %v3579_v34 = vpop.eup %3578  ;;  %v3086_v47 = vmul.f32 0.3275911, %v5679_v40  ;;  %3584 = vrcp.f32 %v3087_v5 }
 0x7f8   : > { %v2373_v39 = vadd.f32 -1.4531521, %v2371_v24  ;;  %v2737_v49 = vmul.f32 %v3579_v34, %v2733_v63  ;;  %v2738_v8 = vsub.f32 2.0, %v2736_v37  ;;  %v2766_v37 = vmul.f32 1.442695, %v2763_v4 }
 0x7f9   : > { %v2374_v7 = vadd.f32 -1.4531521, %v2372_v20  ;;  %v3088_v36 = vadd.f32 1.0, %v3086_v47  ;;  %v3581_v25 = vpop.eup %3580 }
 0x7fa   : > { %v2375_v38 = vmul.f32 %v2373_v39, %v2369_v15  ;;  %v2739_v26 = vsub.f32 2.0, %v2737_v49  ;;  %v2740_v10 = vmul.f32 %v3577_v61, %v2738_v8  ;;  %v3115_v49 = vsub.f32 0.0, %v5676_v58 }
 0x7fb   : > { %v2376_v27 = vmul.f32 %v2374_v7, %v2370_v45  ;;  %3586 = vrcp.f32 %v3088_v36 }
 0x7fc   : > { %v2377_v53 = vadd.f32 1.4214138, %v2375_v38  ;;  %v5684_v51 = vmul.f32 %v3579_v34, %v2739_v26  ;;  %v2742_v54 = vmul.f32 1.0614054, %v2740_v10  ;;  %3588 = vpow2.f32 %v2764_v48  ;;  %v3583_v34 = vpop.eup %3582 }
 0x7fd   : > { %v2378_v60 = vadd.f32 1.4214138, %v2376_v27  ;;  %3590 = vpow2.f32 %v2766_v37  ;;  %v3116_v26 = vsub.f32 0.0, %v5679_v40 }
 0x7fe   : > { %v2379_v13 = vmul.f32 %v2377_v53, %v2369_v15  ;;  %v2743_v28 = vmul.f32 1.0614054, %v5684_v51  ;;  %v2744_v56 = vadd.f32 -1.4531521, %v2742_v54 }
 0x7ff   : > { %v2380_v41 = vmul.f32 %v2378_v60, %v2370_v45 }
 0x800   : > { %v2381_v55 = vadd.f32 -0.28449672, %v2379_v13  ;;  %v2745_v18 = vadd.f32 -1.4531521, %v2743_v28  ;;  %v2746_v24 = vmul.f32 %v2744_v56, %v2740_v10  ;;  %v2356_v56 = vsel %vm2354_vm5, -1.0, %v3862_v59 }
 0x801   : > { %v2382_v63 = vadd.f32 -0.28449672, %v2380_v41  ;;  %v2349_v41 = vmul.f32 0.5, %v5578_v14 }
 0x802   : > { %v2383_v22 = vmul.f32 %v2381_v55, %v2369_v15  ;;  %v2747_v39 = vmul.f32 %v2745_v18, %v5684_v51  ;;  %v2748_v43 = vadd.f32 1.4214138, %v2746_v24  ;;  %v5709_v18 = vld [vmem:[#allocation7 + $0x1f8] sm:$0xff] }
 0x803   : > { %v2384_v46 = vmul.f32 %v2382_v63, %v2370_v45  ;;  %v3117_v63 = vmul.f32 %v3115_v49, %v5676_v58  ;;  %v3118_v58 = vmul.f32 %v3116_v26, %v5679_v40  ;;  %v5720_v40 = vld [vmem:[#allocation7 + $0x200] sm:$0xff] }
 0x804   : > { %v2385_v50 = vadd.f32 0.2548296, %v2383_v22  ;;  %v2749_v38 = vadd.f32 1.4214138, %v2747_v39  ;;  %v2750_v27 = vmul.f32 %v2748_v43, %v2740_v10  ;;  %v3585_v60 = vpop.eup %3584  ;;  %v2726_v43 = vsel %vm2724_vm9, -1.0, %v3862_v59 }
 0x805   : > { %v2386_v17 = vadd.f32 0.2548296, %v2384_v46  ;;  %v3091_v13 = vmul.f32 %v3585_v60, %v3087_v5  ;;  %v2350_v46 = vmul.f32 0.5, %v5580_v42  ;;  %v3119_v42 = vmul.f32 1.442695, %v3117_v63 }
 0x806   : > { %v2387_v20 = vmul.f32 %v2385_v50, %v2369_v15  ;;  %v2751_v53 = vmul.f32 %v2749_v38, %v5684_v51  ;;  %v2752_v47 = vadd.f32 -0.28449672, %v2750_v27 }
 0x807   : > { %v2388_v7 = vmul.f32 %v2386_v17, %v2370_v45  ;;  %v3093_v28 = vsub.f32 2.0, %v3091_v13  ;;  %3592 = vpow2.f32 %v3119_v42 }
 0x808   : > { %v2397_v61 = vmul.f32 %v3581_v25, %v2387_v20  ;;  %v2753_v8 = vadd.f32 -0.28449672, %v2751_v53  ;;  %v3587_v19 = vpop.eup %3586  ;;  %v2754_v9 = vmul.f32 %v2752_v47, %v2740_v10  ;;  %v5729_v53 = vld [vmem:[#allocation7 + $0x208] sm:$0xff]  ;;  %v5735_v47 = vld [vmem:[#allocation7 + $0x210] sm:$0xff] }
 0x809   : > { %v2398_v15 = vmul.f32 %v3583_v34, %v2388_v7  ;;  %v3092_v21 = vmul.f32 %v3587_v19, %v3088_v36  ;;  %v5706_v36 = vmul.f32 %v3585_v60, %v3093_v28  ;;  %v3589_v17 = vpop.eup %3588  ;;  %v5718_v7 = vld [vmem:[#allocation7 + $0x1f0] sm:$0xff] }
 0x80a   : > { %v2399_v35 = vsub.f32 1.0, %v2397_v61  ;;  %v2755_v48 = vmul.f32 %v2753_v8, %v5684_v51  ;;  %v2756_v22 = vadd.f32 0.2548296, %v2754_v9 }
 0x80b   : > { %v2400_v54 = vsub.f32 1.0, %v2398_v15  ;;  %v3094_v50 = vsub.f32 2.0, %v3092_v21 }
 0x80c   : > { %v2401_v45 = vmul.f32 %v2399_v35, %v2355_v62  ;;  %v2758_v14 = vmul.f32 %v2756_v22, %v2740_v10  ;;  %v2757_v39 = vadd.f32 0.2548296, %v2755_v48  ;;  %v3097_v10 = vmul.f32 1.0614054, %v5706_v36 }
 0x80d   : > { %v5711_v24 = vmul.f32 %v3587_v19, %v3094_v50  ;;  %v2402_v20 = vmul.f32 %v2400_v54, %v2356_v56  ;;  %v3121_v35 = vmul.f32 1.442695, %v3118_v58  ;;  %v5746_v54 = vld [vmem:[#allocation7 + $0x218] sm:$0xff] }
 0x80e   : > { %v2403_v55 = vadd.f32 1.0, %v2401_v45  ;;  %v2768_v25 = vmul.f32 %v3589_v17, %v2758_v14  ;;  %v3099_v37 = vadd.f32 -1.4531521, %v3097_v10  ;;  %v2759_v45 = vmul.f32 %v2757_v39, %v5684_v51  ;;  %v3591_v51 = vpop.eup %3590 }
 0x80f   : > { %v3098_v61 = vmul.f32 1.0614054, %v5711_v24  ;;  %v2404_v60 = vadd.f32 1.0, %v2402_v20  ;;  %3594 = vpow2.f32 %v3121_v35  ;;  %v5760_v20 = vmul.f32 0.5, %v5619_v11 }
 0x810   : > { %v5703_v5 = vmul.f32 %v2403_v55, %v2349_v41  ;;  %v2770_v27 = vsub.f32 1.0, %v2768_v25  ;;  %v3101_v19 = vmul.f32 %v3099_v37, %v5706_v36  ;;  %v2720_v55 = vmul.f32 0.5, %v5617_v29  ;;  %v5753_v29 = vld [vmem:[#allocation7 + $0x220] sm:$0xff] }
 0x811   : > { %v3100_v62 = vadd.f32 -1.4531521, %v3098_v61  ;;  %v5750_v50 = vmul.f32 %v2404_v60, %v2350_v46  ;;  %v2769_v14 = vmul.f32 %v3591_v51, %v2759_v45  ;;  %v5762_v46 = vld [vmem:[#allocation7 + $0x228] sm:$0xff] }
 0x812   : > { %v2412_v44 = vrot.slane %v5703_v5, %v5479_v32  ;;  %v2420_v4 = vrot.slane %v5703_v5, %v5481_v23  ;;  %v2428_v34 = vrot.slane %v5703_v5, %v5484_v30  ;;  %v2436_v49 = vrot.slane %v5703_v5, %v5492_v0 }
 0x813   : > { %v2772_v8 = vmul.f32 %v2770_v27, %v2726_v43  ;;  %v3102_v9 = vmul.f32 %v3100_v62, %v5711_v24  ;;  %v2444_v41 = vrot.slane %v5703_v5, %v5504_v16  ;;  %v3103_v21 = vadd.f32 1.4214138, %v3101_v19 }
 0x814   : > { %v2413_v38 = vmul.f32 %v2412_v44, %v5709_v18  ;;  %v2421_v15 = vmul.f32 %v2420_v4, %v5720_v40  ;;  %v2429_v26 = vmul.f32 %v2428_v34, %v5729_v53  ;;  %v2437_v63 = vmul.f32 %v2436_v49, %v5735_v47  ;;  %v5769_v34 = vld [vmem:[#allocation7 + $0x230] sm:$0xff] }
 0x815   : > { %v2774_v48 = vadd.f32 1.0, %v2772_v8  ;;  %v3104_v22 = vadd.f32 1.4214138, %v3102_v9  ;;  %v2452_v56 = vrot.slane %v5703_v5, %v5506_v52  ;;  %v3105_v58 = vmul.f32 %v3103_v21, %v5706_v36  ;;  %v5786_v9 = vld [vmem:[#allocation7 + $0x240] sm:$0xff] }
 0x816   : > { %v2414_v12 = vadd.f32 %v2413_v38, %v5718_v7  ;;  %v2445_v44 = vmul.f32 %v2444_v41, %v5746_v54  ;;  %v2460_v4 = vrot.slane %v5703_v5, %v5515_v33  ;;  %v2468_v25 = vrot.slane %v5703_v5, %v5517_v6  ;;  %v3593_v41 = vpop.eup %3592 }
 0x817   : > { %v3106_v17 = vmul.f32 %v3104_v22, %v5711_v24  ;;  %v3107_v39 = vadd.f32 -0.28449672, %v3105_v58  ;;  %v5766_v10 = vmul.f32 %v2774_v48, %v2720_v55  ;;  %v2453_v38 = vmul.f32 %v2452_v56, %v5753_v29  ;;  %v5800_v22 = vld [vmem:[#allocation7 + $0x248] sm:$0xff] }
 0x818   : > { %v2422_v13 = vadd.f32 %v2421_v15, %v2414_v12  ;;  %v2727_v27 = vsel %vm2725_vm10, -1.0, %v3862_v59  ;;  %v2771_v11 = vsub.f32 1.0, %v2769_v14  ;;  %v2461_v49 = vmul.f32 %v2460_v4, %v5762_v46 }
 0x819   : > { %v3108_v43 = vadd.f32 -0.28449672, %v3106_v17  ;;  %v3109_v37 = vmul.f32 %v3107_v39, %v5706_v36  ;;  %v2476_v62 = vrot.slane %v5750_v50, %v5479_v32  ;;  %v3075_v12 = vmul.f32 0.5, %v5664_v31 }
 0x81a   : > { %v2430_v28 = vadd.f32 %v2429_v26, %v2422_v13  ;;  %v2469_v60 = vmul.f32 %v2468_v25, %v5769_v34  ;;  %v2484_v45 = vrot.slane %v5750_v50, %v5481_v23  ;;  %v2782_v13 = vrot.slane %v5766_v10, %v5479_v32 }
 0x81b   : > { %v3110_v35 = vmul.f32 %v3108_v43, %v5711_v24  ;;  %v3111_v15 = vadd.f32 0.2548296, %v3109_v37  ;;  %v2789_v26 = vrot.slane %v5766_v10, %v5481_v23  ;;  %v2773_v31 = vmul.f32 %v2771_v11, %v2727_v27 }
 0x81c   : > { %v2438_v42 = vadd.f32 %v2437_v63, %v2430_v28  ;;  %v3081_v55 = vsel %vm3079_vm11, -1.0, %v3862_v59  ;;  %v2492_v63 = vrot.slane %v5750_v50, %v5484_v30  ;;  %v2477_v48 = vmul.f32 %v2476_v62, %v5782_v1 }
 0x81d   : > { %v3112_v8 = vadd.f32 0.2548296, %v3110_v35  ;;  %v3113_v21 = vmul.f32 %v3111_v15, %v5706_v36  ;;  %v2783_v28 = vmul.f32 %v2782_v13, %v5709_v18  ;;  %v2796_v56 = vrot.slane %v5766_v10, %v5484_v30  ;;  %v5822_v15 = vld [vmem:[#allocation7 + $0x258] sm:$0xff] }
 0x81e   : > { %v2446_v61 = vadd.f32 %v2445_v44, %v2438_v42  ;;  %v2485_v36 = vmul.f32 %v2484_v45, %v5786_v9  ;;  %v2500_v58 = vrot.slane %v5750_v50, %v5492_v0  ;;  %v5809_v42 = vld [vmem:[#allocation7 + $0x250] sm:$0xff]  ;;  %v2790_v4 = vmul.f32 %v2789_v26, %v5720_v40 }
 0x81f   : > { %v3114_v2 = vmul.f32 %v3112_v8, %v5711_v24  ;;  %v3123_v14 = vmul.f32 %v3593_v41, %v3113_v21  ;;  %v2784_v44 = vadd.f32 %v2783_v28, %v5718_v7  ;;  %v2803_v39 = vrot.slane %v5766_v10, %v5492_v0  ;;  %v5826_v8 = vld [vmem:[#allocation7 + $0x260] sm:$0xff] }
 0x820   : > { %v2454_v5 = vadd.f32 %v2453_v38, %v2446_v61  ;;  %v2775_v25 = vadd.f32 1.0, %v2773_v31  ;;  %v2493_v24 = vmul.f32 %v2492_v63, %v5800_v22  ;;  %v2508_v61 = vrot.slane %v5750_v50, %v5504_v16  ;;  %v3595_v38 = vpop.eup %3594 }
 0x821   : > { %v3125_v43 = vsub.f32 1.0, %v3123_v14  ;;  %v2791_v11 = vadd.f32 %v2790_v4, %v2784_v44  ;;  %v2797_v37 = vmul.f32 %v2796_v56, %v5729_v53  ;;  %v2810_v35 = vrot.slane %v5766_v10, %v5504_v16 }
 0x822   : > { %v2462_v19 = vadd.f32 %v2461_v49, %v2454_v5  ;;  %v3124_v5 = vmul.f32 %v3595_v38, %v3114_v2  ;;  %v2501_v62 = vmul.f32 %v2500_v58, %v5809_v42  ;;  %v2804_v13 = vmul.f32 %v2803_v39, %v5735_v47 }
 0x823   : > { %v3127_v49 = vmul.f32 %v3125_v43, %v3081_v55  ;;  %v2817_v26 = vrot.slane %v5766_v10, %v5506_v52  ;;  %v5832_v41 = vmul.f32 %v2775_v25, %v5760_v20  ;;  %v2524_v55 = vrot.slane %v5750_v50, %v5515_v33 }
 0x824   : > { %v2470_v51 = vadd.f32 %v2469_v60, %v2462_v19  ;;  %v2516_v60 = vrot.slane %v5750_v50, %v5506_v52  ;;  %v2798_v19 = vadd.f32 %v2797_v37, %v2791_v11  ;;  %v2824_v21 = vrot.slane %v5766_v10, %v5515_v33 }
 0x825   : > { %v3129_v31 = vadd.f32 1.0, %v3127_v49  ;;  %v2811_v56 = vmul.f32 %v2810_v35, %v5746_v54  ;;  %v3126_v2 = vsub.f32 1.0, %v3124_v5  ;;  %v2818_v4 = vmul.f32 %v2817_v26, %v5753_v29 }
 0x826   : > { %v2478_v17 = vadd.f32 %v2477_v48, %v2470_v51  ;;  %v2509_v51 = vmul.f32 %v2508_v61, %v5822_v15  ;;  %v5839_v48 = vld [vmem:[#allocation7 + $0x268] sm:$0xff]  ;;  %v2805_v28 = vadd.f32 %v2804_v13, %v2798_v19  ;;  %v2517_v20 = vmul.f32 %v2516_v60, %v5826_v8 }
 0x827   : > { %v5842_v14 = vmul.f32 %v3129_v31, %v3075_v12  ;;  %v2831_v39 = vrot.slane %v5766_v10, %v5517_v6  ;;  %v3082_v25 = vsel %vm3080_vm12, -1.0, %v3862_v59  ;;  %v2525_v12 = vmul.f32 %v2524_v55, %v5839_v48 }
 0x828   : > { %v2486_v27 = vadd.f32 %v2485_v36, %v2478_v17  ;;  %v2532_v36 = vrot.slane %v5750_v50, %v5517_v6  ;;  %v5847_v17 = vld [vmem:[#allocation7 + $0x270] sm:$0xff]  ;;  %v2812_v44 = vadd.f32 %v2811_v56, %v2805_v28  ;;  %v2825_v43 = vmul.f32 %v2824_v21, %v5762_v46 }
 0x829   : > { %v3137_v50 = vrot.slane %v5842_v14, %v5479_v32  ;;  %v2838_v38 = vrot.slane %v5832_v41, %v5479_v32  ;;  %v3144_v10 = vrot.slane %v5842_v14, %v5481_v23  ;;  %v3151_v11 = vrot.slane %v5842_v14, %v5484_v30 }
 0x82a   : > { %v2494_v45 = vadd.f32 %v2493_v24, %v2486_v27  ;;  %v2819_v61 = vadd.f32 %v2818_v4, %v2812_v44  ;;  %v3128_v27 = vmul.f32 %v3126_v2, %v3082_v25  ;;  %v2533_v3 = vmul.f32 %v2532_v36, %v5847_v17 }
 0x82b   : > { %v3138_v59 = vmul.f32 %v3137_v50, %v5709_v18  ;;  %v2832_v5 = vmul.f32 %v2831_v39, %v5769_v34  ;;  %v2845_v49 = vrot.slane %v5832_v41, %v5481_v23  ;;  %v3158_v19 = vrot.slane %v5842_v14, %v5492_v0 }
 0x82c   : > { %v2502_v63 = vadd.f32 %v2501_v62, %v2494_v45  ;;  %v2826_v35 = vadd.f32 %v2825_v43, %v2819_v61  ;;  %v2535_v62 = vld [vmem:[%s4059_s30] sm:$0xff]  ;;  %v3145_v45 = vmul.f32 %v3144_v10, %v5720_v40  ;;  %v2839_v26 = vmul.f32 %v2838_v38, %v5782_v1 }
 0x82d   : > { %v3139_v60 = vadd.f32 %v3138_v59, %v5718_v7  ;;  %v2852_v31 = vrot.slane %v5832_v41, %v5484_v30  ;;  %v3130_v55 = vadd.f32 1.0, %v3128_v27  ;;  %v3165_v7 = vrot.slane %v5842_v14, %v5504_v16 }
 0x82e   : > { %v2510_v58 = vadd.f32 %v2509_v51, %v2502_v63  ;;  %v2833_v18 = vadd.f32 %v2832_v5, %v2826_v35  ;;  %v3152_v63 = vmul.f32 %v3151_v11, %v5729_v53  ;;  %v2846_v28 = vmul.f32 %v2845_v49, %v5786_v9 }
 0x82f   : > { %v3146_v21 = vadd.f32 %v3145_v45, %v3139_v60  ;;  %v2859_v56 = vrot.slane %v5832_v41, %v5492_v0  ;;  %v3076_v2 = vmul.f32 0.5, %v5666_v57  ;;  %v3159_v36 = vmul.f32 %v3158_v19, %v5735_v47 }
 0x830   : > { %v2518_v24 = vadd.f32 %v2517_v20, %v2510_v58  ;;  %v2840_v40 = vadd.f32 %v2839_v26, %v2833_v18  ;;  %v3172_v58 = vrot.slane %v5842_v14, %v5506_v52  ;;  %v2853_v44 = vmul.f32 %v2852_v31, %v5800_v22  ;;  %v2890_v18 = vld [vmem:[%s4059_s30 + $0x8] sm:$0xff] }
 0x831   : > { %v3153_v20 = vadd.f32 %v3152_v63, %v3146_v21  ;;  %v2866_v4 = vrot.slane %v5832_v41, %v5504_v16  ;;  %v3132_v39 = vmul.f32 %v3130_v55, %v3076_v2  ;;  %v3166_v57 = vmul.f32 %v3165_v7, %v5746_v54  ;;  %v3245_v2 = vld [vmem:[%s4059_s30 + $0x10] sm:$0xff] }
 0x832   : > { %v2526_v37 = vadd.f32 %v2525_v12, %v2518_v24  ;;  %v2847_v53 = vadd.f32 %v2846_v28, %v2840_v40  ;;  %v3179_v47 = vrot.slane %v5842_v14, %v5515_v33  ;;  %v2860_v43 = vmul.f32 %v2859_v56, %v5809_v42 }
 0x833   : > { %v3160_v25 = vadd.f32 %v3159_v36, %v3153_v20  ;;  %v2873_v50 = vrot.slane %v5832_v41, %v5506_v52  ;;  %v3173_v61 = vmul.f32 %v3172_v58, %v5753_v29  ;;  %v3186_v38 = vrot.slane %v5842_v14, %v5517_v6 }
 0x834   : > { %v2534_v13 = vadd.f32 %v2533_v3, %v2526_v37  ;;  %v2854_v12 = vadd.f32 %v2853_v44, %v2847_v53  ;;  %v2867_v27 = vmul.f32 %v2866_v4, %v5822_v15  ;;  %v2880_v54 = vrot.slane %v5832_v41, %v5515_v33 }
 0x835   : > { %v3167_v24 = vadd.f32 %v3166_v57, %v3160_v25  ;;  %v3180_v59 = vmul.f32 %v3179_v47, %v5762_v46  ;;  %v3193_v11 = vrot.slane %v3132_v39, %v5479_v32  ;;  %v2874_v35 = vmul.f32 %v2873_v50, %v5826_v8 }
 0x836   : > { %v2536_v51 = vadd.f32 %v2535_v62, %v2534_v13  ;;  %v2861_v10 = vadd.f32 %v2860_v43, %v2854_v12  ;;  %v2887_v29 = vrot.slane %v5832_v41, %v5517_v6  ;;  %v3187_v14 = vmul.f32 %v3186_v38, %v5769_v34 }
 0x837   : > { %v3174_v3 = vadd.f32 %v3173_v61, %v3167_v24  ;;  %v3200_v49 = vrot.slane %v3132_v39, %v5481_v23  ;;  %v2881_v60 = vmul.f32 %v2880_v54, %v5839_v48  ;;  %v3194_v19 = vmul.f32 %v3193_v11, %v5782_v1 }
 0x838   : > { %2537 = vst [vmem:[%s5890_s10] sm:$0xff] %v2536_v51  ;;  %v2868_v37 = vadd.f32 %v2867_v27, %v2861_v10  ;;  %v3207_v32 = vrot.slane %v3132_v39, %v5484_v30  ;;  %v2888_v13 = vmul.f32 %v2887_v29, %v5847_v17  ;;  %v3214_v34 = vrot.slane %v3132_v39, %v5492_v0 }
 0x839   : > { %v3181_v5 = vadd.f32 %v3180_v59, %v3174_v3  ;;  %v3201_v41 = vmul.f32 %v3200_v49, %v5786_v9  ;;  %v3221_v21 = vrot.slane %v3132_v39, %v5504_v16  ;;  %v3228_v7 = vrot.slane %v3132_v39, %v5506_v52 }
 0x83a   : > { %v2875_v62 = vadd.f32 %v2874_v35, %v2868_v37  ;;  %v3208_v55 = vmul.f32 %v3207_v32, %v5800_v22  ;;  %v3215_v30 = vmul.f32 %v3214_v34, %v5809_v42  ;;  %v3235_v0 = vrot.slane %v3132_v39, %v5515_v33 }
 0x83b   : > { %v3188_v45 = vadd.f32 %v3187_v14, %v3181_v5  ;;  %v3222_v9 = vmul.f32 %v3221_v21, %v5822_v15  ;;  %v3229_v16 = vmul.f32 %v3228_v7, %v5826_v8  ;;  %v3242_v40 = vrot.slane %v3132_v39, %v5517_v6 }
 0x83c   : > { %v2882_v46 = vadd.f32 %v2881_v60, %v2875_v62  ;;  %v3236_v56 = vmul.f32 %v3235_v0, %v5839_v48 }
 0x83d   : > { %v3195_v26 = vadd.f32 %v3194_v19, %v3188_v45  ;;  %v3243_v52 = vmul.f32 %v3242_v40, %v5847_v17 }
 0x83e   : > { %v2889_v31 = vadd.f32 %v2888_v13, %v2882_v46 }
 0x83f   : > { %v3202_v23 = vadd.f32 %v3201_v41, %v3195_v26 }
 0x840   : > { %v2891_v1 = vadd.f32 %v2890_v18, %v2889_v31 }
 0x841   : > { %v3209_v63 = vadd.f32 %v3208_v55, %v3202_v23 }
 0x842   : > { %2892 = vst [vmem:[%s5890_s10 + $0x8] sm:$0xff] %v2891_v1 }
 0x843   : > { %v3216_v51 = vadd.f32 %v3215_v30, %v3209_v63 }
 0x845   : > { %v3223_v22 = vadd.f32 %v3222_v9, %v3216_v51 }
 0x847   : > { %v3230_v28 = vadd.f32 %v3229_v16, %v3223_v22 }
 0x849   : > { %v3237_v42 = vadd.f32 %v3236_v56, %v3230_v28 }
 0x84b   : > { %v3244_v15 = vadd.f32 %v3243_v52, %v3237_v42 }
 0x84d   : > { %v3246_v20 = vadd.f32 %v3245_v2, %v3244_v15 }
 0x84f   : > { %3247 = vst [vmem:[%s5890_s10 + $0x10] sm:$0xff] %v3246_v20 }
 0x850   : > { %3725 = shalt.err (!%p3722_p8)
}
 0x851   : > { %s3726_s30 = scalar_lea.hbm %s3261_s27, 384  ;;  %s3730_s13 = scalar_lea.hbm %s5975_s4, 768 }
 0x852   : > { %p3727_p3 = scmp.ne.s32.totalorder %s3261_s27, %s3726_s30  ;;  %p3731_p10 = scmp.lt.s32.totalorder %s3261_s27, %s5975_s4 }
 0x853   : > { %p3732_p1 = scmp.lt.s32.totalorder %s3730_s13, %s3726_s30 }
 0x854   : > { %p3728_p0 = pnand %p3727_p3, %p6274_p12 }
 0x855   : > { %p3733_p2 = por %p3732_p1, %p3731_p10 }
 0x856   : > { %p3729_p11 = pneg %p3728_p0 }
 0x858   : > { %p3734_p6 = pnand %p3733_p2, %p3729_p11 }
 0x85a   : > { %3737 = shalt.err (!%p3734_p6)
}
 0x85b   : > { %3407 = dma.vmem_to_hbm [thread:$0]  (%p6274_p12), %s3264_s21, 384, %s3261_s27, %s3249_s28  }
 0x85c PF: > { %s3275_s8 = sand.u32 1, %s3776_s15   ;;  %p6275_p7 = scmp.ne.s32.totalorder %s6078_s22, 0 }
 0x85d   : > { %p6276_p9 = scmp.ge.s32.totalorder %s3788_s18, 2  ;;  %s3276_s10 = scalar_lea.sflag [#allocation4], %s3275_s8 }
 0x85f   : > { %p3424_p13 = pnand %p6276_p9, %p6275_p7 }
 0x861   : > { %p3425_p5 = pneg %p3424_p13 }
 0x863   : > { %3771 = dma.done.wait (%p3425_p5), %s3276_s10, 384  }
 0x864   : > { %3773 = vsyncadd (%p3425_p5), %s3276_s10, 4294966912  ;;  %p21_p4 = scmp.ge.s32.totalorder %s3961_s11, 4   ;;  %s6277_s15 = smov %s3780_s16 }
 0x865   : > { %s6278_s16 = smov %s3784_s17  ;;  %s6279_s17 = smov %s3977_s20 }
 0x866   : > { %s6280_s18 = smov %s3961_s11  ;;  %23 = sbr.rel (!%p21_p4) target bundleno = 8 (0x8), region = 188 }
 0x86b   :  { %3281 = vsyncpa [#allocation3], 1 }
 0x86c   :  { %3283 = vsyncpa [#allocation3 + $0x1], 1 }
 0x86d   :  { %3284 = vsyncpa [#allocation6], 1 }
 0x86e   :  { %3286 = vsyncpa [#allocation6 + $0x1], 1 }
 0x86f   :  { %3287 = vsyncpa [#allocation9], 1 }
 0x870   :  { %3288 = vsyncpa [#allocation4], 1 }
 0x871   :  { %3290 = vsyncpa [#allocation4 + $0x1], 1 }

</bundles_post_ra>
